<compile_context>
chip_gen: v6e
topology: v6e:2x2x1
jax: 0.10.0
libtpu: 0.0.40
codegen_flags: <defaults>
</compile_context>

<pallas_src>
import functools

import jax
import jax.numpy as jnp
from jax.experimental import pallas as pl
from jax.experimental.pallas import tpu as pltpu

LN_EPS = 1e-5  # torch.nn.LayerNorm default


# ----------------------------- kernel helpers ------------------------------

def _layernorm(v, w, b):
    # v: (TM, C) f32, w/b: (1, C) f32
    mean = jnp.mean(v, axis=-1, keepdims=True)
    centered = v - mean
    var = jnp.mean(centered * centered, axis=-1, keepdims=True)
    return centered * jax.lax.rsqrt(var + LN_EPS) * w + b


def _channel_mix(v, first_tok, mk, mk1, mr, mr1, kw, vw, rw):
    # v: (TM, C) f32; rows are whole sequences stacked t-minor / batch-major.
    # time_shift: xx[row] = v[row-1]; rows with t == 0 are zeroed (mask), so
    # the wrap / cross-sequence row never contributes.
    xx = pltpu.roll(v, shift=1, axis=0)
    xx = jnp.where(first_tok, jnp.float32(0.0), xx)

    xk = (v * mk + xx * mk1).astype(jnp.bfloat16)
    xr = (v * mr + xx * mr1).astype(jnp.bfloat16)

    k = jnp.dot(xk, kw, preferred_element_type=jnp.float32)
    k = jnp.square(jnp.maximum(k, 0.0)).astype(jnp.bfloat16)      # relu(k)^2
    kv = jnp.dot(k, vw, preferred_element_type=jnp.float32)
    r = jax.nn.sigmoid(jnp.dot(xr, rw, preferred_element_type=jnp.float32))
    return r * kv


def rwkv_ffn_pre_block_kernel(
    x_ref,
    ln0_w, ln0_b, ln1_w, ln1_b, ln2_w, ln2_b,
    pre_mk, pre_mk1, pre_mr, pre_mr1, pre_kw, pre_vw, pre_rw,
    ffn_mk, ffn_mk1, ffn_mr, ffn_mr1, ffn_kw, ffn_vw, ffn_rw,
    o_ref, *, seq_len,
):
    x = x_ref[...]                                            # (TM, C) f32

    # Per-sequence first-token mask, shape (TM, 1), broadcast over lanes.
    row = jax.lax.broadcasted_iota(jnp.int32, (x.shape[0], 1), 0)
    first_tok = (row % seq_len) == 0

    # layer_id == 0 -> ln0 first
    x0 = _layernorm(x, ln0_w[...], ln0_b[...])

    # "_attention" of RWKVFfnPreBlock == ffn_pre(ln1(x))
    att = _channel_mix(
        _layernorm(x0, ln1_w[...], ln1_b[...]), first_tok,
        pre_mk[...], pre_mk1[...], pre_mr[...], pre_mr1[...],
        pre_kw[...], pre_vw[...], pre_rw[...],
    )
    x1 = x0 + att

    ffn_out = _channel_mix(
        _layernorm(x1, ln2_w[...], ln2_b[...]), first_tok,
        ffn_mk[...], ffn_mk1[...], ffn_mr[...], ffn_mr1[...],
        ffn_kw[...], ffn_vw[...], ffn_rw[...],
    )
    o_ref[...] = x1 + ffn_out


# ------------------------------ host wrapper -------------------------------

@functools.partial(jax.jit, static_argnames=("target_rows",))
def rwkv_ffn_pre_block(x, p, *, target_rows=256):
    B, T, C = x.shape
    H = p["pre_kw"].shape[1]
    rows = B * T

    # Pack whole sequences per tile so the MXU M-dim is >= target_rows when
    # possible; the tile row count must be a multiple of T and divide B*T.
    seqs_per_tile = max(1, min(B, -(-target_rows // T)))
    while B % seqs_per_tile != 0:
        seqs_per_tile -= 1
    TM = seqs_per_tile * T
    grid = (rows // TM,)

    x2 = x.reshape(rows, C)

    vec = pl.BlockSpec((1, C), lambda i: (0, 0))

    def full(shape):
        return pl.BlockSpec(shape, lambda i: (0, 0))

    in_specs = [
        pl.BlockSpec((TM, C), lambda i: (i, 0)),                     # x slab
        vec, vec, vec, vec, vec, vec,                                # ln0/1/2
        vec, vec, vec, vec,                                          # pre mix
        full((C, H)), full((H, C)), full((C, C)),                    # pre W
        vec, vec, vec, vec,                                          # ffn mix
        full((C, H)), full((H, C)), full((C, C)),                    # ffn W
    ]
    out_spec = pl.BlockSpec((TM, C), lambda i: (i, 0))

    out2 = pl.pallas_call(
        functools.partial(rwkv_ffn_pre_block_kernel, seq_len=T),
        out_shape=jax.ShapeDtypeStruct((rows, C), jnp.float32),
        grid=grid,
        in_specs=in_specs,
        out_specs=out_spec,
        compiler_params=pltpu.CompilerParams(
            dimension_semantics=("parallel",),
            vmem_limit_bytes=48 * 1024 * 1024,
        ),
    )(
        x2,
        p["ln0_w"], p["ln0_b"], p["ln1_w"], p["ln1_b"], p["ln2_w"], p["ln2_b"],
        p["pre_mix_k"], p["pre_one_minus_mix_k"],
        p["pre_mix_r"], p["pre_one_minus_mix_r"],
        p["pre_kw"], p["pre_vw"], p["pre_rw"],
        p["ffn_mix_k"], p["ffn_one_minus_mix_k"],
        p["ffn_mix_r"], p["ffn_one_minus_mix_r"],
        p["ffn_kw"], p["ffn_vw"], p["ffn_rw"],
    )
    return out2.reshape(B, T, C)


# ------------------------- deterministic parameters ------------------------

def make_params(key, emb, num_layers, layer_id=0):
    hidden = 4 * emb
    ks = jax.random.split(key, 6)

    def lin(k, fan_in, fan_out):
        bound = 1.0 / jnp.sqrt(fan_in)
        w = jax.random.uniform(k, (fan_in, fan_out), jnp.float32, -bound, bound)
        return w.astype(jnp.bfloat16)          # bf16 weights for the MXU

    def mix(lid):
        ratio = 1.0 - lid / num_layers
        i = jnp.arange(emb, dtype=jnp.float32) / emb
        return jnp.power(i, ratio).reshape(1, emb)

    pre_mk, pre_mr = mix(0), mix(0)                     # ffn_pre has layer_id=0
    ffn_mk, ffn_mr = mix(layer_id), mix(layer_id)

    return {
        "ln0_w": jnp.ones((1, emb), jnp.float32),
        "ln0_b": jnp.zeros((1, emb), jnp.float32),
        "ln1_w": jnp.ones((1, emb), jnp.float32),
        "ln1_b": jnp.zeros((1, emb), jnp.float32),
        "ln2_w": jnp.ones((1, emb), jnp.float32),
        "ln2_b": jnp.zeros((1, emb), jnp.float32),
        "pre_mix_k": pre_mk, "pre_one_minus_mix_k": 1.0 - pre_mk,
        "pre_mix_r": pre_mr, "pre_one_minus_mix_r": 1.0 - pre_mr,
        "pre_kw": lin(ks[0], emb, hidden),
        "pre_vw": lin(ks[1], hidden, emb),
        "pre_rw": lin(ks[2], emb, emb),
        "ffn_mix_k": ffn_mk, "ffn_one_minus_mix_k": 1.0 - ffn_mk,
        "ffn_mix_r": ffn_mr, "ffn_one_minus_mix_r": 1.0 - ffn_mr,
        "ffn_kw": lin(ks[3], emb, hidden),
        "ffn_vw": lin(ks[4], hidden, emb),
        "ffn_rw": lin(ks[5], emb, emb),
    }


# ------------------------------ JAX reference ------------------------------

def _ref_layernorm(v, w, b):
    mean = jnp.mean(v, axis=-1, keepdims=True)
    centered = v - mean
    var = jnp.mean(centered * centered, axis=-1, keepdims=True)
    return centered * jax.lax.rsqrt(var + LN_EPS) * w + b


def _ref_channel_mix(v, mk, mr, kw, vw, rw):
    Bn, Tn, Cn = v.shape
    xx = jnp.concatenate([jnp.zeros((Bn, 1, Cn), v.dtype), v[:, :-1]], axis=1)
    xk = (v * mk + xx * (1.0 - mk)).astype(jnp.bfloat16)
    xr = (v * mr + xx * (1.0 - mr)).astype(jnp.bfloat16)
    k = jnp.einsum("btc,ch->bth", xk, kw, preferred_element_type=jnp.float32)
    k = jnp.square(jnp.maximum(k, 0.0)).astype(jnp.bfloat16)
    kv = jnp.einsum("bth,hc->btc", k, vw, preferred_element_type=jnp.float32)
    r = jax.nn.sigmoid(
        jnp.einsum("btc,cd->btd", xr, rw, preferred_element_type=jnp.float32))
    return r * kv


def reference(x, p):
    x0 = _ref_layernorm(x, p["ln0_w"], p["ln0_b"])
    att = _ref_channel_mix(
        _ref_layernorm(x0, p["ln1_w"], p["ln1_b"]),
        p["pre_mix_k"], p["pre_mix_r"], p["pre_kw"], p["pre_vw"], p["pre_rw"])
    x1 = x0 + att
    ffn = _ref_channel_mix(
        _ref_layernorm(x1, p["ln2_w"], p["ln2_b"]),
        p["ffn_mix_k"], p["ffn_mix_r"], p["ffn_kw"], p["ffn_vw"], p["ffn_rw"])
    return x1 + ffn


# ----------------------------------- main -----------------------------------

if __name__ == "__main__":
    # Lane-dense embedding (C multiple of 128), >= 256 matmul rows per tile.
    B, T, C = 4, 128, 128        # batch, seq, embedding_size (hidden = 4*C = 512)
    NUM_LAYERS = 4
    LAYER_ID = 0                 # ln0 branch exercised

    key = jax.random.PRNGKey(0)
    kx, kp = jax.random.split(key)
    x = jax.random.normal(kx, (B, T, C), jnp.float32)
    params = make_params(kp, C, NUM_LAYERS, LAYER_ID)

    out = jax.block_until_ready(rwkv_ffn_pre_block(x, params))
    ref = reference(x, params)

    assert out.shape == (B, T, C)
    assert jnp.allclose(out, ref, rtol=1e-2, atol=1e-2), "mismatch vs reference"

    print("KERNEL_OK")
</pallas_src>

<mosaic_0001>
module attributes {stable_mosaic.version = 11 : i64} {
  func.func @rwkv_ffn_pre_block_kernel(%arg0: i32, %arg1: memref<256x128xf32, #tpu.memory_space<vmem>>, %arg2: memref<1x128xf32, #tpu.memory_space<vmem>>, %arg3: memref<1x128xf32, #tpu.memory_space<vmem>>, %arg4: memref<1x128xf32, #tpu.memory_space<vmem>>, %arg5: memref<1x128xf32, #tpu.memory_space<vmem>>, %arg6: memref<1x128xf32, #tpu.memory_space<vmem>>, %arg7: memref<1x128xf32, #tpu.memory_space<vmem>>, %arg8: memref<1x128xf32, #tpu.memory_space<vmem>>, %arg9: memref<1x128xf32, #tpu.memory_space<vmem>>, %arg10: memref<1x128xf32, #tpu.memory_space<vmem>>, %arg11: memref<1x128xf32, #tpu.memory_space<vmem>>, %arg12: memref<128x512xbf16, #tpu.memory_space<vmem>>, %arg13: memref<512x128xbf16, #tpu.memory_space<vmem>>, %arg14: memref<128x128xbf16, #tpu.memory_space<vmem>>, %arg15: memref<1x128xf32, #tpu.memory_space<vmem>>, %arg16: memref<1x128xf32, #tpu.memory_space<vmem>>, %arg17: memref<1x128xf32, #tpu.memory_space<vmem>>, %arg18: memref<1x128xf32, #tpu.memory_space<vmem>>, %arg19: memref<128x512xbf16, #tpu.memory_space<vmem>>, %arg20: memref<512x128xbf16, #tpu.memory_space<vmem>>, %arg21: memref<128x128xbf16, #tpu.memory_space<vmem>>, %arg22: memref<256x128xf32, #tpu.memory_space<vmem>>) attributes {dimension_semantics = [#tpu.dimension_semantics<parallel>], iteration_bounds = array<i64: 2>, scalar_prefetch = 0 : i64, scratch_operands = 0 : i64, tpu.core_type = #tpu.core_type<tc>, window_params = [{transform_indices = @transform_0, window_bounds = array<i64: 256, 128>}, {pipeline_mode = #tpu.pipeline_mode<synchronous>, transform_indices = @transform_1, window_bounds = array<i64: 1, 128>}, {pipeline_mode = #tpu.pipeline_mode<synchronous>, transform_indices = @transform_2, window_bounds = array<i64: 1, 128>}, {pipeline_mode = #tpu.pipeline_mode<synchronous>, transform_indices = @transform_3, window_bounds = array<i64: 1, 128>}, {pipeline_mode = #tpu.pipeline_mode<synchronous>, transform_indices = @transform_4, window_bounds = array<i64: 1, 128>}, {pipeline_mode = #tpu.pipeline_mode<synchronous>, transform_indices = @transform_5, window_bounds = array<i64: 1, 128>}, {pipeline_mode = #tpu.pipeline_mode<synchronous>, transform_indices = @transform_6, window_bounds = array<i64: 1, 128>}, {pipeline_mode = #tpu.pipeline_mode<synchronous>, transform_indices = @transform_7, window_bounds = array<i64: 1, 128>}, {pipeline_mode = #tpu.pipeline_mode<synchronous>, transform_indices = @transform_8, window_bounds = array<i64: 1, 128>}, {pipeline_mode = #tpu.pipeline_mode<synchronous>, transform_indices = @transform_9, window_bounds = array<i64: 1, 128>}, {pipeline_mode = #tpu.pipeline_mode<synchronous>, transform_indices = @transform_10, window_bounds = array<i64: 1, 128>}, {pipeline_mode = #tpu.pipeline_mode<synchronous>, transform_indices = @transform_11, window_bounds = array<i64: 128, 512>}, {pipeline_mode = #tpu.pipeline_mode<synchronous>, transform_indices = @transform_12, window_bounds = array<i64: 512, 128>}, {pipeline_mode = #tpu.pipeline_mode<synchronous>, transform_indices = @transform_13, window_bounds = array<i64: 128, 128>}, {pipeline_mode = #tpu.pipeline_mode<synchronous>, transform_indices = @transform_14, window_bounds = array<i64: 1, 128>}, {pipeline_mode = #tpu.pipeline_mode<synchronous>, transform_indices = @transform_15, window_bounds = array<i64: 1, 128>}, {pipeline_mode = #tpu.pipeline_mode<synchronous>, transform_indices = @transform_16, window_bounds = array<i64: 1, 128>}, {pipeline_mode = #tpu.pipeline_mode<synchronous>, transform_indices = @transform_17, window_bounds = array<i64: 1, 128>}, {pipeline_mode = #tpu.pipeline_mode<synchronous>, transform_indices = @transform_18, window_bounds = array<i64: 128, 512>}, {pipeline_mode = #tpu.pipeline_mode<synchronous>, transform_indices = @transform_19, window_bounds = array<i64: 512, 128>}, {pipeline_mode = #tpu.pipeline_mode<synchronous>, transform_indices = @transform_20, window_bounds = array<i64: 128, 128>}, {transform_indices = @transform_21, window_bounds = array<i64: 256, 128>}]} {
    %c0 = arith.constant 0 : index
    %c0_0 = arith.constant 0 : index
    %0 = vector.load %arg1[%c0, %c0_0] : memref<256x128xf32, #tpu.memory_space<vmem>>, vector<256x128xf32>
    %1 = tpu.iota {dimensions = array<i32: 0>} : vector<256x1xi32>
    %c128_i32 = arith.constant 128 : i32
    %c0_i32 = arith.constant 0 : i32
    %2 = arith.cmpi eq, %c128_i32, %c0_i32 : i32
    %c1_i32 = arith.constant 1 : i32
    %3 = arith.select %2, %c1_i32, %c128_i32 : i32
    %4 = vector.broadcast %3 : i32 to vector<256x1xi32>
    %5 = arith.remsi %1, %4 : vector<256x1xi32>
    %c0_i32_1 = arith.constant 0 : i32
    %6 = vector.broadcast %c0_i32_1 : i32 to vector<256x1xi32>
    %7 = arith.cmpi ne, %5, %6 : vector<256x1xi32>
    %c0_i32_2 = arith.constant 0 : i32
    %8 = vector.broadcast %c0_i32_2 : i32 to vector<256x1xi32>
    %9 = arith.cmpi slt, %5, %8 : vector<256x1xi32>
    %c0_i32_3 = arith.constant 0 : i32
    %10 = arith.cmpi slt, %3, %c0_i32_3 : i32
    %11 = vector.broadcast %10 : i1 to vector<256x1xi1>
    %12 = vector.broadcast %11 : vector<256x1xi1> to vector<256x1xi1>
    %13 = arith.xori %9, %12 : vector<256x1xi1>
    %14 = arith.andi %13, %7 : vector<256x1xi1>
    %15 = vector.broadcast %3 : i32 to vector<256x1xi32>
    %16 = arith.addi %5, %15 : vector<256x1xi32>
    %17 = arith.select %14, %16, %5 : vector<256x1xi1>, vector<256x1xi32>
    %c0_i32_4 = arith.constant 0 : i32
    %18 = vector.broadcast %c0_i32_4 : i32 to vector<256x1xi32>
    %19 = arith.cmpi eq, %17, %18 : vector<256x1xi32>
    %c0_5 = arith.constant 0 : index
    %c0_6 = arith.constant 0 : index
    %20 = vector.load %arg2[%c0_5, %c0_6] : memref<1x128xf32, #tpu.memory_space<vmem>>, vector<1x128xf32>
    %c0_7 = arith.constant 0 : index
    %c0_8 = arith.constant 0 : index
    %21 = vector.load %arg3[%c0_7, %c0_8] : memref<1x128xf32, #tpu.memory_space<vmem>>, vector<1x128xf32>
    %cst = arith.constant dense<0.000000e+00> : vector<256xf32>
    %22 = vector.multi_reduction <add>, %0, %cst [1] : vector<256x128xf32> to vector<256xf32>
    %23 = vector.shape_cast %22 : vector<256xf32> to vector<256x1xf32>
    %cst_9 = arith.constant 1.280000e+02 : f32
    %24 = vector.broadcast %cst_9 : f32 to vector<256x1xf32>
    %25 = arith.divf %23, %24 : vector<256x1xf32>
    %26 = vector.broadcast %25 : vector<256x1xf32> to vector<256x128xf32>
    %27 = arith.subf %0, %26 : vector<256x128xf32>
    %28 = arith.mulf %27, %27 : vector<256x128xf32>
    %cst_10 = arith.constant dense<0.000000e+00> : vector<256xf32>
    %29 = vector.multi_reduction <add>, %28, %cst_10 [1] : vector<256x128xf32> to vector<256xf32>
    %30 = vector.shape_cast %29 : vector<256xf32> to vector<256x1xf32>
    %cst_11 = arith.constant 1.280000e+02 : f32
    %31 = vector.broadcast %cst_11 : f32 to vector<256x1xf32>
    %32 = arith.divf %30, %31 : vector<256x1xf32>
    %cst_12 = arith.constant 9.99999974E-6 : f32
    %33 = vector.broadcast %cst_12 : f32 to vector<256x1xf32>
    %34 = arith.addf %32, %33 : vector<256x1xf32>
    %35 = math.rsqrt %34 : vector<256x1xf32>
    %36 = vector.broadcast %35 : vector<256x1xf32> to vector<256x128xf32>
    %37 = arith.mulf %27, %36 : vector<256x128xf32>
    %38 = vector.broadcast %20 : vector<1x128xf32> to vector<256x128xf32>
    %39 = arith.mulf %37, %38 : vector<256x128xf32>
    %40 = vector.broadcast %21 : vector<1x128xf32> to vector<256x128xf32>
    %41 = arith.addf %39, %40 : vector<256x128xf32>
    %c0_13 = arith.constant 0 : index
    %c0_14 = arith.constant 0 : index
    %42 = vector.load %arg4[%c0_13, %c0_14] : memref<1x128xf32, #tpu.memory_space<vmem>>, vector<1x128xf32>
    %c0_15 = arith.constant 0 : index
    %c0_16 = arith.constant 0 : index
    %43 = vector.load %arg5[%c0_15, %c0_16] : memref<1x128xf32, #tpu.memory_space<vmem>>, vector<1x128xf32>
    %cst_17 = arith.constant dense<0.000000e+00> : vector<256xf32>
    %44 = vector.multi_reduction <add>, %41, %cst_17 [1] : vector<256x128xf32> to vector<256xf32>
    %45 = vector.shape_cast %44 : vector<256xf32> to vector<256x1xf32>
    %cst_18 = arith.constant 1.280000e+02 : f32
    %46 = vector.broadcast %cst_18 : f32 to vector<256x1xf32>
    %47 = arith.divf %45, %46 : vector<256x1xf32>
    %48 = vector.broadcast %47 : vector<256x1xf32> to vector<256x128xf32>
    %49 = arith.subf %41, %48 : vector<256x128xf32>
    %50 = arith.mulf %49, %49 : vector<256x128xf32>
    %cst_19 = arith.constant dense<0.000000e+00> : vector<256xf32>
    %51 = vector.multi_reduction <add>, %50, %cst_19 [1] : vector<256x128xf32> to vector<256xf32>
    %52 = vector.shape_cast %51 : vector<256xf32> to vector<256x1xf32>
    %cst_20 = arith.constant 1.280000e+02 : f32
    %53 = vector.broadcast %cst_20 : f32 to vector<256x1xf32>
    %54 = arith.divf %52, %53 : vector<256x1xf32>
    %cst_21 = arith.constant 9.99999974E-6 : f32
    %55 = vector.broadcast %cst_21 : f32 to vector<256x1xf32>
    %56 = arith.addf %54, %55 : vector<256x1xf32>
    %57 = math.rsqrt %56 : vector<256x1xf32>
    %58 = vector.broadcast %57 : vector<256x1xf32> to vector<256x128xf32>
    %59 = arith.mulf %49, %58 : vector<256x128xf32>
    %60 = vector.broadcast %42 : vector<1x128xf32> to vector<256x128xf32>
    %61 = arith.mulf %59, %60 : vector<256x128xf32>
    %62 = vector.broadcast %43 : vector<1x128xf32> to vector<256x128xf32>
    %63 = arith.addf %61, %62 : vector<256x128xf32>
    %c0_22 = arith.constant 0 : index
    %c0_23 = arith.constant 0 : index
    %64 = vector.load %arg8[%c0_22, %c0_23] : memref<1x128xf32, #tpu.memory_space<vmem>>, vector<1x128xf32>
    %c0_24 = arith.constant 0 : index
    %c0_25 = arith.constant 0 : index
    %65 = vector.load %arg9[%c0_24, %c0_25] : memref<1x128xf32, #tpu.memory_space<vmem>>, vector<1x128xf32>
    %c0_26 = arith.constant 0 : index
    %c0_27 = arith.constant 0 : index
    %66 = vector.load %arg10[%c0_26, %c0_27] : memref<1x128xf32, #tpu.memory_space<vmem>>, vector<1x128xf32>
    %c0_28 = arith.constant 0 : index
    %c0_29 = arith.constant 0 : index
    %67 = vector.load %arg11[%c0_28, %c0_29] : memref<1x128xf32, #tpu.memory_space<vmem>>, vector<1x128xf32>
    %c0_30 = arith.constant 0 : index
    %c0_31 = arith.constant 0 : index
    %68 = vector.load %arg12[%c0_30, %c0_31] : memref<128x512xbf16, #tpu.memory_space<vmem>>, vector<128x512xbf16>
    %c0_32 = arith.constant 0 : index
    %c0_33 = arith.constant 0 : index
    %69 = vector.load %arg13[%c0_32, %c0_33] : memref<512x128xbf16, #tpu.memory_space<vmem>>, vector<512x128xbf16>
    %c0_34 = arith.constant 0 : index
    %c0_35 = arith.constant 0 : index
    %70 = vector.load %arg14[%c0_34, %c0_35] : memref<128x128xbf16, #tpu.memory_space<vmem>>, vector<128x128xbf16>
    %c1_i32_36 = arith.constant 1 : i32
    %71 = tpu.dynamic_rotate %63 by %c1_i32_36 dim 0 : vector<256x128xf32>, i32 -> vector<256x128xf32>
    %cst_37 = arith.constant 0.000000e+00 : f32
    %72 = vector.shape_cast %19 : vector<256x1xi1> to vector<256x1xi1>
    %73 = vector.broadcast %72 : vector<256x1xi1> to vector<256x128xi1>
    %74 = vector.broadcast %cst_37 : f32 to vector<256x128xf32>
    %75 = arith.select %73, %74, %71 : vector<256x128xi1>, vector<256x128xf32>
    %76 = vector.broadcast %64 : vector<1x128xf32> to vector<256x128xf32>
    %77 = arith.mulf %63, %76 : vector<256x128xf32>
    %78 = vector.broadcast %65 : vector<1x128xf32> to vector<256x128xf32>
    %79 = arith.mulf %75, %78 : vector<256x128xf32>
    %80 = arith.addf %77, %79 : vector<256x128xf32>
    %81 = arith.truncf %80 : vector<256x128xf32> to vector<256x128xbf16>
    %82 = vector.broadcast %66 : vector<1x128xf32> to vector<256x128xf32>
    %83 = arith.mulf %63, %82 : vector<256x128xf32>
    %84 = vector.broadcast %67 : vector<1x128xf32> to vector<256x128xf32>
    %85 = arith.mulf %75, %84 : vector<256x128xf32>
    %86 = arith.addf %83, %85 : vector<256x128xf32>
    %87 = arith.truncf %86 : vector<256x128xf32> to vector<256x128xbf16>
    %cst_38 = arith.constant dense<0.000000e+00> : vector<256x512xf32>
    %88 = tpu.matmul %81, %68, %cst_38 {dimension_numbers = #tpu.dot_dimension_numbers<[1], [0], [0], [1], [0, 0, 1, 1], [], []>} : vector<256x128xbf16>, vector<128x512xbf16>, vector<256x512xf32> -> vector<256x512xf32>
    %cst_39 = arith.constant 0.000000e+00 : f32
    %89 = vector.broadcast %cst_39 : f32 to vector<256x512xf32>
    %90 = arith.maximumf %88, %89 : vector<256x512xf32>
    %91 = arith.mulf %90, %90 : vector<256x512xf32>
    %92 = arith.truncf %91 : vector<256x512xf32> to vector<256x512xbf16>
    %cst_40 = arith.constant dense<0.000000e+00> : vector<256x128xf32>
    %93 = tpu.matmul %92, %69, %cst_40 {dimension_numbers = #tpu.dot_dimension_numbers<[1], [0], [0], [1], [0, 0, 1, 1], [], []>} : vector<256x512xbf16>, vector<512x128xbf16>, vector<256x128xf32> -> vector<256x128xf32>
    %cst_41 = arith.constant dense<0.000000e+00> : vector<256x128xf32>
    %94 = tpu.matmul %87, %70, %cst_41 {dimension_numbers = #tpu.dot_dimension_numbers<[1], [0], [0], [1], [0, 0, 1, 1], [], []>} : vector<256x128xbf16>, vector<128x128xbf16>, vector<256x128xf32> -> vector<256x128xf32>
    %95 = arith.negf %94 : vector<256x128xf32>
    %96 = math.exp %95 : vector<256x128xf32>
    %cst_42 = arith.constant 1.000000e+00 : f32
    %97 = vector.broadcast %cst_42 : f32 to vector<256x128xf32>
    %98 = arith.addf %97, %96 : vector<256x128xf32>
    %99 = arith.divf %97, %98 : vector<256x128xf32>
    %100 = arith.mulf %99, %93 : vector<256x128xf32>
    %101 = arith.addf %41, %100 : vector<256x128xf32>
    %c0_43 = arith.constant 0 : index
    %c0_44 = arith.constant 0 : index
    %102 = vector.load %arg6[%c0_43, %c0_44] : memref<1x128xf32, #tpu.memory_space<vmem>>, vector<1x128xf32>
    %c0_45 = arith.constant 0 : index
    %c0_46 = arith.constant 0 : index
    %103 = vector.load %arg7[%c0_45, %c0_46] : memref<1x128xf32, #tpu.memory_space<vmem>>, vector<1x128xf32>
    %cst_47 = arith.constant dense<0.000000e+00> : vector<256xf32>
    %104 = vector.multi_reduction <add>, %101, %cst_47 [1] : vector<256x128xf32> to vector<256xf32>
    %105 = vector.shape_cast %104 : vector<256xf32> to vector<256x1xf32>
    %cst_48 = arith.constant 1.280000e+02 : f32
    %106 = vector.broadcast %cst_48 : f32 to vector<256x1xf32>
    %107 = arith.divf %105, %106 : vector<256x1xf32>
    %108 = vector.broadcast %107 : vector<256x1xf32> to vector<256x128xf32>
    %109 = arith.subf %101, %108 : vector<256x128xf32>
    %110 = arith.mulf %109, %109 : vector<256x128xf32>
    %cst_49 = arith.constant dense<0.000000e+00> : vector<256xf32>
    %111 = vector.multi_reduction <add>, %110, %cst_49 [1] : vector<256x128xf32> to vector<256xf32>
    %112 = vector.shape_cast %111 : vector<256xf32> to vector<256x1xf32>
    %cst_50 = arith.constant 1.280000e+02 : f32
    %113 = vector.broadcast %cst_50 : f32 to vector<256x1xf32>
    %114 = arith.divf %112, %113 : vector<256x1xf32>
    %cst_51 = arith.constant 9.99999974E-6 : f32
    %115 = vector.broadcast %cst_51 : f32 to vector<256x1xf32>
    %116 = arith.addf %114, %115 : vector<256x1xf32>
    %117 = math.rsqrt %116 : vector<256x1xf32>
    %118 = vector.broadcast %117 : vector<256x1xf32> to vector<256x128xf32>
    %119 = arith.mulf %109, %118 : vector<256x128xf32>
    %120 = vector.broadcast %102 : vector<1x128xf32> to vector<256x128xf32>
    %121 = arith.mulf %119, %120 : vector<256x128xf32>
    %122 = vector.broadcast %103 : vector<1x128xf32> to vector<256x128xf32>
    %123 = arith.addf %121, %122 : vector<256x128xf32>
    %c0_52 = arith.constant 0 : index
    %c0_53 = arith.constant 0 : index
    %124 = vector.load %arg15[%c0_52, %c0_53] : memref<1x128xf32, #tpu.memory_space<vmem>>, vector<1x128xf32>
    %c0_54 = arith.constant 0 : index
    %c0_55 = arith.constant 0 : index
    %125 = vector.load %arg16[%c0_54, %c0_55] : memref<1x128xf32, #tpu.memory_space<vmem>>, vector<1x128xf32>
    %c0_56 = arith.constant 0 : index
    %c0_57 = arith.constant 0 : index
    %126 = vector.load %arg17[%c0_56, %c0_57] : memref<1x128xf32, #tpu.memory_space<vmem>>, vector<1x128xf32>
    %c0_58 = arith.constant 0 : index
    %c0_59 = arith.constant 0 : index
    %127 = vector.load %arg18[%c0_58, %c0_59] : memref<1x128xf32, #tpu.memory_space<vmem>>, vector<1x128xf32>
    %c0_60 = arith.constant 0 : index
    %c0_61 = arith.constant 0 : index
    %128 = vector.load %arg19[%c0_60, %c0_61] : memref<128x512xbf16, #tpu.memory_space<vmem>>, vector<128x512xbf16>
    %c0_62 = arith.constant 0 : index
    %c0_63 = arith.constant 0 : index
    %129 = vector.load %arg20[%c0_62, %c0_63] : memref<512x128xbf16, #tpu.memory_space<vmem>>, vector<512x128xbf16>
    %c0_64 = arith.constant 0 : index
    %c0_65 = arith.constant 0 : index
    %130 = vector.load %arg21[%c0_64, %c0_65] : memref<128x128xbf16, #tpu.memory_space<vmem>>, vector<128x128xbf16>
    %c1_i32_66 = arith.constant 1 : i32
    %131 = tpu.dynamic_rotate %123 by %c1_i32_66 dim 0 : vector<256x128xf32>, i32 -> vector<256x128xf32>
    %cst_67 = arith.constant 0.000000e+00 : f32
    %132 = vector.shape_cast %19 : vector<256x1xi1> to vector<256x1xi1>
    %133 = vector.broadcast %132 : vector<256x1xi1> to vector<256x128xi1>
    %134 = vector.broadcast %cst_67 : f32 to vector<256x128xf32>
    %135 = arith.select %133, %134, %131 : vector<256x128xi1>, vector<256x128xf32>
    %136 = vector.broadcast %124 : vector<1x128xf32> to vector<256x128xf32>
    %137 = arith.mulf %123, %136 : vector<256x128xf32>
    %138 = vector.broadcast %125 : vector<1x128xf32> to vector<256x128xf32>
    %139 = arith.mulf %135, %138 : vector<256x128xf32>
    %140 = arith.addf %137, %139 : vector<256x128xf32>
    %141 = arith.truncf %140 : vector<256x128xf32> to vector<256x128xbf16>
    %142 = vector.broadcast %126 : vector<1x128xf32> to vector<256x128xf32>
    %143 = arith.mulf %123, %142 : vector<256x128xf32>
    %144 = vector.broadcast %127 : vector<1x128xf32> to vector<256x128xf32>
    %145 = arith.mulf %135, %144 : vector<256x128xf32>
    %146 = arith.addf %143, %145 : vector<256x128xf32>
    %147 = arith.truncf %146 : vector<256x128xf32> to vector<256x128xbf16>
    %cst_68 = arith.constant dense<0.000000e+00> : vector<256x512xf32>
    %148 = tpu.matmul %141, %128, %cst_68 {dimension_numbers = #tpu.dot_dimension_numbers<[1], [0], [0], [1], [0, 0, 1, 1], [], []>} : vector<256x128xbf16>, vector<128x512xbf16>, vector<256x512xf32> -> vector<256x512xf32>
    %cst_69 = arith.constant 0.000000e+00 : f32
    %149 = vector.broadcast %cst_69 : f32 to vector<256x512xf32>
    %150 = arith.maximumf %148, %149 : vector<256x512xf32>
    %151 = arith.mulf %150, %150 : vector<256x512xf32>
    %152 = arith.truncf %151 : vector<256x512xf32> to vector<256x512xbf16>
    %cst_70 = arith.constant dense<0.000000e+00> : vector<256x128xf32>
    %153 = tpu.matmul %152, %129, %cst_70 {dimension_numbers = #tpu.dot_dimension_numbers<[1], [0], [0], [1], [0, 0, 1, 1], [], []>} : vector<256x512xbf16>, vector<512x128xbf16>, vector<256x128xf32> -> vector<256x128xf32>
    %cst_71 = arith.constant dense<0.000000e+00> : vector<256x128xf32>
    %154 = tpu.matmul %147, %130, %cst_71 {dimension_numbers = #tpu.dot_dimension_numbers<[1], [0], [0], [1], [0, 0, 1, 1], [], []>} : vector<256x128xbf16>, vector<128x128xbf16>, vector<256x128xf32> -> vector<256x128xf32>
    %155 = arith.negf %154 : vector<256x128xf32>
    %156 = math.exp %155 : vector<256x128xf32>
    %cst_72 = arith.constant 1.000000e+00 : f32
    %157 = vector.broadcast %cst_72 : f32 to vector<256x128xf32>
    %158 = arith.addf %157, %156 : vector<256x128xf32>
    %159 = arith.divf %157, %158 : vector<256x128xf32>
    %160 = arith.mulf %159, %153 : vector<256x128xf32>
    %161 = arith.addf %101, %160 : vector<256x128xf32>
    %c0_73 = arith.constant 0 : index
    %c0_74 = arith.constant 0 : index
    %162 = vector.load %arg22[%c0_73, %c0_74] : memref<256x128xf32, #tpu.memory_space<vmem>>, vector<256x128xf32>
    tpu.vector_store %arg22[%c0_73, %c0_74], %161 {strides = array<i32>} : memref<256x128xf32, #tpu.memory_space<vmem>>, vector<256x128xf32>,
    return
  }
  func.func @transform_0(%arg0: i32) -> (i32, i32) {
    %c0_i32 = arith.constant 0 : i32
    %c0_i32_0 = arith.constant 0 : i32
    return %arg0, %c0_i32 : i32, i32
  }
  func.func @transform_1(%arg0: i32) -> (i32, i32) {
    %c0_i32 = arith.constant 0 : i32
    %c0_i32_0 = arith.constant 0 : i32
    %c0_i32_1 = arith.constant 0 : i32
    return %c0_i32, %c0_i32_0 : i32, i32
  }
  func.func @transform_2(%arg0: i32) -> (i32, i32) {
    %c0_i32 = arith.constant 0 : i32
    %c0_i32_0 = arith.constant 0 : i32
    %c0_i32_1 = arith.constant 0 : i32
    return %c0_i32, %c0_i32_0 : i32, i32
  }
  func.func @transform_3(%arg0: i32) -> (i32, i32) {
    %c0_i32 = arith.constant 0 : i32
    %c0_i32_0 = arith.constant 0 : i32
    %c0_i32_1 = arith.constant 0 : i32
    return %c0_i32, %c0_i32_0 : i32, i32
  }
  func.func @transform_4(%arg0: i32) -> (i32, i32) {
    %c0_i32 = arith.constant 0 : i32
    %c0_i32_0 = arith.constant 0 : i32
    %c0_i32_1 = arith.constant 0 : i32
    return %c0_i32, %c0_i32_0 : i32, i32
  }
  func.func @transform_5(%arg0: i32) -> (i32, i32) {
    %c0_i32 = arith.constant 0 : i32
    %c0_i32_0 = arith.constant 0 : i32
    %c0_i32_1 = arith.constant 0 : i32
    return %c0_i32, %c0_i32_0 : i32, i32
  }
  func.func @transform_6(%arg0: i32) -> (i32, i32) {
    %c0_i32 = arith.constant 0 : i32
    %c0_i32_0 = arith.constant 0 : i32
    %c0_i32_1 = arith.constant 0 : i32
    return %c0_i32, %c0_i32_0 : i32, i32
  }
  func.func @transform_7(%arg0: i32) -> (i32, i32) {
    %c0_i32 = arith.constant 0 : i32
    %c0_i32_0 = arith.constant 0 : i32
    %c0_i32_1 = arith.constant 0 : i32
    return %c0_i32, %c0_i32_0 : i32, i32
  }
  func.func @transform_8(%arg0: i32) -> (i32, i32) {
    %c0_i32 = arith.constant 0 : i32
    %c0_i32_0 = arith.constant 0 : i32
    %c0_i32_1 = arith.constant 0 : i32
    return %c0_i32, %c0_i32_0 : i32, i32
  }
  func.func @transform_9(%arg0: i32) -> (i32, i32) {
    %c0_i32 = arith.constant 0 : i32
    %c0_i32_0 = arith.constant 0 : i32
    %c0_i32_1 = arith.constant 0 : i32
    return %c0_i32, %c0_i32_0 : i32, i32
  }
  func.func @transform_10(%arg0: i32) -> (i32, i32) {
    %c0_i32 = arith.constant 0 : i32
    %c0_i32_0 = arith.constant 0 : i32
    %c0_i32_1 = arith.constant 0 : i32
    return %c0_i32, %c0_i32_0 : i32, i32
  }
  func.func @transform_11(%arg0: i32) -> (i32, i32) {
    %c0_i32 = arith.constant 0 : i32
    %c0_i32_0 = arith.constant 0 : i32
    %c0_i32_1 = arith.constant 0 : i32
    return %c0_i32, %c0_i32_0 : i32, i32
  }
  func.func @transform_12(%arg0: i32) -> (i32, i32) {
    %c0_i32 = arith.constant 0 : i32
    %c0_i32_0 = arith.constant 0 : i32
    %c0_i32_1 = arith.constant 0 : i32
    return %c0_i32, %c0_i32_0 : i32, i32
  }
  func.func @transform_13(%arg0: i32) -> (i32, i32) {
    %c0_i32 = arith.constant 0 : i32
    %c0_i32_0 = arith.constant 0 : i32
    %c0_i32_1 = arith.constant 0 : i32
    return %c0_i32, %c0_i32_0 : i32, i32
  }
  func.func @transform_14(%arg0: i32) -> (i32, i32) {
    %c0_i32 = arith.constant 0 : i32
    %c0_i32_0 = arith.constant 0 : i32
    %c0_i32_1 = arith.constant 0 : i32
    return %c0_i32, %c0_i32_0 : i32, i32
  }
  func.func @transform_15(%arg0: i32) -> (i32, i32) {
    %c0_i32 = arith.constant 0 : i32
    %c0_i32_0 = arith.constant 0 : i32
    %c0_i32_1 = arith.constant 0 : i32
    return %c0_i32, %c0_i32_0 : i32, i32
  }
  func.func @transform_16(%arg0: i32) -> (i32, i32) {
    %c0_i32 = arith.constant 0 : i32
    %c0_i32_0 = arith.constant 0 : i32
    %c0_i32_1 = arith.constant 0 : i32
    return %c0_i32, %c0_i32_0 : i32, i32
  }
  func.func @transform_17(%arg0: i32) -> (i32, i32) {
    %c0_i32 = arith.constant 0 : i32
    %c0_i32_0 = arith.constant 0 : i32
    %c0_i32_1 = arith.constant 0 : i32
    return %c0_i32, %c0_i32_0 : i32, i32
  }
  func.func @transform_18(%arg0: i32) -> (i32, i32) {
    %c0_i32 = arith.constant 0 : i32
    %c0_i32_0 = arith.constant 0 : i32
    %c0_i32_1 = arith.constant 0 : i32
    return %c0_i32, %c0_i32_0 : i32, i32
  }
  func.func @transform_19(%arg0: i32) -> (i32, i32) {
    %c0_i32 = arith.constant 0 : i32
    %c0_i32_0 = arith.constant 0 : i32
    %c0_i32_1 = arith.constant 0 : i32
    return %c0_i32, %c0_i32_0 : i32, i32
  }
  func.func @transform_20(%arg0: i32) -> (i32, i32) {
    %c0_i32 = arith.constant 0 : i32
    %c0_i32_0 = arith.constant 0 : i32
    %c0_i32_1 = arith.constant 0 : i32
    return %c0_i32, %c0_i32_0 : i32, i32
  }
  func.func @transform_21(%arg0: i32) -> (i32, i32) {
    %c0_i32 = arith.constant 0 : i32
    %c0_i32_0 = arith.constant 0 : i32
    return %arg0, %c0_i32 : i32, i32
  }
}

</mosaic_0001>

<bundles_post_ra>
// kernel: rwkv_ffn_pre_block.1
= control target key start
LH: loop header
LB: loop body
LE: loop exit
PB: predicated region body
PF: predicated region fallthrough
CT: control target
= control target key end

     0   :  { %s12767_s0 = inlined_call_operand.hbm [shape: f32[512,128], index: 0, kind: input, shape index: {}]   ;;  %s12768_s1 = inlined_call_operand.vmem [shape: f32[1,128], index: 1, kind: input, shape index: {}]   ;;  %s12769_s2 = inlined_call_operand.vmem [shape: f32[1,128], index: 2, kind: input, shape index: {}]   ;;  %s12770_s3 = inlined_call_operand.vmem [shape: f32[1,128], index: 3, kind: input, shape index: {}]   ;;  %s12771_s4 = inlined_call_operand.vmem [shape: f32[1,128], index: 4, kind: input, shape index: {}]   ;;  %s12772_s5 = inlined_call_operand.vmem [shape: f32[1,128], index: 5, kind: input, shape index: {}]   ;;  %s12773_s6 = inlined_call_operand.vmem [shape: f32[1,128], index: 6, kind: input, shape index: {}]   ;;  %s12774_s7 = inlined_call_operand.vmem [shape: f32[1,128], index: 7, kind: input, shape index: {}]   ;;  %s12775_s8 = inlined_call_operand.vmem [shape: f32[1,128], index: 8, kind: input, shape index: {}]   ;;  %s12776_s9 = inlined_call_operand.vmem [shape: f32[1,128], index: 9, kind: input, shape index: {}]   ;;  %s12777_s10 = inlined_call_operand.vmem [shape: f32[1,128], index: 10, kind: input, shape index: {}]   ;;  %s12778_s11 = inlined_call_operand.hbm [shape: bf16[128,512], index: 11, kind: input, shape index: {}]   ;;  %s12779_s12 = inlined_call_operand.hbm [shape: bf16[512,128], index: 12, kind: input, shape index: {}]   ;;  %s12780_s13 = inlined_call_operand.hbm [shape: bf16[128,128], index: 13, kind: input, shape index: {}]   ;;  %s12781_s14 = inlined_call_operand.hbm [shape: f32[1,128], index: 14, kind: input, shape index: {}]   ;;  %s12782_s15 = inlined_call_operand.hbm [shape: f32[1,128], index: 15, kind: input, shape index: {}]   ;;  %s12783_s16 = inlined_call_operand.hbm [shape: f32[1,128], index: 16, kind: input, shape index: {}]   ;;  %s12784_s17 = inlined_call_operand.hbm [shape: f32[1,128], index: 17, kind: input, shape index: {}]   ;;  %s12785_s18 = inlined_call_operand.hbm [shape: bf16[128,512], index: 18, kind: input, shape index: {}]   ;;  %s12786_s19 = inlined_call_operand.hbm [shape: bf16[512,128], index: 19, kind: input, shape index: {}]   ;;  %s12787_s20 = inlined_call_operand.hbm [shape: bf16[128,128], index: 20, kind: input, shape index: {}]   ;;  %s12788_s21 = inlined_call_operand.hbm [shape: f32[512,128], index: 21, kind: output, shape index: {}]  }
   0x1   :  { %12893 = sst [smem:[#allocation91_spill]] %s12767_s0 }
   0x2   :  { %12894 = sst [smem:[#allocation92_spill]] %s12768_s1 }
   0x3   :  { %12895 = sst [smem:[#allocation93_spill]] %s12769_s2 }
   0x4   :  { %12896 = sst [smem:[#allocation94_spill]] %s12770_s3 }
   0x5   :  { %12897 = sst [smem:[#allocation95_spill]] %s12771_s4 }
   0x6   :  { %12898 = sst [smem:[#allocation96_spill]] %s12772_s5 }
   0x7   :  { %12899 = sst [smem:[#allocation97_spill]] %s12773_s6 }
   0x8   :  { %12900 = sst [smem:[#allocation98_spill]] %s12774_s7 }
   0x9   :  { %12901 = sst [smem:[#allocation99_spill]] %s12777_s10 }
   0xa   :  { %12902 = sst [smem:[#allocation100_spill]] %s12778_s11 }
   0xb   :  { %12903 = sst [smem:[#allocation101_spill]] %s12779_s12 }
   0xc   :  { %12904 = sst [smem:[#allocation102_spill]] %s12780_s13 }
   0xd   :  { %12905 = sst [smem:[#allocation103_spill]] %s12781_s14 }
   0xe   :  { %12906 = sst [smem:[#allocation104_spill]] %s12782_s15 }
   0xf   :  { %12907 = sst [smem:[#allocation105_spill]] %s12783_s16 }
  0x10   :  { %12908 = sst [smem:[#allocation106_spill]] %s12784_s17 }
  0x11   :  { %12909 = sst [smem:[#allocation107_spill]] %s12788_s21 }
  0x12   :  { %26 = vsyncpa [#allocation3], 0 }
  0x13   :  { %28 = vsyncpa [#allocation3 + $0x1], 0 }
  0x14   :  { %29 = vsyncpa [#allocation6], 0 }
  0x15   :  { %30 = vsyncpa [#allocation9], 0 }
  0x16   :  { %31 = vsyncpa [#allocation12], 0 }
  0x17   :  { %32 = vsyncpa [#allocation15], 0 }
  0x18   :  { %33 = vsyncpa [#allocation18], 0 }
  0x19   :  { %34 = vsyncpa [#allocation4], 0 }
  0x1a   :  { %36 = vsyncpa [#allocation4 + $0x1], 0  ;;  %s9623_s2 = smov 0   ;;  %s9625_s25 = smov 0  }
  0x1b   :  { %s9627_s26 = smov 0   ;;  %s9629_s27 = smov 0  }
  0x1c LB: > { %s9492_s3 = smov [#allocation5]   ;;  %s9644_s29 = sadd.s32 4294967295, %s9490_s27   ;;  %s9490_s27 = sphi %s9629_s27, %s13248_s27   ;;  %s9486_s26 = sphi %s9627_s26, %s13247_s26   ;;  %s9482_s25 = sphi %s9625_s25, %s13246_s25   ;;  %s9478_s2 = sphi %s9623_s2, %s13245_s2  }
  0x1d   : > { %s561_s28 = sshll.u32 %s9492_s3, 4  ;;  %p7477_p0 = scmp.ge.s32.totalorder %s9490_s27, 1  ;;  %s562_s28 = int_to_ptr.vmem [resolvable:$true] %s561_s28 }
  0x1e   : > { %p12802_p1 = scmp.eq.s32.totalorder %s9644_s29, 0  ;;  %p519_p2 = scmp.lt.s32.totalorder %s9490_s27, 3 }
  0x1f   : > { %s9493_s30 = smov [#allocation8]   ;;  %s9494_s22 = smov [#allocation11]  }
  0x20   : > { %p9649_p3 = pnand %p7477_p0, %p519_p2  ;;  %s587_s5 = sshll.u32 %s9493_s30, 4  ;;  %s9662_s5 = int_to_ptr.vmem [resolvable:$true] %s587_s5 }
  0x21   : > { %s9664_s23 = sshll.u32 %s9494_s22, 4  ;;  %s9129_s24 = scalar_lea.vmem %s562_s28, 4096  ;;  %s613_s23 = int_to_ptr.vmem [resolvable:$true] %s9664_s23 }
  0x22   : > { %s12910_s0 = scalar_select %p9649_p3, 1, 0 }
  0x23   : > { %p8370_p5 = pneg %p9649_p3  ;;  %p9130_p8 = scmp.ne.s32.totalorder %s562_s28, %s9129_s24 }
  0x24   : > { %p9137_p11 = scmp.lt.s32.totalorder %s562_s28, %s562_s28  ;;  %p9138_p12 = scmp.lt.s32.totalorder %s9129_s24, %s9129_s24 }
  0x25   : > { %p9658_p6 = pnand %p8370_p5, %p12802_p1 }
  0x26   : > { %p9139_p13 = por %p9138_p12, %p9137_p11 }
  0x27   : > { %p9668_p7 = pneg %p9658_p6 }
  0x29   : > { %p9132_p9 = pnand %p9130_p8, %p9668_p7 }
  0x2b   : > { %p9133_p10 = pneg %p9132_p9 }
  0x2d   : > { %p9140_p0 = pnand %p9139_p13, %p9133_p10 }
  0x2f   : > { %9143 = shalt.err (!%p9140_p0)
}
  0x30   : > { %s12796_s3 = smov 256   ;;  %s12797_s30 = smov 16  }
  0x31   : > { %s12913_s11 = sld [smem:[#allocation100_spill]]  ;;  %s9155_s6 = scalar_lea.vmem %s9662_s5, 1024 }
  0x32   : > { %p9156_p2 = scmp.ne.s32.totalorder %s9662_s5, %s9155_s6  ;;  %p9163_p9 = scmp.lt.s32.totalorder %s9662_s5, %s9662_s5 }
  0x33   : > { %p9164_p10 = scmp.lt.s32.totalorder %s9155_s6, %s9155_s6 }
  0x34   : > { %p9158_p5 = pnand %p9156_p2, %p9668_p7 }
  0x35   : > { %p9165_p11 = por %p9164_p10, %p9163_p9 }
  0x36   : > { %p9159_p8 = pneg %p9158_p5 }
  0x37   : > { %8373 = dma.hbm_to_vmem [thread:$0]  (!%p9658_p6), %s12913_s11, 4096, %s562_s28, [#allocation6], %s12796_s3, %s12796_s3, %s12797_s30  }
  0x38   : > { %p9166_p12 = pnand %p9165_p11, %p9159_p8 }
  0x3a   : > { %9169 = shalt.err (!%p9166_p12)
}
  0x3b   : > { %s12798_s24 = smov 64   ;;  %s12800_s10 = smov 4  }
  0x3c   : > { %s12914_s13 = sld [smem:[#allocation102_spill]]  ;;  %s9181_s22 = scalar_lea.vmem %s613_s23, 16 }
  0x3d   : > { %p9182_p13 = scmp.ne.s32.totalorder %s613_s23, %s9181_s22  ;;  %s9188_s6 = scalar_lea.vmem %s613_s23, 32 }
  0x3e   : > { %p9189_p5 = scmp.lt.s32.totalorder %s613_s23, %s613_s23  ;;  %p9190_p8 = scmp.lt.s32.totalorder %s9188_s6, %s9181_s22 }
  0x3f   : > { %p9184_p0 = pnand %p9182_p13, %p9668_p7 }
  0x40   : > { %p9191_p9 = por %p9190_p8, %p9189_p5 }
  0x41   : > { %p9185_p2 = pneg %p9184_p0 }
  0x42   : > { %8379 = dma.hbm_to_vmem [thread:$0]  (!%p9658_p6), %s12914_s13, 1024, %s9662_s5, [#allocation9], %s12798_s24, %s12798_s24, %s12800_s10  }
  0x43   : > { %p9192_p10 = pnand %p9191_p9, %p9185_p2 }
  0x45   : > { %9195 = shalt.err (!%p9192_p10)
}
  0x46   : > { %s12915_s15 = sld [smem:[#allocation104_spill]]  ;;  %s9499_s5 = smov [#allocation14]  }
  0x47   : > { %s634_s21 = sshll.u32 %s9499_s5, 4  ;;  %s9500_s28 = smov [#allocation17]   ;;  %s635_s21 = int_to_ptr.vmem [resolvable:$true] %s634_s21 }
  0x48   : > { %s657_s24 = sshll.u32 %s9500_s28, 4  ;;  %s9207_s10 = scalar_lea.vmem %s635_s21, 16  ;;  %s658_s24 = int_to_ptr.vmem [resolvable:$true] %s657_s24 }
  0x49   : > { %p9208_p11 = scmp.ne.s32.totalorder %s635_s21, %s9207_s10  ;;  %s9214_s22 = scalar_lea.vmem %s635_s21, 32 }
  0x4a   : > { %p9215_p0 = scmp.lt.s32.totalorder %s635_s21, %s635_s21  ;;  %p9216_p2 = scmp.lt.s32.totalorder %s9214_s22, %s9207_s10 }
  0x4b   : > { %p9210_p12 = pnand %p9208_p11, %p9668_p7 }
  0x4c   : > { %8385 = dma.hbm_to_vmem [thread:$0]  (!%p9658_p6), %s12915_s15, 16, %s613_s23, [#allocation12]  }
  0x4d   : > { %p9211_p13 = pneg %p9210_p12  ;;  %p9217_p5 = por %p9216_p2, %p9215_p0 }
  0x4f   : > { %p9218_p8 = pnand %p9217_p5, %p9211_p13 }
  0x51   : > { %9221 = shalt.err (!%p9218_p8)
}
  0x52   : > { %s12916_s17 = sld [smem:[#allocation106_spill]]  ;;  %s9233_s30 = scalar_lea.vmem %s658_s24, 4096 }
  0x53   : > { %p9234_p9 = scmp.ne.s32.totalorder %s658_s24, %s9233_s30  ;;  %p9241_p12 = scmp.lt.s32.totalorder %s658_s24, %s658_s24 }
  0x54   : > { %p9242_p4 = scmp.lt.s32.totalorder %s9233_s30, %s9233_s30 }
  0x55   : > { %p9236_p10 = pnand %p9234_p9, %p9668_p7 }
  0x56   : > { %p9243_p1 = por %p9242_p4, %p9241_p12 }
  0x57   : > { %p9237_p11 = pneg %p9236_p10 }
  0x58   : > { %8391 = dma.hbm_to_vmem [thread:$0]  (!%p9658_p6), %s12916_s17, 16, %s635_s21, [#allocation15]  }
  0x59   : > { %p9244_p3 = pnand %p9243_p1, %p9237_p11 }
  0x5b   : > { %9247 = shalt.err (!%p9244_p3)
}
  0x5c   : > { %s12917_s10 = smov 4   ;;  %s12918_s6 = smov 64  }
  0x5d   : > { %8397 = dma.hbm_to_vmem [thread:$0]  (!%p9658_p6), %s12786_s19, 4096, %s658_s24, [#allocation18], %s12918_s6, %s12918_s6, %s12917_s10  }
  0x5e   : > { %s9501_s21 = smov [#allocation7]   ;;  %s9502_s3 = smov [#allocation10]  }
  0x5f   : > { %s574_s22 = sshll.u32 %s9501_s21, 4  ;;  %s601_s23 = sshll.u32 %s9502_s3, 4  ;;  %s575_s22 = int_to_ptr.vmem [resolvable:$true] %s574_s22  ;;  %s602_s23 = int_to_ptr.vmem [resolvable:$true] %s601_s23 }
  0x60   : > { %s9259_s11 = scalar_lea.vmem %s575_s22, 4096  ;;  %p9267_p4 = scmp.lt.s32.totalorder %s575_s22, %s575_s22 }
  0x61   : > { %p9260_p13 = scmp.ne.s32.totalorder %s575_s22, %s9259_s11  ;;  %p9268_p0 = scmp.lt.s32.totalorder %s9259_s11, %s9259_s11 }
  0x63   : > { %p9262_p1 = pnand %p9260_p13, %p9668_p7  ;;  %p9269_p2 = por %p9268_p0, %p9267_p4 }
  0x65   : > { %p9263_p3 = pneg %p9262_p1 }
  0x67   : > { %p9270_p5 = pnand %p9269_p2, %p9263_p3 }
  0x69   : > { %9273 = shalt.err (!%p9270_p5)
}
  0x6a   : > { %s12919_s12 = sld [smem:[#allocation101_spill]]  ;;  %s9285_s5 = scalar_lea.vmem %s602_s23, 16 }
  0x6b   : > { %p9286_p8 = scmp.ne.s32.totalorder %s602_s23, %s9285_s5  ;;  %s9292_s11 = scalar_lea.vmem %s602_s23, 32 }
  0x6c   : > { %p9293_p11 = scmp.lt.s32.totalorder %s602_s23, %s602_s23  ;;  %p9294_p12 = scmp.lt.s32.totalorder %s9292_s11, %s9285_s5 }
  0x6d   : > { %p9288_p9 = pnand %p9286_p8, %p9668_p7 }
  0x6e   : > { %p9295_p13 = por %p9294_p12, %p9293_p11 }
  0x6f   : > { %p9289_p10 = pneg %p9288_p9 }
  0x70   : > { %8376 = dma.hbm_to_vmem [thread:$0]  (!%p9658_p6), %s12919_s12, 4096, %s575_s22, [#allocation6], %s12918_s6, %s12918_s6, %s12917_s10  }
  0x71   : > { %p9296_p1 = pnand %p9295_p13, %p9289_p10 }
  0x73   : > { %9299 = shalt.err (!%p9296_p1)
}
  0x74   : > { %s12920_s14 = sld [smem:[#allocation103_spill]]  ;;  %s9503_s22 = smov [#allocation13]  }
  0x75   : > { %s623_s3 = sshll.u32 %s9503_s22, 4  ;;  %s9504_s24 = smov [#allocation16]   ;;  %s624_s3 = int_to_ptr.vmem [resolvable:$true] %s623_s3 }
  0x76   : > { %s644_s30 = sshll.u32 %s9504_s24, 4  ;;  %s9311_s12 = scalar_lea.vmem %s624_s3, 16  ;;  %s645_s30 = int_to_ptr.vmem [resolvable:$true] %s644_s30 }
  0x77   : > { %p9312_p3 = scmp.ne.s32.totalorder %s624_s3, %s9311_s12  ;;  %s9318_s5 = scalar_lea.vmem %s624_s3, 32 }
  0x78   : > { %p9319_p2 = scmp.lt.s32.totalorder %s624_s3, %s624_s3  ;;  %p9320_p5 = scmp.lt.s32.totalorder %s9318_s5, %s9311_s12 }
  0x79   : > { %p9314_p4 = pnand %p9312_p3, %p9668_p7 }
  0x7a   : > { %8382 = dma.hbm_to_vmem [thread:$0]  (!%p9658_p6), %s12920_s14, 16, %s602_s23, [#allocation9]  }
  0x7b   : > { %p9315_p0 = pneg %p9314_p4  ;;  %p9321_p8 = por %p9320_p5, %p9319_p2 }
  0x7d   : > { %p9322_p9 = pnand %p9321_p8, %p9315_p0 }
  0x7f   : > { %9325 = shalt.err (!%p9322_p9)
}
  0x80   : > { %s12921_s16 = sld [smem:[#allocation105_spill]]  ;;  %s9337_s28 = scalar_lea.vmem %s645_s30, 4096 }
  0x81   : > { %p9338_p10 = scmp.ne.s32.totalorder %s645_s30, %s9337_s28  ;;  %p9345_p13 = scmp.lt.s32.totalorder %s645_s30, %s645_s30 }
  0x82   : > { %p9346_p1 = scmp.lt.s32.totalorder %s9337_s28, %s9337_s28 }
  0x83   : > { %p9340_p11 = pnand %p9338_p10, %p9668_p7 }
  0x84   : > { %p9347_p3 = por %p9346_p1, %p9345_p13 }
  0x85   : > { %p9341_p12 = pneg %p9340_p11 }
  0x86   : > { %8388 = dma.hbm_to_vmem [thread:$0]  (!%p9658_p6), %s12921_s16, 16, %s624_s3, [#allocation12]  }
  0x87   : > { %p9348_p4 = pnand %p9347_p3, %p9341_p12 }
  0x89   : > { %9351 = shalt.err (!%p9348_p4)
}
  0x8a   : > { %s12922_s12 = smov 16   ;;  %s12923_s21 = smov 256  }
  0x8b   : > { %8394 = dma.hbm_to_vmem [thread:$0]  (!%p9658_p6), %s12785_s18, 4096, %s645_s30, [#allocation15], %s12923_s21, %s12923_s21, %s12922_s12  }
  0x8c   : > { %s9505_s3 = smov [#allocation19]  }
  0x8d   : > { %s670_s5 = sshll.u32 %s9505_s3, 4  ;;  %s671_s5 = int_to_ptr.vmem [resolvable:$true] %s670_s5 }
  0x8e   : > { %s9363_s11 = scalar_lea.vmem %s671_s5, 1024  ;;  %p9371_p8 = scmp.lt.s32.totalorder %s671_s5, %s671_s5 }
  0x8f   : > { %p9364_p0 = scmp.ne.s32.totalorder %s671_s5, %s9363_s11  ;;  %p9372_p9 = scmp.lt.s32.totalorder %s9363_s11, %s9363_s11 }
  0x91   : > { %p9366_p2 = pnand %p9364_p0, %p9668_p7  ;;  %p9373_p10 = por %p9372_p9, %p9371_p8 }
  0x93   : > { %p9367_p5 = pneg %p9366_p2 }
  0x95   : > { %p9374_p11 = pnand %p9373_p10, %p9367_p5 }
  0x97   : > { %9377 = shalt.err (!%p9374_p11)
}
  0x98   : > { %8400 = dma.hbm_to_vmem [thread:$0]  (!%p9658_p6), %s12787_s20, 1024, %s671_s5, [#allocation18], %s12918_s6, %s12918_s6, %s12917_s10  }
  0x99   : > { %s7476_s4 = sadd.s32 4294967294, %s9490_s27   ;;  %s9768_s1 = sadd.s32 1, %s9490_s27  }
  0x9a   : > { %s46_s28 = ssub.s32 %s9490_s27, %s9768_s1  ;;  %s49_s12 = sadd.s32 1, %s9486_s26 }
  0x9b   : > { %p47_p7 = scmp.eq.s32.totalorder %s46_s28, 0  ;;  %p56_p12 = scmp.ne.s32.totalorder %s9486_s26, %s9482_s25 }
  0x9c   : > { %p57_p13 = scmp.eq.s32.totalorder %s9490_s27, 0  ;;  %p62_p1 = scmp.ne.s32.totalorder %s9482_s25, %s9478_s2 }
  0x9d   : > { %s9779_s21 = scalar_select %p47_p7, %s9486_s26, %s49_s12  }
  0x9e   : > { %p9781_p3 = por %p57_p13, %p56_p12  ;;  %p12925_p4 = scmp.eq.s32.totalorder %s9644_s29, 0 }
  0x9f   : > { %p506_p0 = scmp.eq.s32.totalorder %s9644_s29, 1  ;;  %p512_p2 = scmp.eq.s32.totalorder %s7476_s4, 1 }
  0xa0   : > { %p9787_p6 = por %p12925_p4, %p62_p1  ;;  %p8419_p5 = scmp.lt.s32.totalorder %s9490_s27, 2 }
  0xa1   : > { %s684_s6 = sand.u32 1, %s9486_s26   ;;  %p9794_p8 = por %p506_p0, %p56_p12 }
  0xa2   : > { %s12926_s10 = scalar_select %p9787_p6, 1, 0 }
  0xa3   : > { %s12927_s24 = scalar_select %p9794_p8, 1, 0 }
  0xa4   : > { %p9798_p9 = por %p512_p2, %p62_p1  ;;  %s7489_s5 = sshll.u32 %s684_s6, 8 }
  0xa5   : > { %s7732_s11 = sshll.u32 %s9490_s27, 12  ;;  %s12929_s28 = sld [smem:[#allocation91_spill]] }
  0xa6   : > { %s12928_s3 = scalar_select %p9798_p9, 1, 0 }
  0xa7   : > { %s688_s4 = scalar_lea.vmem [#allocation2], %s7489_s5  ;;  %p9812_p10 = pnand %p8419_p5, %p9781_p3 }
  0xa8   : > { %s695_s13 = sshll.u32 %s688_s4, 4  ;;  %s9816_s15 = scalar_lea.sflag [#allocation3], %s684_s6  ;;  %s9808_s13 = int_to_ptr.vmem [resolvable:$true] %s695_s13 }
  0xa9   : > { %p9380_p7 = pneg %p9812_p10 }
  0xab   : > { %s9806_s12 = scalar_lea.hbm %s12929_s28, %s7732_s11  ;;  %s9383_s5 = scalar_lea.hbm %s12929_s28, 8192 }
  0xac   : > { %s9378_s16 = scalar_lea.hbm %s9806_s12, 4096  ;;  %p9384_p1 = scmp.lt.s32.totalorder %s9806_s12, %s12929_s28 }
  0xad   : > { %p9379_p11 = scmp.ne.s32.totalorder %s9806_s12, %s9378_s16  ;;  %p9385_p3 = scmp.lt.s32.totalorder %s9383_s5, %s9378_s16 }
  0xaf   : > { %p9381_p12 = pnand %p9380_p7, %p9379_p11  ;;  %p9386_p4 = por %p9385_p3, %p9384_p1 }
  0xb1   : > { %p9382_p13 = pneg %p9381_p12 }
  0xb3   : > { %p9387_p0 = pnand %p9386_p4, %p9382_p13 }
  0xb5   : > { %9390 = shalt.err (!%p9387_p0)
}
  0xb6   : > { %s9391_s22 = scalar_lea.vmem %s9808_s13, 4096  ;;  %s9506_s6 = smov [#allocation2]  }
  0xb7   : > { %p9392_p2 = scmp.ne.s32.totalorder %s9808_s13, %s9391_s22  ;;  %s9396_s17 = sshll.u32 %s9506_s6, 4  ;;  %s9397_s17 = int_to_ptr.vmem [resolvable:$false] %s9396_s17 }
  0xb8   : > { %s9398_s11 = scalar_lea.vmem %s9397_s17, 8192  ;;  %p9399_p12 = scmp.lt.s32.totalorder %s9808_s13, %s9397_s17 }
  0xb9   : > { %p9394_p5 = pnand %p9392_p2, %p9380_p7  ;;  %p9400_p9 = scmp.lt.s32.totalorder %s9398_s11, %s9391_s22 }
  0xbb   : > { %p9395_p11 = pneg %p9394_p5  ;;  %p9401_p8 = por %p9400_p9, %p9399_p12 }
  0xbd   : > { %p9402_p6 = pnand %p9401_p8, %p9395_p11 }
  0xbf   : > { %9405 = shalt.err (!%p9402_p6)
}
  0xc0   : > { %s9507_s16 = smov 128   ;;  %s9508_s23 = smov 8  }
  0xc1   : > { %8404 = dma.hbm_to_vmem [thread:$0]  (!%p9812_p10), %s9806_s12, 4096, %s9808_s13, %s9816_s15, %s9507_s16, %s9507_s16, %s9508_s23  }
  0xc2   : > { %p12931_p7 = scmp.ne.s32.totalorder %s12910_s0, 0 }
  0xc4   : > { %707 = sbr.rel (%p12931_p7) target bundleno = 2570 (0xa0a), region = 104 }
  0xc9   : > { %s9840_s5 = sand.u32 1, %s9482_s25   ;;  %p12932_p6 = scmp.ne.s32.totalorder %s12926_s10, 0 }
  0xca   : > { %s7493_s17 = sshll.u32 %s9840_s5, 8  ;;  %s710_s30 = scalar_lea.sflag [#allocation3], %s9840_s5 }
  0xcb   : > { %s9846_s4 = scalar_lea.vmem [#allocation2], %s7493_s17 }
  0xcc   : > { %9449 = dma.done.wait (%p12932_p6), %s710_s30, 4096  }
  0xcd   : > { %9451 = vsyncadd (%p12932_p6), %s710_s30, 4294963200  ;;  %p12933_p8 = scmp.eq.s32.totalorder %s9644_s29, 0 }
  0xcf   : > { %9453 = dma.done.wait (%p12933_p8), [#allocation6], 8192   ;;  %p12934_p9 = pmov %p12933_p8 }
  0xd0   : > { %p12935_p10 = pmov %p12933_p8 }
  0xd1   : > { %9455 = vsyncadd (%p12934_p9), [#allocation6], 4294959104 }
  0xd2   : > { %9457 = dma.done.wait (%p12935_p10), [#allocation9], 1040   ;;  %p12936_p13 = pmov %p12933_p8 }
  0xd3   : > { %p12937_p1 = pmov %p12933_p8 }
  0xd4   : > { %9459 = vsyncadd (%p12936_p13), [#allocation9], 4294966256 }
  0xd5   : > { %9461 = dma.done.wait (%p12937_p1), [#allocation12], 32   ;;  %p12938_p3 = pmov %p12937_p1 }
  0xd6   : > { %p12939_p4 = pmov %p12937_p1 }
  0xd7   : > { %9463 = vsyncadd (%p12938_p3), [#allocation12], 4294967264 }
  0xd8   : > { %9465 = dma.done.wait (%p12939_p4), [#allocation15], 4112   ;;  %p12940_p0 = pmov %p12937_p1 }
  0xda   : > { %9467 = vsyncadd (%p12940_p0), [#allocation15], 4294963184  ;;  %p12941_p2 = pmov %p12940_p0 }
  0xdb   : > { %p12942_p5 = pmov %p12940_p0 }
  0xdc   : > { %9469 = dma.done.wait (%p12941_p2), [#allocation18], 5120  }
  0xdd   : > { %9471 = vsyncadd (%p12942_p5), [#allocation18], 4294962176  ;;  %v815_v0 = vld [vmem:[%s9846_s4] sm:$0xff]  ;;  %v816_v1 = vld [vmem:[%s9846_s4 + $0x8] sm:$0xff]  ;;  %s12943_s15 = sld [smem:[#allocation92_spill]]  ;;  %p13241_p12 = scmp.ne.s32.totalorder %s12927_s24, 0 }
  0xde   : > { %1298 = vadd.xlane.f32.xlu0 %v815_v0  ;;  %1300 = vadd.xlane.f32.xlu1 %v816_v1  ;;  %v846_v2 = vld [vmem:[%s9846_s4 + $0xf8] sm:$0xff]  ;;  %v817_v3 = vld [vmem:[%s9846_s4 + $0x10] sm:$0xff]  ;;  %v9878_v5 = vld [vmem:[%s9846_s4 + $0x20] sm:$0xff]  ;;  %s12944_s12 = sld [smem:[#allocation93_spill]]  ;;  %s9510_s23 = smov [#allocation20]  }
  0xdf   : > { %v818_v4 = vld [vmem:[%s9846_s4 + $0x18] sm:$0xff]  ;;  %v9881_v6 = vld [vmem:[%s9846_s4 + $0x28] sm:$0xff]  ;;  %v9884_v7 = vld [vmem:[%s9846_s4 + $0x30] sm:$0xff]  ;;  %s12977_s11 = sld [smem:[#allocation94_spill]] }
  0xe0   : > { %v9888_v8 = vld [vmem:[%s9846_s4 + $0x38] sm:$0xff]  ;;  %v9891_v9 = vld [vmem:[%s9846_s4 + $0x40] sm:$0xff]  ;;  %v9896_v10 = vld [vmem:[%s9846_s4 + $0x48] sm:$0xff]  ;;  %s12979_s30 = sld [smem:[#allocation95_spill]] }
  0xe1   : > { %v9899_v11 = vld [vmem:[%s9846_s4 + $0x50] sm:$0xff]  ;;  %v9904_v12 = vld [vmem:[%s9846_s4 + $0x58] sm:$0xff]  ;;  %v9909_v13 = vld [vmem:[%s9846_s4 + $0x60] sm:$0xff]  ;;  %s12980_s7 = sld [smem:[#allocation98_spill]] }
  0xe2   : > { %1360 = vadd.xlane.f32.xlu0 %v846_v2  ;;  %1302 = vadd.xlane.f32.xlu1 %v817_v3  ;;  %v9912_v14 = vld [vmem:[%s9846_s4 + $0x70] sm:$0xff]  ;;  %v9915_v15 = vld [vmem:[%s9846_s4 + $0x68] sm:$0xff]  ;;  %v9920_v16 = vld [vmem:[%s9846_s4 + $0x80] sm:$0xff]  ;;  %s12986_s6 = sld [smem:[#allocation99_spill]] }
  0xe3   : > { %v9925_v17 = vld [vmem:[%s9846_s4 + $0x78] sm:$0xff]  ;;  %v9928_v18 = vld [vmem:[%s9846_s4 + $0x90] sm:$0xff]  ;;  %v9931_v19 = vld [vmem:[%s9846_s4 + $0x88] sm:$0xff]  ;;  %s13116_s14 = sld [smem:[#allocation96_spill]] }
  0xe4   : > { %v9938_v20 = vld [vmem:[%s9846_s4 + $0x98] sm:$0xff]  ;;  %v9958_v39 = vld [vmem:[%s9846_s4 + $0xa8] sm:$0xff]  ;;  %v9961_v40 = vld [vmem:[%s9846_s4 + $0xa0] sm:$0xff]  ;;  %s13117_s10 = sld [smem:[#allocation97_spill]] }
  0xe5   : > { %v9976_v49 = vld [vmem:[%s9846_s4 + $0xb0] sm:$0xff]  ;;  %v9979_v50 = vld [vmem:[%s9846_s4 + $0xb8] sm:$0xff]  ;;  %v9994_v60 = vld [vmem:[%s9846_s4 + $0xc0] sm:$0xff] }
  0xe6   : > { %1304 = vadd.xlane.f32.xlu0 %v818_v4  ;;  %1306 = vadd.xlane.f32.xlu1 %v9878_v5  ;;  %v9997_v61 = vld [vmem:[%s9846_s4 + $0xc8] sm:$0xff] }
  0xea   : > { %1308 = vadd.xlane.f32.xlu0 %v9881_v6  ;;  %1310 = vadd.xlane.f32.xlu1 %v9884_v7 }
  0xee   : > { %1312 = vadd.xlane.f32.xlu0 %v9888_v8  ;;  %1314 = vadd.xlane.f32.xlu1 %v9891_v9 }
  0xf2   : > { %1316 = vadd.xlane.f32.xlu0 %v9896_v10  ;;  %1318 = vadd.xlane.f32.xlu1 %v9899_v11 }
  0xf6   : > { %1320 = vadd.xlane.f32.xlu0 %v9904_v12  ;;  %1322 = vadd.xlane.f32.xlu1 %v9909_v13 }
  0xfa   : > { %1326 = vadd.xlane.f32.xlu1 %v9912_v14  ;;  %1324 = vadd.xlane.f32.xlu0 %v9915_v15 }
  0xfe   : > { %1330 = vadd.xlane.f32.xlu1 %v9920_v16  ;;  %1328 = vadd.xlane.f32.xlu0 %v9925_v17 }
 0x102   : > { %1334 = vadd.xlane.f32.xlu1 %v9928_v18  ;;  %1332 = vadd.xlane.f32.xlu0 %v9931_v19 }
 0x106   : > { %1336 = vadd.xlane.f32.xlu0 %v9938_v20 }
 0x167   : > { %v1299_v21 = vpop.xlane.xlu0 %1298  ;;  %v1301_v22 = vpop.xlane.xlu1 %1300 }
 0x168   : > { %v1363_v23 = vmul.f32 0.0078125, %v1299_v21  ;;  %v1364_v24 = vmul.f32 0.0078125, %v1301_v22  ;;  %v10015_v21 = vld [vmem:[%s9846_s4 + $0xd8] sm:$0xff] }
 0x16a   : > { %v9941_v25 = vsub.f32 %v815_v0, %v1363_v23  ;;  %v9943_v26 = vsub.f32 %v816_v1, %v1364_v24 }
 0x16b   : > { %v1361_v27 = vpop.xlane.xlu0 %1360  ;;  %v1303_v28 = vpop.xlane.xlu1 %1302 }
 0x16c   : > { %v1394_v29 = vmul.f32 0.0078125, %v1361_v27  ;;  %v1427_v30 = vmul.f32 %v9941_v25, %v9941_v25  ;;  %v1428_v31 = vmul.f32 %v9943_v26, %v9943_v26  ;;  %v1365_v33 = vmul.f32 0.0078125, %v1303_v28 }
 0x16e   : > { %1459 = vadd.xlane.f32.xlu1 %v1427_v30  ;;  %v9949_v32 = vsub.f32 %v846_v2, %v1394_v29  ;;  %v9953_v37 = vsub.f32 %v817_v3, %v1365_v33  ;;  %v10033_v33 = vld [vmem:[%s9846_s4 + $0xe8] sm:$0xff] }
 0x16f   : > { %v1305_v34 = vpop.xlane.xlu0 %1304  ;;  %v1307_v41 = vpop.xlane.xlu1 %1306 }
 0x170   : > { %v1458_v35 = vmul.f32 %v9949_v32, %v9949_v32  ;;  %v1366_v36 = vmul.f32 0.0078125, %v1305_v34  ;;  %v1429_v43 = vmul.f32 %v9953_v37, %v9953_v37  ;;  %v1367_v45 = vmul.f32 0.0078125, %v1307_v41 }
 0x172   : > { %1461 = vadd.xlane.f32.xlu1 %v1428_v31  ;;  %1521 = vadd.xlane.f32.xlu0 %v1458_v35  ;;  %v9955_v38 = vsub.f32 %v818_v4, %v1366_v36  ;;  %v9970_v47 = vsub.f32 %v9878_v5, %v1367_v45  ;;  %v10030_v31 = vld [vmem:[%s9846_s4 + $0xe0] sm:$0xff] }
 0x173   : > { %v1309_v42 = vpop.xlane.xlu0 %1308  ;;  %v1311_v51 = vpop.xlane.xlu1 %1310 }
 0x174   : > { %v1430_v44 = vmul.f32 %v9955_v38, %v9955_v38  ;;  %v1368_v46 = vmul.f32 0.0078125, %v1309_v42  ;;  %v1431_v53 = vmul.f32 %v9970_v47, %v9970_v47  ;;  %v1369_v55 = vmul.f32 0.0078125, %v1311_v51 }
 0x176   : > { %1340 = vadd.xlane.f32.xlu1 %v9958_v39  ;;  %1338 = vadd.xlane.f32.xlu0 %v9961_v40  ;;  %v9973_v48 = vsub.f32 %v9881_v6, %v1368_v46  ;;  %v9988_v58 = vsub.f32 %v9884_v7, %v1369_v55 }
 0x177   : > { %v1313_v52 = vpop.xlane.xlu0 %1312  ;;  %v1315_v57 = vpop.xlane.xlu1 %1314 }
 0x178   : > { %v1432_v54 = vmul.f32 %v9973_v48, %v9973_v48  ;;  %v1370_v56 = vmul.f32 0.0078125, %v1313_v52  ;;  %v1433_v0 = vmul.f32 %v9988_v58, %v9988_v58  ;;  %v1371_v2 = vmul.f32 0.0078125, %v1315_v57 }
 0x17a   : > { %1463 = vadd.xlane.f32.xlu0 %v1429_v43  ;;  %1465 = vadd.xlane.f32.xlu1 %v1430_v44  ;;  %v9991_v59 = vsub.f32 %v9888_v8, %v1370_v56  ;;  %v10006_v6 = vsub.f32 %v9891_v9, %v1371_v2  ;;  %v10012_v8 = vld [vmem:[%s9846_s4 + $0xd0] sm:$0xff] }
 0x17b   : > { %v1317_v62 = vpop.xlane.xlu0 %1316  ;;  %v1319_v63 = vpop.xlane.xlu1 %1318 }
 0x17c   : > { %v1434_v1 = vmul.f32 %v9991_v59, %v9991_v59  ;;  %v1372_v3 = vmul.f32 0.0078125, %v1317_v62  ;;  %v1435_v23 = vmul.f32 %v10006_v6, %v10006_v6  ;;  %v1373_v24 = vmul.f32 0.0078125, %v1319_v63 }
 0x17e   : > { %1342 = vadd.xlane.f32.xlu0 %v9976_v49  ;;  %1344 = vadd.xlane.f32.xlu1 %v9979_v50  ;;  %v10009_v7 = vsub.f32 %v9896_v10, %v1372_v3  ;;  %v10024_v29 = vsub.f32 %v9899_v11, %v1373_v24 }
 0x17f   : > { %v1321_v4 = vpop.xlane.xlu0 %1320  ;;  %v1323_v5 = vpop.xlane.xlu1 %1322 }
 0x180   : > { %v1436_v9 = vmul.f32 %v10009_v7, %v10009_v7  ;;  %v1374_v10 = vmul.f32 0.0078125, %v1321_v4  ;;  %v1375_v28 = vmul.f32 0.0078125, %v1323_v5  ;;  %v1437_v41 = vmul.f32 %v10024_v29, %v10024_v29 }
 0x182   : > { %1467 = vadd.xlane.f32.xlu0 %v1431_v53  ;;  %1469 = vadd.xlane.f32.xlu1 %v1432_v54  ;;  %v10027_v30 = vsub.f32 %v9904_v12, %v1374_v10  ;;  %v10042_v42 = vsub.f32 %v9909_v13, %v1375_v28  ;;  %v10053_v53 = vld [vmem:[%s9846_s4 + $0xf0] sm:$0xff]  ;;  %s12560_s4 = scalar_lea.vmem [#allocation20], %s7493_s17  ;;  %s7733_s17 = sshll.u32 %s9644_s29, 12 }
 0x183   : > { %v1325_v22 = vpop.xlane.xlu0 %1324  ;;  %v1327_v27 = vpop.xlane.xlu1 %1326  ;;  %s7308_s13 = sshll.u32 %s12560_s4, 4  ;;  %s12721_s13 = int_to_ptr.vmem [resolvable:$true] %s7308_s13 }
 0x184   : > { %v1377_v35 = vmul.f32 0.0078125, %v1327_v27  ;;  %v1438_v11 = vmul.f32 %v10027_v30, %v10027_v30  ;;  %v1376_v12 = vmul.f32 0.0078125, %v1325_v22  ;;  %v1439_v46 = vmul.f32 %v10042_v42, %v10042_v42  ;;  %s9406_s16 = scalar_lea.vmem %s12721_s13, 4096 }
 0x185   : > { %p9407_p11 = scmp.ne.s32.totalorder %s12721_s13, %s9406_s16 }
 0x186   : > { %1346 = vadd.xlane.f32.xlu0 %v9994_v60  ;;  %1348 = vadd.xlane.f32.xlu1 %v9997_v61  ;;  %v10045_v44 = vsub.f32 %v9912_v14, %v1377_v35  ;;  %v10050_v52 = vsub.f32 %v9915_v15, %v1376_v12 }
 0x187   : > { %v1329_v34 = vpop.xlane.xlu0 %1328  ;;  %v1331_v36 = vpop.xlane.xlu1 %1330  ;;  %p9408_p7 = pnand %p9407_p11, %p13241_p12 }
 0x188   : > { %v1379_v43 = vmul.f32 0.0078125, %v1331_v36  ;;  %v1378_v51 = vmul.f32 0.0078125, %v1329_v34  ;;  %v1441_v13 = vmul.f32 %v10045_v44, %v10045_v44  ;;  %v1440_v14 = vmul.f32 %v10050_v52, %v10050_v52 }
 0x189   : > { %p9409_p6 = pneg %p9408_p7 }
 0x18a   : > { %1471 = vadd.xlane.f32.xlu0 %v1433_v0  ;;  %1473 = vadd.xlane.f32.xlu1 %v1434_v1  ;;  %v10058_v55 = vsub.f32 %v9920_v16, %v1379_v43  ;;  %v10064_v15 = vsub.f32 %v9925_v17, %v1378_v51 }
 0x18b   : > { %v1333_v45 = vpop.xlane.xlu0 %1332  ;;  %v1335_v54 = vpop.xlane.xlu1 %1334 }
 0x18c   : > { %v1381_v56 = vmul.f32 0.0078125, %v1335_v54  ;;  %v1380_v57 = vmul.f32 0.0078125, %v1333_v45  ;;  %v1443_v63 = vmul.f32 %v10058_v55, %v10058_v55  ;;  %v1442_v16 = vmul.f32 %v10064_v15, %v10064_v15 }
 0x18e   : > { %1350 = vadd.xlane.f32.xlu0 %v10012_v8  ;;  %1352 = vadd.xlane.f32.xlu1 %v10015_v21  ;;  %v10071_v1 = vsub.f32 %v9928_v18, %v1381_v56  ;;  %v10074_v2 = vsub.f32 %v9931_v19, %v1380_v57 }
 0x18f   : > { %v1337_v62 = vpop.xlane.xlu0 %1336 }
 0x190   : > { %v1382_v0 = vmul.f32 0.0078125, %v1337_v62  ;;  %v1445_v17 = vmul.f32 %v10071_v1, %v10071_v1  ;;  %v1444_v3 = vmul.f32 %v10074_v2, %v10074_v2 }
 0x192   : > { %1475 = vadd.xlane.f32.xlu0 %v1435_v23  ;;  %1477 = vadd.xlane.f32.xlu1 %v1436_v9  ;;  %v10081_v4 = vsub.f32 %v9938_v20, %v1382_v0  ;;  %v10104_v0 = vld [vmem:[%s12943_s15] ss:$0 sm:$0xff] }
 0x194   : > { %v1446_v18 = vmul.f32 %v10081_v4, %v10081_v4 }
 0x196   : > { %1354 = vadd.xlane.f32.xlu0 %v10030_v31  ;;  %1356 = vadd.xlane.f32.xlu1 %v10033_v33 }
 0x19a   : > { %1479 = vadd.xlane.f32.xlu0 %v1437_v41  ;;  %1481 = vadd.xlane.f32.xlu1 %v1438_v11 }
 0x19e   : > { %1358 = vadd.xlane.f32.xlu0 %v10053_v53  ;;  %1483 = vadd.xlane.f32.xlu1 %v1439_v46 }
 0x1a2   : > { %1487 = vadd.xlane.f32.xlu1 %v1441_v13  ;;  %1485 = vadd.xlane.f32.xlu0 %v1440_v14 }
 0x1a6   : > { %1491 = vadd.xlane.f32.xlu1 %v1443_v63  ;;  %1489 = vadd.xlane.f32.xlu0 %v1442_v16 }
 0x1aa   : > { %1495 = vadd.xlane.f32.xlu1 %v1445_v17  ;;  %1493 = vadd.xlane.f32.xlu0 %v1444_v3 }
 0x1ae   : > { %1497 = vadd.xlane.f32.xlu0 %v1446_v18 }
 0x1f7   : > { %v1460_v5 = vpop.xlane.xlu1 %1459 }
 0x1f8   : > { %v1523_v19 = vmul.f32 0.0078125, %v1460_v5 }
 0x1fa   : > { %v1555_v22 = vadd.f32 1e-05, %v1523_v19 }
 0x1fb   : > { %v1462_v23 = vpop.xlane.xlu1 %1461  ;;  %v1522_v9 = vpop.xlane.xlu0 %1521 }
 0x1fc   : > { %8658 = vrsqrt.f32 %v1555_v22  ;;  %v1524_v24 = vmul.f32 0.0078125, %v1462_v23  ;;  %v1554_v10 = vmul.f32 0.0078125, %v1522_v9 }
 0x1fe   : > { %v1556_v27 = vadd.f32 1e-05, %v1524_v24  ;;  %v1586_v28 = vadd.f32 1e-05, %v1554_v10 }
 0x1ff   : > { %v1341_v34 = vpop.xlane.xlu1 %1340  ;;  %v1339_v35 = vpop.xlane.xlu0 %1338 }
 0x200   : > { %8660 = vrsqrt.f32 %v1556_v27  ;;  %v1384_v20 = vmul.f32 0.0078125, %v1341_v34  ;;  %v1383_v36 = vmul.f32 0.0078125, %v1339_v35 }
 0x201   : > { %8662 = vrsqrt.f32 %v1586_v28 }
 0x202   : > { %v10086_v41 = vsub.f32 %v9958_v39, %v1384_v20  ;;  %v10089_v11 = vsub.f32 %v9961_v40, %v1383_v36 }
 0x203   : > { %v1466_v12 = vpop.xlane.xlu1 %1465  ;;  %v1464_v43 = vpop.xlane.xlu0 %1463 }
 0x204   : > { %v1526_v45 = vmul.f32 0.0078125, %v1466_v12  ;;  %v1525_v46 = vmul.f32 0.0078125, %v1464_v43  ;;  %v1448_v51 = vmul.f32 %v10086_v41, %v10086_v41  ;;  %v1447_v54 = vmul.f32 %v10089_v11, %v10089_v11 }
 0x206   : > { %v1558_v13 = vadd.f32 1e-05, %v1526_v45  ;;  %v1557_v14 = vadd.f32 1e-05, %v1525_v46  ;;  %1501 = vadd.xlane.f32.xlu0 %v1448_v51  ;;  %1499 = vadd.xlane.f32.xlu1 %v1447_v54 }
 0x207   : > { %v1345_v56 = vpop.xlane.xlu1 %1344  ;;  %v1343_v39 = vpop.xlane.xlu0 %1342 }
 0x208   : > { %8664 = vrsqrt.f32 %v1558_v13  ;;  %v1386_v57 = vmul.f32 0.0078125, %v1345_v56  ;;  %v1385_v40 = vmul.f32 0.0078125, %v1343_v39 }
 0x209   : > { %v8659_v62 = vpop.eup %8658  ;;  %8666 = vrsqrt.f32 %v1557_v14 }
 0x20a   : > { %v10096_v63 = vsub.f32 %v9979_v50, %v1386_v57  ;;  %v10099_v16 = vsub.f32 %v9976_v49, %v1385_v40  ;;  %v1619_v17 = vmul.f32 %v8659_v62, %v9941_v25  ;;  %v10114_v49 = vld [vmem:[%s12944_s12] ss:$0 sm:$0xff]  ;;  %s13239_s12 = sld [smem:[#allocation107_spill]] }
 0x20b   : > { %v1470_v3 = vpop.xlane.xlu1 %1469  ;;  %v1468_v18 = vpop.xlane.xlu0 %1467 }
 0x20c   : > { %v1528_v5 = vmul.f32 0.0078125, %v1470_v3  ;;  %v1527_v19 = vmul.f32 0.0078125, %v1468_v18  ;;  %v1450_v22 = vmul.f32 %v10096_v63, %v10096_v63  ;;  %v1449_v50 = vmul.f32 %v10099_v16, %v10099_v16 }
 0x20d   : > { %v8661_v23 = vpop.eup %8660  ;;  %v1657_v9 = vmul.f32 %v10104_v0, %v1619_v17 }
 0x20e   : > { %v8663_v24 = vpop.eup %8662  ;;  %v1560_v25 = vadd.f32 1e-05, %v1528_v5  ;;  %v1559_v10 = vadd.f32 1e-05, %v1527_v19  ;;  %1505 = vadd.xlane.f32.xlu0 %v1450_v22  ;;  %1503 = vadd.xlane.f32.xlu1 %v1449_v50  ;;  %v1620_v27 = vmul.f32 %v8661_v23, %v9943_v26 }
 0x20f   : > { %v1349_v28 = vpop.xlane.xlu1 %1348  ;;  %v1347_v34 = vpop.xlane.xlu0 %1346  ;;  %v10119_v35 = vadd.f32 %v10114_v49, %v1657_v9  ;;  %v1650_v20 = vmul.f32 %v8663_v24, %v9949_v32 }
 0x210   : > { %8668 = vrsqrt.f32 %v1560_v25  ;;  %v1388_v36 = vmul.f32 0.0078125, %v1349_v28  ;;  %v1387_v12 = vmul.f32 0.0078125, %v1347_v34  ;;  %v1658_v43 = vmul.f32 %v10104_v0, %v1620_v27  ;;  %s12719_s22 = scalar_lea.hbm %s13239_s12, %s7733_s17 }
 0x211   : > { %12945 = vst [vmem:[#allocation28_spill] sm:$0xff] %v10119_v35  ;;  %8670 = vrsqrt.f32 %v1559_v10  ;;  %v1688_v45 = vmul.f32 %v10104_v0, %v1650_v20 }
 0x212   : > { %1729 = vadd.xlane.f32.xlu1 %v10119_v35  ;;  %v10126_v46 = vsub.f32 %v9994_v60, %v1387_v12  ;;  %v10129_v26 = vsub.f32 %v9997_v61, %v1388_v36  ;;  %v10135_v56 = vadd.f32 %v10114_v49, %v1658_v43 }
 0x213   : > { %v1474_v51 = vpop.xlane.xlu1 %1473  ;;  %v1472_v54 = vpop.xlane.xlu0 %1471  ;;  %v10132_v32 = vadd.f32 %v10114_v49, %v1688_v45 }
 0x214   : > { %v1530_v13 = vmul.f32 0.0078125, %v1474_v51  ;;  %v1529_v14 = vmul.f32 0.0078125, %v1472_v54  ;;  %12947 = vst [vmem:[#allocation30_spill] sm:$0xff] %v10135_v56  ;;  %v1451_v60 = vmul.f32 %v10126_v46, %v10126_v46  ;;  %v1452_v62 = vmul.f32 %v10129_v26, %v10129_v26 }
 0x215   : > { %12946 = vst [vmem:[#allocation29_spill] sm:$0xff] %v10132_v32  ;;  %v8665_v39 = vpop.eup %8664  ;;  %1791 = vadd.xlane.f32.xlu0 %v10132_v32 }
 0x216   : > { %v8667_v57 = vpop.eup %8666  ;;  %v1562_v40 = vadd.f32 1e-05, %v1530_v13  ;;  %v1561_v61 = vadd.f32 1e-05, %v1529_v14  ;;  %1731 = vadd.xlane.f32.xlu1 %v10135_v56  ;;  %v1622_v17 = vmul.f32 %v8665_v39, %v9955_v38 }
 0x217   : > { %v1353_v3 = vpop.xlane.xlu1 %1352  ;;  %v1351_v18 = vpop.xlane.xlu0 %1350  ;;  %v1621_v5 = vmul.f32 %v8667_v57, %v9953_v37 }
 0x218   : > { %8672 = vrsqrt.f32 %v1562_v40  ;;  %v1390_v19 = vmul.f32 0.0078125, %v1353_v3  ;;  %v1389_v22 = vmul.f32 0.0078125, %v1351_v18  ;;  %v1660_v50 = vmul.f32 %v10104_v0, %v1622_v17 }
 0x219   : > { %8674 = vrsqrt.f32 %v1561_v61  ;;  %1507 = vadd.xlane.f32.xlu0 %v1451_v60  ;;  %v1659_v23 = vmul.f32 %v10104_v0, %v1621_v5 }
 0x21a   : > { %1509 = vadd.xlane.f32.xlu1 %v1452_v62  ;;  %v10148_v9 = vsub.f32 %v10012_v8, %v1389_v22  ;;  %v10151_v24 = vsub.f32 %v10015_v21, %v1390_v19  ;;  %v10157_v28 = vadd.f32 %v10114_v49, %v1660_v50 }
 0x21b   : > { %v1478_v38 = vpop.xlane.xlu1 %1477  ;;  %v1476_v25 = vpop.xlane.xlu0 %1475  ;;  %v10154_v37 = vadd.f32 %v10114_v49, %v1659_v23 }
 0x21c   : > { %v1532_v10 = vmul.f32 0.0078125, %v1478_v38  ;;  %v1531_v27 = vmul.f32 0.0078125, %v1476_v25  ;;  %12949 = vst [vmem:[#allocation32_spill] sm:$0xff] %v10157_v28  ;;  %v1453_v8 = vmul.f32 %v10148_v9, %v10148_v9  ;;  %v1454_v12 = vmul.f32 %v10151_v24, %v10151_v24 }
 0x21d   : > { %12948 = vst [vmem:[#allocation31_spill] sm:$0xff] %v10154_v37  ;;  %v8669_v34 = vpop.eup %8668  ;;  %1733 = vadd.xlane.f32.xlu0 %v10154_v37 }
 0x21e   : > { %v8671_v20 = vpop.eup %8670  ;;  %v1564_v36 = vadd.f32 1e-05, %v1532_v10  ;;  %v1563_v21 = vadd.f32 1e-05, %v1531_v27  ;;  %1735 = vadd.xlane.f32.xlu1 %v10157_v28  ;;  %v1624_v43 = vmul.f32 %v8669_v34, %v9973_v48 }
 0x21f   : > { %v1357_v45 = vpop.xlane.xlu1 %1356  ;;  %v1355_v51 = vpop.xlane.xlu0 %1354  ;;  %v1623_v54 = vmul.f32 %v8671_v20, %v9970_v47 }
 0x220   : > { %8676 = vrsqrt.f32 %v1564_v36  ;;  %v1392_v13 = vmul.f32 0.0078125, %v1357_v45  ;;  %v1391_v14 = vmul.f32 0.0078125, %v1355_v51  ;;  %v1662_v39 = vmul.f32 %v10104_v0, %v1624_v43 }
 0x221   : > { %8678 = vrsqrt.f32 %v1563_v21  ;;  %1511 = vadd.xlane.f32.xlu0 %v1453_v8  ;;  %v1661_v60 = vmul.f32 %v10104_v0, %v1623_v54 }
 0x222   : > { %1513 = vadd.xlane.f32.xlu1 %v1454_v12  ;;  %v10170_v57 = vsub.f32 %v10030_v31, %v1391_v14  ;;  %v10173_v40 = vsub.f32 %v10033_v33, %v1392_v13  ;;  %v10179_v3 = vadd.f32 %v10114_v49, %v1662_v39 }
 0x223   : > { %v1482_v48 = vpop.xlane.xlu1 %1481  ;;  %v1480_v61 = vpop.xlane.xlu0 %1479  ;;  %v10176_v47 = vadd.f32 %v10114_v49, %v1661_v60 }
 0x224   : > { %v1534_v62 = vmul.f32 0.0078125, %v1482_v48  ;;  %v1533_v17 = vmul.f32 0.0078125, %v1480_v61  ;;  %12951 = vst [vmem:[#allocation34_spill] sm:$0xff] %v10179_v3  ;;  %v1455_v31 = vmul.f32 %v10170_v57, %v10170_v57  ;;  %v1456_v22 = vmul.f32 %v10173_v40, %v10173_v40 }
 0x225   : > { %12950 = vst [vmem:[#allocation33_spill] sm:$0xff] %v10176_v47  ;;  %v8673_v18 = vpop.eup %8672  ;;  %1737 = vadd.xlane.f32.xlu0 %v10176_v47 }
 0x226   : > { %v8675_v5 = vpop.eup %8674  ;;  %v1566_v19 = vadd.f32 1e-05, %v1534_v62  ;;  %v1565_v33 = vadd.f32 1e-05, %v1533_v17  ;;  %1739 = vadd.xlane.f32.xlu1 %v10179_v3  ;;  %v1626_v50 = vmul.f32 %v8673_v18, %v9991_v59 }
 0x227   : > { %v1484_v23 = vpop.xlane.xlu1 %1483  ;;  %v1359_v38 = vpop.xlane.xlu0 %1358  ;;  %v1625_v25 = vmul.f32 %v8675_v5, %v9988_v58 }
 0x228   : > { %8680 = vrsqrt.f32 %v1566_v19  ;;  %v1535_v10 = vmul.f32 0.0078125, %v1484_v23  ;;  %v1393_v27 = vmul.f32 0.0078125, %v1359_v38  ;;  %v1664_v34 = vmul.f32 %v10104_v0, %v1626_v50 }
 0x229   : > { %8682 = vrsqrt.f32 %v1565_v33  ;;  %1515 = vadd.xlane.f32.xlu0 %v1455_v31  ;;  %v1663_v8 = vmul.f32 %v10104_v0, %v1625_v25 }
 0x22a   : > { %v1567_v20 = vadd.f32 1e-05, %v1535_v10  ;;  %1517 = vadd.xlane.f32.xlu1 %v1456_v22  ;;  %v10192_v36 = vsub.f32 %v10053_v53, %v1393_v27  ;;  %v10198_v45 = vadd.f32 %v10114_v49, %v1664_v34 }
 0x22b   : > { %v1488_v21 = vpop.xlane.xlu1 %1487  ;;  %v1486_v59 = vpop.xlane.xlu0 %1485  ;;  %v10195_v12 = vadd.f32 %v10114_v49, %v1663_v8 }
 0x22c   : > { %8684 = vrsqrt.f32 %v1567_v20  ;;  %v1537_v58 = vmul.f32 0.0078125, %v1488_v21  ;;  %v1536_v43 = vmul.f32 0.0078125, %v1486_v59  ;;  %12953 = vst [vmem:[#allocation36_spill] sm:$0xff] %v10198_v45  ;;  %v1457_v54 = vmul.f32 %v10192_v36, %v10192_v36 }
 0x22d   : > { %12952 = vst [vmem:[#allocation35_spill] sm:$0xff] %v10195_v12  ;;  %v8677_v51 = vpop.eup %8676  ;;  %1741 = vadd.xlane.f32.xlu0 %v10195_v12 }
 0x22e   : > { %v8679_v13 = vpop.eup %8678  ;;  %v1569_v53 = vadd.f32 1e-05, %v1537_v58  ;;  %v1568_v14 = vadd.f32 1e-05, %v1536_v43  ;;  %1743 = vadd.xlane.f32.xlu1 %v10198_v45  ;;  %v1628_v39 = vmul.f32 %v8677_v51, %v10009_v7 }
 0x22f   : > { %v1492_v60 = vpop.xlane.xlu1 %1491  ;;  %v1490_v48 = vpop.xlane.xlu0 %1489  ;;  %v1627_v61 = vmul.f32 %v8679_v13, %v10006_v6 }
 0x230   : > { %8686 = vrsqrt.f32 %v1569_v53  ;;  %v1539_v62 = vmul.f32 0.0078125, %v1492_v60  ;;  %v1538_v17 = vmul.f32 0.0078125, %v1490_v48  ;;  %v1666_v18 = vmul.f32 %v10104_v0, %v1628_v39 }
 0x231   : > { %8688 = vrsqrt.f32 %v1568_v14  ;;  %1519 = vadd.xlane.f32.xlu0 %v1457_v54  ;;  %v1665_v31 = vmul.f32 %v10104_v0, %v1627_v61 }
 0x232   : > { %v1571_v5 = vadd.f32 1e-05, %v1539_v62  ;;  %v1570_v19 = vadd.f32 1e-05, %v1538_v17  ;;  %v10209_v33 = vadd.f32 %v10114_v49, %v1666_v18 }
 0x233   : > { %v1496_v22 = vpop.xlane.xlu1 %1495  ;;  %v1494_v7 = vpop.xlane.xlu0 %1493  ;;  %v10212_v50 = vadd.f32 %v10114_v49, %v1665_v31 }
 0x234   : > { %12954 = vst [vmem:[#allocation37_spill] sm:$0xff] %v10209_v33  ;;  %8690 = vrsqrt.f32 %v1571_v5  ;;  %v1541_v6 = vmul.f32 0.0078125, %v1496_v22  ;;  %v1540_v23 = vmul.f32 0.0078125, %v1494_v7 }
 0x235   : > { %12955 = vst [vmem:[#allocation38_spill] sm:$0xff] %v10212_v50  ;;  %v8681_v38 = vpop.eup %8680  ;;  %8692 = vrsqrt.f32 %v1570_v19  ;;  %1745 = vadd.xlane.f32.xlu1 %v10212_v50  ;;  %1747 = vadd.xlane.f32.xlu0 %v10209_v33 }
 0x236   : > { %v8683_v25 = vpop.eup %8682  ;;  %v1573_v10 = vadd.f32 1e-05, %v1541_v6  ;;  %v1572_v27 = vadd.f32 1e-05, %v1540_v23  ;;  %v1630_v34 = vmul.f32 %v8681_v38, %v10027_v30 }
 0x237   : > { %v1498_v8 = vpop.xlane.xlu0 %1497  ;;  %v1629_v20 = vmul.f32 %v8683_v25, %v10024_v29 }
 0x238   : > { %8694 = vrsqrt.f32 %v1573_v10  ;;  %v1542_v21 = vmul.f32 0.0078125, %v1498_v8  ;;  %v1668_v59 = vmul.f32 %v10104_v0, %v1630_v34 }
 0x239   : > { %v8685_v58 = vpop.eup %8684  ;;  %8696 = vrsqrt.f32 %v1572_v27  ;;  %v1667_v43 = vmul.f32 %v10104_v0, %v1629_v20 }
 0x23a   : > { %v1574_v51 = vadd.f32 1e-05, %v1542_v21  ;;  %v10221_v54 = vadd.f32 %v10114_v49, %v1668_v59  ;;  %v1631_v13 = vmul.f32 %v8685_v58, %v10042_v42 }
 0x23b   : > { %v10225_v53 = vadd.f32 %v10114_v49, %v1667_v43 }
 0x23c   : > { %12956 = vst [vmem:[#allocation39_spill] sm:$0xff] %v10221_v54  ;;  %8698 = vrsqrt.f32 %v1574_v51  ;;  %1751 = vadd.xlane.f32.xlu0 %v10221_v54  ;;  %v1669_v29 = vmul.f32 %v10104_v0, %v1631_v13 }
 0x23d   : > { %12957 = vst [vmem:[#allocation40_spill] sm:$0xff] %v10225_v53  ;;  %v8687_v30 = vpop.eup %8686  ;;  %1749 = vadd.xlane.f32.xlu1 %v10225_v53 }
 0x23e   : > { %v8689_v14 = vpop.eup %8688  ;;  %v10231_v39 = vadd.f32 %v10114_v49, %v1669_v29  ;;  %v1633_v60 = vmul.f32 %v8687_v30, %v10045_v44 }
 0x23f   : > { %v1632_v48 = vmul.f32 %v8689_v14, %v10050_v52 }
 0x240   : > { %12958 = vst [vmem:[#allocation41_spill] sm:$0xff] %v10231_v39  ;;  %v1671_v42 = vmul.f32 %v10104_v0, %v1633_v60 }
 0x241   : > { %v8691_v61 = vpop.eup %8690  ;;  %1753 = vadd.xlane.f32.xlu1 %v10231_v39  ;;  %v1670_v62 = vmul.f32 %v10104_v0, %v1632_v48 }
 0x242   : > { %v8693_v17 = vpop.eup %8692  ;;  %v10239_v18 = vadd.f32 %v10114_v49, %v1671_v42  ;;  %v1635_v31 = vmul.f32 %v8691_v61, %v10058_v55 }
 0x243   : > { %v10243_v5 = vadd.f32 %v10114_v49, %v1670_v62  ;;  %v1634_v44 = vmul.f32 %v8693_v17, %v10064_v15 }
 0x244   : > { %12959 = vst [vmem:[#allocation42_spill] sm:$0xff] %v10239_v18  ;;  %v1673_v52 = vmul.f32 %v10104_v0, %v1635_v31 }
 0x245   : > { %12960 = vst [vmem:[#allocation43_spill] sm:$0xff] %v10243_v5  ;;  %v8695_v19 = vpop.eup %8694  ;;  %1757 = vadd.xlane.f32.xlu1 %v10239_v18  ;;  %1755 = vadd.xlane.f32.xlu0 %v10243_v5  ;;  %v1672_v22 = vmul.f32 %v10104_v0, %v1634_v44 }
 0x246   : > { %v8697_v7 = vpop.eup %8696  ;;  %v10251_v6 = vadd.f32 %v10114_v49, %v1673_v52  ;;  %v1637_v55 = vmul.f32 %v8695_v19, %v10071_v1 }
 0x247   : > { %v10255_v23 = vadd.f32 %v10114_v49, %v1672_v22  ;;  %v1636_v15 = vmul.f32 %v8697_v7, %v10074_v2 }
 0x248   : > { %12961 = vst [vmem:[#allocation44_spill] sm:$0xff] %v10251_v6  ;;  %v1675_v38 = vmul.f32 %v10104_v0, %v1637_v55 }
 0x249   : > { %12962 = vst [vmem:[#allocation45_spill] sm:$0xff] %v10255_v23  ;;  %v8699_v25 = vpop.eup %8698  ;;  %1761 = vadd.xlane.f32.xlu1 %v10251_v6  ;;  %1759 = vadd.xlane.f32.xlu0 %v10255_v23  ;;  %v1674_v10 = vmul.f32 %v10104_v0, %v1636_v15 }
 0x24a   : > { %v10263_v27 = vadd.f32 %v10114_v49, %v1675_v38  ;;  %v1638_v34 = vmul.f32 %v8699_v25, %v10081_v4 }
 0x24b   : > { %v10267_v1 = vadd.f32 %v10114_v49, %v1674_v10 }
 0x24c   : > { %12963 = vst [vmem:[#allocation46_spill] sm:$0xff] %v10263_v27  ;;  %v1676_v8 = vmul.f32 %v10104_v0, %v1638_v34 }
 0x24d   : > { %12964 = vst [vmem:[#allocation47_spill] sm:$0xff] %v10267_v1  ;;  %1765 = vadd.xlane.f32.xlu1 %v10263_v27  ;;  %1763 = vadd.xlane.f32.xlu0 %v10267_v1 }
 0x24e   : > { %v10273_v2 = vadd.f32 %v10114_v49, %v1676_v8 }
 0x250   : > { %12965 = vst [vmem:[#allocation48_spill] sm:$0xff] %v10273_v2 }
 0x251   : > { %1767 = vadd.xlane.f32.xlu0 %v10273_v2 }
 0x28f   : > { %v1500_v20 = vpop.xlane.xlu1 %1499  ;;  %v1502_v21 = vpop.xlane.xlu0 %1501 }
 0x290   : > { %v1543_v59 = vmul.f32 0.0078125, %v1500_v20  ;;  %v1544_v58 = vmul.f32 0.0078125, %v1502_v21 }
 0x292   : > { %v1575_v43 = vadd.f32 1e-05, %v1543_v59  ;;  %v1576_v4 = vadd.f32 1e-05, %v1544_v58 }
 0x294   : > { %8700 = vrsqrt.f32 %v1575_v43 }
 0x295   : > { %8702 = vrsqrt.f32 %v1576_v4 }
 0x297   : > { %v1504_v51 = vpop.xlane.xlu1 %1503  ;;  %v1506_v13 = vpop.xlane.xlu0 %1505 }
 0x298   : > { %v1545_v29 = vmul.f32 0.0078125, %v1504_v51  ;;  %v1546_v30 = vmul.f32 0.0078125, %v1506_v13 }
 0x29a   : > { %v1577_v14 = vadd.f32 1e-05, %v1545_v29  ;;  %v1578_v60 = vadd.f32 1e-05, %v1546_v30 }
 0x29b   : > { %v1730_v48 = vpop.xlane.xlu1 %1729 }
 0x29c   : > { %8704 = vrsqrt.f32 %v1577_v14  ;;  %v1793_v42 = vmul.f32 0.0078125, %v1730_v48 }
 0x29d   : > { %8706 = vrsqrt.f32 %v1578_v60 }
 0x29e   : > { %v1792_v61 = vpop.xlane.xlu0 %1791  ;;  %v10277_v62 = vsub.f32 %v10119_v35, %v1793_v42 }
 0x29f   : > { %v1824_v17 = vmul.f32 0.0078125, %v1792_v61  ;;  %v1732_v31 = vpop.xlane.xlu1 %1731 }
 0x2a0   : > { %v1794_v44 = vmul.f32 0.0078125, %v1732_v31  ;;  %v1857_v52 = vmul.f32 %v10277_v62, %v10277_v62 }
 0x2a1   : > { %v8701_v19 = vpop.eup %8700  ;;  %v10282_v22 = vsub.f32 %v10132_v32, %v1824_v17 }
 0x2a2   : > { %v8703_v7 = vpop.eup %8702  ;;  %v1508_v55 = vpop.xlane.xlu0 %1507  ;;  %1889 = vadd.xlane.f32.xlu1 %v1857_v52  ;;  %v10285_v15 = vsub.f32 %v10135_v56, %v1794_v44  ;;  %v1639_v38 = vmul.f32 %v8701_v19, %v10089_v11 }
 0x2a3   : > { %v1547_v25 = vmul.f32 0.0078125, %v1508_v55  ;;  %v1510_v10 = vpop.xlane.xlu1 %1509  ;;  %v1888_v34 = vmul.f32 %v10282_v22, %v10282_v22  ;;  %v1640_v8 = vmul.f32 %v8703_v7, %v10086_v41 }
 0x2a4   : > { %v1548_v20 = vmul.f32 0.0078125, %v1510_v10  ;;  %v1858_v21 = vmul.f32 %v10285_v15, %v10285_v15  ;;  %v1677_v59 = vmul.f32 %v10104_v0, %v1639_v38 }
 0x2a5   : > { %v1579_v58 = vadd.f32 1e-05, %v1547_v25  ;;  %1951 = vadd.xlane.f32.xlu0 %v1888_v34  ;;  %v1678_v43 = vmul.f32 %v10104_v0, %v1640_v8 }
 0x2a6   : > { %v1580_v4 = vadd.f32 1e-05, %v1548_v20  ;;  %v1734_v51 = vpop.xlane.xlu0 %1733  ;;  %1891 = vadd.xlane.f32.xlu1 %v1858_v21  ;;  %v10296_v11 = vadd.f32 %v10114_v49, %v1677_v59 }
 0x2a7   : > { %8708 = vrsqrt.f32 %v1579_v58  ;;  %v1795_v13 = vmul.f32 0.0078125, %v1734_v51  ;;  %v1736_v29 = vpop.xlane.xlu1 %1735  ;;  %v10299_v30 = vadd.f32 %v10114_v49, %v1678_v43  ;;  %v8482_v58 = vld [vmem:[#allocation5 + $0xe4] ss:$16 sps:$4 sm:$0xff]   ;;  %v8486_v51 = vld [vmem:[#allocation5 + $0xe0] ss:$16 sps:$4 sm:$0xff]  }
 0x2a8   : > { %12966 = vst [vmem:[#allocation49_spill] sm:$0xff] %v10296_v11  ;;  %8710 = vrsqrt.f32 %v1580_v4  ;;  %v1796_v41 = vmul.f32 0.0078125, %v1736_v29  ;;  %v8484_v4 = vld [vmem:[#allocation5 + $0xec] ss:$16 sps:$4 sm:$0xff]   ;;  %2842 = vmatprep.subr.bf16.mxu0 %v8482_v58 }
 0x2a9   : > { %12967 = vst [vmem:[#allocation50_spill] sm:$0xff] %v10299_v30  ;;  %v8705_v14 = vpop.eup %8704  ;;  %1769 = vadd.xlane.f32.xlu0 %v10296_v11  ;;  %v10303_v60 = vsub.f32 %v10154_v37, %v1795_v13  ;;  %v8487_v13 = vld [vmem:[#allocation5 + $0xe8] ss:$16 sps:$4 sm:$0xff]   ;;  %3035 = vmatprep.subr.bf16.mxu1 %v8484_v4 }
 0x2aa   : > { %v8707_v48 = vpop.eup %8706  ;;  %v1512_v42 = vpop.xlane.xlu0 %1511  ;;  %1771 = vadd.xlane.f32.xlu1 %v10299_v30  ;;  %v10307_v61 = vsub.f32 %v10157_v28, %v1796_v41  ;;  %v1641_v17 = vmul.f32 %v8705_v14, %v10099_v16  ;;  %2843 = vmatpush1.bf16.msra.mxu0 %v8486_v51 }
 0x2ab   : > { %v1549_v31 = vmul.f32 0.0078125, %v1512_v42  ;;  %v1514_v44 = vpop.xlane.xlu1 %1513  ;;  %v1859_v52 = vmul.f32 %v10303_v60, %v10303_v60  ;;  %v1642_v19 = vmul.f32 %v8707_v48, %v10096_v63  ;;  %3036 = vmatpush1.bf16.msra.mxu1 %v8487_v13  ;;  %v8496_v13 = vld [vmem:[#allocation5 + $0xac] ss:$16 sps:$4 sm:$0xff]  }
 0x2ac   : > { %v1550_v7 = vmul.f32 0.0078125, %v1514_v44  ;;  %v1860_v55 = vmul.f32 %v10307_v61, %v10307_v61  ;;  %v1679_v38 = vmul.f32 %v10104_v0, %v1641_v17 }
 0x2ad   : > { %v1581_v25 = vadd.f32 1e-05, %v1549_v31  ;;  %1893 = vadd.xlane.f32.xlu0 %v1859_v52  ;;  %v1680_v10 = vmul.f32 %v10104_v0, %v1642_v19  ;;  %v8488_v52 = vld [vmem:[#allocation5 + $0xc4] ss:$16 sps:$4 sm:$0xff]   ;;  %v8490_v19 = vld [vmem:[#allocation5 + $0xcc] ss:$16 sps:$4 sm:$0xff]  }
 0x2ae   : > { %v1582_v34 = vadd.f32 1e-05, %v1550_v7  ;;  %v1738_v8 = vpop.xlane.xlu0 %1737  ;;  %1895 = vadd.xlane.f32.xlu1 %v1860_v55  ;;  %v10318_v16 = vadd.f32 %v10114_v49, %v1679_v38  ;;  %2844 = vmatprep.subr.bf16.mxu0 %v8488_v52 }
 0x2af   : > { %8712 = vrsqrt.f32 %v1581_v25  ;;  %v1797_v20 = vmul.f32 0.0078125, %v1738_v8  ;;  %v1740_v21 = vpop.xlane.xlu1 %1739  ;;  %v10321_v59 = vadd.f32 %v10114_v49, %v1680_v10  ;;  %v8492_v25 = vld [vmem:[#allocation5 + $0xc0] ss:$16 sps:$4 sm:$0xff]   ;;  %v8493_v10 = vld [vmem:[#allocation5 + $0xc8] ss:$16 sps:$4 sm:$0xff]   ;;  %3037 = vmatprep.subr.bf16.mxu1 %v8490_v19 }
 0x2b0   : > { %12968 = vst [vmem:[#allocation51_spill] sm:$0xff] %v10318_v16  ;;  %8714 = vrsqrt.f32 %v1582_v34  ;;  %v1798_v63 = vmul.f32 0.0078125, %v1740_v21  ;;  %2845 = vmatpush1.bf16.msra.mxu0 %v8492_v25  ;;  %3038 = vmatpush1.bf16.msra.mxu1 %v8493_v10  ;;  %v8500_v19 = vld [vmem:[#allocation5 + $0x84] ss:$16 sps:$4 sm:$0xff]  }
 0x2b1   : > { %12969 = vst [vmem:[#allocation52_spill] sm:$0xff] %v10321_v59  ;;  %1773 = vadd.xlane.f32.xlu0 %v10318_v16  ;;  %v10325_v43 = vsub.f32 %v10176_v47, %v1797_v20  ;;  %3039 = vmatprep.subr.bf16.mxu1 %v8496_v13  ;;  %v8506_v13 = vld [vmem:[#allocation5 + $0x64] ss:$16 sps:$4 sm:$0xff]  }
 0x2b2   : > { %v1516_v29 = vpop.xlane.xlu0 %1515  ;;  %1775 = vadd.xlane.f32.xlu1 %v10321_v59  ;;  %v10329_v41 = vsub.f32 %v10179_v3, %v1798_v63 }
 0x2b3   : > { %v1551_v14 = vmul.f32 0.0078125, %v1516_v29  ;;  %v1518_v48 = vpop.xlane.xlu1 %1517  ;;  %v1861_v42 = vmul.f32 %v10325_v43, %v10325_v43 }
 0x2b4   : > { %v8709_v17 = vpop.eup %8708  ;;  %v1552_v31 = vmul.f32 0.0078125, %v1518_v48  ;;  %v1862_v44 = vmul.f32 %v10329_v41, %v10329_v41  ;;  %v8499_v48 = vld [vmem:[#allocation5 + $0xa8] ss:$16 sps:$4 sm:$0xff]  }
 0x2b5   : > { %v8711_v7 = vpop.eup %8710  ;;  %v1583_v55 = vadd.f32 1e-05, %v1551_v14  ;;  %1897 = vadd.xlane.f32.xlu0 %v1861_v42  ;;  %v1643_v38 = vmul.f32 %v8709_v17, %v10126_v46  ;;  %v8494_v46 = vld [vmem:[#allocation5 + $0xa4] ss:$16 sps:$4 sm:$0xff]   ;;  %v8498_v14 = vld [vmem:[#allocation5 + $0xa0] ss:$16 sps:$4 sm:$0xff]   ;;  %3040 = vmatpush1.bf16.msra.mxu1 %v8499_v48 }
 0x2b6   : > { %v1584_v34 = vadd.f32 1e-05, %v1552_v31  ;;  %v1742_v8 = vpop.xlane.xlu0 %1741  ;;  %1899 = vadd.xlane.f32.xlu1 %v1862_v44  ;;  %v1644_v20 = vmul.f32 %v8711_v7, %v10129_v26  ;;  %2846 = vmatprep.subr.bf16.mxu0 %v8494_v46  ;;  %v8502_v7 = vld [vmem:[#allocation5 + $0x8c] ss:$16 sps:$4 sm:$0xff]  }
 0x2b7   : > { %8716 = vrsqrt.f32 %v1583_v55  ;;  %v1799_v21 = vmul.f32 0.0078125, %v1742_v8  ;;  %v1744_v63 = vpop.xlane.xlu1 %1743  ;;  %v1681_v58 = vmul.f32 %v10104_v0, %v1643_v38  ;;  %2847 = vmatpush1.bf16.msra.mxu0 %v8498_v14  ;;  %v8505_v8 = vld [vmem:[#allocation5 + $0x88] ss:$16 sps:$4 sm:$0xff]   ;;  %3041 = vmatprep.subr.bf16.mxu1 %v8502_v7  ;;  %v8508_v14 = vld [vmem:[#allocation5 + $0x6c] ss:$16 sps:$4 sm:$0xff]  }
 0x2b8   : > { %8718 = vrsqrt.f32 %v1584_v34  ;;  %v1800_v4 = vmul.f32 0.0078125, %v1744_v63  ;;  %v1682_v51 = vmul.f32 %v10104_v0, %v1644_v20  ;;  %v8504_v34 = vld [vmem:[#allocation5 + $0x80] ss:$16 sps:$4 sm:$0xff]   ;;  %2848 = vmatprep.subr.bf16.mxu0 %v8500_v19 }
 0x2b9   : > { %v10340_v29 = vsub.f32 %v10195_v12, %v1799_v21  ;;  %v10343_v26 = vadd.f32 %v10114_v49, %v1681_v58  ;;  %3042 = vmatpush1.bf16.msra.mxu1 %v8505_v8 }
 0x2ba   : > { %v10346_v42 = vsub.f32 %v10198_v45, %v1800_v4  ;;  %v1520_v17 = vpop.xlane.xlu0 %1519  ;;  %v10349_v31 = vadd.f32 %v10114_v49, %v1682_v51  ;;  %3043 = vmatprep.subr.bf16.mxu1 %v8508_v14  ;;  %v8520_v14 = vld [vmem:[#allocation5 + $0x2c] ss:$16 sps:$4 sm:$0xff]  }
 0x2bb   : > { %12970 = vst [vmem:[#allocation53_spill] sm:$0xff] %v10343_v26  ;;  %v1553_v44 = vmul.f32 0.0078125, %v1520_v17  ;;  %1777 = vadd.xlane.f32.xlu0 %v10343_v26  ;;  %v1863_v25 = vmul.f32 %v10340_v29, %v10340_v29  ;;  %2849 = vmatpush1.bf16.msra.mxu0 %v8504_v34  ;;  %v8510_v17 = vld [vmem:[#allocation5 + $0x60] ss:$16 sps:$4 sm:$0xff]  }
 0x2bc   : > { %12971 = vst [vmem:[#allocation54_spill] sm:$0xff] %v10349_v31  ;;  %v8713_v52 = vpop.eup %8712  ;;  %1779 = vadd.xlane.f32.xlu1 %v10349_v31  ;;  %v1864_v63 = vmul.f32 %v10346_v42, %v10346_v42  ;;  %2850 = vmatprep.subr.bf16.mxu0 %v8506_v13 }
 0x2bd   : > { %v8715_v55 = vpop.eup %8714  ;;  %v1585_v38 = vadd.f32 1e-05, %v1553_v44  ;;  %v1645_v10 = vmul.f32 %v8713_v52, %v10148_v9  ;;  %v8511_v44 = vld [vmem:[#allocation5 + $0x68] ss:$16 sps:$4 sm:$0xff]  }
 0x2be   : > { %v1746_v20 = vpop.xlane.xlu1 %1745  ;;  %v1748_v21 = vpop.xlane.xlu0 %1747  ;;  %v1646_v58 = vmul.f32 %v8715_v55, %v10151_v24  ;;  %3044 = vmatpush1.bf16.msra.mxu1 %v8511_v44  ;;  %v8512_v55 = vld [vmem:[#allocation5 + $0x44] ss:$16 sps:$4 sm:$0xff]  }
 0x2bf   : > { %8720 = vrsqrt.f32 %v1585_v38  ;;  %v1801_v4 = vmul.f32 0.0078125, %v1746_v20  ;;  %v1802_v51 = vmul.f32 0.0078125, %v1748_v21  ;;  %1901 = vadd.xlane.f32.xlu0 %v1863_v25  ;;  %v1683_v46 = vmul.f32 %v10104_v0, %v1645_v10  ;;  %2851 = vmatpush1.bf16.msra.mxu0 %v8510_v17  ;;  %v8514_v38 = vld [vmem:[#allocation5 + $0x4c] ss:$16 sps:$4 sm:$0xff]   ;;  %v8516_v20 = vld [vmem:[#allocation5 + $0x40] ss:$16 sps:$4 sm:$0xff]  }
 0x2c0   : > { %1903 = vadd.xlane.f32.xlu1 %v1864_v63  ;;  %v1684_v9 = vmul.f32 %v10104_v0, %v1646_v58  ;;  %v8517_v21 = vld [vmem:[#allocation5 + $0x48] ss:$16 sps:$4 sm:$0xff]   ;;  %2852 = vmatprep.subr.bf16.mxu0 %v8512_v55 }
 0x2c1   : > { %v10362_v48 = vsub.f32 %v10212_v50, %v1801_v4  ;;  %v10365_v24 = vadd.f32 %v10114_v49, %v1683_v46  ;;  %v10368_v52 = vsub.f32 %v10209_v33, %v1802_v51  ;;  %3045 = vmatprep.subr.bf16.mxu1 %v8514_v38 }
 0x2c2   : > { %v10371_v19 = vadd.f32 %v10114_v49, %v1684_v9  ;;  %3046 = vmatpush1.bf16.msra.mxu1 %v8517_v21 }
 0x2c3   : > { %12972 = vst [vmem:[#allocation55_spill] sm:$0xff] %v10365_v24  ;;  %1781 = vadd.xlane.f32.xlu0 %v10365_v24  ;;  %v1865_v34 = vmul.f32 %v10362_v48, %v10362_v48  ;;  %v1866_v4 = vmul.f32 %v10368_v52, %v10368_v52  ;;  %2853 = vmatpush1.bf16.msra.mxu0 %v8516_v20  ;;  %v8526_v20 = vld [vmem:[#allocation5 + $0xc] ss:$16 sps:$4 sm:$0xff]  }
 0x2c4   : > { %12973 = vst [vmem:[#allocation56_spill] sm:$0xff] %v10371_v19  ;;  %v8717_v7 = vpop.eup %8716  ;;  %1783 = vadd.xlane.f32.xlu1 %v10371_v19  ;;  %3047 = vmatprep.subr.bf16.mxu1 %v8520_v14 }
 0x2c5   : > { %v8719_v25 = vpop.eup %8718  ;;  %v1752_v10 = vpop.xlane.xlu0 %1751  ;;  %v1647_v8 = vmul.f32 %v8717_v7, %v10170_v57  ;;  %v8518_v57 = vld [vmem:[#allocation5 + $0x24] ss:$16 sps:$4 sm:$0xff]   ;;  %v8523_v7 = vld [vmem:[#allocation5 + $0x28] ss:$16 sps:$4 sm:$0xff]  }
 0x2c6   : > { %v1750_v63 = vpop.xlane.xlu1 %1749  ;;  %v1804_v58 = vmul.f32 0.0078125, %v1752_v10  ;;  %v1648_v51 = vmul.f32 %v8719_v25, %v10173_v40  ;;  %v8522_v40 = vld [vmem:[#allocation5 + $0x20] ss:$16 sps:$4 sm:$0xff]   ;;  %2854 = vmatprep.subr.bf16.mxu0 %v8518_v57  ;;  %3048 = vmatpush1.bf16.msra.mxu1 %v8523_v7 }
 0x2c7   : > { %v1803_v46 = vmul.f32 0.0078125, %v1750_v63  ;;  %1905 = vadd.xlane.f32.xlu0 %v1865_v34  ;;  %v1685_v9 = vmul.f32 %v10104_v0, %v1647_v8  ;;  %2855 = vmatpush1.bf16.msra.mxu0 %v8522_v40  ;;  %v8524_v8 = vld [vmem:[#allocation5 + $0x4] ss:$16 sps:$4 sm:$0xff]  }
 0x2c8   : > { %1907 = vadd.xlane.f32.xlu1 %v1866_v4  ;;  %v1686_v13 = vmul.f32 %v10104_v0, %v1648_v51  ;;  %v10390_v55 = vsub.f32 %v10221_v54, %v1804_v58  ;;  %v8528_v58 = vld [vmem:[#allocation5] ss:$16 sps:$4 sm:$0xff]   ;;  %v8529_v4 = vld [vmem:[#allocation5 + $0x8] ss:$16 sps:$4 sm:$0xff]   ;;  %2856 = vmatprep.subr.bf16.mxu0 %v8524_v8 }
 0x2c9   : > { %v10384_v17 = vsub.f32 %v10225_v53, %v1803_v46  ;;  %v10387_v44 = vadd.f32 %v10114_v49, %v1685_v9  ;;  %3049 = vmatprep.subr.bf16.mxu1 %v8526_v20 }
 0x2ca   : > { %v1754_v38 = vpop.xlane.xlu1 %1753  ;;  %v10393_v25 = vadd.f32 %v10114_v49, %v1686_v13  ;;  %v1868_v13 = vmul.f32 %v10390_v55, %v10390_v55  ;;  %3050 = vmatpush1.bf16.msra.mxu1 %v8529_v4 }
 0x2cb   : > { %12974 = vst [vmem:[#allocation57_spill] sm:$0xff] %v10387_v44  ;;  %v1805_v10 = vmul.f32 0.0078125, %v1754_v38  ;;  %1785 = vadd.xlane.f32.xlu0 %v10387_v44  ;;  %v1867_v21 = vmul.f32 %v10384_v17, %v10384_v17  ;;  %2857 = vmatpush1.bf16.msra.mxu0 %v8528_v58  ;;  %v12806_v38 = vmov 0  }
 0x2cc   : > { %12975 = vst [vmem:[#allocation58_spill] sm:$0xff] %v10393_v25  ;;  %v8721_v34 = vpop.eup %8720  ;;  %1787 = vadd.xlane.f32.xlu1 %v10393_v25  ;;  %2874 = vmatprep.mubr.bf16.mxu0 %v12806_v38 }
 0x2cd   : > { %v1649_v63 = vmul.f32 %v8721_v34, %v10192_v36  ;;  %v10401_v51 = vsub.f32 %v10231_v39, %v1805_v10  ;;  %3067 = vmatprep.mubr.bf16.mxu1 %v12806_v38 }
 0x2ce   : > { %v1758_v46 = vpop.xlane.xlu1 %1757  ;;  %v1756_v9 = vpop.xlane.xlu0 %1755 }
 0x2cf   : > { %v1807_v57 = vmul.f32 0.0078125, %v1758_v46  ;;  %v1806_v14 = vmul.f32 0.0078125, %v1756_v9  ;;  %1909 = vadd.xlane.f32.xlu0 %v1867_v21  ;;  %v1687_v40 = vmul.f32 %v10104_v0, %v1649_v63  ;;  %v1869_v0 = vmul.f32 %v10401_v51, %v10401_v51 }
 0x2d0   : > { %1911 = vadd.xlane.f32.xlu1 %v1868_v13 }
 0x2d1   : > { %v10407_v36 = vsub.f32 %v10243_v5, %v1806_v14  ;;  %v10410_v7 = vadd.f32 %v10114_v49, %v1687_v40  ;;  %v10415_v10 = vsub.f32 %v10239_v18, %v1807_v57 }
 0x2d2   : > { %v1762_v34 = vpop.xlane.xlu1 %1761  ;;  %v1760_v8 = vpop.xlane.xlu0 %1759 }
 0x2d3   : > { %12976 = vst [vmem:[#allocation59_spill] sm:$0xff] %v10410_v7  ;;  %v1809_v20 = vmul.f32 0.0078125, %v1762_v34  ;;  %v1808_v21 = vmul.f32 0.0078125, %v1760_v8  ;;  %1789 = vadd.xlane.f32.xlu0 %v10410_v7  ;;  %v1870_v63 = vmul.f32 %v10407_v36, %v10407_v36  ;;  %v1871_v9 = vmul.f32 %v10415_v10, %v10415_v10 }
 0x2d4   : > { %1913 = vadd.xlane.f32.xlu1 %v1869_v0 }
 0x2d5   : > { %v10421_v49 = vsub.f32 %v10255_v23, %v1808_v21  ;;  %v10426_v58 = vsub.f32 %v10251_v6, %v1809_v20 }
 0x2d6   : > { %v1766_v4 = vpop.xlane.xlu1 %1765  ;;  %v1764_v46 = vpop.xlane.xlu0 %1763 }
 0x2d7   : > { %v1811_v13 = vmul.f32 0.0078125, %v1766_v4  ;;  %v1810_v57 = vmul.f32 0.0078125, %v1764_v46  ;;  %1915 = vadd.xlane.f32.xlu0 %v1870_v63  ;;  %v1872_v40 = vmul.f32 %v10421_v49, %v10421_v49  ;;  %v1873_v0 = vmul.f32 %v10426_v58, %v10426_v58 }
 0x2d8   : > { %1917 = vadd.xlane.f32.xlu1 %v1871_v9 }
 0x2d9   : > { %v10431_v14 = vsub.f32 %v10267_v1, %v1810_v57  ;;  %v10436_v34 = vsub.f32 %v10263_v27, %v1811_v13 }
 0x2da   : > { %v1768_v8 = vpop.xlane.xlu0 %1767 }
 0x2db   : > { %v1812_v20 = vmul.f32 0.0078125, %v1768_v8  ;;  %1919 = vadd.xlane.f32.xlu0 %v1872_v40  ;;  %v1874_v63 = vmul.f32 %v10431_v14, %v10431_v14  ;;  %v1875_v4 = vmul.f32 %v10436_v34, %v10436_v34 }
 0x2dc   : > { %1921 = vadd.xlane.f32.xlu1 %v1873_v0 }
 0x2dd   : > { %v10441_v21 = vsub.f32 %v10273_v2, %v1812_v20  ;;  %v10539_v2 = vld [vmem:[%s12986_s6] ss:$0 sm:$0xff] }
 0x2df   : > { %1923 = vadd.xlane.f32.xlu0 %v1874_v63  ;;  %v1876_v46 = vmul.f32 %v10441_v21, %v10441_v21 }
 0x2e0   : > { %1925 = vadd.xlane.f32.xlu1 %v1875_v4 }
 0x2e3   : > { %1927 = vadd.xlane.f32.xlu0 %v1876_v46 }
 0x32b   : > { %v1890_v9 = vpop.xlane.xlu1 %1889 }
 0x32c   : > { %v1953_v13 = vmul.f32 0.0078125, %v1890_v9 }
 0x32e   : > { %v1985_v57 = vadd.f32 1e-05, %v1953_v13  ;;  %v1952_v40 = vpop.xlane.xlu0 %1951 }
 0x32f   : > { %v1984_v8 = vmul.f32 0.0078125, %v1952_v40  ;;  %v1892_v0 = vpop.xlane.xlu1 %1891 }
 0x330   : > { %8722 = vrsqrt.f32 %v1985_v57  ;;  %v1954_v20 = vmul.f32 0.0078125, %v1892_v0 }
 0x331   : > { %v2016_v38 = vadd.f32 1e-05, %v1984_v8 }
 0x332   : > { %v1986_v27 = vadd.f32 1e-05, %v1954_v20  ;;  %v1770_v6 = vpop.xlane.xlu0 %1769 }
 0x333   : > { %8724 = vrsqrt.f32 %v2016_v38  ;;  %v1813_v18 = vmul.f32 0.0078125, %v1770_v6  ;;  %v1772_v39 = vpop.xlane.xlu1 %1771 }
 0x334   : > { %8726 = vrsqrt.f32 %v1986_v27  ;;  %v1814_v63 = vmul.f32 0.0078125, %v1772_v39 }
 0x335   : > { %v10450_v4 = vsub.f32 %v10296_v11, %v1813_v18  ;;  %v847_v18 = vlaneseq  ;;  %v10462_v11 = vld [vmem:[%s12977_s11] ss:$0 sm:$0xff] }
 0x336   : > { %v10453_v46 = vsub.f32 %v10299_v30, %v1814_v63  ;;  %v1894_v9 = vpop.xlane.xlu0 %1893 }
 0x337   : > { %v1955_v13 = vmul.f32 0.0078125, %v1894_v9  ;;  %v1896_v40 = vpop.xlane.xlu1 %1895  ;;  %v1877_v57 = vmul.f32 %v10450_v4, %v10450_v4 }
 0x338   : > { %v1956_v8 = vmul.f32 0.0078125, %v1896_v40  ;;  %v1878_v38 = vmul.f32 %v10453_v46, %v10453_v46 }
 0x339   : > { %v1987_v6 = vadd.f32 1e-05, %v1955_v13  ;;  %1929 = vadd.xlane.f32.xlu1 %v1877_v57 }
 0x33a   : > { %v1988_v27 = vadd.f32 1e-05, %v1956_v8  ;;  %v1774_v39 = vpop.xlane.xlu0 %1773  ;;  %1931 = vadd.xlane.f32.xlu0 %v1878_v38  ;;  %v10470_v8 = vshrl.u32 %v847_v18, 7 }
 0x33b   : > { %8728 = vrsqrt.f32 %v1987_v6  ;;  %v1815_v0 = vmul.f32 0.0078125, %v1774_v39  ;;  %v1776_v20 = vpop.xlane.xlu1 %1775 }
 0x33c   : > { %8730 = vrsqrt.f32 %v1988_v27  ;;  %v1816_v63 = vmul.f32 0.0078125, %v1776_v20  ;;  %12978 = vst [vmem:[#allocation60_spill] sm:$0xff] %v10470_v8  ;;  %v10478_v20 = vld [vmem:[%s12979_s30] ss:$0 sm:$0xff]  ;;  %v884_v30 = vand.u32 127, %v10470_v8  ;;  %vm2305_vm0 = vcmp.lt.s32.totalorder %v10470_v8, 1 }
 0x33d   : > { %v8723_v9 = vpop.eup %8722  ;;  %v10465_v40 = vsub.f32 %v10318_v16, %v1815_v0 }
 0x33e   : > { %v10468_v13 = vsub.f32 %v10321_v59, %v1816_v63  ;;  %v1898_v57 = vpop.xlane.xlu0 %1897  ;;  %v2049_v38 = vmul.f32 %v8723_v9, %v10277_v62  ;;  %vm10503_vm1 = vcmp.eq.s32.totalorder %v884_v30, 0 }
 0x33f   : > { %v1957_v6 = vmul.f32 0.0078125, %v1898_v57  ;;  %v1900_v27 = vpop.xlane.xlu1 %1899  ;;  %v1879_v39 = vmul.f32 %v10465_v40, %v10465_v40 }
 0x340   : > { %v8725_v0 = vpop.eup %8724  ;;  %v1958_v16 = vmul.f32 0.0078125, %v1900_v27  ;;  %v1880_v63 = vmul.f32 %v10468_v13, %v10468_v13  ;;  %v2087_v18 = vmul.f32 %v10462_v11, %v2049_v38 }
 0x341   : > { %v8727_v59 = vpop.eup %8726  ;;  %v2080_v62 = vmul.f32 %v8725_v0, %v10282_v22  ;;  %v1989_v9 = vadd.f32 1e-05, %v1957_v6  ;;  %1933 = vadd.xlane.f32.xlu1 %v1879_v39  ;;  %v10492_v22 = vld [vmem:[%s12980_s7] ss:$0 sm:$0xff] }
 0x342   : > { %v1990_v57 = vadd.f32 1e-05, %v1958_v16  ;;  %1935 = vadd.xlane.f32.xlu0 %v1880_v63  ;;  %v2050_v53 = vmul.f32 %v8727_v59, %v10285_v15  ;;  %v2125_v50 = vadd.f32 %v10478_v20, %v2087_v18  ;;  %v10497_v16 = vld [vmem:[%s12776_s9] ss:$0 sm:$0xff] }
 0x343   : > { %v2118_v27 = vmul.f32 %v10462_v11, %v2080_v62  ;;  %8732 = vrsqrt.f32 %v1989_v9 }
 0x344   : > { %8734 = vrsqrt.f32 %v1990_v57  ;;  %v1778_v12 = vpop.xlane.xlu0 %1777  ;;  %v2088_v38 = vmul.f32 %v10462_v11, %v2050_v53  ;;  %v12982_v53 = vmov 0  ;;  %v2273_v63 = vrot.slane %v2125_v50, 7 }
 0x345   : > { %v1817_v15 = vmul.f32 0.0078125, %v1778_v12  ;;  %v1780_v59 = vpop.xlane.xlu1 %1779  ;;  %v10500_v6 = vadd.f32 %v10478_v20, %v2118_v27  ;;  %v12983_v53 = vsel %vm10503_vm1, 4294967295, %v12982_v53  ;;  %v2440_v62 = vmul.f32 %v10492_v22, %v2125_v50 }
 0x346   : > { %v1818_v39 = vmul.f32 0.0078125, %v1780_v59  ;;  %12984 = vst [vmem:[#allocation62_spill] sm:$0xff] %v12983_v53  ;;  %v10508_v0 = vadd.f32 %v10478_v20, %v2088_v38  ;;  %v2564_v9 = vmul.f32 %v10497_v16, %v2125_v50  ;;  %v10522_v38 = vld [vmem:[%s12775_s8] ss:$0 sm:$0xff] }
 0x347   : > { %12981 = vst [vmem:[#allocation61_spill] sm:$0xff] %v10500_v6  ;;  %v10511_v18 = vsub.f32 %v10343_v26, %v1817_v15 }
 0x348   : > { %v8729_v57 = vpop.eup %8728  ;;  %v10517_v27 = vsub.f32 %v10349_v31, %v1818_v39  ;;  %v1902_v30 = vpop.xlane.xlu0 %1901  ;;  %v2274_v59 = vrot.slane %v10508_v0, 7  ;;  %v2441_v15 = vmul.f32 %v10492_v22, %v10508_v0  ;;  %v2565_v12 = vmul.f32 %v10497_v16, %v10508_v0 }
 0x349   : > { %v8731_v26 = vpop.eup %8730  ;;  %v1959_v50 = vmul.f32 0.0078125, %v1902_v30  ;;  %v1904_v47 = vpop.xlane.xlu1 %1903  ;;  %v1881_v39 = vmul.f32 %v10511_v18, %v10511_v18  ;;  %v12985_v31 = vrot.slane %v10500_v6, 7  ;;  %v2051_v32 = vmul.f32 %v8729_v57, %v10303_v60 }
 0x34a   : > { %v1960_v1 = vmul.f32 0.0078125, %v1904_v47  ;;  %v1882_v0 = vmul.f32 %v10517_v27, %v10517_v27  ;;  %v2336_v30 = vsel %vm2305_vm0, %v2273_v63, %v2274_v59  ;;  %v2052_v57 = vmul.f32 %v8731_v26, %v10307_v61 }
 0x34b   : > { %v2337_v37 = vsel %vm2305_vm0, %v12985_v31, %v2273_v63  ;;  %v1991_v5 = vadd.f32 1e-05, %v1959_v50  ;;  %1937 = vadd.xlane.f32.xlu1 %v1881_v39  ;;  %v2479_v60 = vmul.f32 %v10522_v38, %v2336_v30  ;;  %v2089_v47 = vmul.f32 %v10462_v11, %v2051_v32 }
 0x34c   : > { %v2402_v23 = vsel %vm10503_vm1, 0.0, %v2337_v37  ;;  %v1992_v54 = vadd.f32 1e-05, %v1960_v1  ;;  %v1782_v33 = vpop.xlane.xlu0 %1781  ;;  %1939 = vadd.xlane.f32.xlu0 %v1882_v0  ;;  %v2603_v63 = vmul.f32 %v10539_v2, %v2336_v30  ;;  %v2090_v28 = vmul.f32 %v10462_v11, %v2052_v57 }
 0x34d   : > { %v2478_v31 = vmul.f32 %v10522_v38, %v2402_v23  ;;  %v2602_v45 = vmul.f32 %v10539_v2, %v2402_v23  ;;  %8736 = vrsqrt.f32 %v1991_v5  ;;  %v1819_v53 = vmul.f32 0.0078125, %v1782_v33  ;;  %v1784_v37 = vpop.xlane.xlu1 %1783 }
 0x34e   : > { %v2511_v39 = vadd.f32 %v2479_v60, %v2441_v15  ;;  %8738 = vrsqrt.f32 %v1992_v54  ;;  %v1820_v3 = vmul.f32 0.0078125, %v1784_v37  ;;  %v2127_v61 = vadd.f32 %v10478_v20, %v2089_v47 }
 0x34f   : > { %v2510_v50 = vadd.f32 %v2478_v31, %v2440_v62  ;;  %v10556_v1 = vsub.f32 %v10365_v24, %v1819_v53  ;;  %v10558_v32 = vadd.f32 %v2602_v45, %v2564_v9  ;;  %v10560_v23 = vadd.f32 %v2603_v63, %v2565_v12 }
 0x350   : > { %v8733_v0 = vpop.eup %8732  ;;  %v10563_v33 = vsub.f32 %v10371_v19, %v1820_v3  ;;  %v1906_v5 = vpop.xlane.xlu0 %1905  ;;  %v10566_v54 = vadd.f32 %v10478_v20, %v2090_v28  ;;  %v2275_v62 = vrot.slane %v2127_v61, 7  ;;  %v2442_v15 = vmul.f32 %v10492_v22, %v2127_v61 }
 0x351   : > { %v2542_v26 = vpack.c.bf16 %v2511_v39, %v2510_v50  ;;  %12987 = vst [vmem:[#allocation63_spill] sm:$0xff] %v10558_v32  ;;  %12988 = vst [vmem:[#allocation64_spill] sm:$0xff] %v10560_v23  ;;  %v8735_v30 = vpop.eup %8734  ;;  %v2053_v53 = vmul.f32 %v8733_v0, %v10325_v43  ;;  %v1961_v31 = vmul.f32 0.0078125, %v1906_v5  ;;  %v1908_v60 = vpop.xlane.xlu1 %1907  ;;  %v1883_v45 = vmul.f32 %v10556_v1, %v10556_v1 }
 0x352   : > { %v2566_v3 = vmul.f32 %v10497_v16, %v2127_v61  ;;  %v2054_v12 = vmul.f32 %v8735_v30, %v10329_v41  ;;  %v1962_v9 = vmul.f32 0.0078125, %v1908_v60  ;;  %v1884_v28 = vmul.f32 %v10563_v33, %v10563_v33 }
 0x353   : > { %2875 = vmatmul.mubr.bf16.vlgmr.msra.gmra.mxu0 %v2542_v26  ;;  %3068 = vmatmul.mubr.bf16.vlgmr.msra.gmra.mxu1 %v2542_v26  ;;  %v12989_v57 = vmov 0   ;;  %v2276_v43 = vrot.slane %v10566_v54, 7  ;;  %v1993_v47 = vadd.f32 1e-05, %v1961_v31  ;;  %v2335_v63 = vsel %vm2305_vm0, %v2274_v59, %v2275_v62 }
 0x354   : > { %2884 = vmatprep.mubr.bf16.mxu0 %v12989_v57  ;;  %3077 = vmatprep.mubr.bf16.mxu1 %v12989_v57  ;;  %v2443_v37 = vmul.f32 %v10492_v22, %v10566_v54  ;;  %v2567_v41 = vmul.f32 %v10497_v16, %v10566_v54  ;;  %v1994_v50 = vadd.f32 1e-05, %v1962_v9  ;;  %v1786_v39 = vpop.xlane.xlu0 %1785  ;;  %v2480_v26 = vmul.f32 %v10522_v38, %v2335_v63 }
 0x355   : > { %1941 = vadd.xlane.f32.xlu1 %v1883_v45  ;;  %1943 = vadd.xlane.f32.xlu0 %v1884_v28  ;;  %v2334_v61 = vsel %vm2305_vm0, %v2275_v62, %v2276_v43  ;;  %v2604_v0 = vmul.f32 %v10539_v2, %v2335_v63  ;;  %8740 = vrsqrt.f32 %v1993_v47  ;;  %v1821_v5 = vmul.f32 0.0078125, %v1786_v39  ;;  %v1788_v30 = vpop.xlane.xlu1 %1787 }
 0x356   : > { %v2481_v59 = vmul.f32 %v10522_v38, %v2334_v61  ;;  %v2605_v31 = vmul.f32 %v10539_v2, %v2334_v61  ;;  %8742 = vrsqrt.f32 %v1994_v50  ;;  %v1822_v60 = vmul.f32 0.0078125, %v1788_v30 }
 0x357   : > { %v2512_v54 = vadd.f32 %v2480_v26, %v2442_v15  ;;  %v10591_v45 = vadd.f32 %v2604_v0, %v2566_v3  ;;  %v10594_v9 = vsub.f32 %v10387_v44, %v1821_v5  ;;  %v2091_v63 = vmul.f32 %v10462_v11, %v2053_v53 }
 0x358   : > { %v2513_v62 = vadd.f32 %v2481_v59, %v2443_v37  ;;  %v10596_v28 = vadd.f32 %v2605_v31, %v2567_v41  ;;  %v10600_v47 = vsub.f32 %v10393_v25, %v1822_v60  ;;  %v1910_v39 = vpop.xlane.xlu0 %1909  ;;  %v2092_v24 = vmul.f32 %v10462_v11, %v2054_v12 }
 0x359   : > { %12990 = vst [vmem:[#allocation65_spill] sm:$0xff] %v10591_v45  ;;  %v1963_v15 = vmul.f32 0.0078125, %v1910_v39  ;;  %v1912_v3 = vpop.xlane.xlu1 %1911  ;;  %v1885_v37 = vmul.f32 %v10594_v9, %v10594_v9  ;;  %v2129_v5 = vadd.f32 %v10478_v20, %v2091_v63 }
 0x35a   : > { %12991 = vst [vmem:[#allocation66_spill] sm:$0xff] %v10596_v28  ;;  %12992 = vst [vmem:[#allocation67_spill] sm:$0xff] %v10600_v47  ;;  %v2543_v61 = vpack.c.bf16 %v2513_v62, %v2512_v54  ;;  %v8737_v41 = vpop.eup %8736  ;;  %v1964_v53 = vmul.f32 0.0078125, %v1912_v3  ;;  %v1886_v0 = vmul.f32 %v10600_v47, %v10600_v47  ;;  %v10613_v12 = vadd.f32 %v10478_v20, %v2092_v24 }
 0x35b   : > { %v8739_v30 = vpop.eup %8738  ;;  %v2055_v59 = vmul.f32 %v8737_v41, %v10340_v29  ;;  %v1995_v31 = vadd.f32 1e-05, %v1963_v15  ;;  %1945 = vadd.xlane.f32.xlu1 %v1885_v37  ;;  %v2277_v39 = vrot.slane %v2129_v5, 7  ;;  %v2444_v29 = vmul.f32 %v10492_v22, %v2129_v5 }
 0x35c   : > { %2885 = vmatmul.mubr.bf16.gmra.mxu0 %v2543_v61  ;;  %3078 = vmatmul.mubr.bf16.gmra.mxu1 %v2543_v61  ;;  %v2056_v60 = vmul.f32 %v8739_v30, %v10346_v42  ;;  %v1996_v54 = vadd.f32 1e-05, %v1964_v53  ;;  %v1790_v62 = vpop.xlane.xlu0 %1789  ;;  %v2278_v3 = vrot.slane %v10613_v12, 7  ;;  %v2445_v24 = vmul.f32 %v10492_v22, %v10613_v12 }
 0x35d   : > { %1947 = vadd.xlane.f32.xlu0 %v1886_v0  ;;  %8744 = vrsqrt.f32 %v1995_v31  ;;  %v1823_v63 = vmul.f32 0.0078125, %v1790_v62  ;;  %v1914_v26 = vpop.xlane.xlu1 %1913  ;;  %2894 = vmatprep.mubr.bf16.mxu0 %v12989_v57  ;;  %v2333_v61 = vsel %vm2305_vm0, %v2276_v43, %v2277_v39  ;;  %v2093_v0 = vmul.f32 %v10462_v11, %v2055_v59 }
 0x35e   : > { %3087 = vmatprep.mubr.bf16.mxu1 %v12989_v57  ;;  %8746 = vrsqrt.f32 %v1996_v54  ;;  %v1965_v42 = vmul.f32 0.0078125, %v1914_v26  ;;  %v10625_v15 = vsel %vm2305_vm0, %v2277_v39, %v2278_v3  ;;  %v2482_v41 = vmul.f32 %v10522_v38, %v2333_v61 }
 0x35f   : > { %v10630_v37 = vsub.f32 %v10410_v7, %v1823_v63  ;;  %v2483_v53 = vmul.f32 %v10522_v38, %v10625_v15  ;;  %v2094_v26 = vmul.f32 %v10462_v11, %v2056_v60  ;;  %v10638_v54 = vadd.s32 128, %v10470_v8 }
 0x360   : > { %v1997_v30 = vadd.f32 1e-05, %v1965_v42  ;;  %v1916_v31 = vpop.xlane.xlu0 %1915  ;;  %v2514_v43 = vadd.f32 %v2482_v41, %v2444_v29  ;;  %v10643_v25 = vadd.f32 %v10478_v20, %v2093_v0  ;;  %v10650_v29 = vmul.f32 %v10497_v16, %v2129_v5 }
 0x361   : > { %12993 = vst [vmem:[#allocation68_spill] sm:$0xff] %v10630_v37  ;;  %v1966_v62 = vmul.f32 0.0078125, %v1916_v31  ;;  %v1918_v50 = vpop.xlane.xlu1 %1917  ;;  %v2515_v39 = vadd.f32 %v2483_v53, %v2445_v24  ;;  %v1887_v63 = vmul.f32 %v10630_v37, %v10630_v37  ;;  %v10646_v59 = vadd.f32 %v10478_v20, %v2094_v26 }
 0x362   : > { %v8741_v7 = vpop.eup %8740  ;;  %8748 = vrsqrt.f32 %v1997_v30  ;;  %v1967_v44 = vmul.f32 0.0078125, %v1918_v50  ;;  %v2279_v50 = vrot.slane %v10643_v25, 7 }
 0x363   : > { %v8743_v60 = vpop.eup %8742  ;;  %v2057_v42 = vmul.f32 %v8741_v7, %v10362_v48  ;;  %v1998_v19 = vadd.f32 1e-05, %v1966_v62  ;;  %v2544_v31 = vpack.c.bf16 %v2515_v39, %v2514_v43  ;;  %1949 = vadd.xlane.f32.xlu1 %v1887_v63  ;;  %v2280_v0 = vrot.slane %v10646_v59, 7 }
 0x364   : > { %v2058_v24 = vmul.f32 %v8743_v60, %v10368_v52  ;;  %v1999_v41 = vadd.f32 1e-05, %v1967_v44  ;;  %v1920_v53 = vpop.xlane.xlu0 %1919  ;;  %v2446_v48 = vmul.f32 %v10492_v22, %v10643_v25  ;;  %v2569_v7 = vmul.f32 %v10497_v16, %v10613_v12 }
 0x365   : > { %8750 = vrsqrt.f32 %v1998_v19  ;;  %2895 = vmatmul.mubr.bf16.gmra.mxu0 %v2544_v31  ;;  %3088 = vmatmul.mubr.bf16.gmra.mxu1 %v2544_v31  ;;  %v1968_v30 = vmul.f32 0.0078125, %v1920_v53  ;;  %v1922_v26 = vpop.xlane.xlu1 %1921  ;;  %v10663_v52 = vsel %vm2305_vm0, %v2279_v50, %v2280_v0  ;;  %v10667_v19 = vsel %vm2305_vm0, %v2278_v3, %v2279_v50 }
 0x366   : > { %8752 = vrsqrt.f32 %v1999_v41  ;;  %v1969_v5 = vmul.f32 0.0078125, %v1922_v26  ;;  %2904 = vmatprep.mubr.bf16.mxu0 %v12989_v57  ;;  %3097 = vmatprep.mubr.bf16.mxu1 %v12989_v57  ;;  %v2447_v62 = vmul.f32 %v10492_v22, %v10646_v59  ;;  %v2484_v12 = vmul.f32 %v10522_v38, %v10667_v19 }
 0x367   : > { %v2000_v44 = vadd.f32 1e-05, %v1968_v30  ;;  %v2485_v43 = vmul.f32 %v10522_v38, %v10663_v52  ;;  %v2095_v60 = vmul.f32 %v10462_v11, %v2057_v42  ;;  %v2096_v31 = vmul.f32 %v10462_v11, %v2058_v24 }
 0x368   : > { %v2001_v39 = vadd.f32 1e-05, %v1969_v5  ;;  %v1924_v63 = vpop.xlane.xlu0 %1923  ;;  %v2606_v41 = vmul.f32 %v10539_v2, %v2333_v61  ;;  %v2516_v50 = vadd.f32 %v2484_v12, %v2446_v48  ;;  %v2607_v61 = vmul.f32 %v10539_v2, %v10625_v15 }
 0x369   : > { %8754 = vrsqrt.f32 %v2000_v44  ;;  %v1970_v3 = vmul.f32 0.0078125, %v1924_v63  ;;  %v1926_v53 = vpop.xlane.xlu1 %1925  ;;  %v2517_v30 = vadd.f32 %v2485_v43, %v2447_v62  ;;  %v10679_v35 = vadd.f32 %v10478_v20, %v2095_v60 }
 0x36a   : > { %v8745_v26 = vpop.eup %8744  ;;  %8756 = vrsqrt.f32 %v2001_v39  ;;  %v1971_v56 = vmul.f32 0.0078125, %v1926_v53  ;;  %v10682_v5 = vadd.f32 %v10478_v20, %v2096_v31 }
 0x36b   : > { %v8747_v45 = vpop.eup %8746  ;;  %v2059_v42 = vmul.f32 %v8745_v26, %v10384_v17  ;;  %v2002_v24 = vadd.f32 1e-05, %v1970_v3  ;;  %v2545_v28 = vpack.c.bf16 %v2517_v30, %v2516_v50  ;;  %v2281_v12 = vrot.slane %v10679_v35, 7 }
 0x36c   : > { %v2060_v48 = vmul.f32 %v8747_v45, %v10390_v55  ;;  %v2003_v44 = vadd.f32 1e-05, %v1971_v56  ;;  %v1928_v62 = vpop.xlane.xlu0 %1927  ;;  %v2282_v43 = vrot.slane %v10682_v5, 7  ;;  %v2448_v17 = vmul.f32 %v10492_v22, %v10679_v35 }
 0x36d   : > { %8758 = vrsqrt.f32 %v2002_v24  ;;  %2905 = vmatmul.mubr.bf16.gmra.mxu0 %v2545_v28  ;;  %3098 = vmatmul.mubr.bf16.gmra.mxu1 %v2545_v28  ;;  %v1972_v39 = vmul.f32 0.0078125, %v1928_v62  ;;  %v2449_v63 = vmul.f32 %v10492_v22, %v10682_v5  ;;  %v10702_v55 = vsel %vm2305_vm0, %v2280_v0, %v2281_v12 }
 0x36e   : > { %8760 = vrsqrt.f32 %v2003_v44  ;;  %2914 = vmatprep.mubr.bf16.mxu0 %v12989_v57  ;;  %3107 = vmatprep.mubr.bf16.mxu1 %v12989_v57  ;;  %v10698_v56 = vsel %vm2305_vm0, %v2281_v12, %v2282_v43  ;;  %v2097_v45 = vmul.f32 %v10462_v11, %v2059_v42  ;;  %v2486_v60 = vmul.f32 %v10522_v38, %v10702_v55 }
 0x36f   : > { %v8749_v28 = vpop.eup %8748  ;;  %v2004_v15 = vadd.f32 1e-05, %v1972_v39  ;;  %v2487_v31 = vmul.f32 %v10522_v38, %v10698_v56  ;;  %v2098_v3 = vmul.f32 %v10462_v11, %v2060_v48  ;;  %v10715_v0 = vadd.f32 %v2606_v41, %v10650_v29 }
 0x370   : > { %v2061_v53 = vmul.f32 %v8749_v28, %v10401_v51  ;;  %v10712_v50 = vadd.f32 %v10478_v20, %v2097_v45  ;;  %v10717_v30 = vadd.f32 %v2607_v61, %v2569_v7  ;;  %v2518_v26 = vadd.f32 %v2486_v60, %v2448_v17  ;;  %v8533_v51 = vld [vmem:[#allocation7 + $0x30] sm:$0xff]  }
 0x371   : > { %12994 = vst [vmem:[#allocation69_spill] sm:$0xff] %v10715_v0  ;;  %8762 = vrsqrt.f32 %v2004_v15  ;;  %v2519_v42 = vadd.f32 %v2487_v31, %v2449_v63  ;;  %v10720_v24 = vadd.f32 %v10478_v20, %v2098_v3  ;;  %v996_v61 = vand.u32 127, %v10638_v54  ;;  %v8534_v0 = vld [vmem:[#allocation7 + $0xf8] sm:$0xff]  }
 0x372   : > { %12995 = vst [vmem:[#allocation70_spill] sm:$0xff] %v10717_v30  ;;  %v8751_v44 = vpop.eup %8750  ;;  %v2283_v62 = vrot.slane %v10712_v50, 7  ;;  %v2099_v48 = vmul.f32 %v10462_v11, %v2061_v53  ;;  %7846 = vmatprep.subr.bf16.mxu1 %v8534_v0 }
 0x373   : > { %v8753_v12 = vpop.eup %8752  ;;  %v2062_v29 = vmul.f32 %v8751_v44, %v10407_v36  ;;  %v2546_v41 = vpack.c.bf16 %v2519_v42, %v2518_v26  ;;  %v2284_v7 = vrot.slane %v10720_v24, 7  ;;  %v2450_v36 = vmul.f32 %v10492_v22, %v10712_v50 }
 0x374   : > { %v2063_v39 = vmul.f32 %v8753_v12, %v10415_v10  ;;  %v2327_v17 = vsel %vm2305_vm0, %v2282_v43, %v2283_v62  ;;  %v10733_v63 = vadd.f32 %v10478_v20, %v2099_v48  ;;  %v2451_v10 = vmul.f32 %v10492_v22, %v10720_v24  ;;  %v8530_v12 = vld [vmem:[#allocation7 + $0x78] sm:$0xff]  }
 0x375   : > { %2915 = vmatmul.mubr.bf16.gmra.mxu0 %v2546_v41  ;;  %3108 = vmatmul.mubr.bf16.gmra.mxu1 %v2546_v41  ;;  %v10737_v45 = vsel %vm2305_vm0, %v2283_v62, %v2284_v7  ;;  %v2488_v28 = vmul.f32 %v10522_v38, %v2327_v17  ;;  %v2100_v15 = vmul.f32 %v10462_v11, %v2062_v29  ;;  %vm10752_vm2 = vcmp.eq.s32.totalorder %v996_v61, 0  ;;  %v8531_v29 = vld [vmem:[#allocation7 + $0x38] sm:$0xff]  }
 0x376   : > { %v8755_v54 = vpop.eup %8754  ;;  %2924 = vmatprep.mubr.bf16.mxu0 %v12989_v57  ;;  %3117 = vmatprep.mubr.bf16.mxu1 %v12989_v57  ;;  %v2489_v43 = vmul.f32 %v10522_v38, %v10737_v45  ;;  %v2285_v60 = vrot.slane %v10733_v63, 7  ;;  %v2101_v53 = vmul.f32 %v10462_v11, %v2063_v39  ;;  %v12996_v26 = vmov 0 }
 0x377   : > { %v8757_v31 = vpop.eup %8756  ;;  %v2064_v3 = vmul.f32 %v8755_v54, %v10421_v49  ;;  %v12997_v26 = vsel %vm10752_vm2, 4294967295, %v12996_v26  ;;  %v2520_v44 = vadd.f32 %v2488_v28, %v2450_v36  ;;  %v10758_v48 = vadd.f32 %v10478_v20, %v2100_v15  ;;  %7734 = vmatprep.subr.bf16.mxu0 %v8530_v12 }
 0x378   : > { %12998 = vst [vmem:[#allocation71_spill] sm:$0xff] %v12997_v26  ;;  %v2065_v42 = vmul.f32 %v8757_v31, %v10426_v58  ;;  %v2521_v62 = vadd.f32 %v2489_v43, %v2451_v10  ;;  %v10762_v41 = vmul.f32 %v10539_v2, %v10667_v19  ;;  %v10766_v49 = vsel %vm2305_vm0, %v2284_v7, %v2285_v60 }
 0x379   : > { %v2102_v61 = vmul.f32 %v10462_v11, %v2064_v3  ;;  %v10770_v39 = vadd.f32 %v10478_v20, %v2101_v53  ;;  %v10774_v36 = vmul.f32 %v10539_v2, %v10663_v52  ;;  %v2286_v54 = vrot.slane %v10758_v48, 7  ;;  %7735 = vmatpush3.bf16.msra.mxu0 %v8531_v29 }
 0x37a   : > { %v8759_v58 = vpop.eup %8758  ;;  %v2547_v28 = vpack.c.bf16 %v2521_v62, %v2520_v44  ;;  %v2103_v19 = vmul.f32 %v10462_v11, %v2065_v42  ;;  %v2570_v31 = vmul.f32 %v10497_v16, %v10643_v25  ;;  %v10786_v52 = vmul.f32 %v10539_v2, %v2327_v17 }
 0x37b   : > { %v8761_v10 = vpop.eup %8760  ;;  %v2066_v7 = vmul.f32 %v8759_v58, %v10431_v14  ;;  %v10780_v43 = vadd.f32 %v10478_v20, %v2102_v61  ;;  %v2287_v15 = vrot.slane %v10770_v39, 7  ;;  %v10790_v3 = vsel %vm2305_vm0, %v2285_v60, %v2286_v54 }
 0x37c   : > { %v2490_v53 = vmul.f32 %v10522_v38, %v10766_v49  ;;  %v10795_v14 = vadd.f32 %v10478_v20, %v2103_v19  ;;  %v2067_v42 = vmul.f32 %v8761_v10, %v10436_v34  ;;  %v2453_v25 = vmul.f32 %v10492_v22, %v10758_v48  ;;  %v8532_v10 = vld [vmem:[#allocation7 + $0x70] sm:$0xff]  }
 0x37d   : > { %2925 = vmatmul.mubr.bf16.gmra.mxu0 %v2547_v28  ;;  %3118 = vmatmul.mubr.bf16.gmra.mxu1 %v2547_v28  ;;  %v2491_v17 = vmul.f32 %v10522_v38, %v10790_v3  ;;  %v2288_v44 = vrot.slane %v10780_v43, 7  ;;  %v2452_v62 = vmul.f32 %v10492_v22, %v10733_v63  ;;  %v2104_v34 = vmul.f32 %v10462_v11, %v2066_v7 }
 0x37e   : > { %v8763_v60 = vpop.eup %8762  ;;  %2934 = vmatprep.mubr.bf16.mxu0 %v12989_v57  ;;  %3127 = vmatprep.mubr.bf16.mxu1 %v12989_v57  ;;  %v2289_v12 = vrot.slane %v10795_v14, 7  ;;  %v2571_v29 = vmul.f32 %v10497_v16, %v10646_v59  ;;  %v2323_v19 = vsel %vm2305_vm0, %v2286_v54, %v2287_v15  ;;  %v2454_v7 = vmul.f32 %v10492_v22, %v10770_v39 }
 0x37f   : > { %v2068_v61 = vmul.f32 %v8763_v60, %v10441_v21  ;;  %v2523_v58 = vadd.f32 %v2491_v17, %v2453_v25  ;;  %v2322_v28 = vsel %vm2305_vm0, %v2287_v15, %v2288_v44  ;;  %v2522_v30 = vadd.f32 %v2490_v53, %v2452_v62  ;;  %v8535_v21 = vld [vmem:[#allocation7 + $0xb8] sm:$0xff]   ;;  %v8536_v25 = vld [vmem:[#allocation7 + $0xf0] sm:$0xff]   ;;  %v8537_v17 = vld [vmem:[#allocation7 + $0x68] sm:$0xff]   ;;  %7736 = vmatprep.subr.bf16.mxu0 %v8532_v10 }
 0x380   : > { %v2493_v32 = vmul.f32 %v10522_v38, %v2322_v28  ;;  %v10820_v59 = vadd.f32 %v10478_v20, %v2104_v34  ;;  %v2455_v60 = vmul.f32 %v10492_v22, %v10780_v43  ;;  %v2321_v54 = vsel %vm2305_vm0, %v2288_v44, %v2289_v12  ;;  %7737 = vmatpush3.bf16.msra.mxu0 %v8533_v51 }
 0x381   : > { %v2105_v15 = vmul.f32 %v10462_v11, %v2067_v42  ;;  %v2106_v53 = vmul.f32 %v10462_v11, %v2068_v61  ;;  %v2548_v62 = vpack.c.bf16 %v2523_v58, %v2522_v30  ;;  %v2492_v23 = vmul.f32 %v10522_v38, %v2323_v19  ;;  %7847 = vmatpush3.bf16.msra.mxu1 %v8535_v21  ;;  %v8538_v11 = vld [vmem:[#allocation7 + $0xb0] sm:$0xff]   ;;  %v8539_v30 = vld [vmem:[#allocation7 + $0x28] sm:$0xff]  }
 0x382   : > { %v2290_v34 = vrot.slane %v10820_v59, 7  ;;  %v10832_v6 = vsel %vm10752_vm2, 0.0, %v2321_v54  ;;  %v2525_v37 = vadd.f32 %v2493_v32, %v2455_v60  ;;  %7738 = vmatprep.subr.bf16.mxu0 %v8537_v17  ;;  %7848 = vmatprep.subr.bf16.mxu1 %v8536_v25  ;;  %v10847_v32 = vadd.f32 %v10762_v41, %v2570_v31  ;;  %v8540_v60 = vld [vmem:[#allocation7 + $0xe8] sm:$0xff]  }
 0x383   : > { %v10835_v47 = vadd.f32 %v10478_v20, %v2105_v15  ;;  %v10838_v42 = vadd.f32 %v10478_v20, %v2106_v53  ;;  %v2494_v61 = vmul.f32 %v10522_v38, %v10832_v6  ;;  %v10850_v0 = vadd.f32 %v10774_v36, %v2571_v29  ;;  %v8541_v54 = vld [vmem:[#allocation7 + $0xa8] sm:$0xff]   ;;  %v8542_v15 = vld [vmem:[#allocation7 + $0x60] sm:$0xff]  }
 0x384   : > { %v10842_v44 = vsel %vm2305_vm0, %v2289_v12, %v2290_v34  ;;  %v2613_v51 = vmul.f32 %v10539_v2, %v10737_v45  ;;  %v2524_v41 = vadd.f32 %v2492_v23, %v2454_v7  ;;  %v2456_v36 = vmul.f32 %v10492_v22, %v10795_v14  ;;  %7739 = vmatpush3.bf16.msra.mxu0 %v8539_v30  ;;  %v8543_v45 = vld [vmem:[#allocation7 + $0xe0] sm:$0xff]  }
 0x385   : > { %2935 = vmatmul.mubr.bf16.gmra.mxu0 %v2548_v62  ;;  %3128 = vmatmul.mubr.bf16.gmra.mxu1 %v2548_v62  ;;  %v2495_v58 = vmul.f32 %v10522_v38, %v10842_v44  ;;  %v2291_v12 = vrot.slane %v10835_v47, 7  ;;  %v12851_v10 = vrot.slane %v10838_v42, 7  ;;  %v2457_v31 = vmul.f32 %v10492_v22, %v10820_v59  ;;  %v8545_v30 = vld [vmem:[#allocation7 + $0xa0] sm:$0xff]  }
 0x386   : > { %2944 = vmatprep.mubr.bf16.mxu0 %v12989_v57  ;;  %3137 = vmatprep.mubr.bf16.mxu1 %v12989_v57  ;;  %v2549_v23 = vpack.c.bf16 %v2525_v37, %v2524_v41  ;;  %v2616_v7 = vmul.f32 %v10539_v2, %v2323_v19  ;;  %v2617_v25 = vmul.f32 %v10539_v2, %v2322_v28 }
 0x387   : > { %v2318_v29 = vsel %vm2305_vm0, %v2291_v12, %v12851_v10  ;;  %v10872_v21 = vsel %vm2305_vm0, %v2290_v34, %v2291_v12  ;;  %7849 = vmatpush3.bf16.msra.mxu1 %v8538_v11  ;;  %v2526_v17 = vadd.f32 %v2494_v61, %v2456_v36  ;;  %v2527_v53 = vadd.f32 %v2495_v58, %v2457_v31  ;;  %v8544_v10 = vld [vmem:[#allocation7 + $0x20] sm:$0xff]   ;;  %v8547_v31 = vld [vmem:[#allocation7 + $0xd8] sm:$0xff]  }
 0x388   : > { %v10877_v62 = vmul.f32 %v10522_v38, %v2318_v29  ;;  %v2572_v34 = vmul.f32 %v10497_v16, %v10679_v35  ;;  %v2610_v37 = vmul.f32 %v10539_v2, %v10702_v55  ;;  %v2620_v19 = vmul.f32 %v10539_v2, %v10872_v21  ;;  %7850 = vmatprep.subr.bf16.mxu1 %v8540_v60 }
 0x389   : > { %7740 = vmatprep.subr.bf16.mxu0 %v8542_v15  ;;  %v2573_v28 = vmul.f32 %v10497_v16, %v10682_v5  ;;  %v2611_v11 = vmul.f32 %v10539_v2, %v10698_v56  ;;  %v2574_v35 = vmul.f32 %v10497_v16, %v10712_v50  ;;  %v2575_v55 = vmul.f32 %v10497_v16, %v10720_v24 }
 0x38a   : > { %7741 = vmatpush3.bf16.msra.mxu0 %v8544_v10  ;;  %v10889_v61 = vadd.f32 %v2610_v37, %v2572_v34  ;;  %v2621_v58 = vmul.f32 %v10539_v2, %v2318_v29  ;;  %v2576_v5 = vmul.f32 %v10497_v16, %v10733_v63  ;;  %v2577_v56 = vmul.f32 %v10497_v16, %v10758_v48  ;;  %v8548_v29 = vld [vmem:[#allocation7 + $0x18] sm:$0xff]  }
 0x38b   : > { %7851 = vmatpush3.bf16.msra.mxu1 %v8541_v54  ;;  %v10896_v12 = vadd.f32 %v2611_v11, %v2573_v28  ;;  %v10903_v10 = vadd.f32 %v10786_v52, %v2574_v35  ;;  %v10905_v50 = vadd.f32 %v2613_v51, %v2575_v55  ;;  %v2614_v24 = vmul.f32 %v10539_v2, %v10766_v49  ;;  %v8552_v35 = vld [vmem:[#allocation7 + $0x10] sm:$0xff]  }
 0x38c   : > { %7852 = vmatprep.subr.bf16.mxu1 %v8543_v45  ;;  %v2615_v48 = vmul.f32 %v10539_v2, %v10790_v3  ;;  %v2578_v41 = vmul.f32 %v10497_v16, %v10770_v39  ;;  %v2550_v52 = vpack.c.bf16 %v2527_v53, %v2526_v17  ;;  %v2579_v49 = vmul.f32 %v10497_v16, %v10780_v43  ;;  %v8546_v45 = vld [vmem:[#allocation7 + $0x58] sm:$0xff]  }
 0x38d   : > { %2945 = vmatmul.mubr.bf16.gmra.mxu0 %v2549_v23  ;;  %3138 = vmatmul.mubr.bf16.gmra.mxu1 %v2549_v23  ;;  %v2670_v63 = vpack.c.bf16 %v10896_v12, %v10889_v61  ;;  %v2671_v51 = vpack.c.bf16 %v10905_v50, %v10903_v10  ;;  %v10919_v36 = vadd.f32 %v2614_v24, %v2576_v5  ;;  %v8549_v17 = vld [vmem:[#allocation7 + $0x98] sm:$0xff]   ;;  %v8554_v24 = vld [vmem:[#allocation7 + $0x48] sm:$0xff]  }
 0x38e   : > { %2954 = vmatprep.mubr.bf16.mxu0 %v12989_v57  ;;  %3147 = vmatprep.mubr.bf16.mxu1 %v12989_v57  ;;  %v10923_v23 = vadd.f32 %v2615_v48, %v2577_v56  ;;  %v10925_v60 = vadd.f32 %v2616_v7, %v2578_v41  ;;  %v2580_v39 = vmul.f32 %v10497_v16, %v10795_v14  ;;  %v8553_v56 = vld [vmem:[#allocation7 + $0x90] sm:$0xff]   ;;  %v8555_v48 = vld [vmem:[#allocation7 + $0xc8] sm:$0xff]  }
 0x38f   : > { %7853 = vmatpush3.bf16.msra.mxu1 %v8545_v30  ;;  %v2618_v3 = vmul.f32 %v10539_v2, %v10832_v6  ;;  %v10931_v54 = vadd.f32 %v2617_v25, %v2579_v49  ;;  %v2581_v15 = vmul.f32 %v10497_v16, %v10820_v59  ;;  %v2619_v43 = vmul.f32 %v10539_v2, %v10842_v44  ;;  %v8550_v30 = vld [vmem:[#allocation7 + $0x50] sm:$0xff]   ;;  %v8557_v49 = vld [vmem:[#allocation7 + $0x88] sm:$0xff]  }
 0x390   : > { %v2582_v53 = vmul.f32 %v10497_v16, %v10835_v47  ;;  %7742 = vmatprep.subr.bf16.mxu0 %v8546_v45  ;;  %7854 = vmatprep.subr.bf16.mxu1 %v8547_v31  ;;  %v2672_v14 = vpack.c.bf16 %v10923_v23, %v10919_v36  ;;  %v2583_v6 = vmul.f32 %v10497_v16, %v10838_v42  ;;  %v8560_v45 = vld [vmem:[#allocation7] sm:$0xff]  }
 0x391   : > { %v10941_v7 = vadd.f32 %v2618_v3, %v2580_v39  ;;  %7743 = vmatpush3.bf16.msra.mxu0 %v8548_v29  ;;  %v2673_v59 = vpack.c.bf16 %v10931_v54, %v10925_v60  ;;  %v10947_v25 = vadd.f32 %v2619_v43, %v2581_v15  ;;  %v2459_v37 = vmul.f32 %v10492_v22, %v10838_v42  ;;  %v8561_v31 = vld [vmem:[#allocation7 + $0x80] sm:$0xff]  }
 0x392   : > { %v10949_v44 = vadd.f32 %v2620_v19, %v2582_v53  ;;  %v10951_v34 = vadd.f32 %v2621_v58, %v2583_v6  ;;  %v2496_v28 = vmul.f32 %v10522_v38, %v10872_v21  ;;  %v8551_v19 = vld [vmem:[#allocation7 + $0xd0] sm:$0xff]   ;;  %v2458_v58 = vmul.f32 %v10492_v22, %v10835_v47  ;;  %7744 = vmatprep.subr.bf16.mxu0 %v8550_v30  ;;  %v8558_v47 = vld [vmem:[#allocation7 + $0x40] sm:$0xff]  }
 0x393   : > { %7855 = vmatpush3.bf16.msra.mxu1 %v8549_v17  ;;  %v2674_v11 = vpack.c.bf16 %v10947_v25, %v10941_v7  ;;  %v2529_v5 = vadd.f32 %v10877_v62, %v2459_v37  ;;  %v8559_v62 = vld [vmem:[#allocation7 + $0xc0] sm:$0xff]  }
 0x394   : > { %v2675_v55 = vpack.c.bf16 %v10951_v34, %v10949_v44  ;;  %7856 = vmatprep.subr.bf16.mxu1 %v8551_v19  ;;  %v2528_v21 = vadd.f32 %v2496_v28, %v2458_v58 }
 0x395   : > { %2955 = vmatmul.mubr.bf16.gmra.mxu0 %v2550_v52  ;;  %3148 = vmatmul.mubr.bf16.gmra.mxu1 %v2550_v52  ;;  %v8556_v52 = vld [vmem:[#allocation7 + $0x8] sm:$0xff]  }
 0x396   : > { %2964 = vmatprep.mubr.bf16.mxu0 %v12989_v57  ;;  %3157 = vmatprep.mubr.bf16.mxu1 %v12989_v57  ;;  %v2551_v41 = vpack.c.bf16 %v2529_v5, %v2528_v21 }
 0x397   : > { %7745 = vmatpush3.bf16.msra.mxu0 %v8552_v35  ;;  %7857 = vmatpush3.bf16.msra.mxu1 %v8553_v56 }
 0x398   : > { %7746 = vmatprep.subr.bf16.mxu0 %v8554_v24  ;;  %7858 = vmatprep.subr.bf16.mxu1 %v8555_v48 }
 0x39b   : > { %7747 = vmatpush3.bf16.msra.mxu0 %v8556_v52  ;;  %7859 = vmatpush3.bf16.msra.mxu1 %v8557_v49  ;;  %v10973_v49 = vld [vmem:[%s12977_s11] ss:$0 sm:$0xff] }
 0x39c   : > { %7748 = vmatprep.subr.bf16.mxu0 %v8558_v47  ;;  %7860 = vmatprep.subr.bf16.mxu1 %v8559_v62 }
 0x39d   : > { %2965 = vmatmul.mubr.bf16.gmra.mxu0 %v2551_v41  ;;  %3158 = vmatmul.mubr.bf16.gmra.mxu1 %v2551_v41 }
 0x39e   : > { %2974 = vmatprep.mubr.bf16.mxu0 %v12989_v57  ;;  %3167 = vmatprep.mubr.bf16.mxu1 %v12989_v57 }
 0x39f   : > { %7749 = vmatpush3.bf16.msra.mxu0 %v8560_v45  ;;  %7861 = vmatpush3.bf16.msra.mxu1 %v8561_v31 }
 0x3c2   : > { %v1930_v29 = vpop.xlane.xlu1 %1929 }
 0x3c3   : > { %v1973_v39 = vmul.f32 0.0078125, %v1930_v29  ;;  %v1932_v3 = vpop.xlane.xlu0 %1931 }
 0x3c4   : > { %v1974_v17 = vmul.f32 0.0078125, %v1932_v3 }
 0x3c5   : > { %v2005_v15 = vadd.f32 1e-05, %v1973_v39 }
 0x3c6   : > { %v2006_v43 = vadd.f32 1e-05, %v1974_v17 }
 0x3c7   : > { %8764 = vrsqrt.f32 %v2005_v15 }
 0x3c8   : > { %8766 = vrsqrt.f32 %v2006_v43 }
 0x3ca   : > { %v1934_v53 = vpop.xlane.xlu1 %1933 }
 0x3cb   : > { %v1975_v6 = vmul.f32 0.0078125, %v1934_v53  ;;  %v1936_v37 = vpop.xlane.xlu0 %1935 }
 0x3cc   : > { %v1976_v28 = vmul.f32 0.0078125, %v1936_v37 }
 0x3cd   : > { %v2007_v30 = vadd.f32 1e-05, %v1975_v6 }
 0x3ce   : > { %v2008_v19 = vadd.f32 1e-05, %v1976_v28 }
 0x3cf   : > { %8768 = vrsqrt.f32 %v2007_v30  ;;  %v12999_v30 = vrot.slane %v10838_v42, 7 }
 0x3d0   : > { %8770 = vrsqrt.f32 %v2008_v19 }
 0x3d4   : > { %v8765_v35 = vpop.eup %8764  ;;  %v1938_v58 = vpop.xlane.xlu1 %1937 }
 0x3d5   : > { %v8767_v5 = vpop.eup %8766  ;;  %v2069_v56 = vmul.f32 %v8765_v35, %v10450_v4  ;;  %v1977_v21 = vmul.f32 0.0078125, %v1938_v58  ;;  %v1940_v24 = vpop.xlane.xlu0 %1939 }
 0x3d6   : > { %v2070_v48 = vmul.f32 %v8767_v5, %v10453_v46  ;;  %v1978_v41 = vmul.f32 0.0078125, %v1940_v24 }
 0x3d7   : > { %v2009_v52 = vadd.f32 1e-05, %v1977_v21  ;;  %v2107_v47 = vmul.f32 %v10973_v49, %v2069_v56 }
 0x3d8   : > { %v2010_v62 = vadd.f32 1e-05, %v1978_v41  ;;  %v2108_v45 = vmul.f32 %v10973_v49, %v2070_v48 }
 0x3d9   : > { %8772 = vrsqrt.f32 %v2009_v52  ;;  %v2145_v31 = vadd.f32 %v10478_v20, %v2107_v47  ;;  %v11000_v52 = vld [vmem:[%s12979_s30] ss:$0 sm:$0xff] }
 0x3da   : > { %8774 = vrsqrt.f32 %v2010_v62  ;;  %v2146_v4 = vadd.f32 %v10478_v20, %v2108_v45 }
 0x3db   : > { %v2293_v29 = vrot.slane %v2145_v31, 7  ;;  %v2460_v17 = vmul.f32 %v10492_v22, %v2145_v31  ;;  %v2584_v43 = vmul.f32 %v10497_v16, %v2145_v31 }
 0x3dc   : > { %v8769_v46 = vpop.eup %8768  ;;  %v2294_v3 = vrot.slane %v2146_v4, 7  ;;  %v2461_v15 = vmul.f32 %v10492_v22, %v2146_v4  ;;  %v2585_v19 = vmul.f32 %v10497_v16, %v2146_v4 }
 0x3dd   : > { %v8771_v53 = vpop.eup %8770  ;;  %v2071_v6 = vmul.f32 %v8769_v46, %v10465_v40  ;;  %v2317_v20 = vsel %vm2305_vm0, %v12999_v30, %v2293_v29 }
 0x3de   : > { %v1942_v39 = vpop.xlane.xlu1 %1941  ;;  %v1944_v28 = vpop.xlane.xlu0 %1943  ;;  %v2072_v35 = vmul.f32 %v8771_v53, %v10468_v13  ;;  %v2316_v22 = vsel %vm2305_vm0, %v2293_v29, %v2294_v3  ;;  %v2498_v5 = vmul.f32 %v10522_v38, %v2317_v20  ;;  %v2622_v42 = vmul.f32 %v10539_v2, %v2317_v20  ;;  %v11014_v29 = vld [vmem:[%s12980_s7] ss:$0 sm:$0xff] }
 0x3df   : > { %v1979_v37 = vmul.f32 0.0078125, %v1942_v39  ;;  %v1980_v58 = vmul.f32 0.0078125, %v1944_v28  ;;  %v2499_v40 = vmul.f32 %v10522_v38, %v2316_v22  ;;  %v2109_v21 = vmul.f32 %v10973_v49, %v2071_v6 }
 0x3e0   : > { %v2530_v48 = vadd.f32 %v2498_v5, %v2460_v17  ;;  %v2110_v41 = vmul.f32 %v10973_v49, %v2072_v35  ;;  %v2623_v16 = vmul.f32 %v10539_v2, %v2316_v22  ;;  %v11003_v38 = vadd.f32 %v2622_v42, %v2584_v43  ;;  %v11022_v17 = vld [vmem:[%s12776_s9] ss:$0 sm:$0xff]  ;;  %v11041_v22 = vld [vmem:[#allocation8 + $0x38] sm:$0xff]  }
 0x3e1   : > { %v2011_v56 = vadd.f32 1e-05, %v1979_v37  ;;  %v2012_v24 = vadd.f32 1e-05, %v1980_v58  ;;  %v2531_v13 = vadd.f32 %v2499_v40, %v2461_v15  ;;  %v2147_v47 = vadd.f32 %v11000_v52, %v2109_v21  ;;  %v11048_v21 = vld [vmem:[%s12986_s6] ss:$0 sm:$0xff]  ;;  %8230 = vmatprep.subr.bf16.mxu0 %v11041_v22 }
 0x3e2   : > { %v11006_v62 = vadd.f32 %v11000_v52, %v2110_v41  ;;  %v11008_v45 = vadd.f32 %v2623_v16, %v2585_v19  ;;  %s9410_s6 = sshll.u32 %s9510_s23, 4  ;;  %s9411_s6 = int_to_ptr.vmem [resolvable:$false] %s9410_s6 }
 0x3e3   : > { %8776 = vrsqrt.f32 %v2011_v56  ;;  %v2552_v31 = vpack.c.bf16 %v2531_v13, %v2530_v48  ;;  %v2295_v4 = vrot.slane %v2147_v47, 7  ;;  %v2462_v46 = vmul.f32 %v11014_v29, %v2147_v47  ;;  %s9412_s17 = scalar_lea.vmem %s9411_s6, 8192  ;;  %p9413_p8 = scmp.lt.s32.totalorder %s12721_s13, %s9411_s6 }
 0x3e4   : > { %8778 = vrsqrt.f32 %v2012_v24  ;;  %v2296_v2 = vrot.slane %v11006_v62, 7  ;;  %v2586_v15 = vmul.f32 %v11022_v17, %v2147_v47  ;;  %v1946_v43 = vpop.xlane.xlu1 %1945  ;;  %v2463_v37 = vmul.f32 %v11014_v29, %v11006_v62  ;;  %p9414_p9 = scmp.lt.s32.totalorder %s9412_s17, %s9406_s16 }
 0x3e5   : > { %2975 = vmatmul.mubr.bf16.gmra.mxu0 %v2552_v31  ;;  %3168 = vmatmul.mubr.bf16.gmra.mxu1 %v2552_v31  ;;  %v2315_v6 = vsel %vm2305_vm0, %v2294_v3, %v2295_v4  ;;  %v2587_v28 = vmul.f32 %v11022_v17, %v11006_v62  ;;  %v1981_v20 = vmul.f32 0.0078125, %v1946_v43  ;;  %v11038_v3 = vld [vmem:[%s12775_s8] ss:$0 sm:$0xff]  ;;  %v13015_v25 = vpack.c.bf16 %v11008_v45, %v11003_v38 }
 0x3e6   : > { %v1948_v53 = vpop.xlane.xlu0 %1947  ;;  %v8773_v30 = vpop.eup %8772  ;;  %2984 = vmatprep.mubr.bf16.mxu0 %v12989_v57  ;;  %3177 = vmatprep.mubr.bf16.mxu1 %v12989_v57  ;;  %v2314_v35 = vsel %vm2305_vm0, %v2295_v4, %v2296_v2  ;;  %v2500_v58 = vmul.f32 %v11038_v3, %v2315_v6  ;;  %v2624_v42 = vmul.f32 %v11048_v21, %v2315_v6  ;;  %p9415_p10 = por %p9414_p9, %p9413_p8 }
 0x3e7   : > { %v1982_v19 = vmul.f32 0.0078125, %v1948_v53  ;;  %v8775_v5 = vpop.eup %8774  ;;  %v2073_v56 = vmul.f32 %v8773_v30, %v10511_v18  ;;  %v2501_v40 = vmul.f32 %v11038_v3, %v2314_v35  ;;  %v2625_v24 = vmul.f32 %v11048_v21, %v2314_v35 }
 0x3e8   : > { %v2074_v48 = vmul.f32 %v8775_v5, %v10517_v27  ;;  %v2013_v41 = vadd.f32 1e-05, %v1981_v20  ;;  %v2532_v13 = vadd.f32 %v2500_v58, %v2462_v46  ;;  %v11055_v62 = vadd.f32 %v2624_v42, %v2586_v15  ;;  %v8563_v27 = vld [vmem:[#allocation8 + $0x30] sm:$0xff]   ;;  %p9416_p13 = pnand %p9415_p10, %p9409_p6 }
 0x3e9   : > { %v2014_v16 = vadd.f32 1e-05, %v1982_v19  ;;  %v2533_v47 = vadd.f32 %v2501_v40, %v2463_v37  ;;  %v2111_v18 = vmul.f32 %v10973_v49, %v2073_v56  ;;  %v11057_v31 = vadd.f32 %v2625_v24, %v2587_v28 }
 0x3ea   : > { %8780 = vrsqrt.f32 %v2013_v41  ;;  %v2112_v4 = vmul.f32 %v10973_v49, %v2074_v48 }
 0x3eb   : > { %8782 = vrsqrt.f32 %v2014_v16  ;;  %v2553_v43 = vpack.c.bf16 %v2533_v47, %v2532_v13  ;;  %v2149_v53 = vadd.f32 %v11000_v52, %v2111_v18 }
 0x3ec   : > { %v1950_v46 = vpop.xlane.xlu1 %1949  ;;  %v2150_v6 = vadd.f32 %v11000_v52, %v2112_v4 }
 0x3ed   : > { %v1983_v37 = vmul.f32 0.0078125, %v1950_v46  ;;  %2985 = vmatmul.mubr.bf16.gmra.mxu0 %v2553_v43  ;;  %3178 = vmatmul.mubr.bf16.gmra.mxu1 %v2553_v43  ;;  %v2297_v15 = vrot.slane %v2149_v53, 7  ;;  %v2464_v20 = vmul.f32 %v11014_v29, %v2149_v53  ;;  %v2588_v35 = vmul.f32 %v11022_v17, %v2149_v53 }
 0x3ee   : > { %2994 = vmatprep.mubr.bf16.mxu0 %v12989_v57  ;;  %3187 = vmatprep.mubr.bf16.mxu1 %v12989_v57  ;;  %v2298_v28 = vrot.slane %v2150_v6, 7  ;;  %v2465_v19 = vmul.f32 %v11014_v29, %v2150_v6  ;;  %v2589_v42 = vmul.f32 %v11022_v17, %v2150_v6 }
 0x3ef   : > { %v2015_v56 = vadd.f32 1e-05, %v1983_v37  ;;  %v2313_v40 = vsel %vm2305_vm0, %v2296_v2, %v2297_v15 }
 0x3f0   : > { %v8777_v30 = vpop.eup %8776  ;;  %v2312_v48 = vsel %vm2305_vm0, %v2297_v15, %v2298_v28  ;;  %v2502_v41 = vmul.f32 %v11038_v3, %v2313_v40  ;;  %v2626_v16 = vmul.f32 %v11048_v21, %v2313_v40 }
 0x3f1   : > { %v8779_v58 = vpop.eup %8778  ;;  %v2075_v5 = vmul.f32 %v8777_v30, %v10556_v1  ;;  %8784 = vrsqrt.f32 %v2015_v56  ;;  %v2503_v13 = vmul.f32 %v11038_v3, %v2312_v48  ;;  %v2627_v47 = vmul.f32 %v11048_v21, %v2312_v48 }
 0x3f2   : > { %v2076_v24 = vmul.f32 %v8779_v58, %v10563_v33  ;;  %v11082_v18 = vadd.f32 %v2626_v16, %v2588_v35  ;;  %v2534_v4 = vadd.f32 %v2502_v41, %v2464_v20  ;;  %v13000_v41 = vld [vmem:[#allocation67_spill] sm:$0xff] }
 0x3f3   : > { %v2113_v1 = vmul.f32 %v10973_v49, %v2075_v5  ;;  %v2535_v33 = vadd.f32 %v2503_v13, %v2465_v19  ;;  %v11085_v53 = vadd.f32 %v2627_v47, %v2589_v42 }
 0x3f4   : > { %v2114_v2 = vmul.f32 %v10973_v49, %v2076_v24 }
 0x3f5   : > { %v2151_v43 = vadd.f32 %v11000_v52, %v2113_v1  ;;  %v2554_v6 = vpack.c.bf16 %v2535_v33, %v2534_v4  ;;  %v13018_v45 = vpack.c.bf16 %v11085_v53, %v11082_v18 }
 0x3f6   : > { %v2152_v46 = vadd.f32 %v11000_v52, %v2114_v2 }
 0x3f7   : > { %v2299_v37 = vrot.slane %v2151_v43, 7  ;;  %v2466_v58 = vmul.f32 %v11014_v29, %v2151_v43  ;;  %v8781_v35 = vpop.eup %8780  ;;  %2995 = vmatmul.mubr.bf16.gmra.mxu0 %v2554_v6  ;;  %3188 = vmatmul.mubr.bf16.gmra.mxu1 %v2554_v6  ;;  %v2590_v19 = vmul.f32 %v11022_v17, %v2151_v43 }
 0x3f8   : > { %v2300_v30 = vrot.slane %v2152_v46, 7  ;;  %v2467_v5 = vmul.f32 %v11014_v29, %v2152_v46  ;;  %v2591_v56 = vmul.f32 %v11022_v17, %v2152_v46  ;;  %v8783_v40 = vpop.eup %8782  ;;  %v2077_v42 = vmul.f32 %v8781_v35, %v10594_v9  ;;  %3004 = vmatprep.mubr.bf16.mxu0 %v12989_v57  ;;  %3197 = vmatprep.mubr.bf16.mxu1 %v12989_v57 }
 0x3f9   : > { %v2311_v20 = vsel %vm2305_vm0, %v2298_v28, %v2299_v37  ;;  %v2078_v16 = vmul.f32 %v8783_v40, %v13000_v41 }
 0x3fa   : > { %v2310_v24 = vsel %vm2305_vm0, %v2299_v37, %v2300_v30  ;;  %v2504_v48 = vmul.f32 %v11038_v3, %v2311_v20  ;;  %v2628_v13 = vmul.f32 %v11048_v21, %v2311_v20  ;;  %v2115_v9 = vmul.f32 %v10973_v49, %v2077_v42 }
 0x3fb   : > { %v2505_v28 = vmul.f32 %v11038_v3, %v2310_v24  ;;  %v2629_v1 = vmul.f32 %v11048_v21, %v2310_v24  ;;  %v2116_v4 = vmul.f32 %v10973_v49, %v2078_v16 }
 0x3fc   : > { %v2536_v47 = vadd.f32 %v2504_v48, %v2466_v58  ;;  %v11108_v33 = vadd.f32 %v2628_v13, %v2590_v19  ;;  %v2153_v46 = vadd.f32 %v11000_v52, %v2115_v9  ;;  %v13001_v58 = vld [vmem:[#allocation68_spill] sm:$0xff] }
 0x3fd   : > { %v2537_v2 = vadd.f32 %v2505_v28, %v2467_v5  ;;  %v11110_v43 = vadd.f32 %v2629_v1, %v2591_v56  ;;  %v2154_v37 = vadd.f32 %v11000_v52, %v2116_v4 }
 0x3fe   : > { %v8785_v20 = vpop.eup %8784  ;;  %v2301_v40 = vrot.slane %v2153_v46, 7  ;;  %v2468_v56 = vmul.f32 %v11014_v29, %v2153_v46  ;;  %v2592_v42 = vmul.f32 %v11022_v17, %v2153_v46 }
 0x3ff   : > { %v2555_v6 = vpack.c.bf16 %v2537_v2, %v2536_v47  ;;  %v2079_v24 = vmul.f32 %v8785_v20, %v13001_v58  ;;  %v2302_v5 = vrot.slane %v2154_v37, 7  ;;  %v2469_v13 = vmul.f32 %v11014_v29, %v2154_v37 }
 0x400   : > { %v2309_v19 = vsel %vm2305_vm0, %v2300_v30, %v2301_v40  ;;  %v2593_v47 = vmul.f32 %v11022_v17, %v2154_v37 }
 0x401   : > { %3005 = vmatmul.mubr.bf16.gmra.mxu0 %v2555_v6  ;;  %3198 = vmatmul.mubr.bf16.gmra.mxu1 %v2555_v6  ;;  %v2308_v48 = vsel %vm2305_vm0, %v2301_v40, %v2302_v5  ;;  %v2506_v41 = vmul.f32 %v11038_v3, %v2309_v19  ;;  %v2117_v16 = vmul.f32 %v10973_v49, %v2079_v24  ;;  %v13002_v40 = vld [vmem:[#allocation61_spill] sm:$0xff] }
 0x402   : > { %3014 = vmatprep.mubr.bf16.mxu0 %v12989_v57  ;;  %3207 = vmatprep.mubr.bf16.mxu1 %v12989_v57  ;;  %v2630_v28 = vmul.f32 %v11048_v21, %v2309_v19  ;;  %v2507_v1 = vmul.f32 %v11038_v3, %v2308_v48  ;;  %v2631_v30 = vmul.f32 %v11048_v21, %v2308_v48  ;;  %v13003_v37 = vrot.slane %v13002_v40, 7 }
 0x403   : > { %v2155_v9 = vadd.f32 %v11000_v52, %v2117_v16  ;;  %v2538_v4 = vadd.f32 %v2506_v41, %v2468_v56  ;;  %v2471_v58 = vmul.f32 %v11014_v29, %v13002_v40 }
 0x404   : > { %v11133_v2 = vadd.f32 %v2630_v28, %v2592_v42  ;;  %v2539_v46 = vadd.f32 %v2507_v1, %v2469_v13  ;;  %v11135_v6 = vadd.f32 %v2631_v30, %v2593_v47 }
 0x405   : > { %v2303_v20 = vrot.slane %v2155_v9, 7  ;;  %v2470_v56 = vmul.f32 %v11014_v29, %v2155_v9  ;;  %v2594_v42 = vmul.f32 %v11022_v17, %v2155_v9 }
 0x406   : > { %v2556_v49 = vpack.c.bf16 %v2539_v46, %v2538_v4  ;;  %v13020_v53 = vpack.c.bf16 %v11135_v6, %v11133_v2 }
 0x407   : > { %v2306_v19 = vsel %vm2305_vm0, %v2303_v20, %v13003_v37  ;;  %v2307_v52 = vsel %vm2305_vm0, %v2302_v5, %v2303_v20  ;;  %v2595_v5 = vmul.f32 %v11022_v17, %v13002_v40 }
 0x408   : > { %v2508_v48 = vmul.f32 %v11038_v3, %v2307_v52  ;;  %v2509_v41 = vmul.f32 %v11038_v3, %v2306_v19  ;;  %v2632_v16 = vmul.f32 %v11048_v21, %v2307_v52  ;;  %v2633_v28 = vmul.f32 %v11048_v21, %v2306_v19 }
 0x409   : > { %3015 = vmatmul.mubr.bf16.gmra.mxu0 %v2556_v49  ;;  %3208 = vmatmul.mubr.bf16.gmra.mxu1 %v2556_v49 }
 0x40a   : > { %3024 = vmatprep.mubr.bf16.mxu0 %v12989_v57  ;;  %3217 = vmatprep.mubr.bf16.mxu1 %v12989_v57  ;;  %v2540_v29 = vadd.f32 %v2508_v48, %v2470_v56  ;;  %v2541_v13 = vadd.f32 %v2509_v41, %v2471_v58  ;;  %v11157_v1 = vadd.f32 %v2632_v16, %v2594_v42 }
 0x40b   : > { %v11159_v47 = vadd.f32 %v2633_v28, %v2595_v5 }
 0x40c   : > { %v2557_v30 = vpack.c.bf16 %v2541_v13, %v2540_v29 }
 0x411   : > { %3025 = vmatmul.mubr.bf16.gmra.mxu0 %v2557_v30  ;;  %3218 = vmatmul.mubr.bf16.gmra.mxu1 %v2557_v30 }
 0x413   : > { %v2876_v9 = vpop.f32.mrf.mxu0  ;;  %v3069_v4 = vpop.f32.mrf.mxu1 }
 0x414   : > { %v3228_v19 = vmax.f32 %v2876_v9, 0.0  ;;  %v3230_v52 = vmax.f32 %v3069_v4, 0.0 }
 0x415   : > { %v2878_v46 = vpop.f32.mrf.mxu0  ;;  %v3071_v20 = vpop.f32.mrf.mxu1 }
 0x416   : > { %v3229_v37 = vmax.f32 %v2878_v46, 0.0  ;;  %v3231_v17 = vmax.f32 %v3071_v20, 0.0  ;;  %v3356_v3 = vmul.f32 %v3228_v19, %v3228_v19  ;;  %v3358_v24 = vmul.f32 %v3230_v52, %v3230_v52 }
 0x417   : > { %v2880_v21 = vpop.f32.mrf.mxu0  ;;  %v3073_v49 = vpop.f32.mrf.mxu1 }
 0x418   : > { %v3232_v40 = vmax.f32 %v2880_v21, 0.0  ;;  %v3234_v58 = vmax.f32 %v3073_v49, 0.0  ;;  %v3357_v5 = vmul.f32 %v3229_v37, %v3229_v37  ;;  %v3359_v29 = vmul.f32 %v3231_v17, %v3231_v17 }
 0x419   : > { %v2882_v56 = vpop.f32.mrf.mxu0  ;;  %v3075_v42 = vpop.f32.mrf.mxu1 }
 0x41a   : > { %v3233_v48 = vmax.f32 %v2882_v56, 0.0  ;;  %v3235_v41 = vmax.f32 %v3075_v42, 0.0  ;;  %v3360_v16 = vmul.f32 %v3232_v40, %v3232_v40  ;;  %v3362_v28 = vmul.f32 %v3234_v58, %v3234_v58 }
 0x41c   : > { %v3361_v13 = vmul.f32 %v3233_v48, %v3233_v48  ;;  %v3363_v30 = vmul.f32 %v3235_v41, %v3235_v41  ;;  %v2886_v35 = vpop.f32.mrf.mxu0  ;;  %v3079_v15 = vpop.f32.mrf.mxu1  ;;  %v3484_v21 = vpack.c.bf16 %v3360_v16, %v3356_v3  ;;  %v3486_v49 = vpack.c.bf16 %v3362_v28, %v3358_v24  ;;  %v8564_v24 = vld [vmem:[#allocation8 + $0x28] sm:$0xff]  }
 0x41d   : > { %v3236_v52 = vmax.f32 %v2886_v35, 0.0  ;;  %v3238_v42 = vmax.f32 %v3079_v15, 0.0 }
 0x41e   : > { %v3485_v46 = vpack.c.bf16 %v3361_v13, %v3357_v5  ;;  %v3487_v20 = vpack.c.bf16 %v3363_v30, %v3359_v29  ;;  %v2888_v9 = vpop.f32.mrf.mxu0  ;;  %v3081_v4 = vpop.f32.mrf.mxu1 }
 0x41f   : > { %v3237_v37 = vmax.f32 %v2888_v9, 0.0  ;;  %v3239_v17 = vmax.f32 %v3081_v4, 0.0 }
 0x420   : > { %3772 = vmatprep.mubr.bf16.mxu0 %v3485_v46  ;;  %3933 = vmatprep.mubr.bf16.mxu1 %v3487_v20  ;;  %v2890_v56 = vpop.f32.mrf.mxu0  ;;  %v3083_v40 = vpop.f32.mrf.mxu1  ;;  %v3364_v20 = vmul.f32 %v3236_v52, %v3236_v52 }
 0x421   : > { %3773 = vmatmul.mubr.bf16.vlgmr.msra.gmra.mxu0 %v3484_v21  ;;  %3934 = vmatmul.mubr.bf16.vlgmr.msra.gmra.mxu1 %v3486_v49  ;;  %v3240_v58 = vmax.f32 %v2890_v56, 0.0  ;;  %v3242_v19 = vmax.f32 %v3083_v40, 0.0  ;;  %v3365_v29 = vmul.f32 %v3237_v37, %v3237_v37  ;;  %v3367_v13 = vmul.f32 %v3239_v17, %v3239_v17 }
 0x422   : > { %8231 = vmatpush3.bf16.msra.mxu0 %v11041_v22  ;;  %v2892_v48 = vpop.f32.mrf.mxu0  ;;  %v3085_v3 = vpop.f32.mrf.mxu1  ;;  %v3366_v21 = vmul.f32 %v3238_v42, %v3238_v42 }
 0x423   : > { %8232 = vmatprep.subr.bf16.mxu0 %v8563_v27  ;;  %v3241_v41 = vmax.f32 %v2892_v48, 0.0  ;;  %v3243_v16 = vmax.f32 %v3085_v3, 0.0  ;;  %v3368_v28 = vmul.f32 %v3240_v58, %v3240_v58  ;;  %v3370_v5 = vmul.f32 %v3242_v19, %v3242_v19  ;;  %v8565_v48 = vld [vmem:[#allocation8 + $0x20] sm:$0xff]  }
 0x425   : > { %v3369_v30 = vmul.f32 %v3241_v41, %v3241_v41  ;;  %v3371_v46 = vmul.f32 %v3243_v16, %v3243_v16  ;;  %v2896_v49 = vpop.f32.mrf.mxu0  ;;  %v3089_v9 = vpop.f32.mrf.mxu1  ;;  %v3488_v35 = vpack.c.bf16 %v3368_v28, %v3364_v20  ;;  %v3490_v4 = vpack.c.bf16 %v3370_v5, %v3366_v21  ;;  %v8566_v28 = vld [vmem:[#allocation8 + $0x18] sm:$0xff]  }
 0x426   : > { %8233 = vmatpush3.bf16.msra.mxu0 %v8563_v27  ;;  %v3244_v42 = vmax.f32 %v2896_v49, 0.0  ;;  %v3246_v3 = vmax.f32 %v3089_v9, 0.0 }
 0x427   : > { %8234 = vmatprep.subr.bf16.mxu0 %v8564_v24  ;;  %v3489_v22 = vpack.c.bf16 %v3369_v30, %v3365_v29  ;;  %v3491_v15 = vpack.c.bf16 %v3371_v46, %v3367_v13  ;;  %v2898_v56 = vpop.f32.mrf.mxu0  ;;  %v3091_v40 = vpop.f32.mrf.mxu1 }
 0x428   : > { %v3245_v17 = vmax.f32 %v2898_v56, 0.0  ;;  %v3247_v27 = vmax.f32 %v3091_v40, 0.0  ;;  %v3374_v56 = vmul.f32 %v3246_v3, %v3246_v3 }
 0x429   : > { %3780 = vmatprep.mubr.bf16.mxu0 %v3489_v22  ;;  %3941 = vmatprep.mubr.bf16.mxu1 %v3491_v15  ;;  %v2900_v58 = vpop.f32.mrf.mxu0  ;;  %v3093_v37 = vpop.f32.mrf.mxu1 }
 0x42a   : > { %3781 = vmatmul.mubr.bf16.gmra.mxu0 %v3488_v35  ;;  %3942 = vmatmul.mubr.bf16.gmra.mxu1 %v3490_v4  ;;  %v3248_v19 = vmax.f32 %v2900_v58, 0.0  ;;  %v3250_v52 = vmax.f32 %v3093_v37, 0.0  ;;  %v3373_v21 = vmul.f32 %v3245_v17, %v3245_v17  ;;  %v3375_v22 = vmul.f32 %v3247_v27, %v3247_v27 }
 0x42b   : > { %8235 = vmatpush3.bf16.msra.mxu0 %v8564_v24  ;;  %v2902_v41 = vpop.f32.mrf.mxu0  ;;  %v3095_v16 = vpop.f32.mrf.mxu1  ;;  %v3372_v4 = vmul.f32 %v3244_v42, %v3244_v42 }
 0x42c   : > { %8236 = vmatprep.subr.bf16.mxu0 %v8565_v48  ;;  %v3249_v5 = vmax.f32 %v2902_v41, 0.0  ;;  %v3251_v29 = vmax.f32 %v3095_v16, 0.0  ;;  %v3376_v13 = vmul.f32 %v3248_v19, %v3248_v19  ;;  %v3378_v30 = vmul.f32 %v3250_v52, %v3250_v52 }
 0x42d   : > { %v2906_v46 = vpop.f32.mrf.mxu0  ;;  %v3099_v20 = vpop.f32.mrf.mxu1 }
 0x42e   : > { %v3377_v15 = vmul.f32 %v3249_v5, %v3249_v5  ;;  %v3379_v35 = vmul.f32 %v3251_v29, %v3251_v29  ;;  %v3492_v58 = vpack.c.bf16 %v3376_v13, %v3372_v4  ;;  %v3494_v37 = vpack.c.bf16 %v3378_v30, %v3374_v56 }
 0x42f   : > { %8237 = vmatpush3.bf16.msra.mxu0 %v8565_v48  ;;  %v2908_v24 = vpop.f32.mrf.mxu0  ;;  %v3101_v49 = vpop.f32.mrf.mxu1  ;;  %v3252_v5 = vmax.f32 %v2906_v46, 0.0  ;;  %v3254_v29 = vmax.f32 %v3099_v20, 0.0 }
 0x430   : > { %8238 = vmatprep.subr.bf16.mxu0 %v8566_v28  ;;  %v3493_v9 = vpack.c.bf16 %v3377_v15, %v3373_v21  ;;  %v3495_v40 = vpack.c.bf16 %v3379_v35, %v3375_v22  ;;  %v3253_v19 = vmax.f32 %v2908_v24, 0.0  ;;  %v3255_v52 = vmax.f32 %v3101_v49, 0.0  ;;  %v8567_v24 = vld [vmem:[#allocation8 + $0x10] sm:$0xff]  }
 0x431   : > { %v2910_v41 = vpop.f32.mrf.mxu0  ;;  %v3103_v16 = vpop.f32.mrf.mxu1  ;;  %v3380_v49 = vmul.f32 %v3252_v5, %v3252_v5 }
 0x432   : > { %3788 = vmatprep.mubr.bf16.mxu0 %v3493_v9  ;;  %3949 = vmatprep.mubr.bf16.mxu1 %v3495_v40  ;;  %v3256_v17 = vmax.f32 %v2910_v41, 0.0  ;;  %v3258_v27 = vmax.f32 %v3103_v16, 0.0  ;;  %v3381_v15 = vmul.f32 %v3253_v19, %v3253_v19  ;;  %v3383_v35 = vmul.f32 %v3255_v52, %v3255_v52 }
 0x433   : > { %3789 = vmatmul.mubr.bf16.gmra.mxu0 %v3492_v58  ;;  %3950 = vmatmul.mubr.bf16.gmra.mxu1 %v3494_v37  ;;  %v2912_v48 = vpop.f32.mrf.mxu0  ;;  %v3105_v42 = vpop.f32.mrf.mxu1  ;;  %v3382_v9 = vmul.f32 %v3254_v29, %v3254_v29 }
 0x434   : > { %v3257_v3 = vmax.f32 %v2912_v48, 0.0  ;;  %v3259_v39 = vmax.f32 %v3105_v42, 0.0  ;;  %8239 = vmatpush3.bf16.msra.mxu0 %v8566_v28  ;;  %v3384_v21 = vmul.f32 %v3256_v17, %v3256_v17  ;;  %v3386_v13 = vmul.f32 %v3258_v27, %v3258_v27 }
 0x435   : > { %v2916_v30 = vpop.f32.mrf.mxu0  ;;  %v3109_v22 = vpop.f32.mrf.mxu1  ;;  %8240 = vmatprep.subr.bf16.mxu0 %v8567_v24 }
 0x436   : > { %v3385_v4 = vmul.f32 %v3257_v3, %v3257_v3  ;;  %v3387_v56 = vmul.f32 %v3259_v39, %v3259_v39  ;;  %v3496_v37 = vpack.c.bf16 %v3384_v21, %v3380_v49  ;;  %v3498_v41 = vpack.c.bf16 %v3386_v13, %v3382_v9 }
 0x437   : > { %v2918_v46 = vpop.f32.mrf.mxu0  ;;  %v3111_v20 = vpop.f32.mrf.mxu1  ;;  %v3260_v39 = vmax.f32 %v2916_v30, 0.0  ;;  %v3262_v52 = vmax.f32 %v3109_v22, 0.0 }
 0x438   : > { %v3497_v40 = vpack.c.bf16 %v3385_v4, %v3381_v15  ;;  %v3499_v58 = vpack.c.bf16 %v3387_v56, %v3383_v35  ;;  %8241 = vmatpush3.bf16.msra.mxu0 %v8567_v24  ;;  %v3261_v17 = vmax.f32 %v2918_v46, 0.0  ;;  %v3263_v27 = vmax.f32 %v3111_v20, 0.0 }
 0x439   : > { %v2920_v16 = vpop.f32.mrf.mxu0  ;;  %v3113_v28 = vpop.f32.mrf.mxu1  ;;  %v3388_v9 = vmul.f32 %v3260_v39, %v3260_v39  ;;  %v3390_v46 = vmul.f32 %v3262_v52, %v3262_v52 }
 0x43a   : > { %v3264_v48 = vmax.f32 %v2920_v16, 0.0  ;;  %v3266_v19 = vmax.f32 %v3113_v28, 0.0  ;;  %3796 = vmatprep.mubr.bf16.mxu0 %v3497_v40  ;;  %3957 = vmatprep.mubr.bf16.mxu1 %v3499_v58  ;;  %v3389_v4 = vmul.f32 %v3261_v17, %v3261_v17  ;;  %v3391_v56 = vmul.f32 %v3263_v27, %v3263_v27 }
 0x43b   : > { %v2922_v5 = vpop.f32.mrf.mxu0  ;;  %v3115_v29 = vpop.f32.mrf.mxu1  ;;  %3797 = vmatmul.mubr.bf16.gmra.mxu0 %v3496_v37  ;;  %3958 = vmatmul.mubr.bf16.gmra.mxu1 %v3498_v41 }
 0x43c   : > { %v3265_v42 = vmax.f32 %v2922_v5, 0.0  ;;  %v3267_v3 = vmax.f32 %v3115_v29, 0.0  ;;  %v3392_v15 = vmul.f32 %v3264_v48, %v3264_v48  ;;  %v3394_v21 = vmul.f32 %v3266_v19, %v3266_v19 }
 0x43d   : > { %v2926_v13 = vpop.f32.mrf.mxu0  ;;  %v3119_v35 = vpop.f32.mrf.mxu1 }
 0x43e   : > { %v3393_v24 = vmul.f32 %v3265_v42, %v3265_v42  ;;  %v3395_v49 = vmul.f32 %v3267_v3, %v3267_v3  ;;  %v3500_v58 = vpack.c.bf16 %v3392_v15, %v3388_v9  ;;  %v3502_v16 = vpack.c.bf16 %v3394_v21, %v3390_v46 }
 0x43f   : > { %v2928_v20 = vpop.f32.mrf.mxu0  ;;  %v3121_v40 = vpop.f32.mrf.mxu1  ;;  %v3268_v17 = vmax.f32 %v2926_v13, 0.0  ;;  %v3270_v27 = vmax.f32 %v3119_v35, 0.0 }
 0x440   : > { %v3501_v30 = vpack.c.bf16 %v3393_v24, %v3389_v4  ;;  %v3503_v22 = vpack.c.bf16 %v3395_v49, %v3391_v56  ;;  %v3269_v28 = vmax.f32 %v2928_v20, 0.0  ;;  %v3271_v5 = vmax.f32 %v3121_v40, 0.0 }
 0x441   : > { %v2930_v37 = vpop.f32.mrf.mxu0  ;;  %v3123_v41 = vpop.f32.mrf.mxu1  ;;  %v3396_v46 = vmul.f32 %v3268_v17, %v3268_v17  ;;  %v3398_v20 = vmul.f32 %v3270_v27, %v3270_v27 }
 0x442   : > { %v3272_v48 = vmax.f32 %v2930_v37, 0.0  ;;  %v3274_v19 = vmax.f32 %v3123_v41, 0.0  ;;  %3804 = vmatprep.mubr.bf16.mxu0 %v3501_v30  ;;  %3965 = vmatprep.mubr.bf16.mxu1 %v3503_v22  ;;  %v3397_v56 = vmul.f32 %v3269_v28, %v3269_v28  ;;  %v3399_v24 = vmul.f32 %v3271_v5, %v3271_v5  ;;  %v8568_v22 = vld [vmem:[#allocation8 + $0x8] sm:$0xff]  }
 0x443   : > { %v2932_v29 = vpop.f32.mrf.mxu0  ;;  %v3125_v42 = vpop.f32.mrf.mxu1  ;;  %3805 = vmatmul.mubr.bf16.gmra.mxu0 %v3500_v58  ;;  %3966 = vmatmul.mubr.bf16.gmra.mxu1 %v3502_v16 }
 0x444   : > { %v3273_v39 = vmax.f32 %v2932_v29, 0.0  ;;  %v3275_v52 = vmax.f32 %v3125_v42, 0.0  ;;  %v3400_v3 = vmul.f32 %v3272_v48, %v3272_v48  ;;  %v3402_v4 = vmul.f32 %v3274_v19, %v3274_v19  ;;  %8242 = vmatprep.subr.bf16.mxu0 %v8568_v22 }
 0x445   : > { %v2936_v15 = vpop.f32.mrf.mxu0  ;;  %v3129_v21 = vpop.f32.mrf.mxu1  ;;  %8243 = vmatpush3.bf16.msra.mxu0 %v8568_v22 }
 0x446   : > { %v3401_v49 = vmul.f32 %v3273_v39, %v3273_v39  ;;  %v3403_v9 = vmul.f32 %v3275_v52, %v3275_v52  ;;  %v3504_v37 = vpack.c.bf16 %v3400_v3, %v3396_v46  ;;  %v3506_v58 = vpack.c.bf16 %v3402_v4, %v3398_v20 }
 0x447   : > { %v2938_v40 = vpop.f32.mrf.mxu0  ;;  %v3131_v30 = vpop.f32.mrf.mxu1  ;;  %v3276_v28 = vmax.f32 %v2936_v15, 0.0  ;;  %v3278_v5 = vmax.f32 %v3129_v21, 0.0 }
 0x448   : > { %v3505_v13 = vpack.c.bf16 %v3401_v49, %v3397_v56  ;;  %v3507_v35 = vpack.c.bf16 %v3403_v9, %v3399_v24  ;;  %v3277_v29 = vmax.f32 %v2938_v40, 0.0  ;;  %v3279_v48 = vmax.f32 %v3131_v30, 0.0 }
 0x449   : > { %v2940_v16 = vpop.f32.mrf.mxu0  ;;  %v3133_v41 = vpop.f32.mrf.mxu1  ;;  %v3404_v40 = vmul.f32 %v3276_v28, %v3276_v28  ;;  %v3406_v30 = vmul.f32 %v3278_v5, %v3278_v5 }
 0x44a   : > { %v3280_v19 = vmax.f32 %v2940_v16, 0.0  ;;  %v3282_v42 = vmax.f32 %v3133_v41, 0.0  ;;  %3812 = vmatprep.mubr.bf16.mxu0 %v3505_v13  ;;  %3973 = vmatprep.mubr.bf16.mxu1 %v3507_v35  ;;  %v3405_v49 = vmul.f32 %v3277_v29, %v3277_v29  ;;  %v3407_v9 = vmul.f32 %v3279_v48, %v3279_v48 }
 0x44b   : > { %v2942_v39 = vpop.f32.mrf.mxu0  ;;  %v3135_v17 = vpop.f32.mrf.mxu1  ;;  %3813 = vmatmul.mubr.bf16.gmra.mxu0 %v3504_v37  ;;  %3974 = vmatmul.mubr.bf16.gmra.mxu1 %v3506_v58 }
 0x44c   : > { %v3281_v27 = vmax.f32 %v2942_v39, 0.0  ;;  %v3283_v52 = vmax.f32 %v3135_v17, 0.0  ;;  %v3408_v56 = vmul.f32 %v3280_v19, %v3280_v19  ;;  %v3410_v3 = vmul.f32 %v3282_v42, %v3282_v42 }
 0x44d   : > { %v2946_v4 = vpop.f32.mrf.mxu0  ;;  %v3139_v24 = vpop.f32.mrf.mxu1 }
 0x44e   : > { %v3409_v46 = vmul.f32 %v3281_v27, %v3281_v27  ;;  %v3411_v20 = vmul.f32 %v3283_v52, %v3283_v52  ;;  %v3508_v37 = vpack.c.bf16 %v3408_v56, %v3404_v40  ;;  %v3510_v58 = vpack.c.bf16 %v3410_v3, %v3406_v30 }
 0x44f   : > { %v2948_v15 = vpop.f32.mrf.mxu0  ;;  %v3141_v21 = vpop.f32.mrf.mxu1  ;;  %v3284_v22 = vmax.f32 %v2946_v4, 0.0  ;;  %v3286_v29 = vmax.f32 %v3139_v24, 0.0 }
 0x450   : > { %v3509_v13 = vpack.c.bf16 %v3409_v46, %v3405_v49  ;;  %v3511_v35 = vpack.c.bf16 %v3411_v20, %v3407_v9  ;;  %v3285_v39 = vmax.f32 %v2948_v15, 0.0  ;;  %v3287_v19 = vmax.f32 %v3141_v21, 0.0 }
 0x451   : > { %v2950_v16 = vpop.f32.mrf.mxu0  ;;  %v3143_v41 = vpop.f32.mrf.mxu1  ;;  %v3412_v30 = vmul.f32 %v3284_v22, %v3284_v22  ;;  %v3414_v15 = vmul.f32 %v3286_v29, %v3286_v29 }
 0x452   : > { %v3288_v42 = vmax.f32 %v2950_v16, 0.0  ;;  %v3290_v17 = vmax.f32 %v3143_v41, 0.0  ;;  %3820 = vmatprep.mubr.bf16.mxu0 %v3509_v13  ;;  %3981 = vmatprep.mubr.bf16.mxu1 %v3511_v35  ;;  %v3413_v9 = vmul.f32 %v3285_v39, %v3285_v39  ;;  %v3415_v46 = vmul.f32 %v3287_v19, %v3287_v19  ;;  %v8569_v41 = vld [vmem:[#allocation8] sm:$0xff]  }
 0x453   : > { %v2952_v48 = vpop.f32.mrf.mxu0  ;;  %v3145_v27 = vpop.f32.mrf.mxu1  ;;  %3821 = vmatmul.mubr.bf16.gmra.mxu0 %v3508_v37  ;;  %3982 = vmatmul.mubr.bf16.gmra.mxu1 %v3510_v58 }
 0x454   : > { %v3289_v28 = vmax.f32 %v2952_v48, 0.0  ;;  %v3291_v5 = vmax.f32 %v3145_v27, 0.0  ;;  %v3416_v52 = vmul.f32 %v3288_v42, %v3288_v42  ;;  %v3418_v49 = vmul.f32 %v3290_v17, %v3290_v17  ;;  %8244 = vmatprep.subr.bf16.mxu0 %v8569_v41 }
 0x455   : > { %v2956_v56 = vpop.f32.mrf.mxu0  ;;  %v3149_v3 = vpop.f32.mrf.mxu1  ;;  %8245 = vmatpush3.bf16.msra.mxu0 %v8569_v41 }
 0x456   : > { %v3417_v20 = vmul.f32 %v3289_v28, %v3289_v28  ;;  %v3419_v40 = vmul.f32 %v3291_v5, %v3291_v5  ;;  %v3512_v35 = vpack.c.bf16 %v3416_v52, %v3412_v30  ;;  %v3514_v16 = vpack.c.bf16 %v3418_v49, %v3414_v15 }
 0x457   : > { %v2958_v21 = vpop.f32.mrf.mxu0  ;;  %v3151_v13 = vpop.f32.mrf.mxu1  ;;  %v3292_v39 = vmax.f32 %v2956_v56, 0.0  ;;  %v3294_v19 = vmax.f32 %v3149_v3, 0.0 }
 0x458   : > { %v3513_v4 = vpack.c.bf16 %v3417_v20, %v3413_v9  ;;  %v3515_v24 = vpack.c.bf16 %v3419_v40, %v3415_v46  ;;  %v3293_v48 = vmax.f32 %v2958_v21, 0.0  ;;  %v3295_v42 = vmax.f32 %v3151_v13, 0.0 }
 0x459   : > { %v2960_v37 = vpop.f32.mrf.mxu0  ;;  %v3153_v58 = vpop.f32.mrf.mxu1  ;;  %v3420_v21 = vmul.f32 %v3292_v39, %v3292_v39  ;;  %v3422_v13 = vmul.f32 %v3294_v19, %v3294_v19 }
 0x45a   : > { %v3296_v17 = vmax.f32 %v2960_v37, 0.0  ;;  %v3298_v27 = vmax.f32 %v3153_v58, 0.0  ;;  %3828 = vmatprep.mubr.bf16.mxu0 %v3513_v4  ;;  %3989 = vmatprep.mubr.bf16.mxu1 %v3515_v24  ;;  %v3421_v20 = vmul.f32 %v3293_v48, %v3293_v48  ;;  %v3423_v40 = vmul.f32 %v3295_v42, %v3295_v42 }
 0x45b   : > { %v2962_v28 = vpop.f32.mrf.mxu0  ;;  %v3155_v22 = vpop.f32.mrf.mxu1  ;;  %3829 = vmatmul.mubr.bf16.gmra.mxu0 %v3512_v35  ;;  %3990 = vmatmul.mubr.bf16.gmra.mxu1 %v3514_v16 }
 0x45c   : > { %v3297_v29 = vmax.f32 %v2962_v28, 0.0  ;;  %v3299_v5 = vmax.f32 %v3155_v22, 0.0  ;;  %v3424_v52 = vmul.f32 %v3296_v17, %v3296_v17  ;;  %v3426_v49 = vmul.f32 %v3298_v27, %v3298_v27 }
 0x45d   : > { %v2966_v9 = vpop.f32.mrf.mxu0  ;;  %v3159_v46 = vpop.f32.mrf.mxu1 }
 0x45e   : > { %v3425_v30 = vmul.f32 %v3297_v29, %v3297_v29  ;;  %v3427_v15 = vmul.f32 %v3299_v5, %v3299_v5  ;;  %v3516_v35 = vpack.c.bf16 %v3424_v52, %v3420_v21  ;;  %v3518_v16 = vpack.c.bf16 %v3426_v49, %v3422_v13 }
 0x45f   : > { %v2968_v56 = vpop.f32.mrf.mxu0  ;;  %v3161_v3 = vpop.f32.mrf.mxu1  ;;  %v3300_v41 = vmax.f32 %v2966_v9, 0.0  ;;  %v3302_v48 = vmax.f32 %v3159_v46, 0.0 }
 0x460   : > { %v3517_v4 = vpack.c.bf16 %v3425_v30, %v3421_v20  ;;  %v3519_v24 = vpack.c.bf16 %v3427_v15, %v3423_v40  ;;  %v3301_v28 = vmax.f32 %v2968_v56, 0.0  ;;  %v3303_v17 = vmax.f32 %v3161_v3, 0.0 }
 0x461   : > { %v2970_v37 = vpop.f32.mrf.mxu0  ;;  %v3163_v58 = vpop.f32.mrf.mxu1  ;;  %v3428_v15 = vmul.f32 %v3300_v41, %v3300_v41  ;;  %v3430_v21 = vmul.f32 %v3302_v48, %v3302_v48 }
 0x462   : > { %v3304_v27 = vmax.f32 %v2970_v37, 0.0  ;;  %v3306_v22 = vmax.f32 %v3163_v58, 0.0  ;;  %3836 = vmatprep.mubr.bf16.mxu0 %v3517_v4  ;;  %3997 = vmatprep.mubr.bf16.mxu1 %v3519_v24  ;;  %v3429_v52 = vmul.f32 %v3301_v28, %v3301_v28  ;;  %v3431_v49 = vmul.f32 %v3303_v17, %v3303_v17 }
 0x463   : > { %v2972_v42 = vpop.f32.mrf.mxu0  ;;  %v3165_v29 = vpop.f32.mrf.mxu1  ;;  %3837 = vmatmul.mubr.bf16.gmra.mxu0 %v3516_v35  ;;  %3998 = vmatmul.mubr.bf16.gmra.mxu1 %v3518_v16 }
 0x464   : > { %v3305_v39 = vmax.f32 %v2972_v42, 0.0  ;;  %v3307_v19 = vmax.f32 %v3165_v29, 0.0  ;;  %v3432_v5 = vmul.f32 %v3304_v27, %v3304_v27  ;;  %v3434_v20 = vmul.f32 %v3306_v22, %v3306_v22 }
 0x466   : > { %v3433_v40 = vmul.f32 %v3305_v39, %v3305_v39  ;;  %v3435_v30 = vmul.f32 %v3307_v19, %v3307_v19  ;;  %v3520_v3 = vpack.c.bf16 %v3432_v5, %v3428_v15  ;;  %v3522_v4 = vpack.c.bf16 %v3434_v20, %v3430_v21 }
 0x468   : > { %v3521_v13 = vpack.c.bf16 %v3433_v40, %v3429_v52  ;;  %v3523_v56 = vpack.c.bf16 %v3435_v30, %v3431_v49 }
 0x46a   : > { %3844 = vmatprep.mubr.bf16.mxu0 %v3521_v13  ;;  %4005 = vmatprep.mubr.bf16.mxu1 %v3523_v56 }
 0x46b   : > { %3845 = vmatmul.mubr.bf16.gmra.mxu0 %v3520_v3  ;;  %4006 = vmatmul.mubr.bf16.gmra.mxu1 %v3522_v4 }
 0x4a5   : > { %v2976_v9 = vpop.f32.mrf.mxu0  ;;  %v3169_v46 = vpop.f32.mrf.mxu1 }
 0x4a6   : > { %v3308_v22 = vmax.f32 %v2976_v9, 0.0  ;;  %v3310_v41 = vmax.f32 %v3169_v46, 0.0 }
 0x4a7   : > { %v2978_v24 = vpop.f32.mrf.mxu0  ;;  %v3171_v35 = vpop.f32.mrf.mxu1 }
 0x4a8   : > { %v3309_v58 = vmax.f32 %v2978_v24, 0.0  ;;  %v3311_v28 = vmax.f32 %v3171_v35, 0.0  ;;  %v3436_v21 = vmul.f32 %v3308_v22, %v3308_v22  ;;  %v3438_v13 = vmul.f32 %v3310_v41, %v3310_v41 }
 0x4a9   : > { %v2980_v16 = vpop.f32.mrf.mxu0  ;;  %v3173_v37 = vpop.f32.mrf.mxu1 }
 0x4aa   : > { %v3312_v17 = vmax.f32 %v2980_v16, 0.0  ;;  %v3314_v27 = vmax.f32 %v3173_v37, 0.0  ;;  %v3437_v49 = vmul.f32 %v3309_v58, %v3309_v58  ;;  %v3439_v40 = vmul.f32 %v3311_v28, %v3311_v28 }
 0x4ab   : > { %v2982_v48 = vpop.f32.mrf.mxu0  ;;  %v3175_v42 = vpop.f32.mrf.mxu1 }
 0x4ac   : > { %v3313_v29 = vmax.f32 %v2982_v48, 0.0  ;;  %v3315_v39 = vmax.f32 %v3175_v42, 0.0  ;;  %v3440_v19 = vmul.f32 %v3312_v17, %v3312_v17  ;;  %v3442_v5 = vmul.f32 %v3314_v27, %v3314_v27 }
 0x4ad   : > { %v2986_v20 = vpop.f32.mrf.mxu0  ;;  %v3179_v52 = vpop.f32.mrf.mxu1 }
 0x4ae   : > { %v3441_v30 = vmul.f32 %v3313_v29, %v3313_v29  ;;  %v3443_v15 = vmul.f32 %v3315_v39, %v3315_v39  ;;  %v3524_v9 = vpack.c.bf16 %v3440_v19, %v3436_v21  ;;  %v3526_v46 = vpack.c.bf16 %v3442_v5, %v3438_v13 }
 0x4af   : > { %v2988_v56 = vpop.f32.mrf.mxu0  ;;  %v3181_v3 = vpop.f32.mrf.mxu1  ;;  %v3316_v58 = vmax.f32 %v2986_v20, 0.0  ;;  %v3318_v28 = vmax.f32 %v3179_v52, 0.0 }
 0x4b0   : > { %v3525_v4 = vpack.c.bf16 %v3441_v30, %v3437_v49  ;;  %v3527_v24 = vpack.c.bf16 %v3443_v15, %v3439_v40  ;;  %v3317_v37 = vmax.f32 %v2988_v56, 0.0  ;;  %v3319_v48 = vmax.f32 %v3181_v3, 0.0 }
 0x4b1   : > { %v2990_v35 = vpop.f32.mrf.mxu0  ;;  %v3183_v16 = vpop.f32.mrf.mxu1  ;;  %v3444_v15 = vmul.f32 %v3316_v58, %v3316_v58  ;;  %v3446_v21 = vmul.f32 %v3318_v28, %v3318_v28 }
 0x4b2   : > { %v3320_v17 = vmax.f32 %v2990_v35, 0.0  ;;  %v3322_v27 = vmax.f32 %v3183_v16, 0.0  ;;  %3852 = vmatprep.mubr.bf16.mxu0 %v3525_v4  ;;  %4013 = vmatprep.mubr.bf16.mxu1 %v3527_v24  ;;  %v3445_v19 = vmul.f32 %v3317_v37, %v3317_v37  ;;  %v3447_v5 = vmul.f32 %v3319_v48, %v3319_v48 }
 0x4b3   : > { %v2992_v42 = vpop.f32.mrf.mxu0  ;;  %v3185_v29 = vpop.f32.mrf.mxu1  ;;  %3853 = vmatmul.mubr.bf16.gmra.mxu0 %v3524_v9  ;;  %4014 = vmatmul.mubr.bf16.gmra.mxu1 %v3526_v46 }
 0x4b4   : > { %v3321_v22 = vmax.f32 %v2992_v42, 0.0  ;;  %v3323_v41 = vmax.f32 %v3185_v29, 0.0  ;;  %v3448_v39 = vmul.f32 %v3320_v17, %v3320_v17  ;;  %v3450_v49 = vmul.f32 %v3322_v27, %v3322_v27 }
 0x4b6   : > { %v3449_v40 = vmul.f32 %v3321_v22, %v3321_v22  ;;  %v3451_v30 = vmul.f32 %v3323_v41, %v3323_v41  ;;  %v3528_v20 = vpack.c.bf16 %v3448_v39, %v3444_v15  ;;  %v3530_v52 = vpack.c.bf16 %v3450_v49, %v3446_v21 }
 0x4b7   : > { %v2996_v13 = vpop.f32.mrf.mxu0  ;;  %v3189_v56 = vpop.f32.mrf.mxu1 }
 0x4b8   : > { %v3529_v3 = vpack.c.bf16 %v3449_v40, %v3445_v19  ;;  %v3531_v4 = vpack.c.bf16 %v3451_v30, %v3447_v5  ;;  %v3324_v27 = vmax.f32 %v2996_v13, 0.0  ;;  %v3326_v58 = vmax.f32 %v3189_v56, 0.0 }
 0x4b9   : > { %v2998_v24 = vpop.f32.mrf.mxu0  ;;  %v3191_v35 = vpop.f32.mrf.mxu1 }
 0x4ba   : > { %3860 = vmatprep.mubr.bf16.mxu0 %v3529_v3  ;;  %4021 = vmatprep.mubr.bf16.mxu1 %v3531_v4  ;;  %v3325_v16 = vmax.f32 %v2998_v24, 0.0  ;;  %v3327_v37 = vmax.f32 %v3191_v35, 0.0  ;;  %v3452_v21 = vmul.f32 %v3324_v27, %v3324_v27  ;;  %v3454_v3 = vmul.f32 %v3326_v58, %v3326_v58 }
 0x4bb   : > { %v3000_v9 = vpop.f32.mrf.mxu0  ;;  %v3193_v46 = vpop.f32.mrf.mxu1  ;;  %3861 = vmatmul.mubr.bf16.gmra.mxu0 %v3528_v20  ;;  %4022 = vmatmul.mubr.bf16.gmra.mxu1 %v3530_v52 }
 0x4bc   : > { %v3328_v48 = vmax.f32 %v3000_v9, 0.0  ;;  %v3330_v17 = vmax.f32 %v3193_v46, 0.0  ;;  %v3453_v5 = vmul.f32 %v3325_v16, %v3325_v16  ;;  %v3455_v40 = vmul.f32 %v3327_v37, %v3327_v37 }
 0x4bd   : > { %v3002_v28 = vpop.f32.mrf.mxu0  ;;  %v3195_v42 = vpop.f32.mrf.mxu1 }
 0x4be   : > { %v3329_v29 = vmax.f32 %v3002_v28, 0.0  ;;  %v3331_v22 = vmax.f32 %v3195_v42, 0.0  ;;  %v3456_v41 = vmul.f32 %v3328_v48, %v3328_v48  ;;  %v3458_v39 = vmul.f32 %v3330_v17, %v3330_v17 }
 0x4c0   : > { %v3457_v30 = vmul.f32 %v3329_v29, %v3329_v29  ;;  %v3459_v15 = vmul.f32 %v3331_v22, %v3331_v22  ;;  %v3532_v13 = vpack.c.bf16 %v3456_v41, %v3452_v21  ;;  %v3534_v56 = vpack.c.bf16 %v3458_v39, %v3454_v3 }
 0x4c1   : > { %v3006_v49 = vpop.f32.mrf.mxu0  ;;  %v3199_v19 = vpop.f32.mrf.mxu1 }
 0x4c2   : > { %v3533_v52 = vpack.c.bf16 %v3457_v30, %v3453_v5  ;;  %v3535_v24 = vpack.c.bf16 %v3459_v15, %v3455_v40  ;;  %v3332_v16 = vmax.f32 %v3006_v49, 0.0  ;;  %v3334_v37 = vmax.f32 %v3199_v19, 0.0 }
 0x4c3   : > { %v3008_v4 = vpop.f32.mrf.mxu0  ;;  %v3201_v20 = vpop.f32.mrf.mxu1 }
 0x4c4   : > { %v3333_v46 = vmax.f32 %v3008_v4, 0.0  ;;  %v3335_v28 = vmax.f32 %v3201_v20, 0.0  ;;  %3868 = vmatprep.mubr.bf16.mxu0 %v3533_v52  ;;  %4029 = vmatprep.mubr.bf16.mxu1 %v3535_v24  ;;  %v3460_v3 = vmul.f32 %v3332_v16, %v3332_v16  ;;  %v3462_v4 = vmul.f32 %v3334_v37, %v3334_v37 }
 0x4c5   : > { %v3010_v35 = vpop.f32.mrf.mxu0  ;;  %v3203_v9 = vpop.f32.mrf.mxu1  ;;  %3869 = vmatmul.mubr.bf16.gmra.mxu0 %v3532_v13  ;;  %4030 = vmatmul.mubr.bf16.gmra.mxu1 %v3534_v56 }
 0x4c6   : > { %v3336_v48 = vmax.f32 %v3010_v35, 0.0  ;;  %v3338_v17 = vmax.f32 %v3203_v9, 0.0  ;;  %v3461_v41 = vmul.f32 %v3333_v46, %v3333_v46  ;;  %v3463_v39 = vmul.f32 %v3335_v28, %v3335_v28 }
 0x4c7   : > { %v3012_v42 = vpop.f32.mrf.mxu0  ;;  %v3205_v29 = vpop.f32.mrf.mxu1 }
 0x4c8   : > { %v3337_v27 = vmax.f32 %v3012_v42, 0.0  ;;  %v3339_v58 = vmax.f32 %v3205_v29, 0.0  ;;  %v3464_v22 = vmul.f32 %v3336_v48, %v3336_v48  ;;  %v3466_v5 = vmul.f32 %v3338_v17, %v3338_v17 }
 0x4c9   : > { %v3016_v15 = vpop.f32.mrf.mxu0  ;;  %v3209_v21 = vpop.f32.mrf.mxu1 }
 0x4ca   : > { %v3465_v40 = vmul.f32 %v3337_v27, %v3337_v27  ;;  %v3467_v30 = vmul.f32 %v3339_v58, %v3339_v58  ;;  %v3536_v24 = vpack.c.bf16 %v3464_v22, %v3460_v3  ;;  %v3538_v35 = vpack.c.bf16 %v3466_v5, %v3462_v4 }
 0x4cb   : > { %v3018_v20 = vpop.f32.mrf.mxu0  ;;  %v3211_v52 = vpop.f32.mrf.mxu1  ;;  %v3340_v17 = vmax.f32 %v3016_v15, 0.0  ;;  %v3342_v42 = vmax.f32 %v3209_v21, 0.0 }
 0x4cc   : > { %v3537_v49 = vpack.c.bf16 %v3465_v40, %v3461_v41  ;;  %v3539_v19 = vpack.c.bf16 %v3467_v30, %v3463_v39  ;;  %v3341_v9 = vmax.f32 %v3018_v20, 0.0  ;;  %v3343_v48 = vmax.f32 %v3211_v52, 0.0 }
 0x4cd   : > { %v3020_v13 = vpop.f32.mrf.mxu0  ;;  %v3213_v56 = vpop.f32.mrf.mxu1  ;;  %v3468_v4 = vmul.f32 %v3340_v17, %v3340_v17  ;;  %v3470_v20 = vmul.f32 %v3342_v42, %v3342_v42 }
 0x4ce   : > { %3876 = vmatprep.mubr.bf16.mxu0 %v3537_v49  ;;  %4037 = vmatprep.mubr.bf16.mxu1 %v3539_v19  ;;  %v3344_v46 = vmax.f32 %v3020_v13, 0.0  ;;  %v3346_v28 = vmax.f32 %v3213_v56, 0.0  ;;  %v3469_v39 = vmul.f32 %v3341_v9, %v3341_v9  ;;  %v3471_v40 = vmul.f32 %v3343_v48, %v3343_v48 }
 0x4cf   : > { %3877 = vmatmul.mubr.bf16.gmra.mxu0 %v3536_v24  ;;  %4038 = vmatmul.mubr.bf16.gmra.mxu1 %v3538_v35  ;;  %v3022_v16 = vpop.f32.mrf.mxu0  ;;  %v3215_v37 = vpop.f32.mrf.mxu1 }
 0x4d0   : > { %v3345_v29 = vmax.f32 %v3022_v16, 0.0  ;;  %v3347_v27 = vmax.f32 %v3215_v37, 0.0  ;;  %v3472_v58 = vmul.f32 %v3344_v46, %v3344_v46  ;;  %v3474_v41 = vmul.f32 %v3346_v28, %v3346_v28 }
 0x4d1   : > { %v3026_v22 = vpop.f32.mrf.mxu0  ;;  %v3219_v5 = vpop.f32.mrf.mxu1 }
 0x4d2   : > { %v3473_v30 = vmul.f32 %v3345_v29, %v3345_v29  ;;  %v3475_v3 = vmul.f32 %v3347_v27, %v3347_v27  ;;  %v3540_v15 = vpack.c.bf16 %v3472_v58, %v3468_v4  ;;  %v3542_v21 = vpack.c.bf16 %v3474_v41, %v3470_v20 }
 0x4d3   : > { %v3028_v52 = vpop.f32.mrf.mxu0  ;;  %v3221_v49 = vpop.f32.mrf.mxu1  ;;  %v3348_v9 = vmax.f32 %v3026_v22, 0.0  ;;  %v3350_v48 = vmax.f32 %v3219_v5, 0.0  ;;  %v13004_v22 = vld [vmem:[#allocation64_spill] sm:$0xff]  ;;  %v13005_v5 = vld [vmem:[#allocation63_spill] sm:$0xff] }
 0x4d4   : > { %v3541_v19 = vpack.c.bf16 %v3473_v30, %v3469_v39  ;;  %v3543_v24 = vpack.c.bf16 %v3475_v3, %v3471_v40  ;;  %v3349_v56 = vmax.f32 %v3028_v52, 0.0  ;;  %v3351_v16 = vmax.f32 %v3221_v49, 0.0 }
 0x4d5   : > { %v3030_v35 = vpop.f32.mrf.mxu0  ;;  %v3223_v13 = vpop.f32.mrf.mxu1  ;;  %v3476_v3 = vmul.f32 %v3348_v9, %v3348_v9  ;;  %v3478_v4 = vmul.f32 %v3350_v48, %v3350_v48 }
 0x4d6   : > { %v3352_v46 = vmax.f32 %v3030_v35, 0.0  ;;  %v3354_v28 = vmax.f32 %v3223_v13, 0.0  ;;  %3884 = vmatprep.mubr.bf16.mxu0 %v3541_v19  ;;  %4045 = vmatprep.mubr.bf16.mxu1 %v3543_v24  ;;  %v3477_v58 = vmul.f32 %v3349_v56, %v3349_v56  ;;  %v3479_v41 = vmul.f32 %v3351_v16, %v3351_v16 }
 0x4d7   : > { %v3032_v37 = vpop.f32.mrf.mxu0  ;;  %v3225_v29 = vpop.f32.mrf.mxu1  ;;  %3885 = vmatmul.mubr.bf16.gmra.mxu0 %v3540_v15  ;;  %4046 = vmatmul.mubr.bf16.gmra.mxu1 %v3542_v21  ;;  %v13006_v24 = vpack.c.bf16 %v13004_v22, %v13005_v5 }
 0x4d8   : > { %v3353_v17 = vmax.f32 %v3032_v37, 0.0  ;;  %v3355_v42 = vmax.f32 %v3225_v29, 0.0  ;;  %v3480_v27 = vmul.f32 %v3352_v46, %v3352_v46  ;;  %v3482_v39 = vmul.f32 %v3354_v28, %v3354_v28 }
 0x4da   : > { %v3481_v40 = vmul.f32 %v3353_v17, %v3353_v17  ;;  %v3483_v30 = vmul.f32 %v3355_v42, %v3355_v42  ;;  %v3544_v49 = vpack.c.bf16 %v3480_v27, %v3476_v3  ;;  %v3546_v19 = vpack.c.bf16 %v3482_v39, %v3478_v4  ;;  %v13007_v42 = vld [vmem:[#allocation66_spill] sm:$0xff]  ;;  %v13008_v27 = vld [vmem:[#allocation65_spill] sm:$0xff] }
 0x4db   : > { %v13009_v39 = vpack.c.bf16 %v13007_v42, %v13008_v27 }
 0x4dc   : > { %v3545_v20 = vpack.c.bf16 %v3481_v40, %v3477_v58  ;;  %v3547_v52 = vpack.c.bf16 %v3483_v30, %v3479_v41  ;;  %v13010_v58 = vld [vmem:[#allocation70_spill] sm:$0xff]  ;;  %v13011_v41 = vld [vmem:[#allocation69_spill] sm:$0xff] }
 0x4dd   : > { %v13012_v40 = vpack.c.bf16 %v13010_v58, %v13011_v41 }
 0x4de   : > { %3892 = vmatprep.mubr.bf16.mxu0 %v3545_v20  ;;  %4053 = vmatprep.mubr.bf16.mxu1 %v3547_v52 }
 0x4df   : > { %3893 = vmatmul.mubr.bf16.gmra.mxu0 %v3544_v49  ;;  %4054 = vmatmul.mubr.bf16.gmra.mxu1 %v3546_v19 }
 0x4e0   : > { %8246 = vmatprep.mubr.bf16.mxu0 %v13006_v24  ;;  %5609 = vmatprep.mubr.bf16.mxu1 %v12989_v57 }
 0x4e1   : > { %v7750_v15 = vpop.f32.mrf.mxu0  ;;  %v7862_v21 = vpop.f32.mrf.mxu1 }
 0x4e3   : > { %v7751_v35 = vpop.f32.mrf.mxu0  ;;  %v7863_v13 = vpop.f32.mrf.mxu1 }
 0x4e4   : > { %v7752_v56 = vadd.f32 %v7751_v35, %v7750_v15  ;;  %v7864_v16 = vadd.f32 %v7863_v13, %v7862_v21  ;;  %v13013_v15 = vpack.c.bf16 %v10850_v0, %v10847_v32 }
 0x4e5   : > { %v7753_v46 = vpop.f32.mrf.mxu0  ;;  %v7865_v28 = vpop.f32.mrf.mxu1 }
 0x4e6   : > { %v11168_v9 = vadd.f32 %v7864_v16, %v7752_v56 }
 0x4e7   : > { %v7754_v48 = vpop.f32.mrf.mxu0  ;;  %v7866_v37 = vpop.f32.mrf.mxu1  ;;  %8247 = vmatmul.mubr.bf16.vlgmr.msra.gmra.mxu0 %v13009_v39 }
 0x4e8   : > { %v7755_v29 = vadd.f32 %v7754_v48, %v7753_v46  ;;  %v7867_v17 = vadd.f32 %v7866_v37, %v7865_v28  ;;  %8250 = vmatprep.mubr.bf16.mxu0 %v13012_v40 }
 0x4ea   : > { %v11176_v30 = vadd.f32 %v7867_v17, %v7755_v29  ;;  %v7756_v3 = vpop.f32.mrf.mxu0  ;;  %v7868_v4 = vpop.f32.mrf.mxu1 }
 0x4ec   : > { %v7757_v20 = vpop.f32.mrf.mxu0  ;;  %v7869_v52 = vpop.f32.mrf.mxu1 }
 0x4ed   : > { %v7758_v49 = vadd.f32 %v7757_v20, %v7756_v3  ;;  %v7870_v19 = vadd.f32 %v7869_v52, %v7868_v4 }
 0x4ee   : > { %v11178_v22 = vpop.f32.mrf.mxu0  ;;  %v11180_v5 = vpop.f32.mrf.mxu1 }
 0x4ef   : > { %v11182_v24 = vadd.f32 %v7870_v19, %v7758_v49  ;;  %8251 = vmatmul.mubr.bf16.gmra.mxu0 %v13013_v15 }
 0x4f0   : > { %v11187_v21 = vpop.f32.mrf.mxu0  ;;  %v11189_v35 = vpop.f32.mrf.mxu1  ;;  %8254 = vmatprep.mubr.bf16.mxu0 %v2670_v63 }
 0x4f3   : > { %v7762_v13 = vpop.f32.mrf.mxu0  ;;  %v7874_v56 = vpop.f32.mrf.mxu1 }
 0x4f5   : > { %v7763_v16 = vpop.f32.mrf.mxu0  ;;  %v7875_v46 = vpop.f32.mrf.mxu1 }
 0x4f6   : > { %v7764_v28 = vadd.f32 %v7763_v16, %v7762_v13  ;;  %v7876_v48 = vadd.f32 %v7875_v46, %v7874_v56 }
 0x4f7   : > { %8255 = vmatmul.mubr.bf16.gmra.mxu0 %v2671_v51  ;;  %v11197_v32 = vpop.f32.mrf.mxu0  ;;  %v11199_v0 = vpop.f32.mrf.mxu1 }
 0x4f8   : > { %8258 = vmatprep.mubr.bf16.mxu0 %v2672_v14  ;;  %v11204_v61 = vadd.f32 %v7876_v48, %v7764_v28 }
 0x4f9   : > { %v11206_v12 = vpop.f32.mrf.mxu0  ;;  %v11208_v63 = vpop.f32.mrf.mxu1 }
 0x4fa   : > { %13014 = vst [vmem:[#allocation67_spill] sm:$0xff] %v11204_v61 }
 0x4fb   : > { %v7768_v37 = vpop.f32.mrf.mxu0  ;;  %v7880_v29 = vpop.f32.mrf.mxu1 }
 0x4fd   : > { %v7769_v17 = vpop.f32.mrf.mxu0  ;;  %v7881_v42 = vpop.f32.mrf.mxu1 }
 0x4fe   : > { %v7770_v10 = vadd.f32 %v7769_v17, %v7768_v37  ;;  %v7882_v50 = vadd.f32 %v7881_v42, %v7880_v29  ;;  %v13019_v29 = vpack.c.bf16 %v11110_v43, %v11108_v33 }
 0x4ff   : > { %8259 = vmatmul.mubr.bf16.gmra.mxu0 %v2673_v59  ;;  %v11213_v51 = vpop.f32.mrf.mxu0  ;;  %v11215_v36 = vpop.f32.mrf.mxu1 }
 0x500   : > { %8262 = vmatprep.mubr.bf16.mxu0 %v2674_v11  ;;  %v11220_v23 = vadd.f32 %v7882_v50, %v7770_v10 }
 0x501   : > { %v11222_v14 = vpop.f32.mrf.mxu0  ;;  %v11224_v27 = vpop.f32.mrf.mxu1 }
 0x503   : > { %v7774_v39 = vpop.f32.mrf.mxu0  ;;  %v7886_v58 = vpop.f32.mrf.mxu1 }
 0x505   : > { %v7775_v41 = vpop.f32.mrf.mxu0  ;;  %v7887_v40 = vpop.f32.mrf.mxu1 }
 0x506   : > { %v7776_v60 = vadd.f32 %v7775_v41, %v7774_v39  ;;  %v7888_v54 = vadd.f32 %v7887_v40, %v7886_v58 }
 0x507   : > { %8263 = vmatmul.mubr.bf16.gmra.mxu0 %v2675_v55  ;;  %v11229_v59 = vpop.f32.mrf.mxu0  ;;  %v11231_v7 = vpop.f32.mrf.mxu1  ;;  %v13017_v55 = vpack.c.bf16 %v11057_v31, %v11055_v62 }
 0x508   : > { %8266 = vmatprep.mubr.bf16.mxu0 %v13015_v25  ;;  %v11236_v11 = vadd.f32 %v7888_v54, %v7776_v60  ;;  %v13022_v60 = vpack.c.bf16 %v11159_v47, %v11157_v1 }
 0x509   : > { %v11238_v3 = vpop.f32.mrf.mxu0  ;;  %v11240_v4 = vpop.f32.mrf.mxu1 }
 0x50a   : > { %13016 = vst [vmem:[#allocation68_spill] sm:$0xff] %v11236_v11 }
 0x50b   : > { %v7780_v20 = vpop.f32.mrf.mxu0  ;;  %v7892_v52 = vpop.f32.mrf.mxu1 }
 0x50d   : > { %v7781_v49 = vpop.f32.mrf.mxu0  ;;  %v7893_v19 = vpop.f32.mrf.mxu1 }
 0x50e   : > { %v7782_v44 = vadd.f32 %v7781_v49, %v7780_v20  ;;  %v7894_v34 = vadd.f32 %v7893_v19, %v7892_v52 }
 0x50f   : > { %8267 = vmatmul.mubr.bf16.gmra.mxu0 %v13017_v55  ;;  %v11245_v15 = vpop.f32.mrf.mxu0  ;;  %v11247_v38 = vpop.f32.mrf.mxu1 }
 0x510   : > { %8270 = vmatprep.mubr.bf16.mxu0 %v13018_v45  ;;  %v11252_v13 = vadd.f32 %v7894_v34, %v7782_v44 }
 0x511   : > { %v11254_v56 = vpop.f32.mrf.mxu0  ;;  %v11256_v16 = vpop.f32.mrf.mxu1 }
 0x513   : > { %v7786_v46 = vpop.f32.mrf.mxu0  ;;  %v7898_v28 = vpop.f32.mrf.mxu1 }
 0x515   : > { %v7787_v48 = vpop.f32.mrf.mxu0  ;;  %v7899_v37 = vpop.f32.mrf.mxu1 }
 0x516   : > { %v7788_v62 = vadd.f32 %v7787_v48, %v7786_v46  ;;  %v7900_v31 = vadd.f32 %v7899_v37, %v7898_v28 }
 0x517   : > { %8271 = vmatmul.mubr.bf16.gmra.mxu0 %v13019_v29  ;;  %v11261_v17 = vpop.f32.mrf.mxu0  ;;  %v11263_v18 = vpop.f32.mrf.mxu1 }
 0x518   : > { %8274 = vmatprep.mubr.bf16.mxu0 %v13020_v53  ;;  %v11268_v42 = vadd.f32 %v7900_v31, %v7788_v62 }
 0x519   : > { %v11270_v10 = vpop.f32.mrf.mxu0  ;;  %v11272_v50 = vpop.f32.mrf.mxu1 }
 0x51a   : > { %13021 = vst [vmem:[#allocation61_spill] sm:$0xff] %v11268_v42 }
 0x51b   : > { %v7792_v39 = vpop.f32.mrf.mxu0  ;;  %v7904_v58 = vpop.f32.mrf.mxu1 }
 0x51d   : > { %v7793_v41 = vpop.f32.mrf.mxu0  ;;  %v7905_v40 = vpop.f32.mrf.mxu1 }
 0x51e   : > { %v7794_v33 = vadd.f32 %v7793_v41, %v7792_v39  ;;  %v7906_v43 = vadd.f32 %v7905_v40, %v7904_v58 }
 0x51f   : > { %8275 = vmatmul.mubr.bf16.gmra.mxu0 %v13022_v60  ;;  %v11277_v54 = vpop.f32.mrf.mxu0  ;;  %v11279_v2 = vpop.f32.mrf.mxu1 }
 0x520   : > { %5802 = vmatprep.mubr.bf16.mxu0 %v12989_v57  ;;  %v11282_v6 = vadd.f32 %v7906_v43, %v7794_v33 }
 0x521   : > { %v11284_v25 = vpop.f32.mrf.mxu0  ;;  %v11286_v20 = vpop.f32.mrf.mxu1 }
 0x523   : > { %v7798_v52 = vpop.f32.mrf.mxu0  ;;  %v7910_v49 = vpop.f32.mrf.mxu1 }
 0x525   : > { %v7799_v19 = vpop.f32.mrf.mxu0  ;;  %v7911_v44 = vpop.f32.mrf.mxu1 }
 0x526   : > { %v7800_v34 = vadd.f32 %v7799_v19, %v7798_v52  ;;  %v7912_v55 = vadd.f32 %v7911_v44, %v7910_v49 }
 0x527   : > { %v11288_v1 = vpop.f32.mrf.mxu0  ;;  %v11290_v47 = vpop.f32.mrf.mxu1 }
 0x528   : > { %v11292_v45 = vadd.f32 %v7912_v55, %v7800_v34 }
 0x529   : > { %v11294_v46 = vpop.f32.mrf.mxu0  ;;  %v11296_v28 = vpop.f32.mrf.mxu1 }
 0x52a   : > { %13023 = vst [vmem:[#allocation64_spill] sm:$0xff] %v11292_v45 }
 0x52b   : > { %v7804_v48 = vpop.f32.mrf.mxu0  ;;  %v7916_v37 = vpop.f32.mrf.mxu1 }
 0x52d   : > { %v7805_v62 = vpop.f32.mrf.mxu0  ;;  %v7917_v31 = vpop.f32.mrf.mxu1 }
 0x52e   : > { %v7806_v29 = vadd.f32 %v7805_v62, %v7804_v48  ;;  %v7918_v53 = vadd.f32 %v7917_v31, %v7916_v37 }
 0x52f   : > { %v11300_v58 = vpop.f32.mrf.mxu0  ;;  %v11302_v41 = vpop.f32.mrf.mxu1 }
 0x530   : > { %v11298_v39 = vadd.f32 %v7918_v53, %v7806_v29 }
 0x531   : > { %v11304_v40 = vpop.f32.mrf.mxu0  ;;  %v11306_v33 = vpop.f32.mrf.mxu1 }
 0x532   : > { %13024 = vst [vmem:[#allocation63_spill] sm:$0xff] %v11306_v33 }
 0x573   : > { %v7810_v43 = vpop.f32.mrf.mxu0  ;;  %v7922_v60 = vpop.f32.mrf.mxu1 }
 0x575   : > { %v7811_v52 = vpop.f32.mrf.mxu0  ;;  %v7923_v49 = vpop.f32.mrf.mxu1 }
 0x576   : > { %v7812_v19 = vadd.f32 %v7811_v52, %v7810_v43  ;;  %v7924_v44 = vadd.f32 %v7923_v49, %v7922_v60 }
 0x577   : > { %v7813_v34 = vpop.f32.mrf.mxu0  ;;  %v7925_v55 = vpop.f32.mrf.mxu1 }
 0x578   : > { %v11308_v48 = vadd.f32 %v7924_v44, %v7812_v19 }
 0x579   : > { %v7814_v37 = vpop.f32.mrf.mxu0  ;;  %v7926_v62 = vpop.f32.mrf.mxu1 }
 0x57a   : > { %13025 = vst [vmem:[#allocation66_spill] sm:$0xff] %v11308_v48  ;;  %v7815_v31 = vadd.f32 %v7814_v37, %v7813_v34  ;;  %v7927_v29 = vadd.f32 %v7926_v62, %v7925_v55 }
 0x57b   : > { %v7816_v53 = vpop.f32.mrf.mxu0  ;;  %v7928_v26 = vpop.f32.mrf.mxu1 }
 0x57c   : > { %v11310_v57 = vadd.f32 %v7927_v29, %v7815_v31 }
 0x57d   : > { %v7817_v8 = vpop.f32.mrf.mxu0  ;;  %v7929_v45 = vpop.f32.mrf.mxu1 }
 0x57e   : > { %13026 = vst [vmem:[#allocation65_spill] sm:$0xff] %v11310_v57  ;;  %v7818_v42 = vadd.f32 %v7817_v8, %v7816_v53  ;;  %v7930_v11 = vadd.f32 %v7929_v45, %v7928_v26 }
 0x57f   : > { %v7819_v61 = vpop.f32.mrf.mxu0  ;;  %v7931_v33 = vpop.f32.mrf.mxu1 }
 0x580   : > { %v11312_v43 = vadd.f32 %v7930_v11, %v7818_v42 }
 0x581   : > { %v7820_v60 = vpop.f32.mrf.mxu0  ;;  %v7932_v52 = vpop.f32.mrf.mxu1 }
 0x582   : > { %13027 = vst [vmem:[#allocation70_spill] sm:$0xff] %v11312_v43  ;;  %v7821_v49 = vadd.f32 %v7820_v60, %v7819_v61  ;;  %v7933_v19 = vadd.f32 %v7932_v52, %v7931_v33 }
 0x584   : > { %v11314_v44 = vadd.f32 %v7933_v19, %v7821_v49 }
 0x585   : > { %v7822_v34 = vpop.f32.mrf.mxu0  ;;  %v7934_v55 = vpop.f32.mrf.mxu1 }
 0x586   : > { %13028 = vst [vmem:[#allocation69_spill] sm:$0xff] %v11314_v44 }
 0x587   : > { %v7823_v37 = vpop.f32.mrf.mxu0  ;;  %v7935_v62 = vpop.f32.mrf.mxu1 }
 0x588   : > { %v7824_v31 = vadd.f32 %v7823_v37, %v7822_v34  ;;  %v7936_v29 = vadd.f32 %v7935_v62, %v7934_v55 }
 0x589   : > { %v7825_v57 = vpop.f32.mrf.mxu0  ;;  %v7937_v48 = vpop.f32.mrf.mxu1 }
 0x58a   : > { %v11316_v8 = vadd.f32 %v7936_v29, %v7824_v31 }
 0x58b   : > { %v7826_v26 = vpop.f32.mrf.mxu0  ;;  %v7938_v45 = vpop.f32.mrf.mxu1 }
 0x58c   : > { %13029 = vst [vmem:[#allocation72_spill] sm:$0xff] %v11316_v8  ;;  %v7827_v11 = vadd.f32 %v7826_v26, %v7825_v57  ;;  %v7939_v42 = vadd.f32 %v7938_v45, %v7937_v48 }
 0x58e   : > { %v11318_v61 = vadd.f32 %v7939_v42, %v7827_v11 }
 0x58f   : > { %v7828_v53 = vpop.f32.mrf.mxu0  ;;  %v7940_v43 = vpop.f32.mrf.mxu1 }
 0x590   : > { %13030 = vst [vmem:[#allocation73_spill] sm:$0xff] %v11318_v61 }
 0x591   : > { %v7829_v33 = vpop.f32.mrf.mxu0  ;;  %v7941_v60 = vpop.f32.mrf.mxu1 }
 0x592   : > { %v7830_v52 = vadd.f32 %v7829_v33, %v7828_v53  ;;  %v7942_v49 = vadd.f32 %v7941_v60, %v7940_v43 }
 0x593   : > { %v7831_v19 = vpop.f32.mrf.mxu0  ;;  %v7943_v44 = vpop.f32.mrf.mxu1 }
 0x594   : > { %v11320_v34 = vadd.f32 %v7942_v49, %v7830_v52 }
 0x595   : > { %v7832_v55 = vpop.f32.mrf.mxu0  ;;  %v7944_v37 = vpop.f32.mrf.mxu1 }
 0x596   : > { %13031 = vst [vmem:[#allocation74_spill] sm:$0xff] %v11320_v34  ;;  %v7833_v62 = vadd.f32 %v7832_v55, %v7831_v19  ;;  %v7945_v31 = vadd.f32 %v7944_v37, %v7943_v44 }
 0x597   : > { %v7834_v57 = vpop.f32.mrf.mxu0  ;;  %v7946_v48 = vpop.f32.mrf.mxu1 }
 0x598   : > { %v11322_v29 = vadd.f32 %v7945_v31, %v7833_v62 }
 0x599   : > { %v7835_v26 = vpop.f32.mrf.mxu0  ;;  %v7947_v45 = vpop.f32.mrf.mxu1 }
 0x59a   : > { %v7836_v11 = vadd.f32 %v7835_v26, %v7834_v57  ;;  %v7948_v42 = vadd.f32 %v7947_v45, %v7946_v48 }
 0x59b   : > { %v7837_v61 = vpop.f32.mrf.mxu0  ;;  %v7949_v8 = vpop.f32.mrf.mxu1 }
 0x59c   : > { %v11324_v53 = vadd.f32 %v7948_v42, %v7836_v11 }
 0x59d   : > { %v7838_v43 = vpop.f32.mrf.mxu0  ;;  %v7950_v33 = vpop.f32.mrf.mxu1 }
 0x59e   : > { %13032 = vst [vmem:[#allocation75_spill] sm:$0xff] %v11324_v53  ;;  %v7839_v60 = vadd.f32 %v7838_v43, %v7837_v61  ;;  %v7951_v52 = vadd.f32 %v7950_v33, %v7949_v8 }
 0x59f   : > { %v7840_v49 = vpop.f32.mrf.mxu0  ;;  %v7952_v34 = vpop.f32.mrf.mxu1 }
 0x5a0   : > { %v11326_v19 = vadd.f32 %v7951_v52, %v7839_v60 }
 0x5a1   : > { %v7841_v44 = vpop.f32.mrf.mxu0  ;;  %v7953_v55 = vpop.f32.mrf.mxu1 }
 0x5a2   : > { %13033 = vst [vmem:[#allocation76_spill] sm:$0xff] %v11326_v19  ;;  %v7842_v37 = vadd.f32 %v7841_v44, %v7840_v49  ;;  %v7954_v62 = vadd.f32 %v7953_v55, %v7952_v34 }
 0x5a3   : > { %v11328_v31 = vpop.f32.mrf.mxu0 }
 0x5a4   : > { %v11330_v57 = vadd.f32 %v7954_v62, %v7842_v37 }
 0x5a5   : > { %v11332_v48 = vpop.f32.mrf.mxu0 }
 0x5a6   : > { %13034 = vst [vmem:[#allocation77_spill] sm:$0xff] %v11330_v57 }
 0x5a7   : > { %v8248_v26 = vpop.f32.mrf.mxu0 }
 0x5a8   : > { %v7587_v45 = vmul.f32 -1.442695, %v8248_v26 }
 0x5a9   : > { %v4144_v11 = vpop.f32.mrf.mxu0 }
 0x5aa   : > { %8786 = vpow2.f32 %v7587_v45  ;;  %v7585_v61 = vmul.f32 -1.442695, %v4144_v11 }
 0x5ab   : > { %v8249_v8 = vpop.f32.mrf.mxu0 }
 0x5ac   : > { %8788 = vpow2.f32 %v7585_v61  ;;  %v7588_v42 = vmul.f32 -1.442695, %v8249_v8 }
 0x5ad   : > { %v4147_v43 = vpop.f32.mrf.mxu0 }
 0x5ae   : > { %8790 = vpow2.f32 %v7588_v42  ;;  %v7586_v33 = vmul.f32 -1.442695, %v4147_v43 }
 0x5af   : > { %v8252_v60 = vpop.f32.mrf.mxu0 }
 0x5b0   : > { %8792 = vpow2.f32 %v7586_v33  ;;  %v7591_v34 = vmul.f32 -1.442695, %v8252_v60 }
 0x5b1   : > { %v11334_v52 = vpop.f32.mrf.mxu0 }
 0x5b2   : > { %8794 = vpow2.f32 %v7591_v34 }
 0x5b3   : > { %v8253_v49 = vpop.f32.mrf.mxu0 }
 0x5b4   : > { %v7592_v44 = vmul.f32 -1.442695, %v8253_v49 }
 0x5b5   : > { %v4163_v55 = vpop.f32.mrf.mxu0 }
 0x5b6   : > { %8796 = vpow2.f32 %v7592_v44  ;;  %v7590_v37 = vmul.f32 -1.442695, %v4163_v55 }
 0x5b7   : > { %v8787_v62 = vpop.eup %8786  ;;  %v8256_v26 = vpop.f32.mrf.mxu0 }
 0x5b8   : > { %v4369_v45 = vadd.f32 1.0, %v8787_v62  ;;  %8798 = vpow2.f32 %v7590_v37  ;;  %v7595_v11 = vmul.f32 -1.442695, %v8256_v26 }
 0x5b9   : > { %v8789_v61 = vpop.eup %8788  ;;  %v11336_v8 = vpop.f32.mrf.mxu0 }
 0x5ba   : > { %8800 = vrcp.f32 %v4369_v45  ;;  %v4367_v42 = vadd.f32 1.0, %v8789_v61 }
 0x5bb   : > { %v8791_v43 = vpop.eup %8790  ;;  %8802 = vpow2.f32 %v7595_v11  ;;  %v8257_v33 = vpop.f32.mrf.mxu0 }
 0x5bc   : > { %8804 = vrcp.f32 %v4367_v42  ;;  %v4370_v60 = vadd.f32 1.0, %v8791_v43  ;;  %v7596_v34 = vmul.f32 -1.442695, %v8257_v33 }
 0x5bd   : > { %v8793_v49 = vpop.eup %8792  ;;  %v4179_v19 = vpop.f32.mrf.mxu0 }
 0x5be   : > { %8806 = vrcp.f32 %v4370_v60  ;;  %v4368_v44 = vadd.f32 1.0, %v8793_v49  ;;  %v7594_v55 = vmul.f32 -1.442695, %v4179_v19 }
 0x5bf   : > { %v8795_v53 = vpop.eup %8794  ;;  %8808 = vpow2.f32 %v7596_v34  ;;  %v8260_v37 = vpop.f32.mrf.mxu0 }
 0x5c0   : > { %8810 = vrcp.f32 %v4368_v44  ;;  %v4373_v62 = vadd.f32 1.0, %v8795_v53  ;;  %v7599_v26 = vmul.f32 -1.442695, %v8260_v37 }
 0x5c1   : > { %8812 = vpow2.f32 %v7594_v55  ;;  %v11338_v45 = vpop.f32.mrf.mxu0 }
 0x5c2   : > { %8814 = vrcp.f32 %v4373_v62  ;;  %v7761_v62 = vadd.f32 %v11187_v21, %v11178_v22 }
 0x5c3   : > { %v8797_v11 = vpop.eup %8796  ;;  %8816 = vpow2.f32 %v7599_v26  ;;  %v8261_v61 = vpop.f32.mrf.mxu0  ;;  %v7873_v26 = vadd.f32 %v11189_v35, %v11180_v5  ;;  %v7767_v35 = vadd.f32 %v11206_v12, %v11197_v32  ;;  %v7885_v12 = vadd.f32 %v11224_v27, %v11215_v36 }
 0x5c4   : > { %v4374_v42 = vadd.f32 1.0, %v8797_v11  ;;  %v7600_v43 = vmul.f32 -1.442695, %v8261_v61 }
 0x5c5   : > { %v8799_v33 = vpop.eup %8798  ;;  %v4195_v57 = vpop.f32.mrf.mxu0  ;;  %v3947_v22 = vadd.f32 %v7873_v26, %v7761_v62 }
 0x5c6   : > { %8818 = vrcp.f32 %v4374_v42  ;;  %v4372_v60 = vadd.f32 1.0, %v8799_v33  ;;  %v7598_v19 = vmul.f32 -1.442695, %v4195_v57 }
 0x5c7   : > { %v8801_v49 = vpop.eup %8800  ;;  %8820 = vpow2.f32 %v7600_v43  ;;  %v8264_v34 = vpop.f32.mrf.mxu0 }
 0x5c8   : > { %v8803_v44 = vpop.eup %8802  ;;  %8822 = vrcp.f32 %v4372_v60  ;;  %v7603_v53 = vmul.f32 -1.442695, %v8264_v34  ;;  %v11341_v55 = vmul.f32 %v8801_v49, %v11182_v24  ;;  %v13036_v60 = vld [vmem:[#allocation28_spill] sm:$0xff] }
 0x5c9   : > { %v8805_v37 = vpop.eup %8804  ;;  %v4377_v11 = vadd.f32 1.0, %v8803_v44  ;;  %8824 = vpow2.f32 %v7598_v19  ;;  %v11347_v61 = vpop.f32.mrf.mxu0 }
 0x5ca   : > { %13035 = vst [vmem:[#allocation78_spill] sm:$0xff] %v11341_v55  ;;  %8826 = vpow2.f32 %v7603_v53  ;;  %v4463_v57 = vmul.f32 %v8805_v37, %v11168_v9  ;;  %v7879_v53 = vadd.f32 %v11208_v63, %v11199_v0 }
 0x5cb   : > { %v8807_v42 = vpop.eup %8806  ;;  %8828 = vrcp.f32 %v4377_v11  ;;  %v8265_v43 = vpop.f32.mrf.mxu0 }
 0x5cc   : > { %v8809_v33 = vpop.eup %8808  ;;  %v7604_v24 = vmul.f32 -1.442695, %v8265_v43  ;;  %v11351_v49 = vadd.f32 %v4463_v57, %v13036_v60  ;;  %v4466_v62 = vmul.f32 %v8807_v42, %v3947_v22  ;;  %v13038_v43 = vld [vmem:[#allocation30_spill] sm:$0xff]  ;;  %v13040_v22 = vld [vmem:[#allocation32_spill] sm:$0xff] }
 0x5cd   : > { %v8811_v34 = vpop.eup %8810  ;;  %v4378_v21 = vadd.f32 1.0, %v8809_v33  ;;  %v4211_v55 = vpop.f32.mrf.mxu0 }
 0x5ce   : > { %13037 = vst [vmem:[#allocation28_spill] sm:$0xff] %v11351_v49  ;;  %v8813_v5 = vpop.eup %8812  ;;  %8830 = vpow2.f32 %v7604_v24  ;;  %v7602_v19 = vmul.f32 -1.442695, %v4211_v55  ;;  %4529 = vadd.xlane.f32.xlu0 %v11351_v49  ;;  %v4464_v9 = vmul.f32 %v8811_v34, %v11176_v30  ;;  %v7773_v30 = vadd.f32 %v11222_v14, %v11213_v51 }
 0x5cf   : > { %v8815_v44 = vpop.eup %8814  ;;  %8832 = vrcp.f32 %v4378_v21  ;;  %v4376_v37 = vadd.f32 1.0, %v8813_v5  ;;  %v8268_v11 = vpop.f32.mrf.mxu0  ;;  %v3955_v34 = vadd.f32 %v7879_v53, %v7767_v35  ;;  %v11371_v21 = vadd.f32 %v4466_v62, %v13040_v22  ;;  %v13042_v62 = vld [vmem:[#allocation34_spill] sm:$0xff] }
 0x5d0   : > { %v8817_v26 = vpop.eup %8816  ;;  %8834 = vpow2.f32 %v7602_v19  ;;  %v7607_v57 = vmul.f32 -1.442695, %v8268_v11  ;;  %v11360_v33 = vadd.f32 %v4464_v9, %v13038_v43  ;;  %v11363_v32 = vmul.f32 %v8815_v44, %v11220_v23 }
 0x5d1   : > { %8836 = vrcp.f32 %v4376_v37  ;;  %v4381_v0 = vadd.f32 1.0, %v8817_v26  ;;  %v4224_v63 = vpop.f32.mrf.mxu0  ;;  %13041 = vst [vmem:[#allocation32_spill] sm:$0xff] %v11371_v21  ;;  %v3963_v14 = vadd.f32 %v7885_v12, %v7773_v30  ;;  %v7779_v43 = vadd.f32 %v11238_v3, %v11229_v59 }
 0x5d2   : > { %13039 = vst [vmem:[#allocation30_spill] sm:$0xff] %v11360_v33  ;;  %8838 = vpow2.f32 %v7607_v57  ;;  %v7605_v55 = vmul.f32 -1.442695, %v4224_v63  ;;  %4531 = vadd.xlane.f32.xlu0 %v11360_v33  ;;  %v7891_v30 = vadd.f32 %v11240_v4, %v11231_v7  ;;  %v7589_v63 = vmul.f32 -1.442695, %v11334_v52 }
 0x5d3   : > { %v8819_v42 = vpop.eup %8818  ;;  %8840 = vrcp.f32 %v4381_v0  ;;  %v8269_v24 = vpop.f32.mrf.mxu0  ;;  %v7897_v59 = vadd.f32 %v11256_v16, %v11247_v38 }
 0x5d4   : > { %v8821_v60 = vpop.eup %8820  ;;  %8842 = vpow2.f32 %v7605_v55  ;;  %v7608_v23 = vmul.f32 -1.442695, %v8269_v24  ;;  %v4470_v11 = vmul.f32 %v8819_v42, %v3963_v14  ;;  %v7785_v24 = vadd.f32 %v11254_v56, %v11245_v15 }
 0x5d5   : > { %v8823_v51 = vpop.eup %8822  ;;  %v4382_v36 = vadd.f32 1.0, %v8821_v60  ;;  %v11373_v27 = vpop.f32.mrf.mxu0  ;;  %v13044_v60 = vld [vmem:[#allocation36_spill] sm:$0xff]  ;;  %v3971_v52 = vadd.f32 %v7891_v30, %v7779_v43  ;;  %v7791_v56 = vadd.f32 %v11270_v10, %v11261_v17 }
 0x5d6   : > { %v8825_v5 = vpop.eup %8824  ;;  %8844 = vpow2.f32 %v7608_v23  ;;  %4535 = vadd.xlane.f32.xlu0 %v11371_v21  ;;  %v4468_v19 = vmul.f32 %v8823_v51, %v3955_v34  ;;  %v3979_v38 = vadd.f32 %v7897_v59, %v7785_v24 }
 0x5d7   : > { %v8827_v9 = vpop.eup %8826  ;;  %v4380_v44 = vadd.f32 1.0, %v8825_v5  ;;  %v8272_v37 = vpop.f32.mrf.mxu0  ;;  %8846 = vrcp.f32 %v4382_v36 }
 0x5d8   : > { %v8829_v35 = vpop.eup %8828  ;;  %v4385_v53 = vadd.f32 1.0, %v8827_v9  ;;  %v7611_v26 = vmul.f32 -1.442695, %v8272_v37  ;;  %v11377_v57 = vadd.f32 %v4468_v19, %v13042_v62  ;;  %v7903_v19 = vadd.f32 %v11272_v50, %v11263_v18 }
 0x5d9   : > { %8848 = vrcp.f32 %v4380_v44  ;;  %v4240_v12 = vpop.f32.mrf.mxu0  ;;  %v11384_v0 = vmul.f32 %v8829_v35, %v11252_v13  ;;  %v11393_v13 = vadd.f32 %v4470_v11, %v13044_v60  ;;  %v13046_v35 = vld [vmem:[#allocation37_spill] sm:$0xff]  ;;  %v7797_v18 = vadd.f32 %v11284_v25, %v11277_v54 }
 0x5da   : > { %13043 = vst [vmem:[#allocation34_spill] sm:$0xff] %v11377_v57  ;;  %8850 = vrcp.f32 %v4385_v53  ;;  %v7609_v55 = vmul.f32 -1.442695, %v4240_v12  ;;  %4539 = vadd.xlane.f32.xlu0 %v11377_v57  ;;  %v7909_v50 = vadd.f32 %v11286_v20, %v11279_v2  ;;  %v7803_v20 = vadd.f32 %v11294_v46, %v11288_v1  ;;  %v13052_v1 = vld [vmem:[#allocation63_spill] sm:$0xff] }
 0x5db   : > { %v8831_v42 = vpop.eup %8830  ;;  %8852 = vpow2.f32 %v7611_v26  ;;  %v8273_v7 = vpop.f32.mrf.mxu0  ;;  %13045 = vst [vmem:[#allocation36_spill] sm:$0xff] %v11393_v13  ;;  %v7921_v46 = vadd.f32 %v13052_v1, %v11302_v41  ;;  %v7845_v1 = vadd.f32 %v11332_v48, %v11328_v31  ;;  %v13068_v48 = vld [vmem:[#allocation31_spill] sm:$0xff] }
 0x5dc   : > { %v8833_v3 = vpop.eup %8832  ;;  %v7612_v4 = vmul.f32 -1.442695, %v8273_v7  ;;  %v4386_v23 = vadd.f32 1.0, %v8831_v42  ;;  %8854 = vpow2.f32 %v7609_v55  ;;  %v13048_v42 = vld [vmem:[#allocation39_spill] sm:$0xff]  ;;  %v3995_v54 = vadd.f32 %v7909_v50, %v7797_v18  ;;  %v13058_v18 = vld [vmem:[#allocation66_spill] sm:$0xff] }
 0x5dd   : > { %v8835_v34 = vpop.eup %8834  ;;  %v11395_v22 = vpop.f32.mrf.mxu0  ;;  %8856 = vpow2.f32 %v7589_v63  ;;  %v4474_v26 = vmul.f32 %v8833_v3, %v3979_v38  ;;  %v7915_v3 = vadd.f32 %v11296_v28, %v11290_v47  ;;  %v7809_v38 = vadd.f32 %v11304_v40, %v11300_v58  ;;  %v13055_v40 = vld [vmem:[#allocation47_spill] sm:$0xff] }
 0x5de   : > { %v8837_v51 = vpop.eup %8836  ;;  %v4384_v14 = vadd.f32 1.0, %v8835_v34  ;;  %4543 = vadd.xlane.f32.xlu0 %v11393_v13  ;;  %8858 = vpow2.f32 %v7612_v4  ;;  %v13050_v34 = vld [vmem:[#allocation43_spill] sm:$0xff] }
 0x5df   : > { %v8839_v15 = vpop.eup %8838  ;;  %v8276_v16 = vpop.f32.mrf.mxu0  ;;  %v4472_v36 = vmul.f32 %v8837_v51, %v3971_v52  ;;  %v11414_v24 = vadd.f32 %v4474_v26, %v13048_v42  ;;  %v4011_v58 = vadd.f32 %v7921_v46, %v7809_v38 }
 0x5e0   : > { %v8841_v5 = vpop.eup %8840  ;;  %8860 = vrcp.f32 %v4384_v14  ;;  %v4389_v9 = vadd.f32 1.0, %v8839_v15  ;;  %v7615_v44 = vmul.f32 -1.442695, %v8276_v16  ;;  %v7593_v14 = vmul.f32 -1.442695, %v11336_v8 }
 0x5e1   : > { %v8843_v37 = vpop.eup %8842  ;;  %8862 = vrcp.f32 %v4386_v23  ;;  %v4256_v11 = vpop.f32.mrf.mxu0  ;;  %v11403_v53 = vadd.f32 %v4472_v36, %v13046_v35  ;;  %v11406_v62 = vmul.f32 %v8841_v5, %v11282_v6  ;;  %v3987_v6 = vadd.f32 %v7903_v19, %v7791_v56  ;;  %13049 = vst [vmem:[#allocation39_spill] sm:$0xff] %v11414_v24  ;;  %v13053_v36 = vld [vmem:[#allocation45_spill] sm:$0xff] }
 0x5e2   : > { %8864 = vrcp.f32 %v4389_v9  ;;  %v4387_v17 = vadd.f32 1.0, %v8843_v37  ;;  %v7613_v10 = vmul.f32 -1.442695, %v4256_v11  ;;  %v13057_v37 = vld [vmem:[#allocation70_spill] sm:$0xff] }
 0x5e3   : > { %13047 = vst [vmem:[#allocation37_spill] sm:$0xff] %v11403_v53  ;;  %v8845_v43 = vpop.eup %8844  ;;  %8866 = vpow2.f32 %v7615_v44  ;;  %4547 = vadd.xlane.f32.xlu0 %v11403_v53  ;;  %v8277_v30 = vpop.f32.mrf.mxu0 }
 0x5e4   : > { %8868 = vrcp.f32 %v4387_v17  ;;  %v4390_v12 = vadd.f32 1.0, %v8845_v43  ;;  %v7616_v63 = vmul.f32 -1.442695, %v8277_v30  ;;  %v8847_v55 = vpop.eup %8846  ;;  %v7597_v43 = vmul.f32 -1.442695, %v11338_v45 }
 0x5e5   : > { %8870 = vpow2.f32 %v7613_v10  ;;  %v4478_v23 = vmul.f32 %v8847_v55, %v3995_v54  ;;  %v13059_v55 = vld [vmem:[#allocation69_spill] sm:$0xff] }
 0x5e6   : > { %v8849_v59 = vpop.eup %8848  ;;  %8872 = vrcp.f32 %v4390_v12 }
 0x5e7   : > { %v8851_v7 = vpop.eup %8850  ;;  %8874 = vpow2.f32 %v7616_v63  ;;  %4551 = vadd.xlane.f32.xlu0 %v11414_v24  ;;  %v4476_v2 = vmul.f32 %v8849_v59, %v3987_v6  ;;  %v11434_v5 = vadd.f32 %v4478_v23, %v13053_v36  ;;  %v13060_v59 = vld [vmem:[#allocation48_spill] sm:$0xff] }
 0x5e8   : > { %v8853_v25 = vpop.eup %8852  ;;  %v11422_v4 = vmul.f32 %v8851_v7, %v11298_v39  ;;  %v4003_v39 = vadd.f32 %v7915_v3, %v7803_v20  ;;  %v13063_v23 = vld [vmem:[#allocation72_spill] sm:$0xff] }
 0x5e9   : > { %v4393_v60 = vadd.f32 1.0, %v8853_v25  ;;  %v11425_v52 = vadd.f32 %v4476_v2, %v13050_v34  ;;  %v8855_v51 = vpop.eup %8854  ;;  %13054 = vst [vmem:[#allocation63_spill] sm:$0xff] %v11434_v5  ;;  %v7955_v2 = vpop.f32.mrf.mxu1  ;;  %v13062_v25 = vld [vmem:[#allocation74_spill] sm:$0xff]  ;;  %v7601_v34 = vmul.f32 -1.442695, %v11347_v61 }
 0x5ea   : > { %v8857_v15 = vpop.eup %8856  ;;  %v4391_v47 = vadd.f32 1.0, %v8855_v51 }
 0x5eb   : > { %13051 = vst [vmem:[#allocation43_spill] sm:$0xff] %v11425_v52  ;;  %8876 = vrcp.f32 %v4393_v60  ;;  %4555 = vadd.xlane.f32.xlu0 %v11425_v52  ;;  %v8859_v28 = vpop.eup %8858  ;;  %v4371_v54 = vadd.f32 1.0, %v8857_v15  ;;  %v7956_v38 = vpop.f32.mrf.mxu1 }
 0x5ec   : > { %8878 = vrcp.f32 %v4391_v47  ;;  %v4394_v16 = vadd.f32 1.0, %v8859_v28  ;;  %v7957_v46 = vadd.f32 %v7956_v38, %v7955_v2  ;;  %v13084_v38 = vld [vmem:[#allocation42_spill] sm:$0xff] }
 0x5ed   : > { %v8861_v56 = vpop.eup %8860  ;;  %8880 = vpow2.f32 %v7593_v14 }
 0x5ee   : > { %v8863_v8 = vpop.eup %8862  ;;  %v4480_v19 = vmul.f32 %v8861_v56, %v4003_v39  ;;  %8882 = vrcp.f32 %v4394_v16  ;;  %v13064_v39 = vld [vmem:[#allocation77_spill] sm:$0xff]  ;;  %v4059_v36 = vadd.f32 %v7957_v46, %v7845_v1  ;;  %v11509_v1 = vadd.f32 %v11406_v62, %v13084_v38  ;;  %v13086_v46 = vld [vmem:[#allocation64_spill] sm:$0xff] }
 0x5ef   : > { %v8865_v9 = vpop.eup %8864  ;;  %4559 = vadd.xlane.f32.xlu0 %v11434_v5  ;;  %v4482_v17 = vmul.f32 %v8863_v8, %v4011_v58  ;;  %v13065_v8 = vld [vmem:[#allocation75_spill] sm:$0xff]  ;;  %v7610_v62 = vmul.f32 -1.442695, %v11395_v22  ;;  %v13094_v38 = vld [vmem:[#allocation52_spill] sm:$0xff] }
 0x5f0   : > { %v8867_v41 = vpop.eup %8866  ;;  %v11438_v44 = vadd.f32 %v4480_v19, %v13055_v40  ;;  %v11441_v11 = vmul.f32 %v8865_v9, %v13057_v37  ;;  %v13069_v37 = vld [vmem:[#allocation78_spill] sm:$0xff]  ;;  %13085 = vst [vmem:[#allocation75_spill] sm:$0xff] %v11509_v1 }
 0x5f1   : > { %v8869_v35 = vpop.eup %8868  ;;  %v4397_v26 = vadd.f32 1.0, %v8867_v41  ;;  %v11452_v7 = vadd.f32 %v4482_v17, %v13060_v59  ;;  %v13066_v41 = vld [vmem:[#allocation29_spill] sm:$0xff] }
 0x5f2   : > { %13056 = vst [vmem:[#allocation45_spill] sm:$0xff] %v11438_v44  ;;  %v8871_v10 = vpop.eup %8870  ;;  %v11445_v50 = vmul.f32 %v8869_v35, %v13058_v18  ;;  %v11479_v35 = vadd.f32 %v13069_v37, %v13068_v48  ;;  %v13072_v18 = vld [vmem:[#allocation33_spill] sm:$0xff] }
 0x5f3   : > { %v8873_v30 = vpop.eup %8872  ;;  %8884 = vrcp.f32 %v4397_v26  ;;  %v4395_v12 = vadd.f32 1.0, %v8871_v10  ;;  %4563 = vadd.xlane.f32.xlu0 %v11438_v44  ;;  %13061 = vst [vmem:[#allocation47_spill] sm:$0xff] %v11452_v7  ;;  %v13071_v26 = vld [vmem:[#allocation67_spill] sm:$0xff] }
 0x5f4   : > { %v8875_v63 = vpop.eup %8874  ;;  %v11449_v6 = vmul.f32 %v8873_v30, %v13059_v55  ;;  %13070 = vst [vmem:[#allocation66_spill] sm:$0xff] %v11479_v35 }
 0x5f5   : > { %8886 = vrcp.f32 %v4395_v12  ;;  %v4398_v42 = vadd.f32 1.0, %v8875_v63  ;;  %v13074_v63 = vld [vmem:[#allocation35_spill] sm:$0xff] }
 0x5f6   : > { %8888 = vpow2.f32 %v7597_v43  ;;  %v11489_v55 = vadd.f32 %v11363_v32, %v13074_v63  ;;  %v13082_v32 = vld [vmem:[#allocation41_spill] sm:$0xff] }
 0x5f7   : > { %8890 = vrcp.f32 %v4398_v42  ;;  %4567 = vadd.xlane.f32.xlu0 %v11452_v7  ;;  %v13076_v42 = vld [vmem:[#allocation68_spill] sm:$0xff] }
 0x5f8   : > { %v8877_v45 = vpop.eup %8876  ;;  %8892 = vrcp.f32 %v4371_v54  ;;  %13075 = vst [vmem:[#allocation48_spill] sm:$0xff] %v11489_v55  ;;  %v13077_v54 = vld [vmem:[#allocation38_spill] sm:$0xff] }
 0x5f9   : > { %v11456_v20 = vmul.f32 %v8877_v45, %v13062_v25  ;;  %v8879_v3 = vpop.eup %8878  ;;  %8894 = vpow2.f32 %v7601_v34  ;;  %v13079_v25 = vld [vmem:[#allocation40_spill] sm:$0xff] }
 0x5fa   : > { %v8881_v60 = vpop.eup %8880  ;;  %v11460_v51 = vmul.f32 %v8879_v3, %v13063_v23  ;;  %v11499_v3 = vadd.f32 %v11384_v0, %v13079_v25  ;;  %v13087_v0 = vld [vmem:[#allocation44_spill] sm:$0xff] }
 0x5fb   : > { %v8883_v14 = vpop.eup %8882  ;;  %v4375_v47 = vadd.f32 1.0, %v8881_v60  ;;  %v13081_v60 = vld [vmem:[#allocation61_spill] sm:$0xff] }
 0x5fc   : > { %v11463_v15 = vmul.f32 %v8883_v14, %v11322_v29  ;;  %13080 = vst [vmem:[#allocation72_spill] sm:$0xff] %v11499_v3 }
 0x5fd   : > { %8896 = vrcp.f32 %v4375_v47 }
 0x600   : > { %v8885_v28 = vpop.eup %8884 }
 0x601   : > { %v11468_v56 = vmul.f32 %v8885_v28, %v13064_v39  ;;  %v13089_v39 = vld [vmem:[#allocation46_spill] sm:$0xff] }
 0x602   : > { %v8887_v16 = vpop.eup %8886 }
 0x603   : > { %v8889_v61 = vpop.eup %8888  ;;  %v11471_v19 = vmul.f32 %v8887_v16, %v13065_v8  ;;  %v11519_v16 = vadd.f32 %v11422_v4, %v13089_v39 }
 0x604   : > { %v8891_v9 = vpop.eup %8890  ;;  %v4379_v58 = vadd.f32 1.0, %v8889_v61  ;;  %v7606_v61 = vmul.f32 -1.442695, %v11373_v27 }
 0x605   : > { %v4494_v29 = vmul.f32 %v8891_v9, %v4059_v36  ;;  %v8893_v31 = vpop.eup %8892  ;;  %13090 = vst [vmem:[#allocation31_spill] sm:$0xff] %v11519_v16  ;;  %v4259_v9 = vpop.f32.mrf.mxu0 }
 0x606   : > { %8898 = vrcp.f32 %v4379_v58  ;;  %v4467_v17 = vmul.f32 %v8893_v31, %v13071_v26  ;;  %v8895_v10 = vpop.eup %8894  ;;  %v7614_v58 = vmul.f32 -1.442695, %v4259_v9  ;;  %v13097_v9 = vld [vmem:[#allocation54_spill] sm:$0xff] }
 0x607   : > { %v11474_v40 = vadd.f32 %v4494_v29, %v13066_v41  ;;  %v4383_v43 = vadd.f32 1.0, %v8895_v10 }
 0x608   : > { %v11484_v30 = vadd.f32 %v4467_v17, %v13072_v18 }
 0x609   : > { %13067 = vst [vmem:[#allocation70_spill] sm:$0xff] %v11474_v40  ;;  %4591 = vadd.xlane.f32.xlu1 %v11474_v40  ;;  %8900 = vrcp.f32 %v4383_v43 }
 0x60a   : > { %13073 = vst [vmem:[#allocation69_spill] sm:$0xff] %v11484_v30  ;;  %v8897_v12 = vpop.eup %8896  ;;  %8902 = vpow2.f32 %v7606_v61 }
 0x60b   : > { %v4471_v59 = vmul.f32 %v8897_v12, %v13076_v42  ;;  %8904 = vpow2.f32 %v7610_v62  ;;  %v13091_v12 = vld [vmem:[#allocation65_spill] sm:$0xff] }
 0x60c   : > { %v13096_v62 = vld [vmem:[#allocation73_spill] sm:$0xff] }
 0x60d   : > { %4533 = vadd.xlane.f32.xlu1 %v11479_v35  ;;  %v11494_v45 = vadd.f32 %v4471_v59, %v13077_v54  ;;  %v13092_v59 = vld [vmem:[#allocation50_spill] sm:$0xff] }
 0x60f   : > { %13078 = vst [vmem:[#allocation74_spill] sm:$0xff] %v11494_v45 }
 0x611   : > { %4537 = vadd.xlane.f32.xlu1 %v11484_v30 }
 0x613   : > { %v8899_v2 = vpop.eup %8898 }
 0x614   : > { %v4475_v34 = vmul.f32 %v8899_v2, %v13081_v60 }
 0x615   : > { %4541 = vadd.xlane.f32.xlu1 %v11489_v55 }
 0x616   : > { %v11504_v23 = vadd.f32 %v4475_v34, %v13082_v32  ;;  %v8901_v14 = vpop.eup %8900 }
 0x617   : > { %v4479_v47 = vmul.f32 %v8901_v14, %v13086_v46  ;;  %v8903_v36 = vpop.eup %8902  ;;  %v11549_v46 = vadd.f32 %v11449_v6, %v13094_v38 }
 0x618   : > { %13083 = vst [vmem:[#allocation77_spill] sm:$0xff] %v11504_v23  ;;  %v4388_v8 = vadd.f32 1.0, %v8903_v36  ;;  %v8905_v31 = vpop.eup %8904 }
 0x619   : > { %4545 = vadd.xlane.f32.xlu1 %v11494_v45  ;;  %v11514_v28 = vadd.f32 %v4479_v47, %v13087_v0  ;;  %v4392_v37 = vadd.f32 1.0, %v8905_v31  ;;  %13095 = vst [vmem:[#allocation67_spill] sm:$0xff] %v11549_v46 }
 0x61a   : > { %8906 = vrcp.f32 %v4388_v8 }
 0x61b   : > { %13088 = vst [vmem:[#allocation29_spill] sm:$0xff] %v11514_v28  ;;  %8908 = vpow2.f32 %v7614_v58 }
 0x61c   : > { %8910 = vrcp.f32 %v4392_v37 }
 0x61d   : > { %4549 = vadd.xlane.f32.xlu1 %v11499_v3 }
 0x621   : > { %4553 = vadd.xlane.f32.xlu1 %v11504_v23 }
 0x625   : > { %4557 = vadd.xlane.f32.xlu1 %v11509_v1 }
 0x627   : > { %v8907_v22 = vpop.eup %8906 }
 0x628   : > { %v4484_v63 = vmul.f32 %v8907_v22, %v13091_v12  ;;  %v8909_v34 = vpop.eup %8908 }
 0x629   : > { %4561 = vadd.xlane.f32.xlu1 %v11514_v28  ;;  %v4396_v32 = vadd.f32 1.0, %v8909_v34  ;;  %v8911_v47 = vpop.eup %8910 }
 0x62a   : > { %v11539_v54 = vadd.f32 %v4484_v63, %v13092_v59  ;;  %v4488_v36 = vmul.f32 %v8911_v47, %v13096_v62  ;;  %v13102_v63 = vld [vmem:[#allocation58_spill] sm:$0xff]  ;;  %v13104_v62 = vld [vmem:[#allocation49_spill] sm:$0xff] }
 0x62b   : > { %8912 = vrcp.f32 %v4396_v32  ;;  %v8570_v47 = vld [vmem:[#allocation16 + $0xe0] ss:$16 sps:$4 sm:$0xff]  }
 0x62c   : > { %13093 = vst [vmem:[#allocation78_spill] sm:$0xff] %v11539_v54 }
 0x62d   : > { %4565 = vadd.xlane.f32.xlu1 %v11519_v16 }
 0x657   : > { %v4530_v29 = vpop.xlane.xlu0 %4529 }
 0x658   : > { %v4593_v41 = vmul.f32 0.0078125, %v4530_v29  ;;  %v11559_v29 = vadd.f32 %v4488_v36, %v13097_v9  ;;  %v11594_v36 = vadd.f32 %v11445_v50, %v13104_v62 }
 0x65a   : > { %v11525_v48 = vsub.f32 %v11351_v49, %v4593_v41  ;;  %13098 = vst [vmem:[#allocation33_spill] sm:$0xff] %v11559_v29  ;;  %13105 = vst [vmem:[#allocation38_spill] sm:$0xff] %v11594_v36 }
 0x65b   : > { %v4532_v4 = vpop.xlane.xlu0 %4531 }
 0x65c   : > { %v4594_v26 = vmul.f32 0.0078125, %v4532_v4  ;;  %v4657_v27 = vmul.f32 %v11525_v48, %v11525_v48  ;;  %v13099_v4 = vld [vmem:[#allocation56_spill] sm:$0xff] }
 0x65d   : > { %v11569_v37 = vadd.f32 %v11463_v15, %v13099_v4 }
 0x65e   : > { %v11530_v17 = vsub.f32 %v11360_v33, %v4594_v26  ;;  %4689 = vadd.xlane.f32.xlu1 %v4657_v27  ;;  %v8913_v26 = vpop.eup %8912 }
 0x65f   : > { %v4536_v10 = vpop.xlane.xlu0 %4535  ;;  %13100 = vst [vmem:[#allocation35_spill] sm:$0xff] %v11569_v37 }
 0x660   : > { %v4596_v43 = vmul.f32 0.0078125, %v4536_v10  ;;  %v4658_v18 = vmul.f32 %v11530_v17, %v11530_v17 }
 0x662   : > { %4691 = vadd.xlane.f32.xlu1 %v4658_v18  ;;  %v11536_v42 = vsub.f32 %v11371_v21, %v4596_v43  ;;  %v13101_v43 = vld [vmem:[#allocation76_spill] sm:$0xff] }
 0x663   : > { %v4540_v2 = vpop.xlane.xlu0 %4539  ;;  %v4492_v18 = vmul.f32 %v8913_v26, %v13101_v43  ;;  %v13106_v26 = vld [vmem:[#allocation51_spill] sm:$0xff]  ;;  %v8573_v43 = vld [vmem:[#allocation16 + $0xc0] ss:$16 sps:$4 sm:$0xff]  }
 0x664   : > { %v4598_v25 = vmul.f32 0.0078125, %v4540_v2  ;;  %v4660_v60 = vmul.f32 %v11536_v42, %v11536_v42 }
 0x665   : > { %v11579_v59 = vadd.f32 %v4492_v18, %v13102_v63  ;;  %v8575_v18 = vld [vmem:[#allocation16 + $0xc4] ss:$16 sps:$4 sm:$0xff]  }
 0x666   : > { %4571 = vadd.xlane.f32.xlu1 %v11539_v54  ;;  %v11545_v14 = vsub.f32 %v11377_v57, %v4598_v25 }
 0x667   : > { %v4544_v0 = vpop.xlane.xlu0 %4543  ;;  %13103 = vst [vmem:[#allocation68_spill] sm:$0xff] %v11579_v59 }
 0x668   : > { %v4600_v39 = vmul.f32 0.0078125, %v4544_v0  ;;  %v4662_v61 = vmul.f32 %v11545_v14, %v11545_v14  ;;  %v8572_v0 = vld [vmem:[#allocation16 + $0xe4] ss:$16 sps:$4 sm:$0xff]  }
 0x669   : > { %5577 = vmatprep.subr.bf16.mxu1 %v8572_v0 }
 0x66a   : > { %4695 = vadd.xlane.f32.xlu1 %v4660_v60  ;;  %v11556_v8 = vsub.f32 %v11393_v13, %v4600_v39  ;;  %5578 = vmatpush1.bf16.msra.mxu1 %v8570_v47 }
 0x66b   : > { %5579 = vmatprep.subr.bf16.mxu1 %v8575_v18 }
 0x66c   : > { %v4548_v6 = vpop.xlane.xlu0 %4547  ;;  %v4664_v41 = vmul.f32 %v11556_v8, %v11556_v8 }
 0x66d   : > { %v4602_v58 = vmul.f32 0.0078125, %v4548_v6 }
 0x66e   : > { %4575 = vadd.xlane.f32.xlu1 %v11549_v46  ;;  %5580 = vmatpush1.bf16.msra.mxu1 %v8573_v43 }
 0x66f   : > { %v11565_v31 = vsub.f32 %v11403_v53, %v4602_v58 }
 0x670   : > { %v4552_v27 = vpop.xlane.xlu0 %4551 }
 0x671   : > { %v4604_v22 = vmul.f32 0.0078125, %v4552_v27  ;;  %v4666_v10 = vmul.f32 %v11565_v31, %v11565_v31  ;;  %v11604_v27 = vadd.f32 %v11441_v11, %v13106_v26 }
 0x672   : > { %4699 = vadd.xlane.f32.xlu1 %v4662_v61 }
 0x673   : > { %v11576_v12 = vsub.f32 %v11414_v24, %v4604_v22  ;;  %13107 = vst [vmem:[#allocation40_spill] sm:$0xff] %v11604_v27 }
 0x675   : > { %v4668_v15 = vmul.f32 %v11576_v12, %v11576_v12 }
 0x676   : > { %4579 = vadd.xlane.f32.xlu1 %v11559_v29 }
 0x67a   : > { %4703 = vadd.xlane.f32.xlu1 %v4664_v41 }
 0x67e   : > { %4583 = vadd.xlane.f32.xlu1 %v11569_v37 }
 0x682   : > { %4707 = vadd.xlane.f32.xlu1 %v4666_v10 }
 0x686   : > { %4587 = vadd.xlane.f32.xlu1 %v11579_v59 }
 0x68a   : > { %4711 = vadd.xlane.f32.xlu1 %v4668_v15 }
 0x692   : > { %v4592_v2 = vpop.xlane.xlu1 %4591 }
 0x693   : > { %v4624_v25 = vmul.f32 0.0078125, %v4592_v2 }
 0x695   : > { %v11585_v60 = vsub.f32 %v11474_v40, %v4624_v25  ;;  %v13108_v25 = vld [vmem:[#allocation53_spill] sm:$0xff] }
 0x696   : > { %v4534_v34 = vpop.xlane.xlu1 %4533  ;;  %v11614_v11 = vadd.f32 %v11460_v51, %v13108_v25 }
 0x697   : > { %v4595_v32 = vmul.f32 0.0078125, %v4534_v34  ;;  %v4688_v38 = vmul.f32 %v11585_v60, %v11585_v60 }
 0x698   : > { %13109 = vst [vmem:[#allocation61_spill] sm:$0xff] %v11614_v11 }
 0x699   : > { %4751 = vadd.xlane.f32.xlu0 %v4688_v38  ;;  %v11590_v61 = vsub.f32 %v11479_v35, %v4595_v32 }
 0x69a   : > { %v4538_v39 = vpop.xlane.xlu1 %4537 }
 0x69b   : > { %v4597_v6 = vmul.f32 0.0078125, %v4538_v39  ;;  %v4659_v58 = vmul.f32 %v11590_v61, %v11590_v61 }
 0x69d   : > { %4569 = vadd.xlane.f32.xlu0 %v11594_v36  ;;  %v11600_v4 = vsub.f32 %v11484_v30, %v4597_v6 }
 0x69e   : > { %v4542_v9 = vpop.xlane.xlu1 %4541 }
 0x69f   : > { %v4599_v22 = vmul.f32 0.0078125, %v4542_v9  ;;  %v4661_v10 = vmul.f32 %v11600_v4, %v11600_v4 }
 0x6a1   : > { %4693 = vadd.xlane.f32.xlu0 %v4659_v58  ;;  %v11610_v15 = vsub.f32 %v11489_v55, %v4599_v22  ;;  %v13110_v58 = vld [vmem:[#allocation55_spill] sm:$0xff] }
 0x6a2   : > { %v4546_v41 = vpop.xlane.xlu1 %4545 }
 0x6a3   : > { %v4601_v38 = vmul.f32 0.0078125, %v4546_v41  ;;  %v4663_v0 = vmul.f32 %v11610_v15, %v11610_v15  ;;  %v11632_v41 = vadd.f32 %v11456_v20, %v13110_v58  ;;  %v8581_v58 = vld [vmem:[#allocation16 + $0xa4] ss:$16 sps:$4 sm:$0xff]  }
 0x6a4   : > { %5581 = vmatprep.subr.bf16.mxu1 %v8581_v58  ;;  %v8585_v58 = vld [vmem:[#allocation16 + $0xa8] ss:$16 sps:$4 sm:$0xff]  }
 0x6a5   : > { %4573 = vadd.xlane.f32.xlu0 %v11604_v27  ;;  %v11628_v9 = vsub.f32 %v11494_v45, %v4601_v38  ;;  %13111 = vst [vmem:[#allocation41_spill] sm:$0xff] %v11632_v41  ;;  %v13112_v38 = vld [vmem:[#allocation57_spill] sm:$0xff] }
 0x6a6   : > { %v4550_v50 = vpop.xlane.xlu1 %4549 }
 0x6a7   : > { %v4603_v18 = vmul.f32 0.0078125, %v4550_v50 }
 0x6a9   : > { %4697 = vadd.xlane.f32.xlu0 %v4661_v10  ;;  %v4556_v10 = vpop.xlane.xlu0 %4555 }
 0x6aa   : > { %v4554_v63 = vpop.xlane.xlu1 %4553 }
 0x6ab   : > { %v4605_v2 = vmul.f32 0.0078125, %v4554_v63 }
 0x6ad   : > { %v11617_v34 = vsub.f32 %v11504_v23, %v4605_v2  ;;  %4577 = vadd.xlane.f32.xlu0 %v11614_v11  ;;  %v4665_v2 = vmul.f32 %v11628_v9, %v11628_v9 }
 0x6ae   : > { %v4558_v32 = vpop.xlane.xlu1 %4557 }
 0x6af   : > { %v4607_v47 = vmul.f32 0.0078125, %v4558_v32  ;;  %v4669_v39 = vmul.f32 %v11617_v34, %v11617_v34  ;;  %v11648_v32 = vsub.f32 %v11499_v3, %v4603_v18 }
 0x6b1   : > { %v11625_v62 = vsub.f32 %v11509_v1, %v4607_v47  ;;  %4701 = vadd.xlane.f32.xlu0 %v4663_v0  ;;  %4713 = vadd.xlane.f32.xlu1 %v4669_v39  ;;  %v11652_v47 = vadd.f32 %v11471_v19, %v13112_v38  ;;  %v8576_v0 = vld [vmem:[#allocation16 + $0xe8] ss:$16 sps:$4 sm:$0xff]   ;;  %v8578_v39 = vld [vmem:[#allocation16 + $0xec] ss:$16 sps:$4 sm:$0xff]   ;;  %v4667_v18 = vmul.f32 %v11648_v32, %v11648_v32 }
 0x6b2   : > { %v4562_v51 = vpop.xlane.xlu1 %4561  ;;  %5770 = vmatprep.subr.bf16.mxu0 %v8578_v39  ;;  %v8582_v19 = vld [vmem:[#allocation16 + $0xc8] ss:$16 sps:$4 sm:$0xff]  }
 0x6b3   : > { %v4609_v6 = vmul.f32 0.0078125, %v4562_v51  ;;  %v4671_v26 = vmul.f32 %v11625_v62, %v11625_v62  ;;  %13113 = vst [vmem:[#allocation42_spill] sm:$0xff] %v11652_v47  ;;  %v8579_v51 = vld [vmem:[#allocation16 + $0xa0] ss:$16 sps:$4 sm:$0xff]   ;;  %5771 = vmatpush1.bf16.msra.mxu0 %v8576_v0  ;;  %v13114_v39 = vld [vmem:[#allocation59_spill] sm:$0xff] }
 0x6b4   : > { %5582 = vmatpush1.bf16.msra.mxu1 %v8579_v51  ;;  %v8593_v0 = vld [vmem:[#allocation16 + $0x8c] ss:$16 sps:$4 sm:$0xff]  }
 0x6b5   : > { %v11637_v22 = vsub.f32 %v11514_v28, %v4609_v6  ;;  %4581 = vadd.xlane.f32.xlu0 %v11632_v41  ;;  %4717 = vadd.xlane.f32.xlu1 %v4671_v26  ;;  %v4560_v6 = vpop.xlane.xlu0 %4559  ;;  %v8584_v26 = vld [vmem:[#allocation16 + $0xcc] ss:$16 sps:$4 sm:$0xff]  }
 0x6b6   : > { %v4566_v43 = vpop.xlane.xlu1 %4565  ;;  %5772 = vmatprep.subr.bf16.mxu0 %v8584_v26  ;;  %v8605_v28 = vld [vmem:[#allocation16 + $0x4c] ss:$16 sps:$4 sm:$0xff]  }
 0x6b7   : > { %v4611_v63 = vmul.f32 0.0078125, %v4566_v43  ;;  %v4673_v20 = vmul.f32 %v11637_v22, %v11637_v22  ;;  %v4606_v43 = vmul.f32 0.0078125, %v4556_v10  ;;  %v11664_v10 = vadd.f32 %v11468_v56, %v13114_v39  ;;  %5773 = vmatpush1.bf16.msra.mxu0 %v8582_v19  ;;  %v8599_v19 = vld [vmem:[#allocation16 + $0x6c] ss:$16 sps:$4 sm:$0xff]   ;;  %v8602_v39 = vld [vmem:[#allocation16 + $0x44] ss:$16 sps:$4 sm:$0xff]  }
 0x6b9   : > { %v11645_v25 = vsub.f32 %v11519_v16, %v4611_v63  ;;  %4705 = vadd.xlane.f32.xlu0 %v4665_v2  ;;  %4721 = vadd.xlane.f32.xlu1 %v4673_v20  ;;  %v8588_v63 = vld [vmem:[#allocation16 + $0x80] ss:$16 sps:$4 sm:$0xff]   ;;  %v8587_v2 = vld [vmem:[#allocation16 + $0xac] ss:$16 sps:$4 sm:$0xff]   ;;  %v8590_v20 = vld [vmem:[#allocation16 + $0x84] ss:$16 sps:$4 sm:$0xff]   ;;  %v4564_v38 = vpop.xlane.xlu0 %4563  ;;  %v11660_v40 = vsub.f32 %v11425_v52, %v4606_v43 }
 0x6ba   : > { %5583 = vmatprep.subr.bf16.mxu1 %v8590_v20  ;;  %13115 = vst [vmem:[#allocation64_spill] sm:$0xff] %v11664_v10  ;;  %5774 = vmatprep.subr.bf16.mxu0 %v8587_v2  ;;  %v4610_v51 = vmul.f32 0.0078125, %v4564_v38  ;;  %v8596_v20 = vld [vmem:[#allocation16 + $0x64] ss:$16 sps:$4 sm:$0xff]  }
 0x6bb   : > { %v4675_v50 = vmul.f32 %v11645_v25, %v11645_v25  ;;  %5584 = vmatpush1.bf16.msra.mxu1 %v8588_v63  ;;  %v4670_v43 = vmul.f32 %v11660_v40, %v11660_v40  ;;  %5775 = vmatpush1.bf16.msra.mxu0 %v8585_v58  ;;  %v8600_v63 = vld [vmem:[#allocation16 + $0x40] ss:$16 sps:$4 sm:$0xff]   ;;  %v8597_v58 = vld [vmem:[#allocation16 + $0x68] ss:$16 sps:$4 sm:$0xff]  }
 0x6bc   : > { %5776 = vmatprep.subr.bf16.mxu0 %v8593_v0  ;;  %5585 = vmatprep.subr.bf16.mxu1 %v8596_v20  ;;  %v11673_v2 = vsub.f32 %v11438_v44, %v4610_v51  ;;  %v8603_v51 = vld [vmem:[#allocation16 + $0x48] ss:$16 sps:$4 sm:$0xff]   ;;  %v8608_v20 = vld [vmem:[#allocation16 + $0x24] ss:$16 sps:$4 sm:$0xff]  }
 0x6bd   : > { %4585 = vadd.xlane.f32.xlu0 %v11652_v47  ;;  %4725 = vadd.xlane.f32.xlu1 %v4675_v50  ;;  %v4608_v50 = vmul.f32 0.0078125, %v4560_v6  ;;  %v8591_v6 = vld [vmem:[#allocation16 + $0x88] ss:$16 sps:$4 sm:$0xff]   ;;  %v4568_v56 = vpop.xlane.xlu0 %4567 }
 0x6be   : > { %v4612_v38 = vmul.f32 0.0078125, %v4568_v56  ;;  %v8611_v56 = vld [vmem:[#allocation16 + $0x2c] ss:$16 sps:$4 sm:$0xff]  }
 0x6bf   : > { %v11668_v26 = vsub.f32 %v11434_v5, %v4608_v50  ;;  %5777 = vmatpush1.bf16.msra.mxu0 %v8591_v6 }
 0x6c0   : > { %5778 = vmatprep.subr.bf16.mxu0 %v8599_v19  ;;  %v11678_v0 = vsub.f32 %v11452_v7, %v4612_v38  ;;  %v8609_v19 = vld [vmem:[#allocation16 + $0x28] ss:$16 sps:$4 sm:$0xff]   ;;  %v8617_v38 = vld [vmem:[#allocation16 + $0xc] ss:$16 sps:$4 sm:$0xff]  }
 0x6c1   : > { %4709 = vadd.xlane.f32.xlu0 %v4667_v18  ;;  %v8594_v18 = vld [vmem:[#allocation16 + $0x60] ss:$16 sps:$4 sm:$0xff]   ;;  %v4672_v50 = vmul.f32 %v11668_v26, %v11668_v26 }
 0x6c2   : > { %5586 = vmatpush1.bf16.msra.mxu1 %v8594_v18  ;;  %v8606_v18 = vld [vmem:[#allocation16 + $0x20] ss:$16 sps:$4 sm:$0xff]   ;;  %v4676_v6 = vmul.f32 %v11678_v0, %v11678_v0 }
 0x6c3   : > { %5587 = vmatprep.subr.bf16.mxu1 %v8602_v39  ;;  %5779 = vmatpush1.bf16.msra.mxu0 %v8597_v58  ;;  %v8612_v39 = vld [vmem:[#allocation16] ss:$16 sps:$4 sm:$0xff]  }
 0x6c4   : > { %5780 = vmatprep.subr.bf16.mxu0 %v8605_v28 }
 0x6c5   : > { %4589 = vadd.xlane.f32.xlu0 %v11664_v10 }
 0x6c6   : > { %5588 = vmatpush1.bf16.msra.mxu1 %v8600_v63  ;;  %v8614_v63 = vld [vmem:[#allocation16 + $0x4] ss:$16 sps:$4 sm:$0xff]  }
 0x6c7   : > { %5589 = vmatprep.subr.bf16.mxu1 %v8608_v20  ;;  %5781 = vmatpush1.bf16.msra.mxu0 %v8603_v51 }
 0x6c8   : > { %5782 = vmatprep.subr.bf16.mxu0 %v8611_v56 }
 0x6c9   : > { %4715 = vadd.xlane.f32.xlu0 %v4670_v43  ;;  %v4674_v43 = vmul.f32 %v11673_v2, %v11673_v2 }
 0x6ca   : > { %5590 = vmatpush1.bf16.msra.mxu1 %v8606_v18 }
 0x6cb   : > { %5591 = vmatprep.subr.bf16.mxu1 %v8614_v63  ;;  %5783 = vmatpush1.bf16.msra.mxu0 %v8609_v19 }
 0x6cc   : > { %5784 = vmatprep.subr.bf16.mxu0 %v8617_v38 }
 0x6cd   : > { %4719 = vadd.xlane.f32.xlu0 %v4672_v50  ;;  %v8615_v50 = vld [vmem:[#allocation16 + $0x8] ss:$16 sps:$4 sm:$0xff]  }
 0x6ce   : > { %5592 = vmatpush1.bf16.msra.mxu1 %v8612_v39 }
 0x6cf   : > { %5785 = vmatpush1.bf16.msra.mxu0 %v8615_v50  ;;  %v11692_v50 = vld [vmem:[%s13116_s14] ss:$0 sm:$0xff] }
 0x6d1   : > { %4723 = vadd.xlane.f32.xlu0 %v4674_v43 }
 0x6d5   : > { %4727 = vadd.xlane.f32.xlu0 %v4676_v6 }
 0x6e7   : > { %v4690_v28 = vpop.xlane.xlu1 %4689 }
 0x6e8   : > { %v4753_v58 = vmul.f32 0.0078125, %v4690_v28 }
 0x6ea   : > { %v4785_v43 = vadd.f32 1e-05, %v4753_v58 }
 0x6eb   : > { %v4692_v20 = vpop.xlane.xlu1 %4691 }
 0x6ec   : > { %8914 = vrsqrt.f32 %v4785_v43  ;;  %v4754_v44 = vmul.f32 0.0078125, %v4692_v20 }
 0x6ee   : > { %v4786_v51 = vadd.f32 1e-05, %v4754_v44 }
 0x6ef   : > { %v4572_v7 = vpop.xlane.xlu1 %4571 }
 0x6f0   : > { %8916 = vrsqrt.f32 %v4786_v51  ;;  %v4614_v18 = vmul.f32 0.0078125, %v4572_v7  ;;  %v11704_v51 = vld [vmem:[%s13117_s10] ss:$0 sm:$0xff] }
 0x6f2   : > { %v11685_v56 = vsub.f32 %v11539_v54, %v4614_v18 }
 0x6f3   : > { %v4696_v6 = vpop.xlane.xlu1 %4695 }
 0x6f4   : > { %v4678_v19 = vmul.f32 %v11685_v56, %v11685_v56 }
 0x6f6   : > { %4731 = vadd.xlane.f32.xlu0 %v4678_v19 }
 0x6f7   : > { %v4576_v39 = vpop.xlane.xlu1 %4575 }
 0x6f8   : > { %v4616_v63 = vmul.f32 0.0078125, %v4576_v39 }
 0x6f9   : > { %v8915_v38 = vpop.eup %8914 }
 0x6fa   : > { %v4849_v44 = vmul.f32 %v8915_v38, %v11525_v48  ;;  %v11696_v7 = vsub.f32 %v11549_v46, %v4616_v63 }
 0x6fb   : > { %v4700_v28 = vpop.xlane.xlu1 %4699 }
 0x6fc   : > { %v4887_v58 = vmul.f32 %v11692_v50, %v4849_v44  ;;  %v4680_v43 = vmul.f32 %v11696_v7, %v11696_v7 }
 0x6fd   : > { %v8917_v20 = vpop.eup %8916 }
 0x6fe   : > { %v4850_v18 = vmul.f32 %v8917_v20, %v11530_v17  ;;  %4735 = vadd.xlane.f32.xlu0 %v4680_v43  ;;  %v11708_v48 = vadd.f32 %v11704_v51, %v4887_v58  ;;  %v11721_v43 = vld [vmem:[#allocation14] ss:$0 sm:$0xff] }
 0x6ff   : > { %v4580_v19 = vpop.xlane.xlu1 %4579 }
 0x700   : > { %v4888_v39 = vmul.f32 %v11692_v50, %v4850_v18  ;;  %v4618_v63 = vmul.f32 0.0078125, %v4580_v19  ;;  %v12867_v46 = vrot.slane %v11708_v48, 7  ;;  %v11731_v18 = vld [vmem:[#allocation13] ss:$0 sm:$0xff] }
 0x702   : > { %v11712_v38 = vadd.f32 %v11704_v51, %v4888_v39  ;;  %v11715_v44 = vsub.f32 %v11559_v29, %v4618_v63 }
 0x703   : > { %v4704_v54 = vpop.xlane.xlu1 %4703 }
 0x704   : > { %v12866_v16 = vrot.slane %v11712_v38, 7  ;;  %v4682_v17 = vmul.f32 %v11715_v44, %v11715_v44  ;;  %v5300_v39 = vmul.f32 %v11731_v18, %v11712_v38 }
 0x706   : > { %4739 = vadd.xlane.f32.xlu0 %v4682_v17  ;;  %v11729_v20 = vsel %vm2305_vm0, %v12867_v46, %v12866_v16 }
 0x707   : > { %v4584_v19 = vpop.xlane.xlu1 %4583  ;;  %v5338_v63 = vmul.f32 %v11721_v43, %v11729_v20 }
 0x708   : > { %v4620_v29 = vmul.f32 0.0078125, %v4584_v19  ;;  %v4756_v19 = vmul.f32 0.0078125, %v4696_v6 }
 0x709   : > { %v11737_v52 = vadd.f32 %v5338_v63, %v5300_v39  ;;  %v4758_v39 = vmul.f32 0.0078125, %v4700_v28 }
 0x70a   : > { %v11740_v17 = vsub.f32 %v11569_v37, %v4620_v29  ;;  %v4788_v63 = vadd.f32 1e-05, %v4756_v19  ;;  %v4760_v29 = vmul.f32 0.0078125, %v4704_v54 }
 0x70b   : > { %v4708_v5 = vpop.xlane.xlu1 %4707  ;;  %v4790_v24 = vadd.f32 1e-05, %v4758_v39 }
 0x70c   : > { %v4684_v16 = vmul.f32 %v11740_v17, %v11740_v17  ;;  %8918 = vrsqrt.f32 %v4788_v63  ;;  %v4762_v6 = vmul.f32 0.0078125, %v4708_v5 }
 0x70d   : > { %8920 = vrsqrt.f32 %v4790_v24 }
 0x70e   : > { %4743 = vadd.xlane.f32.xlu0 %v4684_v16  ;;  %v4792_v16 = vadd.f32 1e-05, %v4760_v29 }
 0x70f   : > { %v4588_v46 = vpop.xlane.xlu1 %4587 }
 0x710   : > { %v4622_v23 = vmul.f32 0.0078125, %v4588_v46 }
 0x712   : > { %v11745_v1 = vsub.f32 %v11579_v59, %v4622_v23 }
 0x713   : > { %v4712_v23 = vpop.xlane.xlu1 %4711 }
 0x714   : > { %v4686_v53 = vmul.f32 %v11745_v1, %v11745_v1  ;;  %v4764_v54 = vmul.f32 0.0078125, %v4712_v23 }
 0x716   : > { %4747 = vadd.xlane.f32.xlu0 %v4686_v53 }
 0x722   : > { %v4752_v37 = vpop.xlane.xlu0 %4751 }
 0x723   : > { %v4784_v45 = vmul.f32 0.0078125, %v4752_v37  ;;  %v4794_v37 = vadd.f32 1e-05, %v4762_v6 }
 0x725   : > { %v4816_v3 = vadd.f32 1e-05, %v4784_v45  ;;  %v8919_v45 = vpop.eup %8918 }
 0x726   : > { %v4570_v57 = vpop.xlane.xlu0 %4569  ;;  %v8921_v63 = vpop.eup %8920 }
 0x727   : > { %8922 = vrsqrt.f32 %v4816_v3  ;;  %v4613_v46 = vmul.f32 0.0078125, %v4570_v57  ;;  %v4796_v57 = vadd.f32 1e-05, %v4764_v54  ;;  %v11762_v54 = vld [vmem:[#allocation11] ss:$0 sm:$0xff] }
 0x728   : > { %8924 = vrsqrt.f32 %v4792_v16  ;;  %v4852_v16 = vmul.f32 %v8919_v45, %v11536_v42 }
 0x729   : > { %v11750_v59 = vsub.f32 %v11594_v36, %v4613_v46 }
 0x72a   : > { %v4694_v53 = vpop.xlane.xlu0 %4693 }
 0x72b   : > { %v4755_v28 = vmul.f32 0.0078125, %v4694_v53  ;;  %v4677_v19 = vmul.f32 %v11750_v59, %v11750_v59 }
 0x72d   : > { %v4787_v39 = vadd.f32 1e-05, %v4755_v28  ;;  %4729 = vadd.xlane.f32.xlu1 %v4677_v19  ;;  %v4854_v28 = vmul.f32 %v8921_v63, %v11545_v14  ;;  %v5214_v14 = vmul.f32 %v11762_v54, %v11729_v20  ;;  %v11775_v63 = vld [vmem:[#allocation10] ss:$0 sm:$0xff] }
 0x72e   : > { %v4574_v24 = vpop.xlane.xlu0 %4573 }
 0x72f   : > { %8926 = vrsqrt.f32 %v4787_v39  ;;  %v4615_v3 = vmul.f32 0.0078125, %v4574_v24  ;;  %v4890_v39 = vmul.f32 %v11692_v50, %v4852_v16 }
 0x730   : > { %8928 = vrsqrt.f32 %v4794_v37 }
 0x731   : > { %v11755_v29 = vsub.f32 %v11604_v27, %v4615_v3  ;;  %8930 = vrsqrt.f32 %v4796_v57  ;;  %v4892_v3 = vmul.f32 %v11692_v50, %v4854_v28 }
 0x732   : > { %v4698_v5 = vpop.xlane.xlu0 %4697 }
 0x733   : > { %v4757_v46 = vmul.f32 0.0078125, %v4698_v5  ;;  %v4679_v23 = vmul.f32 %v11755_v29, %v11755_v29 }
 0x734   : > { %v8923_v53 = vpop.eup %8922 }
 0x735   : > { %v4880_v6 = vmul.f32 %v8923_v53, %v11585_v60  ;;  %v4789_v19 = vadd.f32 1e-05, %v4757_v46  ;;  %4733 = vadd.xlane.f32.xlu1 %v4679_v23  ;;  %v8925_v42 = vpop.eup %8924  ;;  %v5176_v23 = vmul.f32 %v11775_v63, %v11712_v38  ;;  %v11781_v53 = vadd.f32 %v11704_v51, %v4890_v39 }
 0x736   : > { %v4578_v24 = vpop.xlane.xlu0 %4577  ;;  %v4856_v16 = vmul.f32 %v8925_v42, %v11556_v8  ;;  %v11789_v42 = vadd.f32 %v11704_v51, %v4892_v3 }
 0x737   : > { %v4918_v45 = vmul.f32 %v11692_v50, %v4880_v6  ;;  %8932 = vrsqrt.f32 %v4789_v19  ;;  %v4617_v37 = vmul.f32 0.0078125, %v4578_v24  ;;  %v5246_v8 = vadd.f32 %v5214_v14, %v5176_v23 }
 0x738   : > { %v4894_v14 = vmul.f32 %v11692_v50, %v4856_v16  ;;  %v5302_v16 = vmul.f32 %v11731_v18, %v11781_v53 }
 0x739   : > { %v11770_v57 = vadd.f32 %v11704_v51, %v4918_v45  ;;  %v11773_v60 = vsub.f32 %v11614_v11, %v4617_v37  ;;  %v5175_v45 = vmul.f32 %v11775_v63, %v11708_v48  ;;  %v5299_v37 = vmul.f32 %v11731_v18, %v11708_v48 }
 0x73a   : > { %v4702_v5 = vpop.xlane.xlu0 %4701  ;;  %v4714_v46 = vpop.xlane.xlu1 %4713 }
 0x73b   : > { %v4759_v28 = vmul.f32 0.0078125, %v4702_v5  ;;  %v4765_v6 = vmul.f32 0.0078125, %v4714_v46  ;;  %v4681_v19 = vmul.f32 %v11773_v60, %v11773_v60  ;;  %v13119_v5 = vrot.slane %v11708_v48, 7 }
 0x73c   : > { %v8927_v24 = vpop.eup %8926  ;;  %v13120_v46 = vrot.slane %v11770_v57, 7 }
 0x73d   : > { %v4851_v39 = vmul.f32 %v8927_v24, %v11590_v61  ;;  %v4791_v11 = vadd.f32 1e-05, %v4759_v28  ;;  %v4797_v20 = vadd.f32 1e-05, %v4765_v6  ;;  %4737 = vadd.xlane.f32.xlu1 %v4681_v19  ;;  %v5178_v61 = vmul.f32 %v11775_v63, %v11781_v53  ;;  %v8929_v19 = vpop.eup %8928 }
 0x73e   : > { %v5136_v36 = vsel %vm2305_vm0, %v13120_v46, %v13119_v5  ;;  %v4582_v23 = vpop.xlane.xlu0 %4581  ;;  %v4718_v3 = vpop.xlane.xlu1 %4717 }
 0x73f   : > { %v5137_v13 = vsel %vm10503_vm1, 0.0, %v5136_v36  ;;  %v4889_v28 = vmul.f32 %v11692_v50, %v4851_v39  ;;  %8934 = vrsqrt.f32 %v4791_v11  ;;  %v4619_v48 = vmul.f32 0.0078125, %v4582_v23  ;;  %v8931_v36 = vpop.eup %8930 }
 0x740   : > { %v4767_v6 = vmul.f32 0.0078125, %v4718_v3  ;;  %8936 = vrsqrt.f32 %v4797_v20  ;;  %v5213_v24 = vmul.f32 %v11762_v54, %v5137_v13  ;;  %v5337_v27 = vmul.f32 %v11721_v43, %v5137_v13 }
 0x741   : > { %v11812_v5 = vsub.f32 %v11632_v41, %v4619_v48  ;;  %v4927_v46 = vadd.f32 %v11704_v51, %v4889_v28  ;;  %v11818_v11 = vmul.f32 %v11775_v63, %v11789_v42  ;;  %v11824_v13 = vmul.f32 %v11731_v18, %v11789_v42 }
 0x742   : > { %v4799_v20 = vadd.f32 1e-05, %v4767_v6  ;;  %v4706_v23 = vpop.xlane.xlu0 %4705  ;;  %v4722_v3 = vpop.xlane.xlu1 %4721  ;;  %v5245_v30 = vadd.f32 %v5213_v24, %v5175_v45  ;;  %v11820_v55 = vadd.f32 %v5337_v27, %v5299_v37  ;;  %v11829_v39 = vadd.f32 %v11704_v51, %v4894_v14 }
 0x743   : > { %v4761_v48 = vmul.f32 0.0078125, %v4706_v23  ;;  %v4769_v41 = vmul.f32 0.0078125, %v4722_v3  ;;  %v4683_v28 = vmul.f32 %v11812_v5, %v11812_v5  ;;  %v4858_v6 = vmul.f32 %v8929_v19, %v11565_v31 }
 0x744   : > { %13122 = vst [vmem:[#allocation44_spill] sm:$0xff] %v11820_v55  ;;  %v8933_v33 = vpop.eup %8932  ;;  %v4860_v21 = vmul.f32 %v8931_v36, %v11576_v12  ;;  %v5277_v45 = vpack.c.bf16 %v5246_v8, %v5245_v30  ;;  %v5075_v37 = vrot.slane %v4927_v46, 7  ;;  %v5177_v23 = vmul.f32 %v11775_v63, %v4927_v46 }
 0x745   : > { %v4853_v24 = vmul.f32 %v8933_v33, %v11600_v4  ;;  %v4793_v27 = vadd.f32 1e-05, %v4761_v48  ;;  %4741 = vadd.xlane.f32.xlu1 %v4683_v28  ;;  %8938 = vrsqrt.f32 %v4799_v20  ;;  %v13123_v31 = vrot.slane %v11781_v53, 7 }
 0x746   : > { %5610 = vmatmul.mubr.bf16.vlgmr.msra.gmra.mxu1 %v5277_v45  ;;  %5803 = vmatmul.mubr.bf16.vlgmr.msra.gmra.mxu0 %v5277_v45  ;;  %v4586_v14 = vpop.xlane.xlu0 %4585  ;;  %v4726_v49 = vpop.xlane.xlu1 %4725  ;;  %v13124_v12 = vrot.slane %v11712_v38, 7  ;;  %v5301_v4 = vmul.f32 %v11731_v18, %v4927_v46  ;;  %v4801_v19 = vadd.f32 1e-05, %v4769_v41  ;;  %v13125_v20 = vmov 0  }
 0x747   : > { %v5133_v30 = vsel %vm2305_vm0, %v5075_v37, %v13123_v31  ;;  %v4891_v8 = vmul.f32 %v11692_v50, %v4853_v24  ;;  %8940 = vrsqrt.f32 %v4793_v27  ;;  %v4621_v36 = vmul.f32 0.0078125, %v4586_v14  ;;  %5619 = vmatprep.mubr.bf16.mxu1 %v13125_v20  ;;  %5812 = vmatprep.mubr.bf16.mxu0 %v13125_v20 }
 0x748   : > { %v5134_v33 = vsel %vm2305_vm0, %v13124_v12, %v5075_v37  ;;  %v4771_v48 = vmul.f32 0.0078125, %v4726_v49  ;;  %v5216_v45 = vmul.f32 %v11762_v54, %v5133_v30  ;;  %v4896_v37 = vmul.f32 %v11692_v50, %v4858_v6 }
 0x749   : > { %v5215_v28 = vmul.f32 %v11762_v54, %v5134_v33  ;;  %v5339_v38 = vmul.f32 %v11721_v43, %v5134_v33  ;;  %v11854_v46 = vsub.f32 %v11652_v47, %v4621_v36  ;;  %v5340_v24 = vmul.f32 %v11721_v43, %v5133_v30 }
 0x74a   : > { %v4929_v41 = vadd.f32 %v11704_v51, %v4891_v8  ;;  %v4898_v27 = vmul.f32 %v11692_v50, %v4860_v21  ;;  %v4710_v14 = vpop.xlane.xlu0 %4709  ;;  %v5248_v49 = vadd.f32 %v5216_v45, %v5178_v61  ;;  %8942 = vrsqrt.f32 %v4801_v19 }
 0x74b   : > { %v5247_v31 = vadd.f32 %v5215_v28, %v5177_v23  ;;  %v11859_v12 = vadd.f32 %v5339_v38, %v5301_v4  ;;  %v4763_v3 = vmul.f32 0.0078125, %v4710_v14  ;;  %v4685_v33 = vmul.f32 %v11854_v46, %v11854_v46 }
 0x74c   : > { %v11863_v6 = vadd.f32 %v5340_v24, %v5302_v16  ;;  %v8935_v36 = vpop.eup %8934  ;;  %v4803_v47 = vadd.f32 1e-05, %v4771_v48  ;;  %v5077_v30 = vrot.slane %v4929_v41, 7  ;;  %v5179_v8 = vmul.f32 %v11775_v63, %v4929_v41 }
 0x74d   : > { %v5278_v35 = vpack.c.bf16 %v5248_v49, %v5247_v31  ;;  %v8937_v55 = vpop.eup %8936  ;;  %v4855_v21 = vmul.f32 %v8935_v36, %v11610_v15  ;;  %v4795_v23 = vadd.f32 1e-05, %v4763_v3  ;;  %4745 = vadd.xlane.f32.xlu1 %v4685_v33  ;;  %v5303_v4 = vmul.f32 %v11731_v18, %v4929_v41 }
 0x74e   : > { %v4861_v19 = vmul.f32 %v8937_v55, %v11617_v34  ;;  %v4590_v16 = vpop.xlane.xlu0 %4589  ;;  %v13126_v48 = vrot.slane %v11789_v42, 7  ;;  %v13127_v45 = vrot.slane %v11781_v53, 7  ;;  %v5080_v36 = vrot.slane %v11829_v39, 7 }
 0x74f   : > { %5620 = vmatmul.mubr.bf16.gmra.mxu1 %v5278_v35  ;;  %5813 = vmatmul.mubr.bf16.gmra.mxu0 %v5278_v35  ;;  %v4893_v3 = vmul.f32 %v11692_v50, %v4855_v21  ;;  %8944 = vrsqrt.f32 %v4795_v23  ;;  %v4623_v38 = vmul.f32 0.0078125, %v4590_v16  ;;  %v5182_v16 = vmul.f32 %v11775_v63, %v11829_v39 }
 0x750   : > { %v5131_v28 = vsel %vm2305_vm0, %v5077_v30, %v13126_v48  ;;  %v5132_v15 = vsel %vm2305_vm0, %v13127_v45, %v5077_v30  ;;  %5629 = vmatprep.mubr.bf16.mxu1 %v13125_v20  ;;  %5822 = vmatprep.mubr.bf16.mxu0 %v13125_v20  ;;  %v4899_v55 = vmul.f32 %v11692_v50, %v4861_v19  ;;  %8946 = vrsqrt.f32 %v4803_v47 }
 0x751   : > { %v5217_v35 = vmul.f32 %v11762_v54, %v5132_v15  ;;  %v5218_v34 = vmul.f32 %v11762_v54, %v5131_v28  ;;  %v5341_v24 = vmul.f32 %v11721_v43, %v5132_v15  ;;  %v5342_v53 = vmul.f32 %v11721_v43, %v5131_v28 }
 0x752   : > { %v11888_v41 = vsub.f32 %v11664_v10, %v4623_v38  ;;  %v11891_v31 = vadd.f32 %v11704_v51, %v4893_v3  ;;  %v4716_v49 = vpop.xlane.xlu0 %4715  ;;  %v8939_v23 = vpop.eup %8938  ;;  %v13128_v38 = vrot.slane %v11789_v42, 7  ;;  %v5306_v42 = vmul.f32 %v11731_v18, %v11829_v39 }
 0x753   : > { %v5249_v14 = vadd.f32 %v5217_v35, %v5179_v8  ;;  %v5250_v33 = vadd.f32 %v5218_v34, %v11818_v11  ;;  %v11895_v30 = vadd.f32 %v5341_v24, %v5303_v4  ;;  %v11898_v21 = vadd.f32 %v5342_v53, %v11824_v13 }
 0x754   : > { %v4766_v19 = vmul.f32 0.0078125, %v4716_v49  ;;  %v4687_v47 = vmul.f32 %v11888_v41, %v11888_v41  ;;  %v5079_v8 = vrot.slane %v11891_v31, 7  ;;  %v8941_v48 = vpop.eup %8940  ;;  %v11906_v11 = vadd.f32 %v11704_v51, %v4896_v37 }
 0x755   : > { %v5279_v28 = vpack.c.bf16 %v5250_v33, %v5249_v14  ;;  %v11909_v4 = vadd.f32 %v11704_v51, %v4898_v27  ;;  %v11912_v13 = vadd.f32 %v11704_v51, %v4899_v55  ;;  %v4857_v45 = vmul.f32 %v8941_v48, %v11628_v9 }
 0x756   : > { %v4798_v15 = vadd.f32 1e-05, %v4766_v19  ;;  %4749 = vadd.xlane.f32.xlu1 %v4687_v47  ;;  %v11917_v3 = vsel %vm2305_vm0, %v5079_v8, %v5080_v36  ;;  %v5130_v37 = vsel %vm2305_vm0, %v13128_v38, %v5079_v8  ;;  %v4720_v27 = vpop.xlane.xlu0 %4719  ;;  %v5181_v35 = vmul.f32 %v11775_v63, %v11891_v31 }
 0x757   : > { %5630 = vmatmul.mubr.bf16.gmra.mxu1 %v5279_v28  ;;  %5823 = vmatmul.mubr.bf16.gmra.mxu0 %v5279_v28  ;;  %v5219_v55 = vmul.f32 %v11762_v54, %v5130_v37  ;;  %v5220_v9 = vmul.f32 %v11762_v54, %v11917_v3  ;;  %v4895_v34 = vmul.f32 %v11692_v50, %v4857_v45  ;;  %v4768_v24 = vmul.f32 0.0078125, %v4720_v27  ;;  %v8943_v53 = vpop.eup %8942 }
 0x758   : > { %8948 = vrsqrt.f32 %v4798_v15  ;;  %5639 = vmatprep.mubr.bf16.mxu1 %v13125_v20  ;;  %5832 = vmatprep.mubr.bf16.mxu0 %v13125_v20  ;;  %v4863_v14 = vmul.f32 %v8939_v23, %v11625_v62  ;;  %v12890_v19 = vrot.slane %v11912_v13, 7  ;;  %v5082_v48 = vrot.slane %v11906_v11, 7 }
 0x759   : > { %v5251_v49 = vadd.f32 %v5219_v55, %v5181_v35  ;;  %v5252_v33 = vadd.f32 %v5220_v9, %v5182_v16  ;;  %v4800_v47 = vadd.f32 1e-05, %v4768_v24  ;;  %v4933_v8 = vadd.f32 %v11704_v51, %v4895_v34 }
 0x75a   : > { %v5184_v28 = vmul.f32 %v11775_v63, %v11906_v11  ;;  %v4724_v45 = vpop.xlane.xlu0 %4723  ;;  %v5084_v38 = vrot.slane %v11909_v4, 7  ;;  %v11944_v62 = vmul.f32 %v11731_v18, %v11906_v11  ;;  %v4865_v23 = vmul.f32 %v8943_v53, %v11637_v22 }
 0x75b   : > { %v5280_v15 = vpack.c.bf16 %v5252_v33, %v5251_v49  ;;  %8950 = vrsqrt.f32 %v4800_v47  ;;  %v4770_v16 = vmul.f32 0.0078125, %v4724_v45  ;;  %v5081_v27 = vrot.slane %v4933_v8, 7 }
 0x75c   : > { %v8945_v35 = vpop.eup %8944  ;;  %v4901_v55 = vmul.f32 %v11692_v50, %v4863_v14  ;;  %v5186_v9 = vmul.f32 %v11775_v63, %v11909_v4  ;;  %v11954_v34 = vsel %vm2305_vm0, %v5084_v38, %v12890_v19  ;;  %v11958_v11 = vmul.f32 %v11731_v18, %v11909_v4 }
 0x75d   : > { %v4859_v22 = vmul.f32 %v8945_v35, %v11648_v32  ;;  %v4802_v24 = vadd.f32 1e-05, %v4770_v16  ;;  %v5127_v53 = vsel %vm2305_vm0, %v5081_v27, %v5082_v48  ;;  %v5128_v14 = vsel %vm2305_vm0, %v5080_v36, %v5081_v27  ;;  %v8947_v49 = vpop.eup %8946 }
 0x75e   : > { %v4728_v33 = vpop.xlane.xlu0 %4727  ;;  %v5183_v47 = vmul.f32 %v11775_v63, %v4933_v8  ;;  %v5221_v45 = vmul.f32 %v11762_v54, %v5128_v14  ;;  %v5222_v4 = vmul.f32 %v11762_v54, %v5127_v53  ;;  %v4903_v39 = vmul.f32 %v11692_v50, %v4865_v23 }
 0x75f   : > { %5640 = vmatmul.mubr.bf16.gmra.mxu1 %v5280_v15  ;;  %5833 = vmatmul.mubr.bf16.gmra.mxu0 %v5280_v15  ;;  %v4897_v32 = vmul.f32 %v11692_v50, %v4859_v22  ;;  %8952 = vrsqrt.f32 %v4802_v24  ;;  %v4772_v16 = vmul.f32 0.0078125, %v4728_v33  ;;  %v5305_v15 = vmul.f32 %v11731_v18, %v11891_v31 }
 0x760   : > { %5649 = vmatprep.mubr.bf16.mxu1 %v13125_v20  ;;  %5842 = vmatprep.mubr.bf16.mxu0 %v13125_v20  ;;  %v5253_v36 = vadd.f32 %v5221_v45, %v5183_v47  ;;  %v5254_v27 = vadd.f32 %v5222_v4, %v5184_v28  ;;  %v5343_v35 = vmul.f32 %v11721_v43, %v5130_v37  ;;  %v8618_v47 = vld [vmem:[#allocation17 + $0x78] sm:$0xff]  }
 0x761   : > { %v4867_v61 = vmul.f32 %v8947_v49, %v11645_v25  ;;  %v4804_v19 = vadd.f32 1e-05, %v4772_v16  ;;  %v4935_v23 = vadd.f32 %v11704_v51, %v4897_v32  ;;  %v11978_v22 = vadd.f32 %v11704_v51, %v4901_v55  ;;  %v8619_v45 = vld [vmem:[#allocation17 + $0x38] sm:$0xff]   ;;  %7982 = vmatprep.subr.bf16.mxu1 %v8618_v47 }
 0x762   : > { %v5281_v24 = vpack.c.bf16 %v5254_v27, %v5253_v36  ;;  %v5344_v33 = vmul.f32 %v11721_v43, %v11917_v3  ;;  %v11982_v10 = vadd.f32 %v5343_v35, %v5305_v15  ;;  %v5307_v28 = vmul.f32 %v11731_v18, %v4933_v8  ;;  %7983 = vmatpush3.bf16.msra.mxu1 %v8619_v45 }
 0x763   : > { %8954 = vrsqrt.f32 %v4804_v19  ;;  %v5083_v31 = vrot.slane %v4935_v23, 7  ;;  %v5185_v37 = vmul.f32 %v11775_v63, %v4935_v23  ;;  %v5345_v25 = vmul.f32 %v11721_v43, %v5128_v14 }
 0x764   : > { %v11987_v4 = vadd.f32 %v5344_v33, %v5306_v42  ;;  %v5346_v55 = vmul.f32 %v11721_v43, %v5127_v53  ;;  %v5309_v32 = vmul.f32 %v11731_v18, %v4935_v23  ;;  %v5311_v3 = vmul.f32 %v11731_v18, %v11912_v13 }
 0x765   : > { %v8949_v49 = vpop.eup %8948  ;;  %v5125_v19 = vsel %vm2305_vm0, %v5083_v31, %v5084_v38  ;;  %v5126_v16 = vsel %vm2305_vm0, %v5082_v48, %v5083_v31  ;;  %v11998_v14 = vadd.f32 %v5345_v25, %v5307_v28 }
 0x766   : > { %v4862_v8 = vmul.f32 %v8949_v49, %v11660_v40  ;;  %v5223_v42 = vmul.f32 %v11762_v54, %v5126_v16  ;;  %v5224_v53 = vmul.f32 %v11762_v54, %v5125_v19  ;;  %v5404_v36 = vpack.c.bf16 %v11987_v4, %v11982_v10 }
 0x767   : > { %5650 = vmatmul.mubr.bf16.gmra.mxu1 %v5281_v24  ;;  %5843 = vmatmul.mubr.bf16.gmra.mxu0 %v5281_v24  ;;  %v12008_v48 = vadd.f32 %v5346_v55, %v11944_v62  ;;  %v5347_v38 = vmul.f32 %v11721_v43, %v5126_v16  ;;  %v5348_v23 = vmul.f32 %v11721_v43, %v5125_v19 }
 0x768   : > { %v4900_v40 = vmul.f32 %v11692_v50, %v4862_v8  ;;  %5659 = vmatprep.mubr.bf16.mxu1 %v13125_v20  ;;  %5852 = vmatprep.mubr.bf16.mxu0 %v13125_v20  ;;  %v8951_v27 = vpop.eup %8950  ;;  %v5255_v15 = vadd.f32 %v5223_v42, %v5185_v37  ;;  %v5256_v35 = vadd.f32 %v5224_v53, %v5186_v9  ;;  %v13129_v42 = vrot.slane %v11912_v13, 7 }
 0x769   : > { %v5349_v24 = vmul.f32 %v11721_v43, %v11954_v34  ;;  %v4864_v33 = vmul.f32 %v8951_v27, %v11668_v26  ;;  %v12018_v62 = vadd.f32 %v5347_v38, %v5309_v32  ;;  %v5187_v37 = vmul.f32 %v11775_v63, %v11912_v13 }
 0x76a   : > { %v4938_v28 = vadd.f32 %v11704_v51, %v4900_v40  ;;  %v5282_v47 = vpack.c.bf16 %v5256_v35, %v5255_v15  ;;  %v12023_v9 = vadd.f32 %v5348_v23, %v11958_v11  ;;  %v5087_v26 = vrot.slane %v11978_v22, 7 }
 0x76b   : > { %v12025_v25 = vadd.f32 %v5349_v24, %v5311_v3  ;;  %v4902_v49 = vmul.f32 %v11692_v50, %v4864_v33  ;;  %v12030_v55 = vadd.f32 %v11704_v51, %v4903_v39  ;;  %v4905_v32 = vmul.f32 %v11692_v50, %v4867_v61 }
 0x76c   : > { %v5086_v45 = vrot.slane %v4938_v28, 7  ;;  %v8953_v8 = vpop.eup %8952  ;;  %v5188_v19 = vmul.f32 %v11775_v63, %v4938_v28  ;;  %v5225_v16 = vmul.f32 %v11762_v54, %v11954_v34  ;;  %v5312_v34 = vmul.f32 %v11731_v18, %v4938_v28 }
 0x76d   : > { %v4866_v3 = vmul.f32 %v8953_v8, %v11673_v2  ;;  %v4940_v39 = vadd.f32 %v11704_v51, %v4902_v49  ;;  %v5089_v27 = vrot.slane %v12030_v55, 7 }
 0x76e   : > { %v5123_v53 = vsel %vm2305_vm0, %v13129_v42, %v5086_v45  ;;  %v5122_v61 = vsel %vm2305_vm0, %v5086_v45, %v5087_v26  ;;  %v5257_v35 = vadd.f32 %v5225_v16, %v5187_v37  ;;  %v8620_v42 = vld [vmem:[#allocation17 + $0x70] sm:$0xff]  }
 0x76f   : > { %5660 = vmatmul.mubr.bf16.gmra.mxu1 %v5282_v47  ;;  %5853 = vmatmul.mubr.bf16.gmra.mxu0 %v5282_v47  ;;  %v5226_v40 = vmul.f32 %v11762_v54, %v5123_v53  ;;  %v5350_v38 = vmul.f32 %v11721_v43, %v5123_v53  ;;  %v4904_v2 = vmul.f32 %v11692_v50, %v4866_v3  ;;  %v5088_v13 = vrot.slane %v4940_v39, 7 }
 0x770   : > { %5669 = vmatprep.mubr.bf16.mxu1 %v13125_v20  ;;  %5862 = vmatprep.mubr.bf16.mxu0 %v13125_v20  ;;  %v8955_v15 = vpop.eup %8954  ;;  %v5351_v33 = vmul.f32 %v11721_v43, %v5122_v61  ;;  %v12065_v3 = vadd.f32 %v11704_v51, %v4905_v32 }
 0x771   : > { %v5258_v23 = vadd.f32 %v5226_v40, %v5188_v19  ;;  %v12053_v24 = vadd.f32 %v5350_v38, %v5312_v34  ;;  %v4868_v28 = vmul.f32 %v8955_v15, %v11678_v0  ;;  %v5121_v47 = vsel %vm2305_vm0, %v5087_v26, %v5088_v13  ;;  %v8621_v34 = vld [vmem:[#allocation17 + $0x30] sm:$0xff]   ;;  %v8622_v38 = vld [vmem:[#allocation17 + $0xf8] sm:$0xff]   ;;  %7984 = vmatprep.subr.bf16.mxu1 %v8620_v42 }
 0x772   : > { %v12060_v49 = vadd.f32 %v11704_v51, %v4904_v2  ;;  %v5120_v45 = vsel %vm2305_vm0, %v5088_v13, %v5089_v27  ;;  %v5313_v19 = vmul.f32 %v11731_v18, %v11978_v22  ;;  %v5228_v26 = vmul.f32 %v11762_v54, %v5121_v47  ;;  %7985 = vmatpush3.bf16.msra.mxu1 %v8621_v34 }
 0x773   : > { %v5283_v8 = vpack.c.bf16 %v5258_v23, %v5257_v35  ;;  %v4906_v0 = vmul.f32 %v11692_v50, %v4868_v28  ;;  %v5153_v40 = vsel %vm10752_vm2, 0.0, %v5120_v45  ;;  %v5352_v32 = vmul.f32 %v11721_v43, %v5121_v47  ;;  %v8623_v35 = vld [vmem:[#allocation17 + $0xb8] sm:$0xff]   ;;  %v8624_v23 = vld [vmem:[#allocation17 + $0x68] sm:$0xff]   ;;  %8094 = vmatprep.subr.bf16.mxu0 %v8622_v38 }
 0x774   : > { %v5090_v16 = vrot.slane %v12060_v49, 7  ;;  %v12077_v2 = vadd.f32 %v5351_v33, %v5313_v19  ;;  %v5190_v13 = vmul.f32 %v11775_v63, %v4940_v39  ;;  %v5314_v28 = vmul.f32 %v11731_v18, %v4940_v39  ;;  %v8626_v19 = vld [vmem:[#allocation17 + $0xf0] sm:$0xff]   ;;  %8095 = vmatpush3.bf16.msra.mxu0 %v8623_v35  ;;  %7986 = vmatprep.subr.bf16.mxu1 %v8624_v23 }
 0x775   : > { %v12083_v50 = vadd.f32 %v11704_v51, %v4906_v0  ;;  %v5189_v47 = vmul.f32 %v11775_v63, %v11978_v22  ;;  %v5227_v33 = vmul.f32 %v11762_v54, %v5122_v61  ;;  %v5091_v45 = vrot.slane %v12065_v3, 7  ;;  %v8625_v61 = vld [vmem:[#allocation17 + $0x28] sm:$0xff]   ;;  %8096 = vmatprep.subr.bf16.mxu0 %v8626_v19 }
 0x776   : > { %v5119_v15 = vsel %vm2305_vm0, %v5089_v27, %v5090_v16  ;;  %v5315_v27 = vmul.f32 %v11731_v18, %v12030_v55  ;;  %v5260_v51 = vadd.f32 %v5228_v26, %v5190_v13  ;;  %v12095_v0 = vadd.f32 %v5352_v32, %v5314_v28  ;;  %v8627_v32 = vld [vmem:[#allocation17 + $0xb0] sm:$0xff]   ;;  %v8630_v13 = vld [vmem:[#allocation17 + $0x60] sm:$0xff]   ;;  %7987 = vmatpush3.bf16.msra.mxu1 %v8625_v61 }
 0x777   : > { %5670 = vmatmul.mubr.bf16.gmra.mxu1 %v5283_v8  ;;  %5863 = vmatmul.mubr.bf16.gmra.mxu0 %v5283_v8  ;;  %v5092_v39 = vrot.slane %v12083_v50, 7  ;;  %v5353_v8 = vmul.f32 %v11721_v43, %v5153_v40  ;;  %v5118_v22 = vsel %vm2305_vm0, %v5090_v16, %v5091_v45  ;;  %v5316_v42 = vmul.f32 %v11731_v18, %v12060_v49  ;;  %v8632_v61 = vld [vmem:[#allocation17 + $0x20] sm:$0xff]  }
 0x778   : > { %5679 = vmatprep.mubr.bf16.mxu1 %v13125_v20  ;;  %5872 = vmatprep.mubr.bf16.mxu0 %v13125_v20  ;;  %v5354_v53 = vmul.f32 %v11721_v43, %v5119_v15  ;;  %v5408_v16 = vpack.c.bf16 %v12095_v0, %v12077_v2  ;;  %v5259_v38 = vadd.f32 %v5227_v33, %v5189_v47  ;;  %v8629_v33 = vld [vmem:[#allocation17 + $0xa8] sm:$0xff]  }
 0x779   : > { %v5117_v26 = vsel %vm2305_vm0, %v5091_v45, %v5092_v39  ;;  %v12109_v34 = vadd.f32 %v5353_v8, %v5315_v27  ;;  %v5317_v37 = vmul.f32 %v11731_v18, %v12065_v3  ;;  %v5318_v11 = vmul.f32 %v11731_v18, %v12083_v50  ;;  %v8628_v27 = vld [vmem:[#allocation17 + $0xe8] sm:$0xff]   ;;  %8097 = vmatpush3.bf16.msra.mxu0 %v8627_v32 }
 0x77a   : > { %v12111_v28 = vadd.f32 %v5354_v53, %v5316_v42  ;;  %v5355_v35 = vmul.f32 %v11721_v43, %v5118_v22  ;;  %v5356_v23 = vmul.f32 %v11721_v43, %v5117_v26  ;;  %v5284_v45 = vpack.c.bf16 %v5260_v51, %v5259_v38  ;;  %7988 = vmatprep.subr.bf16.mxu1 %v8630_v13  ;;  %v8634_v42 = vld [vmem:[#allocation17 + $0x58] sm:$0xff]   ;;  %v8633_v53 = vld [vmem:[#allocation17 + $0xa0] sm:$0xff]  }
 0x77b   : > { %v5230_v31 = vmul.f32 %v11762_v54, %v5119_v15  ;;  %v5192_v43 = vmul.f32 %v11775_v63, %v12060_v49  ;;  %v5229_v18 = vmul.f32 %v11762_v54, %v5153_v40  ;;  %v8631_v15 = vld [vmem:[#allocation17 + $0xe0] sm:$0xff]   ;;  %8098 = vmatprep.subr.bf16.mxu0 %v8628_v27  ;;  %7989 = vmatpush3.bf16.msra.mxu1 %v8632_v61  ;;  %v8635_v13 = vld [vmem:[#allocation17 + $0xd8] sm:$0xff]   ;;  %v8638_v27 = vld [vmem:[#allocation17 + $0x50] sm:$0xff]  }
 0x77c   : > { %v5409_v47 = vpack.c.bf16 %v12111_v28, %v12109_v34  ;;  %v12122_v19 = vadd.f32 %v5355_v35, %v5317_v37  ;;  %v12124_v8 = vadd.f32 %v5356_v23, %v5318_v11  ;;  %v5191_v37 = vmul.f32 %v11775_v63, %v12030_v55  ;;  %7990 = vmatprep.subr.bf16.mxu1 %v8634_v42  ;;  %v8636_v38 = vld [vmem:[#allocation17 + $0x18] sm:$0xff]   ;;  %v8646_v61 = vld [vmem:[#allocation17 + $0x40] sm:$0xff]  }
 0x77d   : > { %v5262_v11 = vadd.f32 %v5230_v31, %v5192_v43  ;;  %8099 = vmatpush3.bf16.msra.mxu0 %v8629_v33  ;;  %v5232_v32 = vmul.f32 %v11762_v54, %v5117_v26  ;;  %v8637_v35 = vld [vmem:[#allocation17 + $0x98] sm:$0xff]   ;;  %v5194_v31 = vmul.f32 %v11775_v63, %v12083_v50  ;;  %v5231_v55 = vmul.f32 %v11762_v54, %v5118_v22  ;;  %v8639_v33 = vld [vmem:[#allocation17 + $0xd0] sm:$0xff]   ;;  %v8642_v22 = vld [vmem:[#allocation17 + $0x48] sm:$0xff]  }
 0x77e   : > { %v5261_v49 = vadd.f32 %v5229_v18, %v5191_v37  ;;  %8100 = vmatprep.subr.bf16.mxu0 %v8631_v15  ;;  %v5193_v23 = vmul.f32 %v11775_v63, %v12065_v3  ;;  %v8640_v18 = vld [vmem:[#allocation17 + $0x10] sm:$0xff]   ;;  %v8643_v3 = vld [vmem:[#allocation17 + $0xc8] sm:$0xff]   ;;  %v8647_v42 = vld [vmem:[#allocation17 + $0xc0] sm:$0xff]   ;;  %v13138_v10 = vpack.c.bf16 %v12053_v24, %v12025_v25 }
 0x77f   : > { %5680 = vmatmul.mubr.bf16.gmra.mxu1 %v5284_v45  ;;  %5873 = vmatmul.mubr.bf16.gmra.mxu0 %v5284_v45  ;;  %v5264_v45 = vadd.f32 %v5232_v32, %v5194_v31  ;;  %v8641_v15 = vld [vmem:[#allocation17 + $0x90] sm:$0xff]   ;;  %v8644_v37 = vld [vmem:[#allocation17 + $0x8] sm:$0xff]  }
 0x780   : > { %5689 = vmatprep.mubr.bf16.mxu1 %v13125_v20  ;;  %5882 = vmatprep.mubr.bf16.mxu0 %v13125_v20  ;;  %v5285_v40 = vpack.c.bf16 %v5262_v11, %v5261_v49  ;;  %v5263_v26 = vadd.f32 %v5231_v55, %v5193_v23  ;;  %v8645_v11 = vld [vmem:[#allocation17 + $0x88] sm:$0xff]   ;;  %v8649_v49 = vld [vmem:[#allocation17 + $0x80] sm:$0xff]  }
 0x781   : > { %8101 = vmatpush3.bf16.msra.mxu0 %v8633_v53  ;;  %7991 = vmatpush3.bf16.msra.mxu1 %v8636_v38  ;;  %v8648_v53 = vld [vmem:[#allocation17] sm:$0xff]  }
 0x782   : > { %8102 = vmatprep.subr.bf16.mxu0 %v8635_v13  ;;  %v5286_v43 = vpack.c.bf16 %v5264_v45, %v5263_v26  ;;  %7992 = vmatprep.subr.bf16.mxu1 %v8638_v27 }
 0x785   : > { %8103 = vmatpush3.bf16.msra.mxu0 %v8637_v35  ;;  %7993 = vmatpush3.bf16.msra.mxu1 %v8640_v18 }
 0x786   : > { %8104 = vmatprep.subr.bf16.mxu0 %v8639_v33  ;;  %7994 = vmatprep.subr.bf16.mxu1 %v8642_v22 }
 0x787   : > { %5690 = vmatmul.mubr.bf16.gmra.mxu1 %v5285_v40  ;;  %5883 = vmatmul.mubr.bf16.gmra.mxu0 %v5285_v40  ;;  %v4732_v40 = vpop.xlane.xlu0 %4731 }
 0x788   : > { %5699 = vmatprep.mubr.bf16.mxu1 %v13125_v20  ;;  %5892 = vmatprep.mubr.bf16.mxu0 %v13125_v20  ;;  %v4774_v32 = vmul.f32 0.0078125, %v4732_v40 }
 0x789   : > { %8105 = vmatpush3.bf16.msra.mxu0 %v8641_v15  ;;  %7995 = vmatpush3.bf16.msra.mxu1 %v8644_v37 }
 0x78a   : > { %8106 = vmatprep.subr.bf16.mxu0 %v8643_v3  ;;  %7996 = vmatprep.subr.bf16.mxu1 %v8646_v61  ;;  %v4806_v38 = vadd.f32 1e-05, %v4774_v32 }
 0x78b   : > { %v4736_v13 = vpop.xlane.xlu0 %4735 }
 0x78c   : > { %v4776_v35 = vmul.f32 0.0078125, %v4736_v13  ;;  %8956 = vrsqrt.f32 %v4806_v38 }
 0x78d   : > { %8107 = vmatpush3.bf16.msra.mxu0 %v8645_v11  ;;  %7997 = vmatpush3.bf16.msra.mxu1 %v8648_v53  ;;  %v12149_v53 = vld [vmem:[%s13116_s14] ss:$0 sm:$0xff] }
 0x78e   : > { %8108 = vmatprep.subr.bf16.mxu0 %v8647_v42  ;;  %v4808_v31 = vadd.f32 1e-05, %v4776_v35 }
 0x78f   : > { %5700 = vmatmul.mubr.bf16.gmra.mxu1 %v5286_v43  ;;  %5893 = vmatmul.mubr.bf16.gmra.mxu0 %v5286_v43  ;;  %v4740_v55 = vpop.xlane.xlu0 %4739 }
 0x790   : > { %5709 = vmatprep.mubr.bf16.mxu1 %v13125_v20  ;;  %5902 = vmatprep.mubr.bf16.mxu0 %v13125_v20  ;;  %v4778_v45 = vmul.f32 0.0078125, %v4740_v55  ;;  %8958 = vrsqrt.f32 %v4808_v31 }
 0x791   : > { %8109 = vmatpush3.bf16.msra.mxu0 %v8649_v49 }
 0x792   : > { %v4810_v33 = vadd.f32 1e-05, %v4778_v45 }
 0x797   : > { %v4744_v15 = vpop.xlane.xlu0 %4743 }
 0x798   : > { %v4780_v11 = vmul.f32 0.0078125, %v4744_v15 }
 0x799   : > { %v8957_v18 = vpop.eup %8956 }
 0x79a   : > { %v4870_v37 = vmul.f32 %v8957_v18, %v11685_v56  ;;  %v4812_v40 = vadd.f32 1e-05, %v4780_v11  ;;  %v12165_v11 = vld [vmem:[#allocation13] ss:$0 sm:$0xff] }
 0x79c   : > { %v4908_v49 = vmul.f32 %v12149_v53, %v4870_v37 }
 0x79d   : > { %v8959_v61 = vpop.eup %8958 }
 0x79e   : > { %v4872_v35 = vmul.f32 %v8959_v61, %v11696_v7 }
 0x79f   : > { %v4748_v42 = vpop.xlane.xlu0 %4747 }
 0x7a0   : > { %v4782_v31 = vmul.f32 0.0078125, %v4748_v42 }
 0x7b6   : > { %v4730_v23 = vpop.xlane.xlu1 %4729 }
 0x7b7   : > { %v4773_v26 = vmul.f32 0.0078125, %v4730_v23  ;;  %v12157_v23 = vld [vmem:[%s13117_s10] ss:$0 sm:$0xff] }
 0x7b8   : > { %v4946_v45 = vadd.f32 %v12157_v23, %v4908_v49 }
 0x7b9   : > { %v4805_v27 = vadd.f32 1e-05, %v4773_v26 }
 0x7ba   : > { %v5196_v15 = vmul.f32 %v11775_v63, %v4946_v45  ;;  %v5320_v61 = vmul.f32 %v12165_v11, %v4946_v45 }
 0x7bb   : > { %8960 = vrsqrt.f32 %v4805_v27 }
 0x7bc   : > { %8962 = vrsqrt.f32 %v4810_v33  ;;  %v4910_v33 = vmul.f32 %v12149_v53, %v4872_v35 }
 0x7be   : > { %v4734_v43 = vpop.xlane.xlu1 %4733 }
 0x7bf   : > { %v4775_v22 = vmul.f32 0.0078125, %v4734_v43  ;;  %v4814_v43 = vadd.f32 1e-05, %v4782_v31 }
 0x7c1   : > { %v4807_v3 = vadd.f32 1e-05, %v4775_v22 }
 0x7c3   : > { %8964 = vrsqrt.f32 %v4807_v3 }
 0x7c4   : > { %8966 = vrsqrt.f32 %v4812_v40  ;;  %v12170_v40 = vadd.f32 %v12157_v23, %v4910_v33 }
 0x7c6   : > { %v4738_v32 = vpop.xlane.xlu1 %4737 }
 0x7c7   : > { %v4777_v13 = vmul.f32 0.0078125, %v4738_v32 }
 0x7c8   : > { %v8961_v38 = vpop.eup %8960 }
 0x7c9   : > { %v4869_v56 = vmul.f32 %v8961_v38, %v11750_v59  ;;  %v4809_v55 = vadd.f32 1e-05, %v4777_v13  ;;  %v8963_v27 = vpop.eup %8962  ;;  %v5094_v59 = vrot.slane %v4946_v45, 7 }
 0x7ca   : > { %v4874_v22 = vmul.f32 %v8963_v27, %v11715_v44 }
 0x7cb   : > { %v4907_v26 = vmul.f32 %v12149_v53, %v4869_v56  ;;  %8968 = vrsqrt.f32 %v4809_v55  ;;  %v12182_v55 = vld [vmem:[#allocation14] ss:$0 sm:$0xff] }
 0x7cc   : > { %8970 = vrsqrt.f32 %v4814_v43 }
 0x7cd   : > { %v4945_v7 = vadd.f32 %v12157_v23, %v4907_v26 }
 0x7ce   : > { %v4742_v18 = vpop.xlane.xlu1 %4741 }
 0x7cf   : > { %v4779_v3 = vmul.f32 0.0078125, %v4742_v18  ;;  %v5093_v37 = vrot.slane %v4945_v7, 7  ;;  %v5195_v49 = vmul.f32 %v11775_v63, %v4945_v7  ;;  %v5319_v32 = vmul.f32 %v12165_v11, %v4945_v7 }
 0x7d0   : > { %v8965_v42 = vpop.eup %8964 }
 0x7d1   : > { %v4871_v13 = vmul.f32 %v8965_v42, %v11755_v29  ;;  %v4811_v38 = vadd.f32 1e-05, %v4779_v3  ;;  %v5115_v44 = vsel %vm2305_vm0, %v5093_v37, %v5094_v59  ;;  %v5116_v35 = vsel %vm2305_vm0, %v5092_v39, %v5093_v37 }
 0x7d2   : > { %v5233_v31 = vmul.f32 %v11762_v54, %v5116_v35  ;;  %v5234_v56 = vmul.f32 %v11762_v54, %v5115_v44  ;;  %v5357_v45 = vmul.f32 %v12182_v55, %v5116_v35  ;;  %v5358_v26 = vmul.f32 %v12182_v55, %v5115_v44  ;;  %v8967_v44 = vpop.eup %8966 }
 0x7d3   : > { %v4912_v29 = vmul.f32 %v12149_v53, %v4874_v22  ;;  %v4909_v27 = vmul.f32 %v12149_v53, %v4871_v13  ;;  %8972 = vrsqrt.f32 %v4811_v38  ;;  %v5096_v37 = vrot.slane %v12170_v40, 7 }
 0x7d4   : > { %v5265_v33 = vadd.f32 %v5233_v31, %v5195_v49  ;;  %v5266_v50 = vadd.f32 %v5234_v56, %v5196_v15  ;;  %v12188_v43 = vadd.f32 %v5357_v45, %v5319_v32  ;;  %v12190_v39 = vadd.f32 %v5358_v26, %v5320_v61  ;;  %v12212_v26 = vld [vmem:[#allocation19 + $0x38] sm:$0xff]  }
 0x7d5   : > { %v4947_v7 = vadd.f32 %v12157_v23, %v4909_v27  ;;  %v5198_v49 = vmul.f32 %v11775_v63, %v12170_v40  ;;  %v5322_v15 = vmul.f32 %v12165_v11, %v12170_v40  ;;  %v12202_v13 = vadd.f32 %v12157_v23, %v4912_v29  ;;  %v12215_v29 = vld [vmem:[#allocation11] ss:$0 sm:$0xff]  ;;  %8278 = vmatprep.subr.bf16.mxu1 %v12212_v26 }
 0x7d6   : > { %v4746_v18 = vpop.xlane.xlu1 %4745  ;;  %v5287_v3 = vpack.c.bf16 %v5266_v50, %v5265_v33  ;;  %v4876_v50 = vmul.f32 %v8967_v44, %v11740_v17  ;;  %v13140_v2 = vpack.c.bf16 %v12190_v39, %v12188_v43 }
 0x7d7   : > { %v4781_v22 = vmul.f32 0.0078125, %v4746_v18  ;;  %v5095_v35 = vrot.slane %v4947_v7, 7  ;;  %v5197_v32 = vmul.f32 %v11775_v63, %v4947_v7  ;;  %v5321_v38 = vmul.f32 %v12165_v11, %v4947_v7 }
 0x7d8   : > { %v8969_v61 = vpop.eup %8968  ;;  %5710 = vmatmul.mubr.bf16.gmra.mxu1 %v5287_v3  ;;  %5903 = vmatmul.mubr.bf16.gmra.mxu0 %v5287_v3  ;;  %v4914_v44 = vmul.f32 %v12149_v53, %v4876_v50 }
 0x7d9   : > { %v4873_v31 = vmul.f32 %v8969_v61, %v11773_v60  ;;  %v4813_v56 = vadd.f32 1e-05, %v4781_v22  ;;  %5719 = vmatprep.mubr.bf16.mxu1 %v13125_v20  ;;  %5912 = vmatprep.mubr.bf16.mxu0 %v13125_v20  ;;  %v5113_v40 = vsel %vm2305_vm0, %v5095_v35, %v5096_v37  ;;  %v5114_v45 = vsel %vm2305_vm0, %v5094_v59, %v5095_v35  ;;  %v8971_v22 = vpop.eup %8970 }
 0x7da   : > { %v5235_v63 = vmul.f32 %v11762_v54, %v5114_v45  ;;  %v5236_v27 = vmul.f32 %v12215_v29, %v5113_v40  ;;  %v5359_v60 = vmul.f32 %v12182_v55, %v5114_v45  ;;  %v5360_v33 = vmul.f32 %v12182_v55, %v5113_v40 }
 0x7db   : > { %v4911_v7 = vmul.f32 %v12149_v53, %v4873_v31  ;;  %8974 = vrsqrt.f32 %v4813_v56  ;;  %v5098_v40 = vrot.slane %v12202_v13, 7 }
 0x7dc   : > { %v5267_v59 = vadd.f32 %v5235_v63, %v5197_v32  ;;  %v5268_v18 = vadd.f32 %v5236_v27, %v5198_v49  ;;  %v12223_v3 = vadd.f32 %v5359_v60, %v5321_v38  ;;  %v12225_v54 = vadd.f32 %v5360_v33, %v5322_v15  ;;  %v12232_v32 = vld [vmem:[#allocation10] ss:$0 sm:$0xff] }
 0x7dd   : > { %v4949_v35 = vadd.f32 %v12157_v23, %v4911_v7  ;;  %v5200_v49 = vmul.f32 %v12232_v32, %v12202_v13  ;;  %v5324_v27 = vmul.f32 %v12165_v11, %v12202_v13 }
 0x7de   : > { %v5288_v45 = vpack.c.bf16 %v5268_v18, %v5267_v59 }
 0x7df   : > { %v4750_v61 = vpop.xlane.xlu1 %4749  ;;  %v5097_v56 = vrot.slane %v4949_v35, 7  ;;  %v5199_v38 = vmul.f32 %v12232_v32, %v4949_v35  ;;  %v5323_v63 = vmul.f32 %v12165_v11, %v4949_v35 }
 0x7e0   : > { %v4783_v31 = vmul.f32 0.0078125, %v4750_v61  ;;  %v8973_v15 = vpop.eup %8972  ;;  %5720 = vmatmul.mubr.bf16.gmra.mxu1 %v5288_v45  ;;  %5913 = vmatmul.mubr.bf16.gmra.mxu0 %v5288_v45  ;;  %v4952_v45 = vadd.f32 %v12157_v23, %v4914_v44 }
 0x7e1   : > { %v4875_v60 = vmul.f32 %v8973_v15, %v11812_v5  ;;  %5729 = vmatprep.mubr.bf16.mxu1 %v13125_v20  ;;  %5922 = vmatprep.mubr.bf16.mxu0 %v13125_v20  ;;  %v5111_v50 = vsel %vm2305_vm0, %v5097_v56, %v5098_v40  ;;  %v5112_v7 = vsel %vm2305_vm0, %v5096_v37, %v5097_v56 }
 0x7e2   : > { %v4815_v33 = vadd.f32 1e-05, %v4783_v31  ;;  %v5237_v59 = vmul.f32 %v12215_v29, %v5112_v7  ;;  %v5238_v18 = vmul.f32 %v12215_v29, %v5111_v50  ;;  %v5361_v35 = vmul.f32 %v12182_v55, %v5112_v7 }
 0x7e3   : > { %v5362_v13 = vmul.f32 %v12182_v55, %v5111_v50  ;;  %v4878_v5 = vmul.f32 %v8971_v22, %v11745_v1  ;;  %v4913_v61 = vmul.f32 %v12149_v53, %v4875_v60  ;;  %v5100_v22 = vrot.slane %v4952_v45, 7 }
 0x7e4   : > { %8976 = vrsqrt.f32 %v4815_v33  ;;  %v5269_v31 = vadd.f32 %v5237_v59, %v5199_v38  ;;  %v5270_v15 = vadd.f32 %v5238_v18, %v5200_v49  ;;  %v12254_v17 = vadd.f32 %v5361_v35, %v5323_v63 }
 0x7e5   : > { %v12256_v37 = vadd.f32 %v5362_v13, %v5324_v27  ;;  %v4951_v56 = vadd.f32 %v12157_v23, %v4913_v61  ;;  %v4916_v50 = vmul.f32 %v12149_v53, %v4878_v5  ;;  %v5202_v60 = vmul.f32 %v12232_v32, %v4952_v45 }
 0x7e6   : > { %v5289_v42 = vpack.c.bf16 %v5270_v15, %v5269_v31  ;;  %v5326_v38 = vmul.f32 %v12165_v11, %v4952_v45 }
 0x7e7   : > { %v5099_v1 = vrot.slane %v4951_v56, 7  ;;  %v5201_v44 = vmul.f32 %v12232_v32, %v4951_v56  ;;  %v5325_v49 = vmul.f32 %v12165_v11, %v4951_v56  ;;  %v4954_v5 = vadd.f32 %v12157_v23, %v4916_v50 }
 0x7e8   : > { %v8975_v33 = vpop.eup %8974  ;;  %5730 = vmatmul.mubr.bf16.gmra.mxu1 %v5289_v42  ;;  %5923 = vmatmul.mubr.bf16.gmra.mxu0 %v5289_v42 }
 0x7e9   : > { %v4877_v63 = vmul.f32 %v8975_v33, %v11854_v46  ;;  %5739 = vmatprep.mubr.bf16.mxu1 %v13125_v20  ;;  %5932 = vmatprep.mubr.bf16.mxu0 %v13125_v20  ;;  %v5109_v27 = vsel %vm2305_vm0, %v5099_v1, %v5100_v22  ;;  %v5110_v59 = vsel %vm2305_vm0, %v5098_v40, %v5099_v1 }
 0x7ea   : > { %v5239_v42 = vmul.f32 %v12215_v29, %v5110_v59  ;;  %v5240_v18 = vmul.f32 %v12215_v29, %v5109_v27  ;;  %v5363_v35 = vmul.f32 %v12182_v55, %v5110_v59  ;;  %v5364_v13 = vmul.f32 %v12182_v55, %v5109_v27 }
 0x7eb   : > { %v4915_v46 = vmul.f32 %v12149_v53, %v4877_v63  ;;  %v5102_v59 = vrot.slane %v4954_v5, 7  ;;  %v5204_v27 = vmul.f32 %v12232_v32, %v4954_v5 }
 0x7ec   : > { %v5271_v61 = vadd.f32 %v5239_v42, %v5201_v44  ;;  %v5272_v45 = vadd.f32 %v5240_v18, %v5202_v60  ;;  %v12279_v31 = vadd.f32 %v5363_v35, %v5325_v49  ;;  %v12281_v15 = vadd.f32 %v5364_v13, %v5326_v38 }
 0x7ed   : > { %v4953_v40 = vadd.f32 %v12157_v23, %v4915_v46  ;;  %v5328_v44 = vmul.f32 %v12165_v11, %v4954_v5 }
 0x7ee   : > { %v5290_v56 = vpack.c.bf16 %v5272_v45, %v5271_v61 }
 0x7ef   : > { %v5101_v33 = vrot.slane %v4953_v40, 7  ;;  %v5203_v50 = vmul.f32 %v12232_v32, %v4953_v40  ;;  %v5327_v60 = vmul.f32 %v12165_v11, %v4953_v40 }
 0x7f0   : > { %5740 = vmatmul.mubr.bf16.gmra.mxu1 %v5290_v56  ;;  %5933 = vmatmul.mubr.bf16.gmra.mxu0 %v5290_v56 }
 0x7f1   : > { %v8977_v7 = vpop.eup %8976  ;;  %5749 = vmatprep.mubr.bf16.mxu1 %v13125_v20  ;;  %5942 = vmatprep.mubr.bf16.mxu0 %v13125_v20  ;;  %v5107_v38 = vsel %vm2305_vm0, %v5101_v33, %v5102_v59  ;;  %v5108_v63 = vsel %vm2305_vm0, %v5100_v22, %v5101_v33 }
 0x7f2   : > { %v4879_v49 = vmul.f32 %v8977_v7, %v11888_v41  ;;  %v5241_v42 = vmul.f32 %v12215_v29, %v5108_v63  ;;  %v5242_v18 = vmul.f32 %v12215_v29, %v5107_v38  ;;  %v5365_v35 = vmul.f32 %v12182_v55, %v5108_v63 }
 0x7f3   : > { %v5366_v13 = vmul.f32 %v12182_v55, %v5107_v38 }
 0x7f4   : > { %v4917_v41 = vmul.f32 %v12149_v53, %v4879_v49  ;;  %v5273_v7 = vadd.f32 %v5241_v42, %v5203_v50  ;;  %v5274_v46 = vadd.f32 %v5242_v18, %v5204_v27  ;;  %v12302_v5 = vadd.f32 %v5365_v35, %v5327_v60 }
 0x7f5   : > { %v12304_v61 = vadd.f32 %v5366_v13, %v5328_v44  ;;  %v5206_v53 = vmul.f32 %v12232_v32, %v11770_v57  ;;  %v5330_v27 = vmul.f32 %v12165_v11, %v11770_v57 }
 0x7f6   : > { %v4955_v45 = vadd.f32 %v12157_v23, %v4917_v41  ;;  %v5291_v40 = vpack.c.bf16 %v5274_v46, %v5273_v7  ;;  %v13131_v23 = vrot.slane %v11770_v57, 7 }
 0x7f8   : > { %v5103_v56 = vrot.slane %v4955_v45, 7  ;;  %5750 = vmatmul.mubr.bf16.gmra.mxu1 %v5291_v40  ;;  %5943 = vmatmul.mubr.bf16.gmra.mxu0 %v5291_v40  ;;  %v5205_v33 = vmul.f32 %v12232_v32, %v4955_v45  ;;  %v5329_v44 = vmul.f32 %v12165_v11, %v4955_v45 }
 0x7f9   : > { %5759 = vmatprep.mubr.bf16.mxu1 %v13125_v20  ;;  %5952 = vmatprep.mubr.bf16.mxu0 %v13125_v20 }
 0x7fa   : > { %v5105_v50 = vsel %vm2305_vm0, %v5103_v56, %v13131_v23  ;;  %v5106_v60 = vsel %vm2305_vm0, %v5102_v59, %v5103_v56 }
 0x7fb   : > { %v5243_v49 = vmul.f32 %v12215_v29, %v5106_v60  ;;  %v5244_v32 = vmul.f32 %v12215_v29, %v5105_v50  ;;  %v5367_v38 = vmul.f32 %v12182_v55, %v5106_v60  ;;  %v5368_v63 = vmul.f32 %v12182_v55, %v5105_v50 }
 0x7fd   : > { %v5275_v42 = vadd.f32 %v5243_v49, %v5205_v33  ;;  %v5276_v20 = vadd.f32 %v5244_v32, %v5206_v53  ;;  %v12327_v18 = vadd.f32 %v5367_v38, %v5329_v44  ;;  %v12329_v57 = vadd.f32 %v5368_v63, %v5330_v27 }
 0x7ff   : > { %v5292_v35 = vpack.c.bf16 %v5276_v20, %v5275_v42 }
 0x801   : > { %5760 = vmatmul.mubr.bf16.gmra.mxu1 %v5292_v35  ;;  %5953 = vmatmul.mubr.bf16.gmra.mxu0 %v5292_v35 }
 0x806   : > { %v5611_v11 = vpop.f32.mrf.mxu1  ;;  %v5804_v59 = vpop.f32.mrf.mxu0 }
 0x807   : > { %v5963_v56 = vmax.f32 %v5611_v11, 0.0  ;;  %v5965_v33 = vmax.f32 %v5804_v59, 0.0 }
 0x808   : > { %v5613_v13 = vpop.f32.mrf.mxu1  ;;  %v5806_v29 = vpop.f32.mrf.mxu0 }
 0x809   : > { %v5964_v46 = vmax.f32 %v5613_v13, 0.0  ;;  %v5966_v55 = vmax.f32 %v5806_v29, 0.0  ;;  %v6091_v35 = vmul.f32 %v5963_v56, %v5963_v56  ;;  %v6093_v58 = vmul.f32 %v5965_v33, %v5965_v33 }
 0x80a   : > { %v5615_v41 = vpop.f32.mrf.mxu1  ;;  %v5808_v7 = vpop.f32.mrf.mxu0 }
 0x80b   : > { %v5967_v45 = vmax.f32 %v5615_v41, 0.0  ;;  %v5969_v40 = vmax.f32 %v5808_v7, 0.0  ;;  %v6092_v38 = vmul.f32 %v5964_v46, %v5964_v46  ;;  %v6094_v63 = vmul.f32 %v5966_v55, %v5966_v55 }
 0x80c   : > { %v5617_v53 = vpop.f32.mrf.mxu1  ;;  %v5810_v27 = vpop.f32.mrf.mxu0 }
 0x80d   : > { %v5968_v23 = vmax.f32 %v5617_v53, 0.0  ;;  %v5970_v50 = vmax.f32 %v5810_v27, 0.0  ;;  %v6095_v60 = vmul.f32 %v5967_v45, %v5967_v45  ;;  %v6097_v44 = vmul.f32 %v5969_v40, %v5969_v40  ;;  %v8651_v53 = vld [vmem:[#allocation19 + $0x30] sm:$0xff]  }
 0x80f   : > { %v5621_v49 = vpop.f32.mrf.mxu1  ;;  %v5814_v32 = vpop.f32.mrf.mxu0  ;;  %v6096_v42 = vmul.f32 %v5968_v23, %v5968_v23  ;;  %v6098_v20 = vmul.f32 %v5970_v50, %v5970_v50  ;;  %v6219_v11 = vpack.c.bf16 %v6095_v60, %v6091_v35  ;;  %v6221_v59 = vpack.c.bf16 %v6097_v44, %v6093_v58 }
 0x810   : > { %v5971_v46 = vmax.f32 %v5621_v49, 0.0  ;;  %v5973_v55 = vmax.f32 %v5814_v32, 0.0 }
 0x811   : > { %v5623_v13 = vpop.f32.mrf.mxu1  ;;  %v5816_v29 = vpop.f32.mrf.mxu0  ;;  %v6220_v41 = vpack.c.bf16 %v6096_v42, %v6092_v38  ;;  %v6222_v7 = vpack.c.bf16 %v6098_v20, %v6094_v63  ;;  %v8652_v63 = vld [vmem:[#allocation19 + $0x28] sm:$0xff]  }
 0x812   : > { %v5972_v27 = vmax.f32 %v5623_v13, 0.0  ;;  %v5974_v45 = vmax.f32 %v5816_v29, 0.0  ;;  %v6099_v49 = vmul.f32 %v5971_v46, %v5971_v46  ;;  %v6101_v32 = vmul.f32 %v5973_v55, %v5973_v55 }
 0x813   : > { %v5625_v22 = vpop.f32.mrf.mxu1  ;;  %v5818_v1 = vpop.f32.mrf.mxu0  ;;  %6507 = vmatprep.mubr.bf16.mxu1 %v6220_v41  ;;  %6668 = vmatprep.mubr.bf16.mxu0 %v6222_v7 }
 0x814   : > { %v5975_v40 = vmax.f32 %v5625_v22, 0.0  ;;  %v5977_v51 = vmax.f32 %v5818_v1, 0.0  ;;  %6508 = vmatmul.mubr.bf16.vlgmr.msra.gmra.mxu1 %v6219_v11  ;;  %6669 = vmatmul.mubr.bf16.vlgmr.msra.gmra.mxu0 %v6221_v59  ;;  %v6100_v22 = vmul.f32 %v5972_v27, %v5972_v27  ;;  %v6102_v1 = vmul.f32 %v5974_v45, %v5974_v45 }
 0x815   : > { %v5627_v23 = vpop.f32.mrf.mxu1  ;;  %v5820_v56 = vpop.f32.mrf.mxu0  ;;  %8279 = vmatpush3.bf16.msra.mxu1 %v12212_v26 }
 0x816   : > { %v5976_v33 = vmax.f32 %v5627_v23, 0.0  ;;  %v5978_v50 = vmax.f32 %v5820_v56, 0.0  ;;  %v6103_v58 = vmul.f32 %v5975_v40, %v5975_v40  ;;  %v6105_v60 = vmul.f32 %v5977_v51, %v5977_v51  ;;  %8280 = vmatprep.subr.bf16.mxu1 %v8651_v53  ;;  %v8653_v51 = vld [vmem:[#allocation19 + $0x20] sm:$0xff]  }
 0x817   : > { %v5631_v44 = vpop.f32.mrf.mxu1  ;;  %v5824_v38 = vpop.f32.mrf.mxu0 }
 0x818   : > { %v6104_v42 = vmul.f32 %v5976_v33, %v5976_v33  ;;  %v6106_v20 = vmul.f32 %v5978_v50, %v5978_v50  ;;  %v6223_v7 = vpack.c.bf16 %v6103_v58, %v6099_v49  ;;  %v6225_v11 = vpack.c.bf16 %v6105_v60, %v6101_v32 }
 0x819   : > { %v5633_v35 = vpop.f32.mrf.mxu1  ;;  %v5826_v13 = vpop.f32.mrf.mxu0  ;;  %8281 = vmatpush3.bf16.msra.mxu1 %v8651_v53  ;;  %v5979_v45 = vmax.f32 %v5631_v44, 0.0  ;;  %v5981_v46 = vmax.f32 %v5824_v38, 0.0 }
 0x81a   : > { %v6224_v29 = vpack.c.bf16 %v6104_v42, %v6100_v22  ;;  %v6226_v41 = vpack.c.bf16 %v6106_v20, %v6102_v1  ;;  %8282 = vmatprep.subr.bf16.mxu1 %v8652_v63  ;;  %v5980_v40 = vmax.f32 %v5633_v35, 0.0  ;;  %v5982_v23 = vmax.f32 %v5826_v13, 0.0  ;;  %v8654_v42 = vld [vmem:[#allocation19 + $0x18] sm:$0xff]  }
 0x81b   : > { %v5635_v26 = vpop.f32.mrf.mxu1  ;;  %v5828_v59 = vpop.f32.mrf.mxu0  ;;  %v6107_v13 = vmul.f32 %v5979_v45, %v5979_v45  ;;  %v6109_v44 = vmul.f32 %v5981_v46, %v5981_v46 }
 0x81c   : > { %v5983_v56 = vmax.f32 %v5635_v26, 0.0  ;;  %v5985_v27 = vmax.f32 %v5828_v59, 0.0  ;;  %6515 = vmatprep.mubr.bf16.mxu1 %v6224_v29  ;;  %6676 = vmatprep.mubr.bf16.mxu0 %v6226_v41  ;;  %v6108_v20 = vmul.f32 %v5980_v40, %v5980_v40  ;;  %v6110_v49 = vmul.f32 %v5982_v23, %v5982_v23 }
 0x81d   : > { %v5637_v55 = vpop.f32.mrf.mxu1  ;;  %v5830_v33 = vpop.f32.mrf.mxu0  ;;  %6516 = vmatmul.mubr.bf16.gmra.mxu1 %v6223_v7  ;;  %6677 = vmatmul.mubr.bf16.gmra.mxu0 %v6225_v11 }
 0x81e   : > { %v5984_v50 = vmax.f32 %v5637_v55, 0.0  ;;  %v5986_v53 = vmax.f32 %v5830_v33, 0.0  ;;  %8283 = vmatpush3.bf16.msra.mxu1 %v8652_v63  ;;  %v6111_v58 = vmul.f32 %v5983_v56, %v5983_v56  ;;  %v6113_v60 = vmul.f32 %v5985_v27, %v5985_v27 }
 0x81f   : > { %v5641_v22 = vpop.f32.mrf.mxu1  ;;  %v5834_v1 = vpop.f32.mrf.mxu0  ;;  %8284 = vmatprep.subr.bf16.mxu1 %v8653_v51 }
 0x820   : > { %v6112_v32 = vmul.f32 %v5984_v50, %v5984_v50  ;;  %v6114_v35 = vmul.f32 %v5986_v53, %v5986_v53  ;;  %v6227_v11 = vpack.c.bf16 %v6111_v58, %v6107_v13  ;;  %v6229_v26 = vpack.c.bf16 %v6113_v60, %v6109_v44 }
 0x821   : > { %v5643_v38 = vpop.f32.mrf.mxu1  ;;  %v5836_v29 = vpop.f32.mrf.mxu0  ;;  %v5987_v40 = vmax.f32 %v5641_v22, 0.0  ;;  %v5989_v23 = vmax.f32 %v5834_v1, 0.0 }
 0x822   : > { %v6228_v41 = vpack.c.bf16 %v6112_v32, %v6108_v20  ;;  %v6230_v7 = vpack.c.bf16 %v6114_v35, %v6110_v49  ;;  %8285 = vmatpush3.bf16.msra.mxu1 %v8653_v51  ;;  %v5988_v56 = vmax.f32 %v5643_v38, 0.0  ;;  %v5990_v27 = vmax.f32 %v5836_v29, 0.0 }
 0x823   : > { %v5645_v63 = vpop.f32.mrf.mxu1  ;;  %v5838_v59 = vpop.f32.mrf.mxu0  ;;  %8286 = vmatprep.subr.bf16.mxu1 %v8654_v42  ;;  %v6115_v44 = vmul.f32 %v5987_v40, %v5987_v40  ;;  %v6117_v38 = vmul.f32 %v5989_v23, %v5989_v23 }
 0x824   : > { %v5991_v55 = vmax.f32 %v5645_v63, 0.0  ;;  %v5993_v33 = vmax.f32 %v5838_v59, 0.0  ;;  %6523 = vmatprep.mubr.bf16.mxu1 %v6228_v41  ;;  %6684 = vmatprep.mubr.bf16.mxu0 %v6230_v7  ;;  %v6116_v49 = vmul.f32 %v5988_v56, %v5988_v56  ;;  %v6118_v32 = vmul.f32 %v5990_v27, %v5990_v27  ;;  %v8655_v7 = vld [vmem:[#allocation19 + $0x10] sm:$0xff]  }
 0x825   : > { %v5647_v45 = vpop.f32.mrf.mxu1  ;;  %v5840_v46 = vpop.f32.mrf.mxu0  ;;  %6524 = vmatmul.mubr.bf16.gmra.mxu1 %v6227_v11  ;;  %6685 = vmatmul.mubr.bf16.gmra.mxu0 %v6229_v26 }
 0x826   : > { %v5992_v50 = vmax.f32 %v5647_v45, 0.0  ;;  %v5994_v53 = vmax.f32 %v5840_v46, 0.0  ;;  %8287 = vmatpush3.bf16.msra.mxu1 %v8654_v42  ;;  %v6119_v51 = vmul.f32 %v5991_v55, %v5991_v55  ;;  %v6121_v58 = vmul.f32 %v5993_v33, %v5993_v33 }
 0x827   : > { %v5651_v60 = vpop.f32.mrf.mxu1  ;;  %v5844_v20 = vpop.f32.mrf.mxu0  ;;  %8288 = vmatprep.subr.bf16.mxu1 %v8655_v7 }
 0x828   : > { %v6120_v35 = vmul.f32 %v5992_v50, %v5992_v50  ;;  %v6122_v13 = vmul.f32 %v5994_v53, %v5994_v53  ;;  %v6231_v11 = vpack.c.bf16 %v6119_v51, %v6115_v44  ;;  %v6233_v26 = vpack.c.bf16 %v6121_v58, %v6117_v38 }
 0x829   : > { %v5653_v29 = vpop.f32.mrf.mxu1  ;;  %v5846_v22 = vpop.f32.mrf.mxu0  ;;  %v5995_v56 = vmax.f32 %v5651_v60, 0.0  ;;  %v5997_v27 = vmax.f32 %v5844_v20, 0.0 }
 0x82a   : > { %v6232_v1 = vpack.c.bf16 %v6120_v35, %v6116_v49  ;;  %v6234_v41 = vpack.c.bf16 %v6122_v13, %v6118_v32  ;;  %v5996_v42 = vmax.f32 %v5653_v29, 0.0  ;;  %v5998_v55 = vmax.f32 %v5846_v22, 0.0  ;;  %8289 = vmatpush3.bf16.msra.mxu1 %v8655_v7 }
 0x82b   : > { %v5655_v63 = vpop.f32.mrf.mxu1  ;;  %v5848_v59 = vpop.f32.mrf.mxu0  ;;  %v6123_v38 = vmul.f32 %v5995_v56, %v5995_v56  ;;  %v6125_v29 = vmul.f32 %v5997_v27, %v5997_v27 }
 0x82c   : > { %v5999_v33 = vmax.f32 %v5655_v63, 0.0  ;;  %v6001_v45 = vmax.f32 %v5848_v59, 0.0  ;;  %6531 = vmatprep.mubr.bf16.mxu1 %v6232_v1  ;;  %6692 = vmatprep.mubr.bf16.mxu0 %v6234_v41  ;;  %v6124_v32 = vmul.f32 %v5996_v42, %v5996_v42  ;;  %v6126_v35 = vmul.f32 %v5998_v55, %v5998_v55 }
 0x82d   : > { %v5657_v46 = vpop.f32.mrf.mxu1  ;;  %v5850_v40 = vpop.f32.mrf.mxu0  ;;  %6532 = vmatmul.mubr.bf16.gmra.mxu1 %v6231_v11  ;;  %6693 = vmatmul.mubr.bf16.gmra.mxu0 %v6233_v26 }
 0x82e   : > { %v6000_v23 = vmax.f32 %v5657_v46, 0.0  ;;  %v6002_v50 = vmax.f32 %v5850_v40, 0.0  ;;  %v6127_v53 = vmul.f32 %v5999_v33, %v5999_v33  ;;  %v6129_v51 = vmul.f32 %v6001_v45, %v6001_v45 }
 0x82f   : > { %v5661_v58 = vpop.f32.mrf.mxu1  ;;  %v5854_v49 = vpop.f32.mrf.mxu0 }
 0x830   : > { %v6128_v13 = vmul.f32 %v6000_v23, %v6000_v23  ;;  %v6130_v44 = vmul.f32 %v6002_v50, %v6002_v50  ;;  %v6235_v41 = vpack.c.bf16 %v6127_v53, %v6123_v38  ;;  %v6237_v11 = vpack.c.bf16 %v6129_v51, %v6125_v29 }
 0x831   : > { %v5663_v60 = vpop.f32.mrf.mxu1  ;;  %v5856_v20 = vpop.f32.mrf.mxu0  ;;  %v6003_v7 = vmax.f32 %v5661_v58, 0.0  ;;  %v6005_v42 = vmax.f32 %v5854_v49, 0.0 }
 0x832   : > { %v6238_v22 = vpack.c.bf16 %v6130_v44, %v6126_v35  ;;  %v6236_v1 = vpack.c.bf16 %v6128_v13, %v6124_v32  ;;  %v6004_v59 = vmax.f32 %v5663_v60, 0.0  ;;  %v6006_v33 = vmax.f32 %v5856_v20, 0.0 }
 0x833   : > { %v5665_v26 = vpop.f32.mrf.mxu1  ;;  %v5858_v63 = vpop.f32.mrf.mxu0  ;;  %v6131_v38 = vmul.f32 %v6003_v7, %v6003_v7  ;;  %v6133_v29 = vmul.f32 %v6005_v42, %v6005_v42 }
 0x834   : > { %v6007_v45 = vmax.f32 %v5665_v26, 0.0  ;;  %v6009_v46 = vmax.f32 %v5858_v63, 0.0  ;;  %6539 = vmatprep.mubr.bf16.mxu1 %v6236_v1  ;;  %6700 = vmatprep.mubr.bf16.mxu0 %v6238_v22  ;;  %v6132_v32 = vmul.f32 %v6004_v59, %v6004_v59  ;;  %v6134_v35 = vmul.f32 %v6006_v33, %v6006_v33  ;;  %v8656_v22 = vld [vmem:[#allocation19 + $0x8] sm:$0xff]  }
 0x835   : > { %v5667_v55 = vpop.f32.mrf.mxu1  ;;  %v5860_v40 = vpop.f32.mrf.mxu0  ;;  %6540 = vmatmul.mubr.bf16.gmra.mxu1 %v6235_v41  ;;  %6701 = vmatmul.mubr.bf16.gmra.mxu0 %v6237_v11 }
 0x836   : > { %v6008_v56 = vmax.f32 %v5667_v55, 0.0  ;;  %v6010_v27 = vmax.f32 %v5860_v40, 0.0  ;;  %v6135_v23 = vmul.f32 %v6007_v45, %v6007_v45  ;;  %v6137_v50 = vmul.f32 %v6009_v46, %v6009_v46  ;;  %8290 = vmatprep.subr.bf16.mxu1 %v8656_v22 }
 0x837   : > { %v5671_v53 = vpop.f32.mrf.mxu1  ;;  %v5864_v51 = vpop.f32.mrf.mxu0  ;;  %8291 = vmatpush3.bf16.msra.mxu1 %v8656_v22 }
 0x838   : > { %v6136_v13 = vmul.f32 %v6008_v56, %v6008_v56  ;;  %v6138_v44 = vmul.f32 %v6010_v27, %v6010_v27  ;;  %v6239_v1 = vpack.c.bf16 %v6135_v23, %v6131_v38  ;;  %v6241_v41 = vpack.c.bf16 %v6137_v50, %v6133_v29 }
 0x839   : > { %v5673_v60 = vpop.f32.mrf.mxu1  ;;  %v5866_v20 = vpop.f32.mrf.mxu0  ;;  %v6011_v59 = vmax.f32 %v5671_v53, 0.0  ;;  %v6013_v33 = vmax.f32 %v5864_v51, 0.0 }
 0x83a   : > { %v6242_v58 = vpack.c.bf16 %v6138_v44, %v6134_v35  ;;  %v6240_v49 = vpack.c.bf16 %v6136_v13, %v6132_v32  ;;  %v6012_v63 = vmax.f32 %v5673_v60, 0.0  ;;  %v6014_v45 = vmax.f32 %v5866_v20, 0.0 }
 0x83b   : > { %v5675_v11 = vpop.f32.mrf.mxu1  ;;  %v5868_v26 = vpop.f32.mrf.mxu0  ;;  %v6139_v29 = vmul.f32 %v6011_v59, %v6011_v59  ;;  %v6141_v60 = vmul.f32 %v6013_v33, %v6013_v33 }
 0x83c   : > { %v6015_v46 = vmax.f32 %v5675_v11, 0.0  ;;  %v6017_v55 = vmax.f32 %v5868_v26, 0.0  ;;  %6547 = vmatprep.mubr.bf16.mxu1 %v6240_v49  ;;  %6708 = vmatprep.mubr.bf16.mxu0 %v6242_v58  ;;  %v6140_v35 = vmul.f32 %v6012_v63, %v6012_v63  ;;  %v6142_v13 = vmul.f32 %v6014_v45, %v6014_v45 }
 0x83d   : > { %v5677_v40 = vpop.f32.mrf.mxu1  ;;  %v5870_v7 = vpop.f32.mrf.mxu0  ;;  %6548 = vmatmul.mubr.bf16.gmra.mxu1 %v6239_v1  ;;  %6709 = vmatmul.mubr.bf16.gmra.mxu0 %v6241_v41 }
 0x83e   : > { %v6016_v42 = vmax.f32 %v5677_v40, 0.0  ;;  %v6018_v56 = vmax.f32 %v5870_v7, 0.0  ;;  %v6143_v27 = vmul.f32 %v6015_v46, %v6015_v46  ;;  %v6145_v23 = vmul.f32 %v6017_v55, %v6017_v55 }
 0x83f   : > { %v5681_v50 = vpop.f32.mrf.mxu1  ;;  %v5874_v32 = vpop.f32.mrf.mxu0 }
 0x840   : > { %v6144_v44 = vmul.f32 %v6016_v42, %v6016_v42  ;;  %v6146_v38 = vmul.f32 %v6018_v56, %v6018_v56  ;;  %v6243_v49 = vpack.c.bf16 %v6143_v27, %v6139_v29  ;;  %v6245_v1 = vpack.c.bf16 %v6145_v23, %v6141_v60 }
 0x841   : > { %v5683_v53 = vpop.f32.mrf.mxu1  ;;  %v5876_v51 = vpop.f32.mrf.mxu0  ;;  %v6019_v22 = vmax.f32 %v5681_v50, 0.0  ;;  %v6021_v63 = vmax.f32 %v5874_v32, 0.0 }
 0x842   : > { %v6246_v20 = vpack.c.bf16 %v6146_v38, %v6142_v13  ;;  %v6244_v58 = vpack.c.bf16 %v6144_v44, %v6140_v35  ;;  %v6020_v26 = vmax.f32 %v5683_v53, 0.0  ;;  %v6022_v46 = vmax.f32 %v5876_v51, 0.0 }
 0x843   : > { %v5685_v41 = vpop.f32.mrf.mxu1  ;;  %v5878_v11 = vpop.f32.mrf.mxu0  ;;  %v6147_v29 = vmul.f32 %v6019_v22, %v6019_v22  ;;  %v6149_v60 = vmul.f32 %v6021_v63, %v6021_v63 }
 0x844   : > { %v6023_v55 = vmax.f32 %v5685_v41, 0.0  ;;  %v6025_v40 = vmax.f32 %v5878_v11, 0.0  ;;  %6555 = vmatprep.mubr.bf16.mxu1 %v6244_v58  ;;  %6716 = vmatprep.mubr.bf16.mxu0 %v6246_v20  ;;  %v6148_v35 = vmul.f32 %v6020_v26, %v6020_v26  ;;  %v6150_v13 = vmul.f32 %v6022_v46, %v6022_v46  ;;  %v8657_v20 = vld [vmem:[#allocation19] sm:$0xff]  }
 0x845   : > { %v5687_v45 = vpop.f32.mrf.mxu1  ;;  %v5880_v7 = vpop.f32.mrf.mxu0  ;;  %6556 = vmatmul.mubr.bf16.gmra.mxu1 %v6243_v49  ;;  %6717 = vmatmul.mubr.bf16.gmra.mxu0 %v6245_v1 }
 0x846   : > { %v6024_v59 = vmax.f32 %v5687_v45, 0.0  ;;  %v6026_v33 = vmax.f32 %v5880_v7, 0.0  ;;  %v6151_v42 = vmul.f32 %v6023_v55, %v6023_v55  ;;  %v6153_v56 = vmul.f32 %v6025_v40, %v6025_v40  ;;  %8292 = vmatprep.subr.bf16.mxu1 %v8657_v20 }
 0x847   : > { %v5691_v27 = vpop.f32.mrf.mxu1  ;;  %v5884_v23 = vpop.f32.mrf.mxu0  ;;  %8293 = vmatpush3.bf16.msra.mxu1 %v8657_v20 }
 0x848   : > { %v6152_v44 = vmul.f32 %v6024_v59, %v6024_v59  ;;  %v6154_v38 = vmul.f32 %v6026_v33, %v6026_v33  ;;  %v6247_v58 = vpack.c.bf16 %v6151_v42, %v6147_v29  ;;  %v6249_v49 = vpack.c.bf16 %v6153_v56, %v6149_v60 }
 0x849   : > { %v5693_v53 = vpop.f32.mrf.mxu1  ;;  %v5886_v51 = vpop.f32.mrf.mxu0  ;;  %v6027_v26 = vmax.f32 %v5691_v27, 0.0  ;;  %v6029_v46 = vmax.f32 %v5884_v23, 0.0 }
 0x84a   : > { %v6250_v50 = vpack.c.bf16 %v6154_v38, %v6150_v13  ;;  %v6248_v32 = vpack.c.bf16 %v6152_v44, %v6148_v35  ;;  %v6028_v11 = vmax.f32 %v5693_v53, 0.0  ;;  %v6030_v55 = vmax.f32 %v5886_v51, 0.0 }
 0x84b   : > { %v5695_v1 = vpop.f32.mrf.mxu1  ;;  %v5888_v41 = vpop.f32.mrf.mxu0  ;;  %v6155_v60 = vmul.f32 %v6027_v26, %v6027_v26  ;;  %v6157_v53 = vmul.f32 %v6029_v46, %v6029_v46 }
 0x84c   : > { %v6031_v40 = vmax.f32 %v5695_v1, 0.0  ;;  %v6033_v45 = vmax.f32 %v5888_v41, 0.0  ;;  %6563 = vmatprep.mubr.bf16.mxu1 %v6248_v32  ;;  %6724 = vmatprep.mubr.bf16.mxu0 %v6250_v50  ;;  %v6156_v13 = vmul.f32 %v6028_v11, %v6028_v11  ;;  %v6158_v44 = vmul.f32 %v6030_v55, %v6030_v55 }
 0x84d   : > { %v5697_v7 = vpop.f32.mrf.mxu1  ;;  %v5890_v22 = vpop.f32.mrf.mxu0  ;;  %6564 = vmatmul.mubr.bf16.gmra.mxu1 %v6247_v58  ;;  %6725 = vmatmul.mubr.bf16.gmra.mxu0 %v6249_v49 }
 0x84e   : > { %v6032_v63 = vmax.f32 %v5697_v7, 0.0  ;;  %v6034_v59 = vmax.f32 %v5890_v22, 0.0  ;;  %v6159_v33 = vmul.f32 %v6031_v40, %v6031_v40  ;;  %v6161_v42 = vmul.f32 %v6033_v45, %v6033_v45 }
 0x84f   : > { %v5701_v56 = vpop.f32.mrf.mxu1  ;;  %v5894_v35 = vpop.f32.mrf.mxu0 }
 0x850   : > { %v6160_v38 = vmul.f32 %v6032_v63, %v6032_v63  ;;  %v6162_v29 = vmul.f32 %v6034_v59, %v6034_v59  ;;  %v6251_v32 = vpack.c.bf16 %v6159_v33, %v6155_v60  ;;  %v6253_v58 = vpack.c.bf16 %v6161_v42, %v6157_v53 }
 0x851   : > { %v5703_v27 = vpop.f32.mrf.mxu1  ;;  %v5896_v23 = vpop.f32.mrf.mxu0  ;;  %v6035_v20 = vmax.f32 %v5701_v56, 0.0  ;;  %v6037_v11 = vmax.f32 %v5894_v35, 0.0 }
 0x852   : > { %v6254_v51 = vpack.c.bf16 %v6162_v29, %v6158_v44  ;;  %v6252_v50 = vpack.c.bf16 %v6160_v38, %v6156_v13  ;;  %v6036_v41 = vmax.f32 %v5703_v27, 0.0  ;;  %v6038_v40 = vmax.f32 %v5896_v23, 0.0 }
 0x853   : > { %v5705_v49 = vpop.f32.mrf.mxu1  ;;  %v5898_v1 = vpop.f32.mrf.mxu0  ;;  %v6163_v38 = vmul.f32 %v6035_v20, %v6035_v20  ;;  %v6165_v29 = vmul.f32 %v6037_v11, %v6037_v11 }
 0x854   : > { %v6039_v45 = vmax.f32 %v5705_v49, 0.0  ;;  %v6041_v7 = vmax.f32 %v5898_v1, 0.0  ;;  %6571 = vmatprep.mubr.bf16.mxu1 %v6252_v50  ;;  %6732 = vmatprep.mubr.bf16.mxu0 %v6254_v51  ;;  %v6164_v33 = vmul.f32 %v6036_v41, %v6036_v41  ;;  %v6166_v42 = vmul.f32 %v6038_v40, %v6038_v40 }
 0x855   : > { %v5707_v55 = vpop.f32.mrf.mxu1  ;;  %v5900_v22 = vpop.f32.mrf.mxu0  ;;  %6572 = vmatmul.mubr.bf16.gmra.mxu1 %v6251_v32  ;;  %6733 = vmatmul.mubr.bf16.gmra.mxu0 %v6253_v58 }
 0x856   : > { %v6040_v26 = vmax.f32 %v5707_v55, 0.0  ;;  %v6042_v46 = vmax.f32 %v5900_v22, 0.0  ;;  %v6167_v63 = vmul.f32 %v6039_v45, %v6039_v45  ;;  %v6169_v59 = vmul.f32 %v6041_v7, %v6041_v7 }
 0x858   : > { %v6168_v13 = vmul.f32 %v6040_v26, %v6040_v26  ;;  %v6170_v44 = vmul.f32 %v6042_v46, %v6042_v46  ;;  %v6255_v27 = vpack.c.bf16 %v6167_v63, %v6163_v38  ;;  %v6257_v23 = vpack.c.bf16 %v6169_v59, %v6165_v29 }
 0x85a   : > { %v6258_v60 = vpack.c.bf16 %v6170_v44, %v6166_v42  ;;  %v6256_v53 = vpack.c.bf16 %v6168_v13, %v6164_v33 }
 0x85c   : > { %6579 = vmatprep.mubr.bf16.mxu1 %v6256_v53  ;;  %6740 = vmatprep.mubr.bf16.mxu0 %v6258_v60 }
 0x85d   : > { %6580 = vmatmul.mubr.bf16.gmra.mxu1 %v6255_v27  ;;  %6741 = vmatmul.mubr.bf16.gmra.mxu0 %v6257_v23 }
 0x898   : > { %v5711_v56 = vpop.f32.mrf.mxu1  ;;  %v5904_v35 = vpop.f32.mrf.mxu0 }
 0x899   : > { %v6043_v45 = vmax.f32 %v5711_v56, 0.0  ;;  %v6045_v7 = vmax.f32 %v5904_v35, 0.0 }
 0x89a   : > { %v5713_v51 = vpop.f32.mrf.mxu1  ;;  %v5906_v50 = vpop.f32.mrf.mxu0 }
 0x89b   : > { %v6044_v49 = vmax.f32 %v5713_v51, 0.0  ;;  %v6046_v1 = vmax.f32 %v5906_v50, 0.0  ;;  %v6171_v38 = vmul.f32 %v6043_v45, %v6043_v45  ;;  %v6173_v29 = vmul.f32 %v6045_v7, %v6045_v7 }
 0x89c   : > { %v5715_v32 = vpop.f32.mrf.mxu1  ;;  %v5908_v58 = vpop.f32.mrf.mxu0 }
 0x89d   : > { %v6047_v41 = vmax.f32 %v5715_v32, 0.0  ;;  %v6049_v40 = vmax.f32 %v5908_v58, 0.0  ;;  %v6172_v33 = vmul.f32 %v6044_v49, %v6044_v49  ;;  %v6174_v42 = vmul.f32 %v6046_v1, %v6046_v1 }
 0x89e   : > { %v5717_v20 = vpop.f32.mrf.mxu1  ;;  %v5910_v11 = vpop.f32.mrf.mxu0 }
 0x89f   : > { %v6048_v55 = vmax.f32 %v5717_v20, 0.0  ;;  %v6050_v22 = vmax.f32 %v5910_v11, 0.0  ;;  %v6175_v26 = vmul.f32 %v6047_v41, %v6047_v41  ;;  %v6177_v46 = vmul.f32 %v6049_v40, %v6049_v40 }
 0x8a0   : > { %v5721_v63 = vpop.f32.mrf.mxu1  ;;  %v5914_v59 = vpop.f32.mrf.mxu0 }
 0x8a1   : > { %v6176_v13 = vmul.f32 %v6048_v55, %v6048_v55  ;;  %v6178_v44 = vmul.f32 %v6050_v22, %v6050_v22  ;;  %v6259_v56 = vpack.c.bf16 %v6175_v26, %v6171_v38  ;;  %v6261_v35 = vpack.c.bf16 %v6177_v46, %v6173_v29 }
 0x8a2   : > { %v5723_v60 = vpop.f32.mrf.mxu1  ;;  %v5916_v53 = vpop.f32.mrf.mxu0  ;;  %v6051_v49 = vmax.f32 %v5721_v63, 0.0  ;;  %v6053_v1 = vmax.f32 %v5914_v59, 0.0 }
 0x8a3   : > { %v6262_v27 = vpack.c.bf16 %v6178_v44, %v6174_v42  ;;  %v6260_v23 = vpack.c.bf16 %v6176_v13, %v6172_v33  ;;  %v6052_v32 = vmax.f32 %v5723_v60, 0.0  ;;  %v6054_v58 = vmax.f32 %v5916_v53, 0.0 }
 0x8a4   : > { %v5725_v51 = vpop.f32.mrf.mxu1  ;;  %v5918_v50 = vpop.f32.mrf.mxu0  ;;  %v6179_v38 = vmul.f32 %v6051_v49, %v6051_v49  ;;  %v6181_v29 = vmul.f32 %v6053_v1, %v6053_v1 }
 0x8a5   : > { %v6055_v41 = vmax.f32 %v5725_v51, 0.0  ;;  %v6057_v40 = vmax.f32 %v5918_v50, 0.0  ;;  %6587 = vmatprep.mubr.bf16.mxu1 %v6260_v23  ;;  %6748 = vmatprep.mubr.bf16.mxu0 %v6262_v27  ;;  %v6180_v33 = vmul.f32 %v6052_v32, %v6052_v32  ;;  %v6182_v42 = vmul.f32 %v6054_v58, %v6054_v58 }
 0x8a6   : > { %v5727_v20 = vpop.f32.mrf.mxu1  ;;  %v5920_v11 = vpop.f32.mrf.mxu0  ;;  %6588 = vmatmul.mubr.bf16.gmra.mxu1 %v6259_v56  ;;  %6749 = vmatmul.mubr.bf16.gmra.mxu0 %v6261_v35 }
 0x8a7   : > { %v6056_v45 = vmax.f32 %v5727_v20, 0.0  ;;  %v6058_v7 = vmax.f32 %v5920_v11, 0.0  ;;  %v6183_v55 = vmul.f32 %v6055_v41, %v6055_v41  ;;  %v6185_v22 = vmul.f32 %v6057_v40, %v6057_v40 }
 0x8a8   : > { %v5731_v26 = vpop.f32.mrf.mxu1  ;;  %v5924_v46 = vpop.f32.mrf.mxu0 }
 0x8a9   : > { %v6184_v13 = vmul.f32 %v6056_v45, %v6056_v45  ;;  %v6186_v44 = vmul.f32 %v6058_v7, %v6058_v7  ;;  %v6263_v27 = vpack.c.bf16 %v6183_v55, %v6179_v38  ;;  %v6265_v23 = vpack.c.bf16 %v6185_v22, %v6181_v29 }
 0x8aa   : > { %v5733_v60 = vpop.f32.mrf.mxu1  ;;  %v5926_v53 = vpop.f32.mrf.mxu0  ;;  %v6059_v32 = vmax.f32 %v5731_v26, 0.0  ;;  %v6061_v58 = vmax.f32 %v5924_v46, 0.0 }
 0x8ab   : > { %v6266_v63 = vpack.c.bf16 %v6186_v44, %v6182_v42  ;;  %v6264_v59 = vpack.c.bf16 %v6184_v13, %v6180_v33  ;;  %v6060_v51 = vmax.f32 %v5733_v60, 0.0  ;;  %v6062_v50 = vmax.f32 %v5926_v53, 0.0 }
 0x8ac   : > { %v5735_v56 = vpop.f32.mrf.mxu1  ;;  %v5928_v35 = vpop.f32.mrf.mxu0  ;;  %v6187_v38 = vmul.f32 %v6059_v32, %v6059_v32  ;;  %v6189_v29 = vmul.f32 %v6061_v58, %v6061_v58 }
 0x8ad   : > { %v6063_v41 = vmax.f32 %v5735_v56, 0.0  ;;  %v6065_v40 = vmax.f32 %v5928_v35, 0.0  ;;  %6595 = vmatprep.mubr.bf16.mxu1 %v6264_v59  ;;  %6756 = vmatprep.mubr.bf16.mxu0 %v6266_v63  ;;  %v6188_v33 = vmul.f32 %v6060_v51, %v6060_v51  ;;  %v6190_v42 = vmul.f32 %v6062_v50, %v6062_v50 }
 0x8ae   : > { %v5737_v20 = vpop.f32.mrf.mxu1  ;;  %v5930_v11 = vpop.f32.mrf.mxu0  ;;  %6596 = vmatmul.mubr.bf16.gmra.mxu1 %v6263_v27  ;;  %6757 = vmatmul.mubr.bf16.gmra.mxu0 %v6265_v23 }
 0x8af   : > { %v6064_v49 = vmax.f32 %v5737_v20, 0.0  ;;  %v6066_v1 = vmax.f32 %v5930_v11, 0.0  ;;  %v6191_v45 = vmul.f32 %v6063_v41, %v6063_v41  ;;  %v6193_v7 = vmul.f32 %v6065_v40, %v6065_v40 }
 0x8b0   : > { %v5741_v55 = vpop.f32.mrf.mxu1  ;;  %v5934_v22 = vpop.f32.mrf.mxu0 }
 0x8b1   : > { %v6192_v13 = vmul.f32 %v6064_v49, %v6064_v49  ;;  %v6194_v44 = vmul.f32 %v6066_v1, %v6066_v1  ;;  %v6267_v63 = vpack.c.bf16 %v6191_v45, %v6187_v38  ;;  %v6269_v59 = vpack.c.bf16 %v6193_v7, %v6189_v29 }
 0x8b2   : > { %v5743_v60 = vpop.f32.mrf.mxu1  ;;  %v5936_v53 = vpop.f32.mrf.mxu0  ;;  %v6067_v51 = vmax.f32 %v5741_v55, 0.0  ;;  %v6069_v50 = vmax.f32 %v5934_v22, 0.0 }
 0x8b3   : > { %v6268_v26 = vpack.c.bf16 %v6192_v13, %v6188_v33  ;;  %v6270_v46 = vpack.c.bf16 %v6194_v44, %v6190_v42  ;;  %v6068_v56 = vmax.f32 %v5743_v60, 0.0  ;;  %v6070_v35 = vmax.f32 %v5936_v53, 0.0 }
 0x8b4   : > { %v5745_v27 = vpop.f32.mrf.mxu1  ;;  %v5938_v23 = vpop.f32.mrf.mxu0  ;;  %v6195_v38 = vmul.f32 %v6067_v51, %v6067_v51  ;;  %v6197_v29 = vmul.f32 %v6069_v50, %v6069_v50 }
 0x8b5   : > { %v6071_v41 = vmax.f32 %v5745_v27, 0.0  ;;  %v6073_v40 = vmax.f32 %v5938_v23, 0.0  ;;  %6603 = vmatprep.mubr.bf16.mxu1 %v6268_v26  ;;  %6764 = vmatprep.mubr.bf16.mxu0 %v6270_v46  ;;  %v6196_v33 = vmul.f32 %v6068_v56, %v6068_v56  ;;  %v6198_v42 = vmul.f32 %v6070_v35, %v6070_v35 }
 0x8b6   : > { %v5747_v20 = vpop.f32.mrf.mxu1  ;;  %v5940_v11 = vpop.f32.mrf.mxu0  ;;  %6604 = vmatmul.mubr.bf16.gmra.mxu1 %v6267_v63  ;;  %6765 = vmatmul.mubr.bf16.gmra.mxu0 %v6269_v59 }
 0x8b7   : > { %v6072_v32 = vmax.f32 %v5747_v20, 0.0  ;;  %v6074_v58 = vmax.f32 %v5940_v11, 0.0  ;;  %v6199_v49 = vmul.f32 %v6071_v41, %v6071_v41  ;;  %v6201_v1 = vmul.f32 %v6073_v40, %v6073_v40 }
 0x8b8   : > { %v5751_v45 = vpop.f32.mrf.mxu1  ;;  %v5944_v7 = vpop.f32.mrf.mxu0 }
 0x8b9   : > { %v6200_v13 = vmul.f32 %v6072_v32, %v6072_v32  ;;  %v6202_v44 = vmul.f32 %v6074_v58, %v6074_v58  ;;  %v6271_v26 = vpack.c.bf16 %v6199_v49, %v6195_v38  ;;  %v6273_v46 = vpack.c.bf16 %v6201_v1, %v6197_v29 }
 0x8ba   : > { %v5753_v60 = vpop.f32.mrf.mxu1  ;;  %v5946_v53 = vpop.f32.mrf.mxu0  ;;  %v6075_v56 = vmax.f32 %v5751_v45, 0.0  ;;  %v6077_v35 = vmax.f32 %v5944_v7, 0.0 }
 0x8bb   : > { %v6272_v55 = vpack.c.bf16 %v6200_v13, %v6196_v33  ;;  %v6274_v22 = vpack.c.bf16 %v6202_v44, %v6198_v42  ;;  %v6076_v27 = vmax.f32 %v5753_v60, 0.0  ;;  %v6078_v23 = vmax.f32 %v5946_v53, 0.0 }
 0x8bc   : > { %v5755_v63 = vpop.f32.mrf.mxu1  ;;  %v5948_v59 = vpop.f32.mrf.mxu0  ;;  %v6203_v38 = vmul.f32 %v6075_v56, %v6075_v56  ;;  %v6205_v29 = vmul.f32 %v6077_v35, %v6077_v35 }
 0x8bd   : > { %v6079_v41 = vmax.f32 %v5755_v63, 0.0  ;;  %v6081_v40 = vmax.f32 %v5948_v59, 0.0  ;;  %6611 = vmatprep.mubr.bf16.mxu1 %v6272_v55  ;;  %6772 = vmatprep.mubr.bf16.mxu0 %v6274_v22  ;;  %v6204_v33 = vmul.f32 %v6076_v27, %v6076_v27  ;;  %v6206_v42 = vmul.f32 %v6078_v23, %v6078_v23 }
 0x8be   : > { %v5757_v20 = vpop.f32.mrf.mxu1  ;;  %v5950_v11 = vpop.f32.mrf.mxu0  ;;  %6612 = vmatmul.mubr.bf16.gmra.mxu1 %v6271_v26  ;;  %6773 = vmatmul.mubr.bf16.gmra.mxu0 %v6273_v46 }
 0x8bf   : > { %v6080_v51 = vmax.f32 %v5757_v20, 0.0  ;;  %v6082_v50 = vmax.f32 %v5950_v11, 0.0  ;;  %v6207_v32 = vmul.f32 %v6079_v41, %v6079_v41  ;;  %v6209_v58 = vmul.f32 %v6081_v40, %v6081_v40 }
 0x8c1   : > { %v5761_v49 = vpop.f32.mrf.mxu1  ;;  %v5954_v1 = vpop.f32.mrf.mxu0  ;;  %v6208_v13 = vmul.f32 %v6080_v51, %v6080_v51  ;;  %v6210_v44 = vmul.f32 %v6082_v50, %v6082_v50  ;;  %v6275_v55 = vpack.c.bf16 %v6207_v32, %v6203_v38  ;;  %v6277_v22 = vpack.c.bf16 %v6209_v58, %v6205_v29 }
 0x8c2   : > { %v6083_v27 = vmax.f32 %v5761_v49, 0.0  ;;  %v6085_v23 = vmax.f32 %v5954_v1, 0.0  ;;  %v13132_v49 = vld [vmem:[#allocation44_spill] sm:$0xff] }
 0x8c3   : > { %v5763_v60 = vpop.f32.mrf.mxu1  ;;  %v5956_v53 = vpop.f32.mrf.mxu0  ;;  %v6276_v45 = vpack.c.bf16 %v6208_v13, %v6204_v33  ;;  %v6278_v7 = vpack.c.bf16 %v6210_v44, %v6206_v42  ;;  %v13133_v1 = vpack.c.bf16 %v11737_v52, %v13132_v49 }
 0x8c4   : > { %v6084_v63 = vmax.f32 %v5763_v60, 0.0  ;;  %v6086_v59 = vmax.f32 %v5956_v53, 0.0  ;;  %v6211_v13 = vmul.f32 %v6083_v27, %v6083_v27  ;;  %v6213_v44 = vmul.f32 %v6085_v23, %v6085_v23 }
 0x8c5   : > { %v5765_v26 = vpop.f32.mrf.mxu1  ;;  %v5958_v46 = vpop.f32.mrf.mxu0  ;;  %6619 = vmatprep.mubr.bf16.mxu1 %v6276_v45  ;;  %6780 = vmatprep.mubr.bf16.mxu0 %v6278_v7 }
 0x8c6   : > { %v6087_v41 = vmax.f32 %v5765_v26, 0.0  ;;  %v6089_v40 = vmax.f32 %v5958_v46, 0.0  ;;  %6620 = vmatmul.mubr.bf16.gmra.mxu1 %v6275_v55  ;;  %6781 = vmatmul.mubr.bf16.gmra.mxu0 %v6277_v22  ;;  %v6212_v32 = vmul.f32 %v6084_v63, %v6084_v63  ;;  %v6214_v58 = vmul.f32 %v6086_v59, %v6086_v59 }
 0x8c7   : > { %v5767_v20 = vpop.f32.mrf.mxu1  ;;  %v5960_v11 = vpop.f32.mrf.mxu0  ;;  %v13134_v26 = vpack.c.bf16 %v11863_v6, %v11859_v12  ;;  %v13135_v59 = vpack.c.bf16 %v11898_v21, %v11895_v30  ;;  %v13136_v6 = vpack.c.bf16 %v12008_v48, %v11998_v14 }
 0x8c8   : > { %v6088_v56 = vmax.f32 %v5767_v20, 0.0  ;;  %v6090_v35 = vmax.f32 %v5960_v11, 0.0  ;;  %v6215_v51 = vmul.f32 %v6087_v41, %v6087_v41  ;;  %v6217_v50 = vmul.f32 %v6089_v40, %v6089_v40 }
 0x8ca   : > { %v6216_v33 = vmul.f32 %v6088_v56, %v6088_v56  ;;  %v6218_v42 = vmul.f32 %v6090_v35, %v6090_v35  ;;  %v6279_v60 = vpack.c.bf16 %v6215_v51, %v6211_v13  ;;  %v6281_v53 = vpack.c.bf16 %v6217_v50, %v6213_v44 }
 0x8cc   : > { %v6280_v38 = vpack.c.bf16 %v6216_v33, %v6212_v32  ;;  %v6282_v29 = vpack.c.bf16 %v6218_v42, %v6214_v58  ;;  %v13137_v33 = vpack.c.bf16 %v12023_v9, %v12018_v62 }
 0x8ce   : > { %6627 = vmatprep.mubr.bf16.mxu1 %v6280_v38  ;;  %6788 = vmatprep.mubr.bf16.mxu0 %v6282_v29  ;;  %v13139_v29 = vpack.c.bf16 %v12124_v8, %v12122_v19  ;;  %v13142_v19 = vpack.c.bf16 %v12256_v37, %v12254_v17  ;;  %v13144_v17 = vpack.c.bf16 %v12304_v61, %v12302_v5 }
 0x8cf   : > { %6628 = vmatmul.mubr.bf16.gmra.mxu1 %v6279_v60  ;;  %6789 = vmatmul.mubr.bf16.gmra.mxu0 %v6281_v53  ;;  %v13141_v53 = vpack.c.bf16 %v12225_v54, %v12223_v3  ;;  %v13143_v3 = vpack.c.bf16 %v12281_v15, %v12279_v31  ;;  %v13145_v31 = vpack.c.bf16 %v12329_v57, %v12327_v18 }
 0x8d0   : > { %8294 = vmatprep.mubr.bf16.mxu1 %v13133_v1 }
 0x8d4   : > { %v7998_v45 = vpop.f32.mrf.mxu1  ;;  %v8110_v7 = vpop.f32.mrf.mxu0 }
 0x8d6   : > { %v7999_v55 = vpop.f32.mrf.mxu1  ;;  %v8111_v22 = vpop.f32.mrf.mxu0 }
 0x8d7   : > { %8295 = vmatmul.mubr.bf16.vlgmr.msra.gmra.mxu1 %v13134_v26  ;;  %v8000_v46 = vadd.f32 %v7999_v55, %v7998_v45  ;;  %v8112_v63 = vadd.f32 %v8111_v22, %v8110_v7 }
 0x8d8   : > { %8298 = vmatprep.mubr.bf16.mxu1 %v13135_v59  ;;  %v8001_v41 = vpop.f32.mrf.mxu1  ;;  %v8113_v40 = vpop.f32.mrf.mxu0 }
 0x8d9   : > { %v12343_v27 = vadd.f32 %v8112_v63, %v8000_v46 }
 0x8da   : > { %v8002_v52 = vpop.f32.mrf.mxu1  ;;  %v8114_v23 = vpop.f32.mrf.mxu0 }
 0x8db   : > { %v8003_v20 = vadd.f32 %v8002_v52, %v8001_v41  ;;  %v8115_v11 = vadd.f32 %v8114_v23, %v8113_v40 }
 0x8dd   : > { %v8004_v56 = vpop.f32.mrf.mxu1  ;;  %v12345_v35 = vadd.f32 %v8115_v11, %v8003_v20  ;;  %v12395_v1 = vpop.f32.mrf.mxu0 }
 0x8df   : > { %v8005_v51 = vpop.f32.mrf.mxu1  ;;  %8299 = vmatmul.mubr.bf16.gmra.mxu1 %v5404_v36  ;;  %v12399_v7 = vpop.f32.mrf.mxu0 }
 0x8e0   : > { %v12350_v12 = vadd.f32 %v8005_v51, %v8004_v56  ;;  %8302 = vmatprep.mubr.bf16.mxu1 %v13136_v6 }
 0x8e1   : > { %v8007_v30 = vpop.f32.mrf.mxu1  ;;  %v12409_v22 = vpop.f32.mrf.mxu0 }
 0x8e3   : > { %v8008_v21 = vpop.f32.mrf.mxu1  ;;  %v12413_v59 = vpop.f32.mrf.mxu0 }
 0x8e4   : > { %v12355_v50 = vadd.f32 %v8008_v21, %v8007_v30 }
 0x8e5   : > { %v8010_v32 = vpop.f32.mrf.mxu1  ;;  %v12420_v52 = vpop.f32.mrf.mxu0 }
 0x8e7   : > { %v8011_v58 = vpop.f32.mrf.mxu1  ;;  %8303 = vmatmul.mubr.bf16.gmra.mxu1 %v13137_v33  ;;  %v12424_v20 = vpop.f32.mrf.mxu0 }
 0x8e8   : > { %v12360_v42 = vadd.f32 %v8011_v58, %v8010_v32  ;;  %8306 = vmatprep.mubr.bf16.mxu1 %v13138_v10 }
 0x8e9   : > { %v8013_v4 = vpop.f32.mrf.mxu1  ;;  %v12428_v6 = vpop.f32.mrf.mxu0 }
 0x8eb   : > { %v8014_v36 = vpop.f32.mrf.mxu1  ;;  %v12432_v21 = vpop.f32.mrf.mxu0 }
 0x8ec   : > { %v12365_v14 = vadd.f32 %v8014_v36, %v8013_v4 }
 0x8ed   : > { %v8016_v48 = vpop.f32.mrf.mxu1  ;;  %v12436_v33 = vpop.f32.mrf.mxu0 }
 0x8ef   : > { %v8017_v13 = vpop.f32.mrf.mxu1  ;;  %8307 = vmatmul.mubr.bf16.gmra.mxu1 %v5408_v16  ;;  %v12438_v10 = vpop.f32.mrf.mxu0 }
 0x8f0   : > { %v12370_v44 = vadd.f32 %v8017_v13, %v8016_v48  ;;  %8310 = vmatprep.mubr.bf16.mxu1 %v5409_v47 }
 0x8f1   : > { %v8019_v62 = vpop.f32.mrf.mxu1  ;;  %v12440_v4 = vpop.f32.mrf.mxu0 }
 0x8f3   : > { %v8020_v9 = vpop.f32.mrf.mxu1  ;;  %v12442_v36 = vpop.f32.mrf.mxu0 }
 0x8f4   : > { %v12375_v25 = vadd.f32 %v8020_v9, %v8019_v62 }
 0x8f5   : > { %v8022_v24 = vpop.f32.mrf.mxu1  ;;  %v12444_v48 = vpop.f32.mrf.mxu0 }
 0x8f7   : > { %v8023_v38 = vpop.f32.mrf.mxu1  ;;  %8311 = vmatmul.mubr.bf16.gmra.mxu1 %v13139_v29  ;;  %v12446_v13 = vpop.f32.mrf.mxu0 }
 0x8f8   : > { %v12380_v60 = vadd.f32 %v8023_v38, %v8022_v24  ;;  %8314 = vmatprep.mubr.bf16.mxu1 %v13140_v2 }
 0x8f9   : > { %v8025_v0 = vpop.f32.mrf.mxu1  ;;  %v12448_v62 = vpop.f32.mrf.mxu0 }
 0x8fb   : > { %v8026_v16 = vpop.f32.mrf.mxu1  ;;  %v12450_v9 = vpop.f32.mrf.mxu0 }
 0x8fc   : > { %v12385_v34 = vadd.f32 %v8026_v16, %v8025_v0 }
 0x8fd   : > { %v8028_v28 = vpop.f32.mrf.mxu1  ;;  %v12452_v24 = vpop.f32.mrf.mxu0 }
 0x8ff   : > { %v8029_v47 = vpop.f32.mrf.mxu1  ;;  %8315 = vmatmul.mubr.bf16.gmra.mxu1 %v13141_v53  ;;  %v12454_v38 = vpop.f32.mrf.mxu0 }
 0x900   : > { %v12390_v49 = vadd.f32 %v8029_v47, %v8028_v28  ;;  %8318 = vmatprep.mubr.bf16.mxu1 %v13142_v19 }
 0x901   : > { %v8031_v8 = vpop.f32.mrf.mxu1  ;;  %v12456_v29 = vpop.f32.mrf.mxu0 }
 0x903   : > { %v8032_v43 = vpop.f32.mrf.mxu1  ;;  %v12458_v2 = vpop.f32.mrf.mxu0 }
 0x904   : > { %v12397_v39 = vadd.f32 %v8032_v43, %v8031_v8 }
 0x905   : > { %v8034_v45 = vpop.f32.mrf.mxu1  ;;  %v12460_v0 = vpop.f32.mrf.mxu0 }
 0x907   : > { %v8035_v55 = vpop.f32.mrf.mxu1  ;;  %8319 = vmatmul.mubr.bf16.gmra.mxu1 %v13143_v3  ;;  %v12462_v16 = vpop.f32.mrf.mxu0 }
 0x908   : > { %v12404_v54 = vadd.f32 %v8035_v55, %v8034_v45  ;;  %8322 = vmatprep.mubr.bf16.mxu1 %v13144_v17 }
 0x909   : > { %v8037_v37 = vpop.f32.mrf.mxu1  ;;  %v12464_v28 = vpop.f32.mrf.mxu0 }
 0x90b   : > { %v8038_v26 = vpop.f32.mrf.mxu1  ;;  %v12466_v47 = vpop.f32.mrf.mxu0 }
 0x90c   : > { %v12411_v46 = vadd.f32 %v8038_v26, %v8037_v37 }
 0x90d   : > { %v8040_v63 = vpop.f32.mrf.mxu1  ;;  %v12470_v19 = vpop.f32.mrf.mxu0 }
 0x90f   : > { %v8041_v41 = vpop.f32.mrf.mxu1  ;;  %8323 = vmatmul.mubr.bf16.gmra.mxu1 %v13145_v31  ;;  %v12474_v43 = vpop.f32.mrf.mxu0 }
 0x910   : > { %v12418_v15 = vadd.f32 %v8041_v41, %v8040_v63 }
 0x911   : > { %v8043_v40 = vpop.f32.mrf.mxu1  ;;  %v12476_v3 = vpop.f32.mrf.mxu0 }
 0x913   : > { %v8044_v5 = vpop.f32.mrf.mxu1  ;;  %v12480_v63 = vpop.f32.mrf.mxu0 }
 0x914   : > { %v12422_v61 = vadd.f32 %v8044_v5, %v8043_v40 }
 0x915   : > { %v8046_v23 = vpop.f32.mrf.mxu1  ;;  %v12484_v5 = vpop.f32.mrf.mxu0 }
 0x917   : > { %v8047_v11 = vpop.f32.mrf.mxu1 }
 0x918   : > { %v12426_v56 = vadd.f32 %v8047_v11, %v8046_v23 }
 0x919   : > { %v8049_v51 = vpop.f32.mrf.mxu1 }
 0x91a   : > { %13146 = vst [vmem:[#allocation46_spill] sm:$0xff] %v12426_v56 }
 0x91b   : > { %v8050_v30 = vpop.f32.mrf.mxu1 }
 0x91c   : > { %v12430_v18 = vadd.f32 %v8050_v30, %v8049_v51  ;;  %v12488_v30 = vpop.f32.mrf.mxu0 }
 0x91d   : > { %v8052_v57 = vpop.f32.mrf.mxu1  ;;  %13154 = vst [vmem:[#allocation58_spill] sm:$0xff] %v12488_v30 }
 0x91e   : > { %13147 = vst [vmem:[#allocation65_spill] sm:$0xff] %v12430_v18 }
 0x91f   : > { %v8053_v32 = vpop.f32.mrf.mxu1 }
 0x920   : > { %v12434_v58 = vadd.f32 %v8053_v32, %v8052_v57 }
 0x921   : > { %v12468_v53 = vpop.f32.mrf.mxu1 }
 0x922   : > { %13148 = vst [vmem:[#allocation50_spill] sm:$0xff] %v12434_v58  ;;  %13149 = vst [vmem:[#allocation52_spill] sm:$0xff] %v12468_v53 }
 0x923   : > { %v12472_v8 = vpop.f32.mrf.mxu1 }
 0x924   : > { %13150 = vst [vmem:[#allocation73_spill] sm:$0xff] %v12472_v8 }
 0x966   : > { %v8058_v45 = vpop.f32.mrf.mxu1 }
 0x968   : > { %v8059_v55 = vpop.f32.mrf.mxu1 }
 0x969   : > { %v12478_v17 = vadd.f32 %v8059_v55, %v8058_v45  ;;  %v12492_v55 = vpop.f32.mrf.mxu0 }
 0x96a   : > { %v8061_v37 = vpop.f32.mrf.mxu1  ;;  %13156 = vst [vmem:[#allocation51_spill] sm:$0xff] %v12492_v55 }
 0x96b   : > { %13151 = vst [vmem:[#allocation54_spill] sm:$0xff] %v12478_v17 }
 0x96c   : > { %v8062_v26 = vpop.f32.mrf.mxu1 }
 0x96d   : > { %v12482_v41 = vadd.f32 %v8062_v26, %v8061_v37 }
 0x96e   : > { %v8064_v31 = vpop.f32.mrf.mxu1 }
 0x96f   : > { %13152 = vst [vmem:[#allocation56_spill] sm:$0xff] %v12482_v41  ;;  %v12496_v41 = vpop.f32.mrf.mxu0 }
 0x970   : > { %v8065_v40 = vpop.f32.mrf.mxu1  ;;  %13158 = vst [vmem:[#allocation55_spill] sm:$0xff] %v12496_v41 }
 0x971   : > { %v12486_v23 = vadd.f32 %v8065_v40, %v8064_v31 }
 0x972   : > { %v8067_v11 = vpop.f32.mrf.mxu1 }
 0x973   : > { %13153 = vst [vmem:[#allocation76_spill] sm:$0xff] %v12486_v23  ;;  %v12500_v23 = vpop.f32.mrf.mxu0 }
 0x974   : > { %v8068_v51 = vpop.f32.mrf.mxu1 }
 0x975   : > { %v12490_v57 = vadd.f32 %v8068_v51, %v8067_v11 }
 0x976   : > { %v8070_v32 = vpop.f32.mrf.mxu1 }
 0x977   : > { %13155 = vst [vmem:[#allocation49_spill] sm:$0xff] %v12490_v57  ;;  %v12504_v57 = vpop.f32.mrf.mxu0 }
 0x978   : > { %v8071_v45 = vpop.f32.mrf.mxu1 }
 0x979   : > { %v12494_v17 = vadd.f32 %v8071_v45, %v8070_v32 }
 0x97a   : > { %v8073_v37 = vpop.f32.mrf.mxu1 }
 0x97b   : > { %13157 = vst [vmem:[#allocation53_spill] sm:$0xff] %v12494_v17  ;;  %v12508_v17 = vpop.f32.mrf.mxu0 }
 0x97c   : > { %v8074_v26 = vpop.f32.mrf.mxu1  ;;  %13162 = vst [vmem:[#allocation62_spill] sm:$0xff] %v12508_v17 }
 0x97d   : > { %v12498_v18 = vadd.f32 %v8074_v26, %v8073_v37 }
 0x97e   : > { %v8076_v31 = vpop.f32.mrf.mxu1 }
 0x97f   : > { %13159 = vst [vmem:[#allocation57_spill] sm:$0xff] %v12498_v18  ;;  %v12512_v18 = vpop.f32.mrf.mxu0 }
 0x980   : > { %v8077_v40 = vpop.f32.mrf.mxu1  ;;  %13164 = vst [vmem:[#allocation44_spill] sm:$0xff] %v12512_v18 }
 0x981   : > { %v12502_v56 = vadd.f32 %v8077_v40, %v8076_v31  ;;  %v12516_v40 = vpop.f32.mrf.mxu0 }
 0x982   : > { %v8079_v11 = vpop.f32.mrf.mxu1  ;;  %13166 = vst [vmem:[#allocation80_spill] sm:$0xff] %v12516_v40 }
 0x983   : > { %13160 = vst [vmem:[#allocation59_spill] sm:$0xff] %v12502_v56 }
 0x984   : > { %v8080_v51 = vpop.f32.mrf.mxu1 }
 0x985   : > { %v12506_v8 = vadd.f32 %v8080_v51, %v8079_v11  ;;  %v12520_v51 = vpop.f32.mrf.mxu0 }
 0x986   : > { %v8082_v32 = vpop.f32.mrf.mxu1  ;;  %13168 = vst [vmem:[#allocation82_spill] sm:$0xff] %v12520_v51 }
 0x987   : > { %13161 = vst [vmem:[#allocation60_spill] sm:$0xff] %v12506_v8 }
 0x988   : > { %v8083_v45 = vpop.f32.mrf.mxu1 }
 0x989   : > { %v12510_v55 = vadd.f32 %v8083_v45, %v8082_v32  ;;  %v12524_v45 = vpop.f32.mrf.mxu0 }
 0x98a   : > { %v8085_v37 = vpop.f32.mrf.mxu1  ;;  %13170 = vst [vmem:[#allocation84_spill] sm:$0xff] %v12524_v45 }
 0x98b   : > { %13163 = vst [vmem:[#allocation71_spill] sm:$0xff] %v12510_v55 }
 0x98c   : > { %v8086_v26 = vpop.f32.mrf.mxu1 }
 0x98d   : > { %v12514_v41 = vadd.f32 %v8086_v26, %v8085_v37 }
 0x98f   : > { %13165 = vst [vmem:[#allocation79_spill] sm:$0xff] %v12514_v41  ;;  %v8088_v31 = vpop.f32.mrf.mxu1  ;;  %v12526_v41 = vpop.f32.mrf.mxu0 }
 0x990   : > { %13171 = vst [vmem:[#allocation85_spill] sm:$0xff] %v12526_v41 }
 0x991   : > { %v8089_v56 = vpop.f32.mrf.mxu1  ;;  %v12528_v51 = vpop.f32.mrf.mxu0 }
 0x992   : > { %v12518_v53 = vadd.f32 %v8089_v56, %v8088_v31  ;;  %13172 = vst [vmem:[#allocation86_spill] sm:$0xff] %v12528_v51 }
 0x993   : > { %v8091_v11 = vpop.f32.mrf.mxu1  ;;  %v12530_v45 = vpop.f32.mrf.mxu0 }
 0x994   : > { %13167 = vst [vmem:[#allocation81_spill] sm:$0xff] %v12518_v53  ;;  %13173 = vst [vmem:[#allocation87_spill] sm:$0xff] %v12530_v45 }
 0x995   : > { %v8092_v8 = vpop.f32.mrf.mxu1 }
 0x996   : > { %v12522_v58 = vadd.f32 %v8092_v8, %v8091_v11 }
 0x997   : > { %v8296_v32 = vpop.f32.mrf.mxu1 }
 0x998   : > { %13169 = vst [vmem:[#allocation83_spill] sm:$0xff] %v12522_v58  ;;  %v7697_v55 = vmul.f32 -1.442695, %v8296_v32 }
 0x999   : > { %v6879_v17 = vpop.f32.mrf.mxu1 }
 0x99a   : > { %8978 = vpow2.f32 %v7697_v55  ;;  %v7695_v37 = vmul.f32 -1.442695, %v6879_v17 }
 0x99b   : > { %v8297_v26 = vpop.f32.mrf.mxu1 }
 0x99c   : > { %8980 = vpow2.f32 %v7695_v37  ;;  %v7698_v40 = vmul.f32 -1.442695, %v8297_v26 }
 0x99d   : > { %v6882_v56 = vpop.f32.mrf.mxu1 }
 0x99e   : > { %8982 = vpow2.f32 %v7698_v40  ;;  %v7696_v31 = vmul.f32 -1.442695, %v6882_v56  ;;  %v12532_v40 = vpop.f32.mrf.mxu0 }
 0x99f   : > { %v8300_v53 = vpop.f32.mrf.mxu1  ;;  %13174 = vst [vmem:[#allocation88_spill] sm:$0xff] %v12532_v40 }
 0x9a0   : > { %8984 = vpow2.f32 %v7696_v31  ;;  %v7701_v8 = vmul.f32 -1.442695, %v8300_v53 }
 0x9a1   : > { %v6895_v11 = vpop.f32.mrf.mxu1 }
 0x9a2   : > { %8986 = vpow2.f32 %v7701_v8  ;;  %v7699_v58 = vmul.f32 -1.442695, %v6895_v11 }
 0x9a3   : > { %v8301_v32 = vpop.f32.mrf.mxu1 }
 0x9a4   : > { %8988 = vpow2.f32 %v7699_v58  ;;  %v7702_v17 = vmul.f32 -1.442695, %v8301_v32  ;;  %v12534_v58 = vpop.f32.mrf.mxu0 }
 0x9a5   : > { %v6898_v55 = vpop.f32.mrf.mxu1  ;;  %13175 = vst [vmem:[#allocation89_spill] sm:$0xff] %v12534_v58 }
 0x9a6   : > { %8990 = vpow2.f32 %v7702_v17  ;;  %v7700_v37 = vmul.f32 -1.442695, %v6898_v55 }
 0x9a7   : > { %v8979_v26 = vpop.eup %8978  ;;  %v8304_v41 = vpop.f32.mrf.mxu1 }
 0x9a8   : > { %v7104_v56 = vadd.f32 1.0, %v8979_v26  ;;  %8992 = vpow2.f32 %v7700_v37  ;;  %v7705_v51 = vmul.f32 -1.442695, %v8304_v41 }
 0x9a9   : > { %v8981_v31 = vpop.eup %8980  ;;  %v6911_v53 = vpop.f32.mrf.mxu1 }
 0x9aa   : > { %8994 = vrcp.f32 %v7104_v56  ;;  %v7102_v8 = vadd.f32 1.0, %v8981_v31  ;;  %v7703_v11 = vmul.f32 -1.442695, %v6911_v53  ;;  %v12536_v56 = vpop.f32.mrf.mxu0 }
 0x9ab   : > { %v8983_v18 = vpop.eup %8982  ;;  %8996 = vpow2.f32 %v7705_v51  ;;  %v8305_v45 = vpop.f32.mrf.mxu1 }
 0x9ac   : > { %8998 = vrcp.f32 %v7102_v8  ;;  %v7105_v32 = vadd.f32 1.0, %v8983_v18  ;;  %v7706_v17 = vmul.f32 -1.442695, %v8305_v45  ;;  %v8118_v18 = vadd.f32 %v12399_v7, %v12395_v1 }
 0x9ad   : > { %v8985_v55 = vpop.eup %8984  ;;  %9000 = vpow2.f32 %v7703_v11  ;;  %v6914_v30 = vpop.f32.mrf.mxu1 }
 0x9ae   : > { %9002 = vrcp.f32 %v7105_v32  ;;  %v7103_v26 = vadd.f32 1.0, %v8985_v55  ;;  %v7704_v37 = vmul.f32 -1.442695, %v6914_v30  ;;  %v12540_v32 = vpop.f32.mrf.mxu0 }
 0x9af   : > { %v8987_v41 = vpop.eup %8986  ;;  %9004 = vpow2.f32 %v7706_v17  ;;  %v8308_v40 = vpop.f32.mrf.mxu1  ;;  %13176 = vst [vmem:[#allocation90_spill] sm:$0xff] %v12540_v32 }
 0x9b0   : > { %9006 = vrcp.f32 %v7103_v26  ;;  %v7108_v31 = vadd.f32 1.0, %v8987_v41  ;;  %v7709_v51 = vmul.f32 -1.442695, %v8308_v40  ;;  %v8121_v40 = vadd.f32 %v12413_v59, %v12409_v22 }
 0x9b1   : > { %v8989_v53 = vpop.eup %8988  ;;  %9008 = vpow2.f32 %v7704_v37  ;;  %v6927_v58 = vpop.f32.mrf.mxu1  ;;  %v6679_v41 = vadd.f32 %v8118_v18, %v12350_v12  ;;  %v8130_v22 = vadd.f32 %v12438_v10, %v12436_v33 }
 0x9b2   : > { %9010 = vrcp.f32 %v7108_v31  ;;  %v7106_v45 = vadd.f32 1.0, %v8989_v53  ;;  %v7707_v8 = vmul.f32 -1.442695, %v6927_v58  ;;  %v12545_v53 = vpop.f32.mrf.mxu0  ;;  %v6682_v32 = vadd.f32 %v8121_v40, %v12355_v50 }
 0x9b3   : > { %v8991_v11 = vpop.eup %8990  ;;  %9012 = vpow2.f32 %v7709_v51  ;;  %v8309_v30 = vpop.f32.mrf.mxu1  ;;  %v8127_v50 = vadd.f32 %v12432_v21, %v12428_v6  ;;  %v6695_v6 = vadd.f32 %v8130_v22, %v12370_v44  ;;  %v8133_v21 = vadd.f32 %v12442_v36, %v12440_v4 }
 0x9b4   : > { %9014 = vrcp.f32 %v7106_v45  ;;  %v7109_v17 = vadd.f32 1.0, %v8991_v11  ;;  %v7710_v55 = vmul.f32 -1.442695, %v8309_v30 }
 0x9b5   : > { %v8993_v26 = vpop.eup %8992  ;;  %9016 = vpow2.f32 %v7707_v8  ;;  %v6930_v37 = vpop.f32.mrf.mxu1  ;;  %v13177_v8 = vld [vmem:[#allocation66_spill] sm:$0xff] }
 0x9b6   : > { %9018 = vrcp.f32 %v7109_v17  ;;  %v7107_v1 = vadd.f32 1.0, %v8993_v26  ;;  %v7708_v7 = vmul.f32 -1.442695, %v6930_v37 }
 0x9b7   : > { %v8995_v58 = vpop.eup %8994  ;;  %9020 = vpow2.f32 %v7710_v55  ;;  %v8312_v31 = vpop.f32.mrf.mxu1 }
 0x9b8   : > { %v8997_v51 = vpop.eup %8996  ;;  %v7200_v45 = vmul.f32 %v8995_v58, %v6679_v41  ;;  %9022 = vrcp.f32 %v7107_v1  ;;  %v7713_v11 = vmul.f32 -1.442695, %v8312_v31  ;;  %v8124_v41 = vadd.f32 %v12424_v20, %v12420_v52  ;;  %v12556_v1 = vpop.f32.mrf.mxu0 }
 0x9b9   : > { %v8999_v30 = vpop.eup %8998  ;;  %v7112_v59 = vadd.f32 1.0, %v8997_v51  ;;  %9024 = vpow2.f32 %v7708_v7  ;;  %v6943_v12 = vpop.f32.mrf.mxu1 }
 0x9ba   : > { %v9001_v18 = vpop.eup %9000  ;;  %v7232_v17 = vadd.f32 %v7200_v45, %v13177_v8  ;;  %v7198_v55 = vmul.f32 %v8999_v30, %v12343_v27  ;;  %9026 = vpow2.f32 %v7713_v11  ;;  %v7711_v26 = vmul.f32 -1.442695, %v6943_v12  ;;  %v13178_v27 = vld [vmem:[#allocation28_spill] sm:$0xff]  ;;  %v12571_v36 = vpop.f32.mrf.mxu0  ;;  %v13180_v8 = vld [vmem:[#allocation30_spill] sm:$0xff] }
 0x9bb   : > { %v9003_v37 = vpop.eup %9002  ;;  %9028 = vrcp.f32 %v7112_v59  ;;  %v7110_v33 = vadd.f32 1.0, %v9001_v18  ;;  %v8313_v10 = vpop.f32.mrf.mxu1  ;;  %v13179_v11 = vld [vmem:[#allocation32_spill] sm:$0xff]  ;;  %v6687_v18 = vadd.f32 %v8124_v41, %v12360_v42 }
 0x9bc   : > { %v9005_v40 = vpop.eup %9004  ;;  %7264 = vst [vmem:[%s12560_s4 + $0x10] sm:$0xff] %v7232_v17  ;;  %v7230_v7 = vadd.f32 %v7198_v55, %v13178_v27  ;;  %v7201_v58 = vmul.f32 %v9003_v37, %v6682_v32  ;;  %9030 = vpow2.f32 %v7711_v26  ;;  %v7714_v52 = vmul.f32 -1.442695, %v8313_v10 }
 0x9bd   : > { %v9007_v20 = vpop.eup %9006  ;;  %9032 = vrcp.f32 %v7110_v33  ;;  %v7113_v31 = vadd.f32 1.0, %v9005_v40  ;;  %v6946_v51 = vpop.f32.mrf.mxu1  ;;  %v6698_v33 = vadd.f32 %v8133_v21, %v12375_v25  ;;  %v13181_v40 = vld [vmem:[#allocation48_spill] sm:$0xff] }
 0x9be   : > { %v9009_v45 = vpop.eup %9008  ;;  %7262 = vst [vmem:[%s12560_s4] sm:$0xff] %v7230_v7  ;;  %v7233_v30 = vadd.f32 %v7201_v58, %v13179_v11  ;;  %v7199_v59 = vmul.f32 %v9007_v20, %v12345_v35  ;;  %9034 = vpow2.f32 %v7714_v52  ;;  %v7712_v32 = vmul.f32 -1.442695, %v6946_v51  ;;  %v12583_v21 = vpop.f32.mrf.mxu0 }
 0x9bf   : > { %v9011_v12 = vpop.eup %9010  ;;  %9036 = vrcp.f32 %v7113_v31  ;;  %v7111_v44 = vadd.f32 1.0, %v9009_v45  ;;  %v8316_v22 = vpop.f32.mrf.mxu1  ;;  %v6690_v35 = vadd.f32 %v8127_v50, %v12365_v14  ;;  %v8136_v20 = vadd.f32 %v12446_v13, %v12444_v48  ;;  %v13182_v31 = vld [vmem:[#allocation69_spill] sm:$0xff] }
 0x9c0   : > { %v9013_v4 = vpop.eup %9012  ;;  %7265 = vst [vmem:[%s12560_s4 + $0x18] sm:$0xff] %v7233_v30  ;;  %v7231_v17 = vadd.f32 %v7199_v59, %v13180_v8  ;;  %v7204_v55 = vmul.f32 %v9011_v12, %v6695_v6  ;;  %9038 = vpow2.f32 %v7712_v32  ;;  %v7717_v26 = vmul.f32 -1.442695, %v8316_v22  ;;  %v13183_v32 = vld [vmem:[#allocation36_spill] sm:$0xff]  ;;  %v12596_v8 = vpop.f32.mrf.mxu0 }
 0x9c1   : > { %v9015_v37 = vpop.eup %9014  ;;  %9040 = vrcp.f32 %v7111_v44  ;;  %v7116_v42 = vadd.f32 1.0, %v9013_v4  ;;  %v6959_v41 = vpop.f32.mrf.mxu1  ;;  %v8142_v14 = vadd.f32 %v12454_v38, %v12452_v24  ;;  %v8139_v48 = vadd.f32 %v12450_v9, %v12448_v62 }
 0x9c2   : > { %v9017_v10 = vpop.eup %9016  ;;  %7263 = vst [vmem:[%s12560_s4 + $0x8] sm:$0xff] %v7231_v17  ;;  %v7236_v27 = vadd.f32 %v7204_v55, %v13181_v40  ;;  %v7202_v7 = vmul.f32 %v9015_v37, %v6687_v18  ;;  %9042 = vpow2.f32 %v7717_v26  ;;  %v7715_v58 = vmul.f32 -1.442695, %v6959_v41  ;;  %v13184_v17 = vld [vmem:[#allocation34_spill] sm:$0xff] }
 0x9c3   : > { %v9019_v52 = vpop.eup %9018  ;;  %9044 = vrcp.f32 %v7116_v42  ;;  %v7114_v25 = vadd.f32 1.0, %v9017_v10  ;;  %v8317_v50 = vpop.f32.mrf.mxu1  ;;  %v8145_v13 = vadd.f32 %v12458_v2, %v12456_v29  ;;  %v6711_v4 = vadd.f32 %v8142_v14, %v12390_v49 }
 0x9c4   : > { %v9021_v6 = vpop.eup %9020  ;;  %7268 = vst [vmem:[%s12560_s4 + $0x30] sm:$0xff] %v7236_v27  ;;  %v7234_v51 = vadd.f32 %v7202_v7, %v13182_v31  ;;  %v7205_v45 = vmul.f32 %v9019_v52, %v6698_v33  ;;  %9046 = vpow2.f32 %v7715_v58  ;;  %v7718_v11 = vmul.f32 -1.442695, %v8317_v50  ;;  %v13185_v58 = vld [vmem:[#allocation72_spill] sm:$0xff] }
 0x9c5   : > { %v9023_v30 = vpop.eup %9022  ;;  %9048 = vrcp.f32 %v7114_v25  ;;  %v7117_v24 = vadd.f32 1.0, %v9021_v6  ;;  %v6962_v38 = vpop.f32.mrf.mxu1  ;;  %v8148_v62 = vadd.f32 %v12462_v16, %v12460_v0  ;;  %v6703_v33 = vadd.f32 %v8136_v20, %v12380_v60 }
 0x9c6   : > { %v9025_v59 = vpop.eup %9024  ;;  %7266 = vst [vmem:[%s12560_s4 + $0x20] sm:$0xff] %v7234_v51  ;;  %v7237_v12 = vadd.f32 %v7205_v45, %v13183_v32  ;;  %v7203_v18 = vmul.f32 %v9023_v30, %v6690_v35  ;;  %9050 = vpow2.f32 %v7718_v11  ;;  %v7716_v44 = vmul.f32 -1.442695, %v6962_v38  ;;  %v12608_v25 = vpop.f32.mrf.mxu0  ;;  %v13187_v38 = vld [vmem:[#allocation39_spill] sm:$0xff] }
 0x9c7   : > { %v9027_v22 = vpop.eup %9026  ;;  %9052 = vrcp.f32 %v7117_v24  ;;  %v7115_v9 = vadd.f32 1.0, %v9025_v59  ;;  %v8320_v29 = vpop.f32.mrf.mxu1  ;;  %v6706_v49 = vadd.f32 %v8139_v48, %v12385_v34  ;;  %v6714_v41 = vadd.f32 %v8145_v13, %v12397_v39 }
 0x9c8   : > { %v9029_v2 = vpop.eup %9028  ;;  %7269 = vst [vmem:[%s12560_s4 + $0x38] sm:$0xff] %v7237_v12  ;;  %v7235_v55 = vadd.f32 %v7203_v18, %v13184_v17  ;;  %v7120_v26 = vadd.f32 1.0, %v9027_v22  ;;  %9054 = vpow2.f32 %v7716_v44  ;;  %v7721_v37 = vmul.f32 -1.442695, %v8320_v29  ;;  %v12621_v18 = vpop.f32.mrf.mxu0 }
 0x9c9   : > { %v9031_v35 = vpop.eup %9030  ;;  %v7208_v42 = vmul.f32 %v9029_v2, %v6711_v4  ;;  %9056 = vrcp.f32 %v7115_v9  ;;  %v6975_v0 = vpop.f32.mrf.mxu1  ;;  %v8154_v7 = vadd.f32 %v12474_v43, %v12470_v19  ;;  %v6719_v14 = vadd.f32 %v8148_v62, %v12404_v54  ;;  %v13186_v19 = vld [vmem:[#allocation74_spill] sm:$0xff] }
 0x9ca   : > { %v9033_v16 = vpop.eup %9032  ;;  %7267 = vst [vmem:[%s12560_s4 + $0x28] sm:$0xff] %v7235_v55  ;;  %9058 = vrcp.f32 %v7120_v26  ;;  %v7118_v10 = vadd.f32 1.0, %v9031_v35  ;;  %v7719_v40 = vmul.f32 -1.442695, %v6975_v0  ;;  %v8151_v31 = vadd.f32 %v12466_v47, %v12464_v28  ;;  %v13189_v55 = vld [vmem:[#allocation58_spill] sm:$0xff] }
 0x9cb   : > { %v9035_v27 = vpop.eup %9034  ;;  %v7240_v52 = vadd.f32 %v7208_v42, %v13185_v58  ;;  %v7206_v60 = vmul.f32 %v9033_v16, %v6703_v33  ;;  %9060 = vpow2.f32 %v7721_v37  ;;  %v8321_v34 = vpop.f32.mrf.mxu1  ;;  %v8157_v54 = vadd.f32 %v12480_v63, %v12476_v3  ;;  %v13190_v37 = vld [vmem:[#allocation75_spill] sm:$0xff]  ;;  %v13191_v42 = vld [vmem:[#allocation50_spill] sm:$0xff] }
 0x9cc   : > { %v9037_v20 = vpop.eup %9036  ;;  %9062 = vrcp.f32 %v7118_v10  ;;  %v7121_v39 = vadd.f32 1.0, %v9035_v27  ;;  %v7722_v50 = vmul.f32 -1.442695, %v8321_v34  ;;  %v6727_v24 = vadd.f32 %v8154_v7, %v12418_v15  ;;  %v13188_v15 = vld [vmem:[#allocation37_spill] sm:$0xff]  ;;  %v12632_v16 = vpop.f32.mrf.mxu0 }
 0x9cd   : > { %v9039_v6 = vpop.eup %9038  ;;  %7272 = vst [vmem:[%s12560_s4 + $0x50] sm:$0xff] %v7240_v52  ;;  %v7238_v43 = vadd.f32 %v7206_v60, %v13186_v19  ;;  %v7209_v51 = vmul.f32 %v9037_v20, %v6714_v41  ;;  %9064 = vpow2.f32 %v7719_v40  ;;  %v6978_v45 = vpop.f32.mrf.mxu1  ;;  %v8166_v12 = vadd.f32 %v12504_v57, %v12500_v23  ;;  %v13192_v40 = vld [vmem:[#allocation52_spill] sm:$0xff]  ;;  %v13193_v27 = vld [vmem:[#allocation73_spill] sm:$0xff]  ;;  %v13195_v20 = vld [vmem:[#allocation62_spill] sm:$0xff] }
 0x9ce   : > { %v9041_v11 = vpop.eup %9040  ;;  %9066 = vrcp.f32 %v7121_v39  ;;  %v7119_v30 = vadd.f32 1.0, %v9039_v6  ;;  %v7720_v48 = vmul.f32 -1.442695, %v6978_v45  ;;  %v6722_v22 = vadd.f32 %v8151_v31, %v12411_v46  ;;  %v13197_v19 = vld [vmem:[#allocation63_spill] sm:$0xff] }
 0x9cf   : > { %v9043_v13 = vpop.eup %9042  ;;  %7270 = vst [vmem:[%s12560_s4 + $0x40] sm:$0xff] %v7238_v43  ;;  %v7241_v28 = vadd.f32 %v7209_v51, %v13187_v38  ;;  %v7207_v47 = vmul.f32 %v9041_v11, %v6706_v49  ;;  %9068 = vpow2.f32 %v7722_v50  ;;  %v8324_v59 = vpop.f32.mrf.mxu1  ;;  %v6730_v2 = vadd.f32 %v8157_v54, %v12422_v61  ;;  %v13198_v11 = vld [vmem:[#allocation46_spill] sm:$0xff] }
 0x9d0   : > { %v9045_v32 = vpop.eup %9044  ;;  %9070 = vrcp.f32 %v7119_v30  ;;  %v7124_v3 = vadd.f32 1.0, %v9043_v13  ;;  %v7725_v63 = vmul.f32 -1.442695, %v8324_v59  ;;  %v8160_v26 = vadd.f32 %v13189_v55, %v12484_v5  ;;  %v13194_v5 = vld [vmem:[#allocation77_spill] sm:$0xff]  ;;  %v13199_v30 = vld [vmem:[#allocation51_spill] sm:$0xff]  ;;  %v13207_v55 = vld [vmem:[#allocation82_spill] sm:$0xff] }
 0x9d1   : > { %v9047_v44 = vpop.eup %9046  ;;  %7273 = vst [vmem:[%s12560_s4 + $0x58] sm:$0xff] %v7241_v28  ;;  %v7239_v4 = vadd.f32 %v7207_v47, %v13188_v15  ;;  %v7212_v62 = vmul.f32 %v9045_v32, %v6727_v24  ;;  %9072 = vpow2.f32 %v7720_v48  ;;  %v6991_v9 = vpop.f32.mrf.mxu1  ;;  %v6743_v0 = vadd.f32 %v8166_v12, %v13191_v42  ;;  %v13200_v48 = vld [vmem:[#allocation55_spill] sm:$0xff] }
 0x9d2   : > { %v9049_v29 = vpop.eup %9048  ;;  %9074 = vrcp.f32 %v7124_v3  ;;  %v7122_v23 = vadd.f32 1.0, %v9047_v44  ;;  %v7723_v57 = vmul.f32 -1.442695, %v6991_v9  ;;  %v8057_v7 = vadd.f32 %v13193_v27, %v13192_v40  ;;  %v12645_v24 = vpop.f32.mrf.mxu0  ;;  %v13201_v47 = vld [vmem:[#allocation43_spill] sm:$0xff]  ;;  %v13211_v40 = vld [vmem:[#allocation89_spill] sm:$0xff] }
 0x9d3   : > { %v9051_v17 = vpop.eup %9050  ;;  %7271 = vst [vmem:[%s12560_s4 + $0x48] sm:$0xff] %v7239_v4  ;;  %v7244_v46 = vadd.f32 %v7212_v62, %v13190_v37  ;;  %v7210_v35 = vmul.f32 %v9049_v29, %v6719_v14  ;;  %9076 = vpow2.f32 %v7725_v63  ;;  %v8325_v33 = vpop.f32.mrf.mxu1  ;;  %v13196_v14 = vld [vmem:[#allocation44_spill] sm:$0xff]  ;;  %v6735_v54 = vadd.f32 %v8160_v26, %v13198_v11  ;;  %v13202_v63 = vld [vmem:[#allocation86_spill] sm:$0xff]  ;;  %v13203_v44 = vld [vmem:[#allocation87_spill] sm:$0xff] }
 0x9d4   : > { %v9053_v49 = vpop.eup %9052  ;;  %9078 = vrcp.f32 %v7122_v23  ;;  %v7125_v61 = vadd.f32 1.0, %v9051_v17  ;;  %v7726_v41 = vmul.f32 -1.442695, %v8325_v33  ;;  %v8169_v39 = vadd.f32 %v13196_v14, %v13195_v20  ;;  %v13204_v15 = vld [vmem:[#allocation31_spill] sm:$0xff]  ;;  %v13205_v23 = vld [vmem:[#allocation65_spill] sm:$0xff]  ;;  %v13206_v17 = vld [vmem:[#allocation80_spill] sm:$0xff]  ;;  %v12656_v37 = vpop.f32.mrf.mxu0 }
 0x9d5   : > { %v9055_v10 = vpop.eup %9054  ;;  %7276 = vst [vmem:[%s12560_s4 + $0x70] sm:$0xff] %v7244_v46  ;;  %v7242_v58 = vadd.f32 %v7210_v35, %v13194_v5  ;;  %v7213_v52 = vmul.f32 %v9053_v49, %v6730_v2  ;;  %9080 = vpow2.f32 %v7723_v57  ;;  %v6994_v60 = vpop.f32.mrf.mxu1  ;;  %v8163_v13 = vadd.f32 %v13200_v48, %v13199_v30  ;;  %v13208_v46 = vld [vmem:[#allocation29_spill] sm:$0xff]  ;;  %v13213_v20 = vld [vmem:[#allocation54_spill] sm:$0xff] }
 0x9d6   : > { %v9057_v34 = vpop.eup %9056  ;;  %9082 = vrcp.f32 %v7125_v61  ;;  %v7123_v50 = vadd.f32 1.0, %v9055_v10  ;;  %v7724_v6 = vmul.f32 -1.442695, %v6994_v60  ;;  %v6746_v3 = vadd.f32 %v8169_v39, %v8057_v7  ;;  %v13209_v61 = vld [vmem:[#allocation76_spill] sm:$0xff]  ;;  %v13212_v7 = vld [vmem:[#allocation47_spill] sm:$0xff]  ;;  %v13217_v30 = vld [vmem:[#allocation49_spill] sm:$0xff] }
 0x9d7   : > { %v9059_v31 = vpop.eup %9058  ;;  %7274 = vst [vmem:[%s12560_s4 + $0x60] sm:$0xff] %v7242_v58  ;;  %v7245_v43 = vadd.f32 %v7213_v52, %v13197_v19  ;;  %v7211_v51 = vmul.f32 %v9057_v34, %v6722_v22  ;;  %9084 = vpow2.f32 %v7726_v41  ;;  %v8178_v22 = vadd.f32 %v13203_v44, %v13202_v63  ;;  %v13210_v10 = vld [vmem:[#allocation88_spill] sm:$0xff]  ;;  %v13216_v19 = vld [vmem:[#allocation45_spill] sm:$0xff] }
 0x9d8   : > { %v9061_v45 = vpop.eup %9060  ;;  %v7216_v38 = vmul.f32 %v9059_v31, %v6743_v0  ;;  %9086 = vrcp.f32 %v7123_v50  ;;  %v6738_v57 = vadd.f32 %v8163_v13, %v13205_v23  ;;  %v8172_v26 = vadd.f32 %v13207_v55, %v13206_v17  ;;  %v13214_v39 = vld [vmem:[#allocation84_spill] sm:$0xff]  ;;  %v13215_v50 = vld [vmem:[#allocation85_spill] sm:$0xff]  ;;  %v8200_v31 = vpop.f32.mrf.mxu0  ;;  %v13223_v17 = vld [vmem:[#allocation59_spill] sm:$0xff] }
 0x9d9   : > { %v9063_v28 = vpop.eup %9062  ;;  %7277 = vst [vmem:[%s12560_s4 + $0x78] sm:$0xff] %v7245_v43  ;;  %v7243_v59 = vadd.f32 %v7211_v51, %v13201_v47  ;;  %v7128_v32 = vadd.f32 1.0, %v9061_v45  ;;  %9088 = vpow2.f32 %v7724_v6  ;;  %v6759_v41 = vadd.f32 %v8178_v22, %v13209_v61  ;;  %v13218_v13 = vld [vmem:[#allocation40_spill] sm:$0xff]  ;;  %v13220_v22 = vld [vmem:[#allocation38_spill] sm:$0xff] }
 0x9da   : > { %v9065_v12 = vpop.eup %9064  ;;  %v7248_v4 = vadd.f32 %v7216_v38, %v13204_v15  ;;  %v7214_v62 = vmul.f32 %v9063_v28, %v6735_v54  ;;  %v8181_v27 = vadd.f32 %v13211_v40, %v13210_v10  ;;  %v6751_v14 = vadd.f32 %v8172_v26, %v13213_v20  ;;  %v8201_v44 = vpop.f32.mrf.mxu0  ;;  %v13226_v40 = vld [vmem:[#allocation60_spill] sm:$0xff] }
 0x9db   : > { %v9067_v9 = vpop.eup %9066  ;;  %7275 = vst [vmem:[%s12560_s4 + $0x68] sm:$0xff] %v7243_v59  ;;  %9090 = vrcp.f32 %v7128_v32  ;;  %v7126_v29 = vadd.f32 1.0, %v9065_v12  ;;  %v8175_v6 = vadd.f32 %v13215_v50, %v13214_v39  ;;  %v8190_v59 = vadd.f32 %v12583_v21, %v12571_v36  ;;  %v13222_v36 = vld [vmem:[#allocation67_spill] sm:$0xff]  ;;  %v13230_v50 = vld [vmem:[#allocation81_spill] sm:$0xff] }
 0x9dc   : > { %v9069_v2 = vpop.eup %9068  ;;  %7280 = vst [vmem:[%s12560_s4 + $0x90] sm:$0xff] %v7248_v4  ;;  %v7246_v35 = vadd.f32 %v7214_v62, %v13208_v46  ;;  %v7217_v33 = vmul.f32 %v9067_v9, %v6746_v3  ;;  %v6762_v48 = vadd.f32 %v8181_v27, %v13217_v30  ;;  %v13219_v3 = vld [vmem:[#allocation56_spill] sm:$0xff]  ;;  %v13221_v9 = vld [vmem:[#allocation90_spill] sm:$0xff]  ;;  %v8193_v26 = vadd.f32 %v12608_v25, %v12596_v8  ;;  %v13227_v27 = vld [vmem:[#allocation41_spill] sm:$0xff] }
 0x9dd   : > { %v9071_v49 = vpop.eup %9070  ;;  %9092 = vrcp.f32 %v7126_v29  ;;  %v7129_v42 = vadd.f32 1.0, %v9069_v2  ;;  %v6754_v63 = vadd.f32 %v8175_v6, %v13219_v3  ;;  %v8184_v29 = vadd.f32 %v13221_v9, %v12536_v56  ;;  %v13236_v3 = vld [vmem:[#allocation79_spill] sm:$0xff]  ;;  %v13240_v9 = vld [vmem:[#allocation68_spill] sm:$0xff] }
 0x9de   : > { %v9073_v0 = vpop.eup %9072  ;;  %7278 = vst [vmem:[%s12560_s4 + $0x80] sm:$0xff] %v7246_v35  ;;  %v7249_v5 = vadd.f32 %v7217_v33, %v13212_v7  ;;  %v7215_v58 = vmul.f32 %v9071_v49, %v6738_v57  ;;  %v6775_v55 = vadd.f32 %v8190_v59, %v13223_v17  ;;  %v8203_v33 = vpop.f32.mrf.mxu0  ;;  %v13224_v49 = vld [vmem:[#allocation78_spill] sm:$0xff]  ;;  %v8187_v61 = vadd.f32 %v12556_v1, %v12545_v53  ;;  %v13229_v53 = vld [vmem:[#allocation61_spill] sm:$0xff] }
 0x9df   : > { %v9075_v52 = vpop.eup %9074  ;;  %9094 = vrcp.f32 %v7129_v42  ;;  %v7127_v60 = vadd.f32 1.0, %v9073_v0  ;;  %v13225_v42 = vld [vmem:[#allocation53_spill] sm:$0xff]  ;;  %v6778_v8 = vadd.f32 %v8193_v26, %v13226_v40  ;;  %v8202_v25 = vadd.f32 %v8201_v44, %v8200_v31 }
 0x9e0   : > { %v9077_v34 = vpop.eup %9076  ;;  %7281 = vst [vmem:[%s12560_s4 + $0x98] sm:$0xff] %v7249_v5  ;;  %v7247_v43 = vadd.f32 %v7215_v58, %v13216_v19  ;;  %v7220_v51 = vmul.f32 %v9075_v52, %v6759_v41  ;;  %v6767_v0 = vadd.f32 %v8184_v29, %v13225_v42  ;;  %v8204_v52 = vpop.f32.mrf.mxu0  ;;  %v8196_v20 = vadd.f32 %v12632_v16, %v12621_v18  ;;  %v13231_v19 = vld [vmem:[#allocation35_spill] sm:$0xff]  ;;  %v13233_v16 = vld [vmem:[#allocation33_spill] sm:$0xff] }
 0x9e1   : > { %v9079_v45 = vpop.eup %9078  ;;  %9096 = vrcp.f32 %v7127_v60  ;;  %v7132_v11 = vadd.f32 1.0, %v9077_v34  ;;  %v13228_v60 = vld [vmem:[#allocation57_spill] sm:$0xff]  ;;  %v6791_v6 = vadd.f32 %v8202_v25, %v13230_v50  ;;  %v8205_v31 = vadd.f32 %v8204_v52, %v8203_v33 }
 0x9e2   : > { %v9081_v54 = vpop.eup %9080  ;;  %7279 = vst [vmem:[%s12560_s4 + $0x88] sm:$0xff] %v7247_v43  ;;  %v7252_v38 = vadd.f32 %v7220_v51, %v13218_v13  ;;  %v7218_v28 = vmul.f32 %v9079_v45, %v6751_v14  ;;  %v6770_v34 = vadd.f32 %v8187_v61, %v13228_v60  ;;  %v8199_v18 = vadd.f32 %v12656_v37, %v12645_v24  ;;  %v13237_v24 = vld [vmem:[#allocation42_spill] sm:$0xff] }
 0x9e3   : > { %v9083_v47 = vpop.eup %9082  ;;  %9098 = vrcp.f32 %v7132_v11  ;;  %v7130_v32 = vadd.f32 1.0, %v9081_v54  ;;  %v13232_v11 = vld [vmem:[#allocation71_spill] sm:$0xff] }
 0x9e4   : > { %v9085_v12 = vpop.eup %9084  ;;  %7284 = vst [vmem:[%s12560_s4 + $0xb0] sm:$0xff] %v7252_v38  ;;  %v7250_v15 = vadd.f32 %v7218_v28, %v13220_v22  ;;  %v7221_v4 = vmul.f32 %v9083_v47, %v6762_v48  ;;  %v6783_v54 = vadd.f32 %v8196_v20, %v13232_v11  ;;  %v13234_v38 = vld [vmem:[#allocation83_spill] sm:$0xff]  ;;  %v13235_v47 = vld [vmem:[#allocation64_spill] sm:$0xff] }
 0x9e5   : > { %v9087_v62 = vpop.eup %9086  ;;  %9100 = vrcp.f32 %v7130_v32  ;;  %v7133_v2 = vadd.f32 1.0, %v9085_v12  ;;  %v6794_v28 = vadd.f32 %v8205_v31, %v13234_v38 }
 0x9e6   : > { %v9089_v23 = vpop.eup %9088  ;;  %7282 = vst [vmem:[%s12560_s4 + $0xa0] sm:$0xff] %v7250_v15  ;;  %v7253_v21 = vadd.f32 %v7221_v4, %v13222_v36  ;;  %v7219_v57 = vmul.f32 %v9087_v62, %v6754_v63  ;;  %v6786_v63 = vadd.f32 %v8199_v18, %v13236_v3  ;;  %v13238_v15 = vld [vmem:[#allocation70_spill] sm:$0xff] }
 0x9e7   : > { %9102 = vrcp.f32 %v7133_v2  ;;  %v7131_v46 = vadd.f32 1.0, %v9089_v23 }
 0x9e8   : > { %v9091_v35 = vpop.eup %9090  ;;  %7285 = vst [vmem:[%s12560_s4 + $0xb8] sm:$0xff] %v7253_v21  ;;  %v7251_v56 = vadd.f32 %v7219_v57, %v13224_v49 }
 0x9e9   : > { %v7224_v41 = vmul.f32 %v9091_v35, %v6775_v55  ;;  %9104 = vrcp.f32 %v7131_v46 }
 0x9ea   : > { %v9093_v10 = vpop.eup %9092  ;;  %7283 = vst [vmem:[%s12560_s4 + $0xa8] sm:$0xff] %v7251_v56 }
 0x9eb   : > { %v7256_v7 = vadd.f32 %v7224_v41, %v13227_v27  ;;  %v7222_v5 = vmul.f32 %v9093_v10, %v6767_v0 }
 0x9ec   : > { %v9095_v58 = vpop.eup %9094 }
 0x9ed   : > { %7288 = vst [vmem:[%s12560_s4 + $0xd0] sm:$0xff] %v7256_v7  ;;  %v7254_v1 = vadd.f32 %v7222_v5, %v13229_v53  ;;  %v7225_v14 = vmul.f32 %v9095_v58, %v6778_v8 }
 0x9ee   : > { %v9097_v39 = vpop.eup %9096 }
 0x9ef   : > { %7286 = vst [vmem:[%s12560_s4 + $0xc0] sm:$0xff] %v7254_v1  ;;  %v7257_v43 = vadd.f32 %v7225_v14, %v13231_v19  ;;  %v7223_v51 = vmul.f32 %v9097_v39, %v6770_v34 }
 0x9f0   : > { %v9099_v45 = vpop.eup %9098 }
 0x9f1   : > { %7289 = vst [vmem:[%s12560_s4 + $0xd8] sm:$0xff] %v7257_v43  ;;  %v7255_v30 = vadd.f32 %v7223_v51, %v13233_v16  ;;  %v7228_v48 = vmul.f32 %v9099_v45, %v6791_v6 }
 0x9f2   : > { %v9101_v13 = vpop.eup %9100 }
 0x9f3   : > { %7287 = vst [vmem:[%s12560_s4 + $0xc8] sm:$0xff] %v7255_v30  ;;  %v7260_v59 = vadd.f32 %v7228_v48, %v13235_v47  ;;  %v7226_v32 = vmul.f32 %v9101_v13, %v6783_v54 }
 0x9f4   : > { %v9103_v12 = vpop.eup %9102 }
 0x9f5   : > { %7292 = vst [vmem:[%s12560_s4 + $0xf0] sm:$0xff] %v7260_v59  ;;  %v7258_v37 = vadd.f32 %v7226_v32, %v13237_v24  ;;  %v7229_v44 = vmul.f32 %v9103_v12, %v6794_v28 }
 0x9f6   : > { %v9105_v22 = vpop.eup %9104 }
 0x9f7   : > { %7290 = vst [vmem:[%s12560_s4 + $0xe0] sm:$0xff] %v7258_v37  ;;  %v7261_v4 = vadd.f32 %v7229_v44, %v13238_v15  ;;  %v7227_v62 = vmul.f32 %v9105_v22, %v6786_v63 }
 0x9f9   : > { %7293 = vst [vmem:[%s12560_s4 + $0xf8] sm:$0xff] %v7261_v4  ;;  %v7259_v29 = vadd.f32 %v7227_v62, %v13240_v9 }
 0x9fb   : > { %7291 = vst [vmem:[%s12560_s4 + $0xe8] sm:$0xff] %v7259_v29 }
 0x9fc   : > { %9419 = shalt.err (!%p9416_p13)
}
 0x9fd   : > { %s9420_s4 = scalar_lea.hbm %s12719_s22, 4096  ;;  %s9424_s23 = scalar_lea.hbm %s13239_s12, 8192 }
 0x9fe   : > { %p9421_p1 = scmp.ne.s32.totalorder %s12719_s22, %s9420_s4  ;;  %p9425_p0 = scmp.lt.s32.totalorder %s12719_s22, %s13239_s12 }
 0x9ff   : > { %p9426_p2 = scmp.lt.s32.totalorder %s9424_s23, %s9420_s4 }
 0xa00   : > { %p9422_p3 = pnand %p9421_p1, %p13241_p12 }
 0xa01   : > { %p9427_p5 = por %p9426_p2, %p9425_p0 }
 0xa02   : > { %p9423_p4 = pneg %p9422_p3 }
 0xa04   : > { %p9428_p11 = pnand %p9427_p5, %p9423_p4 }
 0xa06   : > { %9431 = shalt.err (!%p9428_p11)
}
 0xa07   : > { %s9511_s6 = smov 128   ;;  %s9512_s16 = smov 8  }
 0xa08   : > { %s13242_s17 = scalar_lea.sflag [#allocation4], %s9840_s5 }
 0xa09   : > { %8368 = dma.vmem_to_hbm [thread:$0]  (%p13241_p12), %s12721_s13, 4096, %s12719_s22, %s13242_s17, %s9511_s6, %s9511_s6, %s9512_s16  }
 0xa0a PF: > { %s7323_s15 = sand.u32 1, %s9478_s2   ;;  %p13243_p7 = scmp.ne.s32.totalorder %s12928_s3, 0 }
 0xa0b   : > { %p13244_p6 = scmp.ge.s32.totalorder %s9490_s27, 2  ;;  %s7324_s7 = scalar_lea.sflag [#allocation4], %s7323_s15 }
 0xa0d   : > { %p8406_p8 = pnand %p13244_p6, %p13243_p7 }
 0xa0f   : > { %p8407_p9 = pneg %p8406_p8 }
 0xa11   : > { %9473 = dma.done.wait (%p8407_p9), %s7324_s7, 4096  }
 0xa12   : > { %9475 = vsyncadd (%p8407_p9), %s7324_s7, 4294963200  ;;  %p39_p10 = scmp.ge.s32.totalorder %s9768_s1, 4   ;;  %s13245_s2 = smov %s9482_s25 }
 0xa13   : > { %s13246_s25 = smov %s9486_s26  ;;  %s13247_s26 = smov %s9779_s21 }
 0xa14   : > { %s13248_s27 = smov %s9768_s1  ;;  %41 = sbr.rel (!%p39_p10) target bundleno = 28 (0x1c), region = 189 }
 0xa19   :  { %7329 = vsyncpa [#allocation3], 1 }
 0xa1a   :  { %7331 = vsyncpa [#allocation3 + $0x1], 1 }
 0xa1b   :  { %7332 = vsyncpa [#allocation6], 1 }
 0xa1c   :  { %7333 = vsyncpa [#allocation9], 1 }
 0xa1d   :  { %7334 = vsyncpa [#allocation12], 1 }
 0xa1e   :  { %7335 = vsyncpa [#allocation15], 1 }
 0xa1f   :  { %7336 = vsyncpa [#allocation18], 1 }
 0xa20   :  { %7337 = vsyncpa [#allocation4], 1 }
 0xa21   :  { %7339 = vsyncpa [#allocation4 + $0x1], 1 }

</bundles_post_ra>
